<compile_context>
chip_gen: v7x
topology: tpu7x:2x2x1
jax: 0.10.0
libtpu: 0.0.40
codegen_flags: <defaults>
</compile_context>

<pallas_src>
import functools

import jax
import jax.numpy as jnp
from jax.experimental import pallas as pl
from jax.experimental.pallas import tpu as pltpu


def _rup(x, m):
    return ((x + m - 1) // m) * m


# --------------------------------------------------------------------------
# Fused Pallas kernel:  out = act( (A @ B) * scale + shift [+ residual] )
#   A: (tm, tk) bf16   B: (tk, tn) bf16   scale/shift: (1, tn) f32
#   residual: (tm, tn) f32.  fp32 accumulation in VMEM scratch; epilogue and
#   output store only on the last K step.
# --------------------------------------------------------------------------
def _mm_bn_kernel(a_ref, b_ref, s_ref, t_ref, o_ref, acc_ref, *, relu):
    @pl.when(pl.program_id(2) == 0)
    def _():
        acc_ref[...] = jnp.zeros_like(acc_ref)

    acc_ref[...] += jnp.dot(a_ref[...], b_ref[...],
                            preferred_element_type=jnp.float32)

    @pl.when(pl.program_id(2) == pl.num_programs(2) - 1)
    def _():
        y = acc_ref[...] * s_ref[...] + t_ref[...]
        if relu:
            y = jnp.maximum(y, 0.0)
        o_ref[...] = y.astype(o_ref.dtype)


def _mm_bn_res_kernel(a_ref, b_ref, s_ref, t_ref, r_ref, o_ref, acc_ref, *, relu):
    @pl.when(pl.program_id(2) == 0)
    def _():
        acc_ref[...] = jnp.zeros_like(acc_ref)

    acc_ref[...] += jnp.dot(a_ref[...], b_ref[...],
                            preferred_element_type=jnp.float32)

    @pl.when(pl.program_id(2) == pl.num_programs(2) - 1)
    def _():
        y = acc_ref[...] * s_ref[...] + t_ref[...] + r_ref[...]
        if relu:
            y = jnp.maximum(y, 0.0)
        o_ref[...] = y.astype(o_ref.dtype)


def _pick_tk(Kp):
    if Kp <= 1024:                 # single K step, no output revisits
        return Kp
    for t in (512, 384, 256, 128):
        if Kp % t == 0:
            return t
    return 128


def fused_matmul(a, b, scale, shift, residual=None, relu=True):
    """a: (M, Kp) bf16, b: (Kp, Np) bf16, scale/shift: (1, Np) f32,
    residual: (M, <=Np) f32 or None. Returns (Mp, Np) f32; caller crops."""
    M, Kp = a.shape
    Kp2, Np = b.shape
    assert Kp == Kp2
    tn = 256 if (Np >= 512 and Np % 256 == 0) else 128
    tk = _pick_tk(Kp)
    if M >= 256:
        tm = 128
    elif M >= 128:
        tm = 128 if Np // tn >= 2 else 64      # keep >=2 parallel programs (v7x)
    else:
        tm = _rup(M, 16)
    Mp = _rup(M, tm)
    if Mp != M:
        a = jnp.pad(a, ((0, Mp - M), (0, 0)))

    a_spec = pl.BlockSpec((tm, tk), lambda i, j, k: (i, k))
    b_spec = pl.BlockSpec((tk, tn), lambda i, j, k: (k, j))
    v_spec = pl.BlockSpec((1, tn), lambda i, j, k: (0, j))
    o_spec = pl.BlockSpec((tm, tn), lambda i, j, k: (i, j))

    if residual is None:
        kern = functools.partial(_mm_bn_kernel, relu=relu)
        ins = (a, b, scale, shift)
        in_specs = [a_spec, b_spec, v_spec, v_spec]
    else:
        r = jnp.pad(residual.astype(jnp.float32),
                    ((0, Mp - M), (0, Np - residual.shape[1])))
        kern = functools.partial(_mm_bn_res_kernel, relu=relu)
        ins = (a, b, scale, shift, r)
        in_specs = [a_spec, b_spec, v_spec, v_spec, o_spec]

    return pl.pallas_call(
        kern,
        out_shape=jax.ShapeDtypeStruct((Mp, Np), jnp.float32),
        grid_spec=pltpu.PrefetchScalarGridSpec(
            num_scalar_prefetch=0,
            grid=(Mp // tm, Np // tn, Kp // tk),
            in_specs=in_specs,
            out_specs=o_spec,
            scratch_shapes=[pltpu.VMEM((tm, tn), jnp.float32)]),
        compiler_params=pltpu.CompilerParams(
            dimension_semantics=("parallel", "parallel", "arbitrary")),
    )(*ins)


# --------------------------------------------------------------------------
# Conv2d = im2col (bf16, built lazily under jit) + fused Pallas matmul
# --------------------------------------------------------------------------
def _im2col_bf16(x, kh, kw, stride, pad):
    x = x.astype(jnp.bfloat16)
    N, H, W, C = x.shape
    OH = (H + 2 * pad - kh) // stride + 1
    OW = (W + 2 * pad - kw) // stride + 1
    if pad:
        x = jnp.pad(x, ((0, 0), (pad, pad), (pad, pad), (0, 0)))
    if kh == 1 and kw == 1:
        if stride != 1:
            x = x[:, ::stride, ::stride, :]
        return x.reshape(N * OH * OW, C), OH, OW
    taps = [x[:, i:i + stride * OH:stride, j:j + stride * OW:stride, :]
            for i in range(kh) for j in range(kw)]
    patches = jnp.stack(taps, axis=3)              # [N, OH, OW, kh*kw, C]
    return patches.reshape(N * OH * OW, kh * kw * C), OH, OW


def conv_bn_act(x, cp, relu=True, residual=None):
    N = x.shape[0]
    patches, OH, OW = _im2col_bf16(x, cp['kh'], cp['kw'], cp['stride'], cp['pad'])
    M, K = patches.shape
    Kp, _ = cp['w'].shape
    if Kp != K:
        patches = jnp.pad(patches, ((0, 0), (0, Kp - K)))
    res2d = residual.reshape(M, -1) if residual is not None else None
    y = fused_matmul(patches, cp['w'], cp['scale'], cp['shift'],
                     residual=res2d, relu=relu)
    return y[:M, :cp['cout']].reshape(N, OH, OW, cp['cout'])


# --------------------------------------------------------------------------
# MaxPool 3x3 / stride 2 / pad 1: the 9-way max tree is left to XLA fusion
# under jit (per perf review, a Pallas kernel here only added a 9x HBM
# materialization of the taps for a trivial reduction).
# --------------------------------------------------------------------------
def maxpool2d(x, k=3, stride=2, pad=1):
    N, H, W, C = x.shape
    OH = (H + 2 * pad - k) // stride + 1
    OW = (W + 2 * pad - k) // stride + 1
    xp = jnp.pad(x, ((0, 0), (pad, pad), (pad, pad), (0, 0)),
                 constant_values=-jnp.inf)
    out = None
    for i in range(k):
        for j in range(k):
            tap = xp[:, i:i + stride * OH:stride, j:j + stride * OW:stride, :]
            out = tap if out is None else jnp.maximum(out, tap)
    return out


# --------------------------------------------------------------------------
# Global average pool (adaptive avg pool to 1x1) as a C-tiled Pallas reduction
# --------------------------------------------------------------------------
def _avgpool_kernel(x_ref, o_ref):
    o_ref[...] = jnp.mean(x_ref[...], axis=1)


def avgpool_global(x, tc=128):
    N, H, W, C = x.shape
    xr = x.reshape(N, H * W, C)
    if C % tc != 0:
        tc = C
    return pl.pallas_call(
        _avgpool_kernel,
        out_shape=jax.ShapeDtypeStruct((N, C), jnp.float32),
        grid_spec=pltpu.PrefetchScalarGridSpec(
            num_scalar_prefetch=0,
            grid=(C // tc,),
            in_specs=[pl.BlockSpec((N, H * W, tc), lambda j: (0, 0, j))],
            out_specs=pl.BlockSpec((N, tc), lambda j: (0, j))),
        compiler_params=pltpu.CompilerParams(dimension_semantics=("parallel",)),
    )(xr)


# --------------------------------------------------------------------------
# ResNet-18 parameters: deterministic synthetic init, pre-packed into the
# padded bf16 (Kp, Np) matmul layout + folded BN scale/shift (done ONCE).
# --------------------------------------------------------------------------
def _conv_w(key, kh, kw, cin, cout):
    std = (2.0 / (kh * kw * cin)) ** 0.5
    return std * jax.random.normal(key, (kh, kw, cin, cout), jnp.float32)


def _bn_fold(key, c, eps=1e-5):
    k1, k2, k3, k4 = jax.random.split(key, 4)
    gamma = 1.0 + 0.1 * jax.random.normal(k1, (c,), jnp.float32)
    beta = 0.1 * jax.random.normal(k2, (c,), jnp.float32)
    mean = 0.1 * jax.random.normal(k3, (c,), jnp.float32)
    var = jax.random.uniform(k4, (c,), jnp.float32, 0.5, 1.5)
    scale = gamma / jnp.sqrt(var + eps)
    shift = beta - mean * scale
    return scale, shift


def _prep_conv(w_hwio, scale, shift, stride, pad):
    kh, kw, cin, cout = w_hwio.shape
    K = kh * kw * cin
    Kp, Np = _rup(K, 128), _rup(cout, 128)
    w2 = jnp.pad(w_hwio.reshape(K, cout).astype(jnp.bfloat16),
                 ((0, Kp - K), (0, Np - cout)))
    return {
        'w': w2,
        'scale': jnp.pad(scale.reshape(1, cout), ((0, 0), (0, Np - cout))),
        'shift': jnp.pad(shift.reshape(1, cout), ((0, 0), (0, Np - cout))),
        'kh': kh, 'kw': kw, 'stride': stride, 'pad': pad, 'cout': cout,
    }


def _block_params(key, cin, cout, stride):
    ks = jax.random.split(key, 6)
    p = {
        'conv1': _prep_conv(_conv_w(ks[0], 3, 3, cin, cout),
                            *_bn_fold(ks[1], cout), stride=stride, pad=1),
        'conv2': _prep_conv(_conv_w(ks[2], 3, 3, cout, cout),
                            *_bn_fold(ks[3], cout), stride=1, pad=1),
    }
    if stride != 1 or cin != cout:
        p['down'] = _prep_conv(_conv_w(ks[4], 1, 1, cin, cout),
                               *_bn_fold(ks[5], cout), stride=stride, pad=0)
    return p


def init_params(key):
    ks = jax.random.split(key, 8)
    params = {
        'conv1': _prep_conv(_conv_w(ks[0], 7, 7, 3, 64),
                            *_bn_fold(ks[1], 64), stride=2, pad=3),
        'layers': [],
    }
    cfg = [(64, 64, 1), (64, 128, 2), (128, 256, 2), (256, 512, 2)]
    for idx, (cin, cout, stride) in enumerate(cfg):
        b0k, b1k = jax.random.split(ks[2 + idx], 2)
        params['layers'].append([
            _block_params(b0k, cin, cout, stride),
            _block_params(b1k, cout, cout, 1),
        ])
    fc_w = 0.05 * jax.random.normal(ks[6], (512, 10), jnp.float32)
    fc_b = 0.05 * jax.random.normal(ks[7], (10,), jnp.float32)
    Np = _rup(10, 128)
    params['fc'] = {
        'w': jnp.pad(fc_w.astype(jnp.bfloat16), ((0, 0), (0, Np - 10))),
        'scale': jnp.pad(jnp.ones((1, 10), jnp.float32), ((0, 0), (0, Np - 10))),
        'shift': jnp.pad(fc_b.reshape(1, 10), ((0, 0), (0, Np - 10))),
        'cout': 10,
    }
    return params


# --------------------------------------------------------------------------
# Forward
# --------------------------------------------------------------------------
def basic_block(x, p):
    out = conv_bn_act(x, p['conv1'], relu=True)
    if 'down' in p:
        identity = conv_bn_act(x, p['down'], relu=False)
    else:
        identity = x
    # conv2 + BN2 + residual add + ReLU, all fused in the matmul epilogue
    return conv_bn_act(out, p['conv2'], relu=True, residual=identity)


def resnet18_forward(x_nchw, params):
    # layout: input is NCHW (PyTorch convention); converted to NHWC internally.
    x = jnp.transpose(x_nchw, (0, 2, 3, 1)).astype(jnp.float32)

    x = conv_bn_act(x, params['conv1'], relu=True)
    x = maxpool2d(x, k=3, stride=2, pad=1)

    for layer in params['layers']:
        for blk in layer:
            x = basic_block(x, blk)

    feat = avgpool_global(x)                                   # [N, 512]

    fcp = params['fc']
    a = feat.astype(jnp.bfloat16)
    Kp = fcp['w'].shape[0]
    if Kp != a.shape[1]:
        a = jnp.pad(a, ((0, 0), (0, Kp - a.shape[1])))
    logits = fused_matmul(a, fcp['w'], fcp['scale'], fcp['shift'],
                          residual=None, relu=False)
    return logits[:feat.shape[0], :fcp['cout']]                 # [N, 10]


if __name__ == "__main__":
    key = jax.random.PRNGKey(0)
    pkey, xkey = jax.random.split(key)
    params = init_params(pkey)
    x = jax.random.normal(xkey, (2, 3, 64, 64), jnp.float32)   # NCHW, like PyTorch

    fwd = jax.jit(lambda inp: resnet18_forward(inp, params))
    out = jax.block_until_ready(fwd(x))

    assert out.shape == (2, 10), out.shape
    assert bool(jnp.all(jnp.isfinite(out)))
    print("KERNEL_OK")
</pallas_src>

<mosaic_0001>
module attributes {stable_mosaic.version = 11 : i64} {
  func.func @_mm_bn_kernel(%arg0: i32, %arg1: i32, %arg2: i32, %arg3: memref<128x256xbf16, #tpu.memory_space<vmem>>, %arg4: memref<256x128xbf16, #tpu.memory_space<vmem>>, %arg5: memref<1x128xf32, #tpu.memory_space<vmem>>, %arg6: memref<1x128xf32, #tpu.memory_space<vmem>>, %arg7: memref<128x128xf32, #tpu.memory_space<vmem>>, %arg8: memref<128x128xf32, #tpu.memory_space<vmem>>) attributes {dimension_semantics = [#tpu.dimension_semantics<parallel>, #tpu.dimension_semantics<parallel>, #tpu.dimension_semantics<arbitrary>], iteration_bounds = array<i64: 16, 1, 1>, scalar_prefetch = 0 : i64, scratch_operands = 1 : i64, tpu.core_type = #tpu.core_type<tc>, window_params = [{transform_indices = @transform_0, window_bounds = array<i64: 128, 256>}, {transform_indices = @transform_1, window_bounds = array<i64: 256, 128>}, {transform_indices = @transform_2, window_bounds = array<i64: 1, 128>}, {transform_indices = @transform_3, window_bounds = array<i64: 1, 128>}, {transform_indices = @transform_4, window_bounds = array<i64: 128, 128>}]} {
    %c0_i32 = arith.constant 0 : i32
    %0 = arith.cmpi eq, %arg2, %c0_i32 : i32
    %1 = arith.extui %0 : i1 to i32
    %c0_i32_0 = arith.constant 0 : i32
    %2 = arith.cmpi ne, %1, %c0_i32_0 : i32
    scf.if %2 {
      %cst_10 = arith.constant 0.000000e+00 : f32
      %12 = vector.broadcast %cst_10 : f32 to vector<128x128xf32>
      %c0_11 = arith.constant 0 : index
      %c0_12 = arith.constant 0 : index
      %13 = vector.load %arg8[%c0_11, %c0_12] : memref<128x128xf32, #tpu.memory_space<vmem>>, vector<128x128xf32>
      tpu.vector_store %arg8[%c0_11, %c0_12], %12 {strides = array<i32>} : memref<128x128xf32, #tpu.memory_space<vmem>>, vector<128x128xf32>,
    } else {
    }
    %c0 = arith.constant 0 : index
    %c0_1 = arith.constant 0 : index
    %3 = vector.load %arg8[%c0, %c0_1] : memref<128x128xf32, #tpu.memory_space<vmem>>, vector<128x128xf32>
    %c0_2 = arith.constant 0 : index
    %c0_3 = arith.constant 0 : index
    %4 = vector.load %arg3[%c0_2, %c0_3] : memref<128x256xbf16, #tpu.memory_space<vmem>>, vector<128x256xbf16>
    %c0_4 = arith.constant 0 : index
    %c0_5 = arith.constant 0 : index
    %5 = vector.load %arg4[%c0_4, %c0_5] : memref<256x128xbf16, #tpu.memory_space<vmem>>, vector<256x128xbf16>
    %cst = arith.constant dense<0.000000e+00> : vector<128x128xf32>
    %6 = tpu.matmul %4, %5, %cst {dimension_numbers = #tpu.dot_dimension_numbers<[1], [0], [0], [1], [0, 0, 1, 1], [], []>} : vector<128x256xbf16>, vector<256x128xbf16>, vector<128x128xf32> -> vector<128x128xf32>
    %7 = arith.addf %3, %6 : vector<128x128xf32>
    %c0_6 = arith.constant 0 : index
    %c0_7 = arith.constant 0 : index
    %8 = vector.load %arg8[%c0_6, %c0_7] : memref<128x128xf32, #tpu.memory_space<vmem>>, vector<128x128xf32>
    tpu.vector_store %arg8[%c0_6, %c0_7], %7 {strides = array<i32>} : memref<128x128xf32, #tpu.memory_space<vmem>>, vector<128x128xf32>,
    %c0_i32_8 = arith.constant 0 : i32
    %9 = arith.cmpi eq, %arg2, %c0_i32_8 : i32
    %10 = arith.extui %9 : i1 to i32
    %c0_i32_9 = arith.constant 0 : i32
    %11 = arith.cmpi ne, %10, %c0_i32_9 : i32
    scf.if %11 {
      %c0_10 = arith.constant 0 : index
      %c0_11 = arith.constant 0 : index
      %12 = vector.load %arg8[%c0_10, %c0_11] : memref<128x128xf32, #tpu.memory_space<vmem>>, vector<128x128xf32>
      %c0_12 = arith.constant 0 : index
      %c0_13 = arith.constant 0 : index
      %13 = vector.load %arg5[%c0_12, %c0_13] : memref<1x128xf32, #tpu.memory_space<vmem>>, vector<1x128xf32>
      %14 = vector.broadcast %13 : vector<1x128xf32> to vector<128x128xf32>
      %15 = arith.mulf %12, %14 : vector<128x128xf32>
      %c0_14 = arith.constant 0 : index
      %c0_15 = arith.constant 0 : index
      %16 = vector.load %arg6[%c0_14, %c0_15] : memref<1x128xf32, #tpu.memory_space<vmem>>, vector<1x128xf32>
      %17 = vector.broadcast %16 : vector<1x128xf32> to vector<128x128xf32>
      %18 = arith.addf %15, %17 : vector<128x128xf32>
      %cst_16 = arith.constant 0.000000e+00 : f32
      %19 = vector.broadcast %cst_16 : f32 to vector<128x128xf32>
      %20 = arith.maximumf %18, %19 : vector<128x128xf32>
      %c0_17 = arith.constant 0 : index
      %c0_18 = arith.constant 0 : index
      %21 = vector.load %arg7[%c0_17, %c0_18] : memref<128x128xf32, #tpu.memory_space<vmem>>, vector<128x128xf32>
      tpu.vector_store %arg7[%c0_17, %c0_18], %20 {strides = array<i32>} : memref<128x128xf32, #tpu.memory_space<vmem>>, vector<128x128xf32>,
    } else {
    }
    return
  }
  func.func @transform_0(%arg0: i32, %arg1: i32, %arg2: i32) -> (i32, i32) {
    %c0_i32 = arith.constant 0 : i32
    return %arg0, %arg2 : i32, i32
  }
  func.func @transform_1(%arg0: i32, %arg1: i32, %arg2: i32) -> (i32, i32) {
    %c0_i32 = arith.constant 0 : i32
    return %arg2, %arg1 : i32, i32
  }
  func.func @transform_2(%arg0: i32, %arg1: i32, %arg2: i32) -> (i32, i32) {
    %c0_i32 = arith.constant 0 : i32
    %c0_i32_0 = arith.constant 0 : i32
    return %c0_i32, %arg1 : i32, i32
  }
  func.func @transform_3(%arg0: i32, %arg1: i32, %arg2: i32) -> (i32, i32) {
    %c0_i32 = arith.constant 0 : i32
    %c0_i32_0 = arith.constant 0 : i32
    return %c0_i32, %arg1 : i32, i32
  }
  func.func @transform_4(%arg0: i32, %arg1: i32, %arg2: i32) -> (i32, i32) {
    %c0_i32 = arith.constant 0 : i32
    return %arg0, %arg1 : i32, i32
  }
}

module attributes {stable_mosaic.version = 11 : i64} {
  func.func @_mm_bn_kernel(%arg0: i32, %arg1: i32, %arg2: i32, %arg3: memref<128x640xbf16, #tpu.memory_space<vmem>>, %arg4: memref<640x128xbf16, #tpu.memory_space<vmem>>, %arg5: memref<1x128xf32, #tpu.memory_space<vmem>>, %arg6: memref<1x128xf32, #tpu.memory_space<vmem>>, %arg7: memref<128x128xf32, #tpu.memory_space<vmem>>, %arg8: memref<128x128xf32, #tpu.memory_space<vmem>>) attributes {dimension_semantics = [#tpu.dimension_semantics<parallel>, #tpu.dimension_semantics<parallel>, #tpu.dimension_semantics<arbitrary>], iteration_bounds = array<i64: 4, 1, 1>, scalar_prefetch = 0 : i64, scratch_operands = 1 : i64, tpu.core_type = #tpu.core_type<tc>, window_params = [{transform_indices = @transform_0, window_bounds = array<i64: 128, 640>}, {transform_indices = @transform_1, window_bounds = array<i64: 640, 128>}, {transform_indices = @transform_2, window_bounds = array<i64: 1, 128>}, {transform_indices = @transform_3, window_bounds = array<i64: 1, 128>}, {transform_indices = @transform_4, window_bounds = array<i64: 128, 128>}]} {
    %c0_i32 = arith.constant 0 : i32
    %0 = arith.cmpi eq, %arg2, %c0_i32 : i32
    %1 = arith.extui %0 : i1 to i32
    %c0_i32_0 = arith.constant 0 : i32
    %2 = arith.cmpi ne, %1, %c0_i32_0 : i32
    scf.if %2 {
      %cst_10 = arith.constant 0.000000e+00 : f32
      %12 = vector.broadcast %cst_10 : f32 to vector<128x128xf32>
      %c0_11 = arith.constant 0 : index
      %c0_12 = arith.constant 0 : index
      %13 = vector.load %arg8[%c0_11, %c0_12] : memref<128x128xf32, #tpu.memory_space<vmem>>, vector<128x128xf32>
      tpu.vector_store %arg8[%c0_11, %c0_12], %12 {strides = array<i32>} : memref<128x128xf32, #tpu.memory_space<vmem>>, vector<128x128xf32>,
    } else {
    }
    %c0 = arith.constant 0 : index
    %c0_1 = arith.constant 0 : index
    %3 = vector.load %arg8[%c0, %c0_1] : memref<128x128xf32, #tpu.memory_space<vmem>>, vector<128x128xf32>
    %c0_2 = arith.constant 0 : index
    %c0_3 = arith.constant 0 : index
    %4 = vector.load %arg3[%c0_2, %c0_3] : memref<128x640xbf16, #tpu.memory_space<vmem>>, vector<128x640xbf16>
    %c0_4 = arith.constant 0 : index
    %c0_5 = arith.constant 0 : index
    %5 = vector.load %arg4[%c0_4, %c0_5] : memref<640x128xbf16, #tpu.memory_space<vmem>>, vector<640x128xbf16>
    %cst = arith.constant dense<0.000000e+00> : vector<128x128xf32>
    %6 = tpu.matmul %4, %5, %cst {dimension_numbers = #tpu.dot_dimension_numbers<[1], [0], [0], [1], [0, 0, 1, 1], [], []>} : vector<128x640xbf16>, vector<640x128xbf16>, vector<128x128xf32> -> vector<128x128xf32>
    %7 = arith.addf %3, %6 : vector<128x128xf32>
    %c0_6 = arith.constant 0 : index
    %c0_7 = arith.constant 0 : index
    %8 = vector.load %arg8[%c0_6, %c0_7] : memref<128x128xf32, #tpu.memory_space<vmem>>, vector<128x128xf32>
    tpu.vector_store %arg8[%c0_6, %c0_7], %7 {strides = array<i32>} : memref<128x128xf32, #tpu.memory_space<vmem>>, vector<128x128xf32>,
    %c0_i32_8 = arith.constant 0 : i32
    %9 = arith.cmpi eq, %arg2, %c0_i32_8 : i32
    %10 = arith.extui %9 : i1 to i32
    %c0_i32_9 = arith.constant 0 : i32
    %11 = arith.cmpi ne, %10, %c0_i32_9 : i32
    scf.if %11 {
      %c0_10 = arith.constant 0 : index
      %c0_11 = arith.constant 0 : index
      %12 = vector.load %arg8[%c0_10, %c0_11] : memref<128x128xf32, #tpu.memory_space<vmem>>, vector<128x128xf32>
      %c0_12 = arith.constant 0 : index
      %c0_13 = arith.constant 0 : index
      %13 = vector.load %arg5[%c0_12, %c0_13] : memref<1x128xf32, #tpu.memory_space<vmem>>, vector<1x128xf32>
      %14 = vector.broadcast %13 : vector<1x128xf32> to vector<128x128xf32>
      %15 = arith.mulf %12, %14 : vector<128x128xf32>
      %c0_14 = arith.constant 0 : index
      %c0_15 = arith.constant 0 : index
      %16 = vector.load %arg6[%c0_14, %c0_15] : memref<1x128xf32, #tpu.memory_space<vmem>>, vector<1x128xf32>
      %17 = vector.broadcast %16 : vector<1x128xf32> to vector<128x128xf32>
      %18 = arith.addf %15, %17 : vector<128x128xf32>
      %cst_16 = arith.constant 0.000000e+00 : f32
      %19 = vector.broadcast %cst_16 : f32 to vector<128x128xf32>
      %20 = arith.maximumf %18, %19 : vector<128x128xf32>
      %c0_17 = arith.constant 0 : index
      %c0_18 = arith.constant 0 : index
      %21 = vector.load %arg7[%c0_17, %c0_18] : memref<128x128xf32, #tpu.memory_space<vmem>>, vector<128x128xf32>
      tpu.vector_store %arg7[%c0_17, %c0_18], %20 {strides = array<i32>} : memref<128x128xf32, #tpu.memory_space<vmem>>, vector<128x128xf32>,
    } else {
    }
    return
  }
  func.func @transform_0(%arg0: i32, %arg1: i32, %arg2: i32) -> (i32, i32) {
    %c0_i32 = arith.constant 0 : i32
    return %arg0, %arg2 : i32, i32
  }
  func.func @transform_1(%arg0: i32, %arg1: i32, %arg2: i32) -> (i32, i32) {
    %c0_i32 = arith.constant 0 : i32
    return %arg2, %arg1 : i32, i32
  }
  func.func @transform_2(%arg0: i32, %arg1: i32, %arg2: i32) -> (i32, i32) {
    %c0_i32 = arith.constant 0 : i32
    %c0_i32_0 = arith.constant 0 : i32
    return %c0_i32, %arg1 : i32, i32
  }
  func.func @transform_3(%arg0: i32, %arg1: i32, %arg2: i32) -> (i32, i32) {
    %c0_i32 = arith.constant 0 : i32
    %c0_i32_0 = arith.constant 0 : i32
    return %c0_i32, %arg1 : i32, i32
  }
  func.func @transform_4(%arg0: i32, %arg1: i32, %arg2: i32) -> (i32, i32) {
    %c0_i32 = arith.constant 0 : i32
    return %arg0, %arg1 : i32, i32
  }
}

module attributes {stable_mosaic.version = 11 : i64} {
  func.func @_mm_bn_res_kernel(%arg0: i32, %arg1: i32, %arg2: i32, %arg3: memref<128x640xbf16, #tpu.memory_space<vmem>>, %arg4: memref<640x128xbf16, #tpu.memory_space<vmem>>, %arg5: memref<1x128xf32, #tpu.memory_space<vmem>>, %arg6: memref<1x128xf32, #tpu.memory_space<vmem>>, %arg7: memref<128x128xf32, #tpu.memory_space<vmem>>, %arg8: memref<128x128xf32, #tpu.memory_space<vmem>>, %arg9: memref<128x128xf32, #tpu.memory_space<vmem>>) attributes {dimension_semantics = [#tpu.dimension_semantics<parallel>, #tpu.dimension_semantics<parallel>, #tpu.dimension_semantics<arbitrary>], iteration_bounds = array<i64: 4, 1, 1>, scalar_prefetch = 0 : i64, scratch_operands = 1 : i64, tpu.core_type = #tpu.core_type<tc>, window_params = [{transform_indices = @transform_0, window_bounds = array<i64: 128, 640>}, {transform_indices = @transform_1, window_bounds = array<i64: 640, 128>}, {transform_indices = @transform_2, window_bounds = array<i64: 1, 128>}, {transform_indices = @transform_3, window_bounds = array<i64: 1, 128>}, {transform_indices = @transform_4, window_bounds = array<i64: 128, 128>}, {transform_indices = @transform_5, window_bounds = array<i64: 128, 128>}]} {
    %c0_i32 = arith.constant 0 : i32
    %0 = arith.cmpi eq, %arg2, %c0_i32 : i32
    %1 = arith.extui %0 : i1 to i32
    %c0_i32_0 = arith.constant 0 : i32
    %2 = arith.cmpi ne, %1, %c0_i32_0 : i32
    scf.if %2 {
      %cst_10 = arith.constant 0.000000e+00 : f32
      %12 = vector.broadcast %cst_10 : f32 to vector<128x128xf32>
      %c0_11 = arith.constant 0 : index
      %c0_12 = arith.constant 0 : index
      %13 = vector.load %arg9[%c0_11, %c0_12] : memref<128x128xf32, #tpu.memory_space<vmem>>, vector<128x128xf32>
      tpu.vector_store %arg9[%c0_11, %c0_12], %12 {strides = array<i32>} : memref<128x128xf32, #tpu.memory_space<vmem>>, vector<128x128xf32>,
    } else {
    }
    %c0 = arith.constant 0 : index
    %c0_1 = arith.constant 0 : index
    %3 = vector.load %arg9[%c0, %c0_1] : memref<128x128xf32, #tpu.memory_space<vmem>>, vector<128x128xf32>
    %c0_2 = arith.constant 0 : index
    %c0_3 = arith.constant 0 : index
    %4 = vector.load %arg3[%c0_2, %c0_3] : memref<128x640xbf16, #tpu.memory_space<vmem>>, vector<128x640xbf16>
    %c0_4 = arith.constant 0 : index
    %c0_5 = arith.constant 0 : index
    %5 = vector.load %arg4[%c0_4, %c0_5] : memref<640x128xbf16, #tpu.memory_space<vmem>>, vector<640x128xbf16>
    %cst = arith.constant dense<0.000000e+00> : vector<128x128xf32>
    %6 = tpu.matmul %4, %5, %cst {dimension_numbers = #tpu.dot_dimension_numbers<[1], [0], [0], [1], [0, 0, 1, 1], [], []>} : vector<128x640xbf16>, vector<640x128xbf16>, vector<128x128xf32> -> vector<128x128xf32>
    %7 = arith.addf %3, %6 : vector<128x128xf32>
    %c0_6 = arith.constant 0 : index
    %c0_7 = arith.constant 0 : index
    %8 = vector.load %arg9[%c0_6, %c0_7] : memref<128x128xf32, #tpu.memory_space<vmem>>, vector<128x128xf32>
    tpu.vector_store %arg9[%c0_6, %c0_7], %7 {strides = array<i32>} : memref<128x128xf32, #tpu.memory_space<vmem>>, vector<128x128xf32>,
    %c0_i32_8 = arith.constant 0 : i32
    %9 = arith.cmpi eq, %arg2, %c0_i32_8 : i32
    %10 = arith.extui %9 : i1 to i32
    %c0_i32_9 = arith.constant 0 : i32
    %11 = arith.cmpi ne, %10, %c0_i32_9 : i32
    scf.if %11 {
      %c0_10 = arith.constant 0 : index
      %c0_11 = arith.constant 0 : index
      %12 = vector.load %arg9[%c0_10, %c0_11] : memref<128x128xf32, #tpu.memory_space<vmem>>, vector<128x128xf32>
      %c0_12 = arith.constant 0 : index
      %c0_13 = arith.constant 0 : index
      %13 = vector.load %arg5[%c0_12, %c0_13] : memref<1x128xf32, #tpu.memory_space<vmem>>, vector<1x128xf32>
      %14 = vector.broadcast %13 : vector<1x128xf32> to vector<128x128xf32>
      %15 = arith.mulf %12, %14 : vector<128x128xf32>
      %c0_14 = arith.constant 0 : index
      %c0_15 = arith.constant 0 : index
      %16 = vector.load %arg6[%c0_14, %c0_15] : memref<1x128xf32, #tpu.memory_space<vmem>>, vector<1x128xf32>
      %17 = vector.broadcast %16 : vector<1x128xf32> to vector<128x128xf32>
      %18 = arith.addf %15, %17 : vector<128x128xf32>
      %c0_16 = arith.constant 0 : index
      %c0_17 = arith.constant 0 : index
      %19 = vector.load %arg7[%c0_16, %c0_17] : memref<128x128xf32, #tpu.memory_space<vmem>>, vector<128x128xf32>
      %20 = arith.addf %18, %19 : vector<128x128xf32>
      %cst_18 = arith.constant 0.000000e+00 : f32
      %21 = vector.broadcast %cst_18 : f32 to vector<128x128xf32>
      %22 = arith.maximumf %20, %21 : vector<128x128xf32>
      %c0_19 = arith.constant 0 : index
      %c0_20 = arith.constant 0 : index
      %23 = vector.load %arg8[%c0_19, %c0_20] : memref<128x128xf32, #tpu.memory_space<vmem>>, vector<128x128xf32>
      tpu.vector_store %arg8[%c0_19, %c0_20], %22 {strides = array<i32>} : memref<128x128xf32, #tpu.memory_space<vmem>>, vector<128x128xf32>,
    } else {
    }
    return
  }
  func.func @transform_0(%arg0: i32, %arg1: i32, %arg2: i32) -> (i32, i32) {
    %c0_i32 = arith.constant 0 : i32
    return %arg0, %arg2 : i32, i32
  }
  func.func @transform_1(%arg0: i32, %arg1: i32, %arg2: i32) -> (i32, i32) {
    %c0_i32 = arith.constant 0 : i32
    return %arg2, %arg1 : i32, i32
  }
  func.func @transform_2(%arg0: i32, %arg1: i32, %arg2: i32) -> (i32, i32) {
    %c0_i32 = arith.constant 0 : i32
    %c0_i32_0 = arith.constant 0 : i32
    return %c0_i32, %arg1 : i32, i32
  }
  func.func @transform_3(%arg0: i32, %arg1: i32, %arg2: i32) -> (i32, i32) {
    %c0_i32 = arith.constant 0 : i32
    %c0_i32_0 = arith.constant 0 : i32
    return %c0_i32, %arg1 : i32, i32
  }
  func.func @transform_4(%arg0: i32, %arg1: i32, %arg2: i32) -> (i32, i32) {
    %c0_i32 = arith.constant 0 : i32
    return %arg0, %arg1 : i32, i32
  }
  func.func @transform_5(%arg0: i32, %arg1: i32, %arg2: i32) -> (i32, i32) {
    %c0_i32 = arith.constant 0 : i32
    return %arg0, %arg1 : i32, i32
  }
}

module attributes {stable_mosaic.version = 11 : i64} {
  func.func @_mm_bn_kernel(%arg0: i32, %arg1: i32, %arg2: i32, %arg3: memref<64x640xbf16, #tpu.memory_space<vmem>>, %arg4: memref<640x128xbf16, #tpu.memory_space<vmem>>, %arg5: memref<1x128xf32, #tpu.memory_space<vmem>>, %arg6: memref<1x128xf32, #tpu.memory_space<vmem>>, %arg7: memref<64x128xf32, #tpu.memory_space<vmem>>, %arg8: memref<64x128xf32, #tpu.memory_space<vmem>>) attributes {dimension_semantics = [#tpu.dimension_semantics<parallel>, #tpu.dimension_semantics<parallel>, #tpu.dimension_semantics<arbitrary>], iteration_bounds = array<i64: 2, 1, 1>, scalar_prefetch = 0 : i64, scratch_operands = 1 : i64, tpu.core_type = #tpu.core_type<tc>, window_params = [{transform_indices = @transform_0, window_bounds = array<i64: 64, 640>}, {transform_indices = @transform_1, window_bounds = array<i64: 640, 128>}, {transform_indices = @transform_2, window_bounds = array<i64: 1, 128>}, {transform_indices = @transform_3, window_bounds = array<i64: 1, 128>}, {transform_indices = @transform_4, window_bounds = array<i64: 64, 128>}]} {
    %c0_i32 = arith.constant 0 : i32
    %0 = arith.cmpi eq, %arg2, %c0_i32 : i32
    %1 = arith.extui %0 : i1 to i32
    %c0_i32_0 = arith.constant 0 : i32
    %2 = arith.cmpi ne, %1, %c0_i32_0 : i32
    scf.if %2 {
      %cst_10 = arith.constant 0.000000e+00 : f32
      %12 = vector.broadcast %cst_10 : f32 to vector<64x128xf32>
      %c0_11 = arith.constant 0 : index
      %c0_12 = arith.constant 0 : index
      %13 = vector.load %arg8[%c0_11, %c0_12] : memref<64x128xf32, #tpu.memory_space<vmem>>, vector<64x128xf32>
      tpu.vector_store %arg8[%c0_11, %c0_12], %12 {strides = array<i32>} : memref<64x128xf32, #tpu.memory_space<vmem>>, vector<64x128xf32>,
    } else {
    }
    %c0 = arith.constant 0 : index
    %c0_1 = arith.constant 0 : index
    %3 = vector.load %arg8[%c0, %c0_1] : memref<64x128xf32, #tpu.memory_space<vmem>>, vector<64x128xf32>
    %c0_2 = arith.constant 0 : index
    %c0_3 = arith.constant 0 : index
    %4 = vector.load %arg3[%c0_2, %c0_3] : memref<64x640xbf16, #tpu.memory_space<vmem>>, vector<64x640xbf16>
    %c0_4 = arith.constant 0 : index
    %c0_5 = arith.constant 0 : index
    %5 = vector.load %arg4[%c0_4, %c0_5] : memref<640x128xbf16, #tpu.memory_space<vmem>>, vector<640x128xbf16>
    %cst = arith.constant dense<0.000000e+00> : vector<64x128xf32>
    %6 = tpu.matmul %4, %5, %cst {dimension_numbers = #tpu.dot_dimension_numbers<[1], [0], [0], [1], [0, 0, 1, 1], [], []>} : vector<64x640xbf16>, vector<640x128xbf16>, vector<64x128xf32> -> vector<64x128xf32>
    %7 = arith.addf %3, %6 : vector<64x128xf32>
    %c0_6 = arith.constant 0 : index
    %c0_7 = arith.constant 0 : index
    %8 = vector.load %arg8[%c0_6, %c0_7] : memref<64x128xf32, #tpu.memory_space<vmem>>, vector<64x128xf32>
    tpu.vector_store %arg8[%c0_6, %c0_7], %7 {strides = array<i32>} : memref<64x128xf32, #tpu.memory_space<vmem>>, vector<64x128xf32>,
    %c0_i32_8 = arith.constant 0 : i32
    %9 = arith.cmpi eq, %arg2, %c0_i32_8 : i32
    %10 = arith.extui %9 : i1 to i32
    %c0_i32_9 = arith.constant 0 : i32
    %11 = arith.cmpi ne, %10, %c0_i32_9 : i32
    scf.if %11 {
      %c0_10 = arith.constant 0 : index
      %c0_11 = arith.constant 0 : index
      %12 = vector.load %arg8[%c0_10, %c0_11] : memref<64x128xf32, #tpu.memory_space<vmem>>, vector<64x128xf32>
      %c0_12 = arith.constant 0 : index
      %c0_13 = arith.constant 0 : index
      %13 = vector.load %arg5[%c0_12, %c0_13] : memref<1x128xf32, #tpu.memory_space<vmem>>, vector<1x128xf32>
      %14 = vector.broadcast %13 : vector<1x128xf32> to vector<64x128xf32>
      %15 = arith.mulf %12, %14 : vector<64x128xf32>
      %c0_14 = arith.constant 0 : index
      %c0_15 = arith.constant 0 : index
      %16 = vector.load %arg6[%c0_14, %c0_15] : memref<1x128xf32, #tpu.memory_space<vmem>>, vector<1x128xf32>
      %17 = vector.broadcast %16 : vector<1x128xf32> to vector<64x128xf32>
      %18 = arith.addf %15, %17 : vector<64x128xf32>
      %cst_16 = arith.constant 0.000000e+00 : f32
      %19 = vector.broadcast %cst_16 : f32 to vector<64x128xf32>
      %20 = arith.maximumf %18, %19 : vector<64x128xf32>
      %c0_17 = arith.constant 0 : index
      %c0_18 = arith.constant 0 : index
      %21 = vector.load %arg7[%c0_17, %c0_18] : memref<64x128xf32, #tpu.memory_space<vmem>>, vector<64x128xf32>
      tpu.vector_store %arg7[%c0_17, %c0_18], %20 {strides = array<i32>} : memref<64x128xf32, #tpu.memory_space<vmem>>, vector<64x128xf32>,
    } else {
    }
    return
  }
  func.func @transform_0(%arg0: i32, %arg1: i32, %arg2: i32) -> (i32, i32) {
    %c0_i32 = arith.constant 0 : i32
    return %arg0, %arg2 : i32, i32
  }
  func.func @transform_1(%arg0: i32, %arg1: i32, %arg2: i32) -> (i32, i32) {
    %c0_i32 = arith.constant 0 : i32
    return %arg2, %arg1 : i32, i32
  }
  func.func @transform_2(%arg0: i32, %arg1: i32, %arg2: i32) -> (i32, i32) {
    %c0_i32 = arith.constant 0 : i32
    %c0_i32_0 = arith.constant 0 : i32
    return %c0_i32, %arg1 : i32, i32
  }
  func.func @transform_3(%arg0: i32, %arg1: i32, %arg2: i32) -> (i32, i32) {
    %c0_i32 = arith.constant 0 : i32
    %c0_i32_0 = arith.constant 0 : i32
    return %c0_i32, %arg1 : i32, i32
  }
  func.func @transform_4(%arg0: i32, %arg1: i32, %arg2: i32) -> (i32, i32) {
    %c0_i32 = arith.constant 0 : i32
    return %arg0, %arg1 : i32, i32
  }
}

module attributes {stable_mosaic.version = 11 : i64} {
  func.func @_mm_bn_kernel(%arg0: i32, %arg1: i32, %arg2: i32, %arg3: memref<64x128xbf16, #tpu.memory_space<vmem>>, %arg4: memref<128x128xbf16, #tpu.memory_space<vmem>>, %arg5: memref<1x128xf32, #tpu.memory_space<vmem>>, %arg6: memref<1x128xf32, #tpu.memory_space<vmem>>, %arg7: memref<64x128xf32, #tpu.memory_space<vmem>>, %arg8: memref<64x128xf32, #tpu.memory_space<vmem>>) attributes {dimension_semantics = [#tpu.dimension_semantics<parallel>, #tpu.dimension_semantics<parallel>, #tpu.dimension_semantics<arbitrary>], iteration_bounds = array<i64: 2, 1, 1>, scalar_prefetch = 0 : i64, scratch_operands = 1 : i64, tpu.core_type = #tpu.core_type<tc>, window_params = [{transform_indices = @transform_0, window_bounds = array<i64: 64, 128>}, {transform_indices = @transform_1, window_bounds = array<i64: 128, 128>}, {transform_indices = @transform_2, window_bounds = array<i64: 1, 128>}, {transform_indices = @transform_3, window_bounds = array<i64: 1, 128>}, {transform_indices = @transform_4, window_bounds = array<i64: 64, 128>}]} {
    %c0_i32 = arith.constant 0 : i32
    %0 = arith.cmpi eq, %arg2, %c0_i32 : i32
    %1 = arith.extui %0 : i1 to i32
    %c0_i32_0 = arith.constant 0 : i32
    %2 = arith.cmpi ne, %1, %c0_i32_0 : i32
    scf.if %2 {
      %cst_10 = arith.constant 0.000000e+00 : f32
      %12 = vector.broadcast %cst_10 : f32 to vector<64x128xf32>
      %c0_11 = arith.constant 0 : index
      %c0_12 = arith.constant 0 : index
      %13 = vector.load %arg8[%c0_11, %c0_12] : memref<64x128xf32, #tpu.memory_space<vmem>>, vector<64x128xf32>
      tpu.vector_store %arg8[%c0_11, %c0_12], %12 {strides = array<i32>} : memref<64x128xf32, #tpu.memory_space<vmem>>, vector<64x128xf32>,
    } else {
    }
    %c0 = arith.constant 0 : index
    %c0_1 = arith.constant 0 : index
    %3 = vector.load %arg8[%c0, %c0_1] : memref<64x128xf32, #tpu.memory_space<vmem>>, vector<64x128xf32>
    %c0_2 = arith.constant 0 : index
    %c0_3 = arith.constant 0 : index
    %4 = vector.load %arg3[%c0_2, %c0_3] : memref<64x128xbf16, #tpu.memory_space<vmem>>, vector<64x128xbf16>
    %c0_4 = arith.constant 0 : index
    %c0_5 = arith.constant 0 : index
    %5 = vector.load %arg4[%c0_4, %c0_5] : memref<128x128xbf16, #tpu.memory_space<vmem>>, vector<128x128xbf16>
    %cst = arith.constant dense<0.000000e+00> : vector<64x128xf32>
    %6 = tpu.matmul %4, %5, %cst {dimension_numbers = #tpu.dot_dimension_numbers<[1], [0], [0], [1], [0, 0, 1, 1], [], []>} : vector<64x128xbf16>, vector<128x128xbf16>, vector<64x128xf32> -> vector<64x128xf32>
    %7 = arith.addf %3, %6 : vector<64x128xf32>
    %c0_6 = arith.constant 0 : index
    %c0_7 = arith.constant 0 : index
    %8 = vector.load %arg8[%c0_6, %c0_7] : memref<64x128xf32, #tpu.memory_space<vmem>>, vector<64x128xf32>
    tpu.vector_store %arg8[%c0_6, %c0_7], %7 {strides = array<i32>} : memref<64x128xf32, #tpu.memory_space<vmem>>, vector<64x128xf32>,
    %c0_i32_8 = arith.constant 0 : i32
    %9 = arith.cmpi eq, %arg2, %c0_i32_8 : i32
    %10 = arith.extui %9 : i1 to i32
    %c0_i32_9 = arith.constant 0 : i32
    %11 = arith.cmpi ne, %10, %c0_i32_9 : i32
    scf.if %11 {
      %c0_10 = arith.constant 0 : index
      %c0_11 = arith.constant 0 : index
      %12 = vector.load %arg8[%c0_10, %c0_11] : memref<64x128xf32, #tpu.memory_space<vmem>>, vector<64x128xf32>
      %c0_12 = arith.constant 0 : index
      %c0_13 = arith.constant 0 : index
      %13 = vector.load %arg5[%c0_12, %c0_13] : memref<1x128xf32, #tpu.memory_space<vmem>>, vector<1x128xf32>
      %14 = vector.broadcast %13 : vector<1x128xf32> to vector<64x128xf32>
      %15 = arith.mulf %12, %14 : vector<64x128xf32>
      %c0_14 = arith.constant 0 : index
      %c0_15 = arith.constant 0 : index
      %16 = vector.load %arg6[%c0_14, %c0_15] : memref<1x128xf32, #tpu.memory_space<vmem>>, vector<1x128xf32>
      %17 = vector.broadcast %16 : vector<1x128xf32> to vector<64x128xf32>
      %18 = arith.addf %15, %17 : vector<64x128xf32>
      %c0_16 = arith.constant 0 : index
      %c0_17 = arith.constant 0 : index
      %19 = vector.load %arg7[%c0_16, %c0_17] : memref<64x128xf32, #tpu.memory_space<vmem>>, vector<64x128xf32>
      tpu.vector_store %arg7[%c0_16, %c0_17], %18 {strides = array<i32>} : memref<64x128xf32, #tpu.memory_space<vmem>>, vector<64x128xf32>,
    } else {
    }
    return
  }
  func.func @transform_0(%arg0: i32, %arg1: i32, %arg2: i32) -> (i32, i32) {
    %c0_i32 = arith.constant 0 : i32
    return %arg0, %arg2 : i32, i32
  }
  func.func @transform_1(%arg0: i32, %arg1: i32, %arg2: i32) -> (i32, i32) {
    %c0_i32 = arith.constant 0 : i32
    return %arg2, %arg1 : i32, i32
  }
  func.func @transform_2(%arg0: i32, %arg1: i32, %arg2: i32) -> (i32, i32) {
    %c0_i32 = arith.constant 0 : i32
    %c0_i32_0 = arith.constant 0 : i32
    return %c0_i32, %arg1 : i32, i32
  }
  func.func @transform_3(%arg0: i32, %arg1: i32, %arg2: i32) -> (i32, i32) {
    %c0_i32 = arith.constant 0 : i32
    %c0_i32_0 = arith.constant 0 : i32
    return %c0_i32, %arg1 : i32, i32
  }
  func.func @transform_4(%arg0: i32, %arg1: i32, %arg2: i32) -> (i32, i32) {
    %c0_i32 = arith.constant 0 : i32
    return %arg0, %arg1 : i32, i32
  }
}

module attributes {stable_mosaic.version = 11 : i64} {
  func.func @_mm_bn_res_kernel(%arg0: i32, %arg1: i32, %arg2: i32, %arg3: memref<64x384xbf16, #tpu.memory_space<vmem>>, %arg4: memref<384x128xbf16, #tpu.memory_space<vmem>>, %arg5: memref<1x128xf32, #tpu.memory_space<vmem>>, %arg6: memref<1x128xf32, #tpu.memory_space<vmem>>, %arg7: memref<64x128xf32, #tpu.memory_space<vmem>>, %arg8: memref<64x128xf32, #tpu.memory_space<vmem>>, %arg9: memref<64x128xf32, #tpu.memory_space<vmem>>) attributes {dimension_semantics = [#tpu.dimension_semantics<parallel>, #tpu.dimension_semantics<parallel>, #tpu.dimension_semantics<arbitrary>], iteration_bounds = array<i64: 2, 1, 3>, scalar_prefetch = 0 : i64, scratch_operands = 1 : i64, tpu.core_type = #tpu.core_type<tc>, window_params = [{transform_indices = @transform_0, window_bounds = array<i64: 64, 384>}, {transform_indices = @transform_1, window_bounds = array<i64: 384, 128>}, {transform_indices = @transform_2, window_bounds = array<i64: 1, 128>}, {transform_indices = @transform_3, window_bounds = array<i64: 1, 128>}, {transform_indices = @transform_4, window_bounds = array<i64: 64, 128>}, {transform_indices = @transform_5, window_bounds = array<i64: 64, 128>}]} {
    %c0_i32 = arith.constant 0 : i32
    %0 = arith.cmpi eq, %arg2, %c0_i32 : i32
    %1 = arith.extui %0 : i1 to i32
    %c0_i32_0 = arith.constant 0 : i32
    %2 = arith.cmpi ne, %1, %c0_i32_0 : i32
    scf.if %2 {
      %cst_9 = arith.constant 0.000000e+00 : f32
      %12 = vector.broadcast %cst_9 : f32 to vector<64x128xf32>
      %c0_10 = arith.constant 0 : index
      %c0_11 = arith.constant 0 : index
      %13 = vector.load %arg9[%c0_10, %c0_11] : memref<64x128xf32, #tpu.memory_space<vmem>>, vector<64x128xf32>
      tpu.vector_store %arg9[%c0_10, %c0_11], %12 {strides = array<i32>} : memref<64x128xf32, #tpu.memory_space<vmem>>, vector<64x128xf32>,
    } else {
    }
    %c0 = arith.constant 0 : index
    %c0_1 = arith.constant 0 : index
    %3 = vector.load %arg9[%c0, %c0_1] : memref<64x128xf32, #tpu.memory_space<vmem>>, vector<64x128xf32>
    %c0_2 = arith.constant 0 : index
    %c0_3 = arith.constant 0 : index
    %4 = vector.load %arg3[%c0_2, %c0_3] : memref<64x384xbf16, #tpu.memory_space<vmem>>, vector<64x384xbf16>
    %c0_4 = arith.constant 0 : index
    %c0_5 = arith.constant 0 : index
    %5 = vector.load %arg4[%c0_4, %c0_5] : memref<384x128xbf16, #tpu.memory_space<vmem>>, vector<384x128xbf16>
    %cst = arith.constant dense<0.000000e+00> : vector<64x128xf32>
    %6 = tpu.matmul %4, %5, %cst {dimension_numbers = #tpu.dot_dimension_numbers<[1], [0], [0], [1], [0, 0, 1, 1], [], []>} : vector<64x384xbf16>, vector<384x128xbf16>, vector<64x128xf32> -> vector<64x128xf32>
    %7 = arith.addf %3, %6 : vector<64x128xf32>
    %c0_6 = arith.constant 0 : index
    %c0_7 = arith.constant 0 : index
    %8 = vector.load %arg9[%c0_6, %c0_7] : memref<64x128xf32, #tpu.memory_space<vmem>>, vector<64x128xf32>
    tpu.vector_store %arg9[%c0_6, %c0_7], %7 {strides = array<i32>} : memref<64x128xf32, #tpu.memory_space<vmem>>, vector<64x128xf32>,
    %c2_i32 = arith.constant 2 : i32
    %9 = arith.cmpi eq, %arg2, %c2_i32 : i32
    %10 = arith.extui %9 : i1 to i32
    %c0_i32_8 = arith.constant 0 : i32
    %11 = arith.cmpi ne, %10, %c0_i32_8 : i32
    scf.if %11 {
      %c0_9 = arith.constant 0 : index
      %c0_10 = arith.constant 0 : index
      %12 = vector.load %arg9[%c0_9, %c0_10] : memref<64x128xf32, #tpu.memory_space<vmem>>, vector<64x128xf32>
      %c0_11 = arith.constant 0 : index
      %c0_12 = arith.constant 0 : index
      %13 = vector.load %arg5[%c0_11, %c0_12] : memref<1x128xf32, #tpu.memory_space<vmem>>, vector<1x128xf32>
      %14 = vector.broadcast %13 : vector<1x128xf32> to vector<64x128xf32>
      %15 = arith.mulf %12, %14 : vector<64x128xf32>
      %c0_13 = arith.constant 0 : index
      %c0_14 = arith.constant 0 : index
      %16 = vector.load %arg6[%c0_13, %c0_14] : memref<1x128xf32, #tpu.memory_space<vmem>>, vector<1x128xf32>
      %17 = vector.broadcast %16 : vector<1x128xf32> to vector<64x128xf32>
      %18 = arith.addf %15, %17 : vector<64x128xf32>
      %c0_15 = arith.constant 0 : index
      %c0_16 = arith.constant 0 : index
      %19 = vector.load %arg7[%c0_15, %c0_16] : memref<64x128xf32, #tpu.memory_space<vmem>>, vector<64x128xf32>
      %20 = arith.addf %18, %19 : vector<64x128xf32>
      %cst_17 = arith.constant 0.000000e+00 : f32
      %21 = vector.broadcast %cst_17 : f32 to vector<64x128xf32>
      %22 = arith.maximumf %20, %21 : vector<64x128xf32>
      %c0_18 = arith.constant 0 : index
      %c0_19 = arith.constant 0 : index
      %23 = vector.load %arg8[%c0_18, %c0_19] : memref<64x128xf32, #tpu.memory_space<vmem>>, vector<64x128xf32>
      tpu.vector_store %arg8[%c0_18, %c0_19], %22 {strides = array<i32>} : memref<64x128xf32, #tpu.memory_space<vmem>>, vector<64x128xf32>,
    } else {
    }
    return
  }
  func.func @transform_0(%arg0: i32, %arg1: i32, %arg2: i32) -> (i32, i32) {
    %c0_i32 = arith.constant 0 : i32
    return %arg0, %arg2 : i32, i32
  }
  func.func @transform_1(%arg0: i32, %arg1: i32, %arg2: i32) -> (i32, i32) {
    %c0_i32 = arith.constant 0 : i32
    return %arg2, %arg1 : i32, i32
  }
  func.func @transform_2(%arg0: i32, %arg1: i32, %arg2: i32) -> (i32, i32) {
    %c0_i32 = arith.constant 0 : i32
    %c0_i32_0 = arith.constant 0 : i32
    return %c0_i32, %arg1 : i32, i32
  }
  func.func @transform_3(%arg0: i32, %arg1: i32, %arg2: i32) -> (i32, i32) {
    %c0_i32 = arith.constant 0 : i32
    %c0_i32_0 = arith.constant 0 : i32
    return %c0_i32, %arg1 : i32, i32
  }
  func.func @transform_4(%arg0: i32, %arg1: i32, %arg2: i32) -> (i32, i32) {
    %c0_i32 = arith.constant 0 : i32
    return %arg0, %arg1 : i32, i32
  }
  func.func @transform_5(%arg0: i32, %arg1: i32, %arg2: i32) -> (i32, i32) {
    %c0_i32 = arith.constant 0 : i32
    return %arg0, %arg1 : i32, i32
  }
}

module attributes {stable_mosaic.version = 11 : i64} {
  func.func @_mm_bn_kernel(%arg0: i32, %arg1: i32, %arg2: i32, %arg3: memref<64x384xbf16, #tpu.memory_space<vmem>>, %arg4: memref<384x128xbf16, #tpu.memory_space<vmem>>, %arg5: memref<1x128xf32, #tpu.memory_space<vmem>>, %arg6: memref<1x128xf32, #tpu.memory_space<vmem>>, %arg7: memref<64x128xf32, #tpu.memory_space<vmem>>, %arg8: memref<64x128xf32, #tpu.memory_space<vmem>>) attributes {dimension_semantics = [#tpu.dimension_semantics<parallel>, #tpu.dimension_semantics<parallel>, #tpu.dimension_semantics<arbitrary>], iteration_bounds = array<i64: 2, 1, 3>, scalar_prefetch = 0 : i64, scratch_operands = 1 : i64, tpu.core_type = #tpu.core_type<tc>, window_params = [{transform_indices = @transform_0, window_bounds = array<i64: 64, 384>}, {transform_indices = @transform_1, window_bounds = array<i64: 384, 128>}, {transform_indices = @transform_2, window_bounds = array<i64: 1, 128>}, {transform_indices = @transform_3, window_bounds = array<i64: 1, 128>}, {transform_indices = @transform_4, window_bounds = array<i64: 64, 128>}]} {
    %c0_i32 = arith.constant 0 : i32
    %0 = arith.cmpi eq, %arg2, %c0_i32 : i32
    %1 = arith.extui %0 : i1 to i32
    %c0_i32_0 = arith.constant 0 : i32
    %2 = arith.cmpi ne, %1, %c0_i32_0 : i32
    scf.if %2 {
      %cst_9 = arith.constant 0.000000e+00 : f32
      %12 = vector.broadcast %cst_9 : f32 to vector<64x128xf32>
      %c0_10 = arith.constant 0 : index
      %c0_11 = arith.constant 0 : index
      %13 = vector.load %arg8[%c0_10, %c0_11] : memref<64x128xf32, #tpu.memory_space<vmem>>, vector<64x128xf32>
      tpu.vector_store %arg8[%c0_10, %c0_11], %12 {strides = array<i32>} : memref<64x128xf32, #tpu.memory_space<vmem>>, vector<64x128xf32>,
    } else {
    }
    %c0 = arith.constant 0 : index
    %c0_1 = arith.constant 0 : index
    %3 = vector.load %arg8[%c0, %c0_1] : memref<64x128xf32, #tpu.memory_space<vmem>>, vector<64x128xf32>
    %c0_2 = arith.constant 0 : index
    %c0_3 = arith.constant 0 : index
    %4 = vector.load %arg3[%c0_2, %c0_3] : memref<64x384xbf16, #tpu.memory_space<vmem>>, vector<64x384xbf16>
    %c0_4 = arith.constant 0 : index
    %c0_5 = arith.constant 0 : index
    %5 = vector.load %arg4[%c0_4, %c0_5] : memref<384x128xbf16, #tpu.memory_space<vmem>>, vector<384x128xbf16>
    %cst = arith.constant dense<0.000000e+00> : vector<64x128xf32>
    %6 = tpu.matmul %4, %5, %cst {dimension_numbers = #tpu.dot_dimension_numbers<[1], [0], [0], [1], [0, 0, 1, 1], [], []>} : vector<64x384xbf16>, vector<384x128xbf16>, vector<64x128xf32> -> vector<64x128xf32>
    %7 = arith.addf %3, %6 : vector<64x128xf32>
    %c0_6 = arith.constant 0 : index
    %c0_7 = arith.constant 0 : index
    %8 = vector.load %arg8[%c0_6, %c0_7] : memref<64x128xf32, #tpu.memory_space<vmem>>, vector<64x128xf32>
    tpu.vector_store %arg8[%c0_6, %c0_7], %7 {strides = array<i32>} : memref<64x128xf32, #tpu.memory_space<vmem>>, vector<64x128xf32>,
    %c2_i32 = arith.constant 2 : i32
    %9 = arith.cmpi eq, %arg2, %c2_i32 : i32
    %10 = arith.extui %9 : i1 to i32
    %c0_i32_8 = arith.constant 0 : i32
    %11 = arith.cmpi ne, %10, %c0_i32_8 : i32
    scf.if %11 {
      %c0_9 = arith.constant 0 : index
      %c0_10 = arith.constant 0 : index
      %12 = vector.load %arg8[%c0_9, %c0_10] : memref<64x128xf32, #tpu.memory_space<vmem>>, vector<64x128xf32>
      %c0_11 = arith.constant 0 : index
      %c0_12 = arith.constant 0 : index
      %13 = vector.load %arg5[%c0_11, %c0_12] : memref<1x128xf32, #tpu.memory_space<vmem>>, vector<1x128xf32>
      %14 = vector.broadcast %13 : vector<1x128xf32> to vector<64x128xf32>
      %15 = arith.mulf %12, %14 : vector<64x128xf32>
      %c0_13 = arith.constant 0 : index
      %c0_14 = arith.constant 0 : index
      %16 = vector.load %arg6[%c0_13, %c0_14] : memref<1x128xf32, #tpu.memory_space<vmem>>, vector<1x128xf32>
      %17 = vector.broadcast %16 : vector<1x128xf32> to vector<64x128xf32>
      %18 = arith.addf %15, %17 : vector<64x128xf32>
      %cst_15 = arith.constant 0.000000e+00 : f32
      %19 = vector.broadcast %cst_15 : f32 to vector<64x128xf32>
      %20 = arith.maximumf %18, %19 : vector<64x128xf32>
      %c0_16 = arith.constant 0 : index
      %c0_17 = arith.constant 0 : index
      %21 = vector.load %arg7[%c0_16, %c0_17] : memref<64x128xf32, #tpu.memory_space<vmem>>, vector<64x128xf32>
      tpu.vector_store %arg7[%c0_16, %c0_17], %20 {strides = array<i32>} : memref<64x128xf32, #tpu.memory_space<vmem>>, vector<64x128xf32>,
    } else {
    }
    return
  }
  func.func @transform_0(%arg0: i32, %arg1: i32, %arg2: i32) -> (i32, i32) {
    %c0_i32 = arith.constant 0 : i32
    return %arg0, %arg2 : i32, i32
  }
  func.func @transform_1(%arg0: i32, %arg1: i32, %arg2: i32) -> (i32, i32) {
    %c0_i32 = arith.constant 0 : i32
    return %arg2, %arg1 : i32, i32
  }
  func.func @transform_2(%arg0: i32, %arg1: i32, %arg2: i32) -> (i32, i32) {
    %c0_i32 = arith.constant 0 : i32
    %c0_i32_0 = arith.constant 0 : i32
    return %c0_i32, %arg1 : i32, i32
  }
  func.func @transform_3(%arg0: i32, %arg1: i32, %arg2: i32) -> (i32, i32) {
    %c0_i32 = arith.constant 0 : i32
    %c0_i32_0 = arith.constant 0 : i32
    return %c0_i32, %arg1 : i32, i32
  }
  func.func @transform_4(%arg0: i32, %arg1: i32, %arg2: i32) -> (i32, i32) {
    %c0_i32 = arith.constant 0 : i32
    return %arg0, %arg1 : i32, i32
  }
}

module attributes {stable_mosaic.version = 11 : i64} {
  func.func @_mm_bn_kernel(%arg0: i32, %arg1: i32, %arg2: i32, %arg3: memref<32x384xbf16, #tpu.memory_space<vmem>>, %arg4: memref<384x128xbf16, #tpu.memory_space<vmem>>, %arg5: memref<1x128xf32, #tpu.memory_space<vmem>>, %arg6: memref<1x128xf32, #tpu.memory_space<vmem>>, %arg7: memref<32x128xf32, #tpu.memory_space<vmem>>, %arg8: memref<32x128xf32, #tpu.memory_space<vmem>>) attributes {dimension_semantics = [#tpu.dimension_semantics<parallel>, #tpu.dimension_semantics<parallel>, #tpu.dimension_semantics<arbitrary>], iteration_bounds = array<i64: 1, 2, 3>, scalar_prefetch = 0 : i64, scratch_operands = 1 : i64, tpu.core_type = #tpu.core_type<tc>, window_params = [{transform_indices = @transform_0, window_bounds = array<i64: 32, 384>}, {transform_indices = @transform_1, window_bounds = array<i64: 384, 128>}, {transform_indices = @transform_2, window_bounds = array<i64: 1, 128>}, {transform_indices = @transform_3, window_bounds = array<i64: 1, 128>}, {transform_indices = @transform_4, window_bounds = array<i64: 32, 128>}]} {
    %c0_i32 = arith.constant 0 : i32
    %0 = arith.cmpi eq, %arg2, %c0_i32 : i32
    %1 = arith.extui %0 : i1 to i32
    %c0_i32_0 = arith.constant 0 : i32
    %2 = arith.cmpi ne, %1, %c0_i32_0 : i32
    scf.if %2 {
      %cst_9 = arith.constant 0.000000e+00 : f32
      %12 = vector.broadcast %cst_9 : f32 to vector<32x128xf32>
      %c0_10 = arith.constant 0 : index
      %c0_11 = arith.constant 0 : index
      %13 = vector.load %arg8[%c0_10, %c0_11] : memref<32x128xf32, #tpu.memory_space<vmem>>, vector<32x128xf32>
      tpu.vector_store %arg8[%c0_10, %c0_11], %12 {strides = array<i32>} : memref<32x128xf32, #tpu.memory_space<vmem>>, vector<32x128xf32>,
    } else {
    }
    %c0 = arith.constant 0 : index
    %c0_1 = arith.constant 0 : index
    %3 = vector.load %arg8[%c0, %c0_1] : memref<32x128xf32, #tpu.memory_space<vmem>>, vector<32x128xf32>
    %c0_2 = arith.constant 0 : index
    %c0_3 = arith.constant 0 : index
    %4 = vector.load %arg3[%c0_2, %c0_3] : memref<32x384xbf16, #tpu.memory_space<vmem>>, vector<32x384xbf16>
    %c0_4 = arith.constant 0 : index
    %c0_5 = arith.constant 0 : index
    %5 = vector.load %arg4[%c0_4, %c0_5] : memref<384x128xbf16, #tpu.memory_space<vmem>>, vector<384x128xbf16>
    %cst = arith.constant dense<0.000000e+00> : vector<32x128xf32>
    %6 = tpu.matmul %4, %5, %cst {dimension_numbers = #tpu.dot_dimension_numbers<[1], [0], [0], [1], [0, 0, 1, 1], [], []>} : vector<32x384xbf16>, vector<384x128xbf16>, vector<32x128xf32> -> vector<32x128xf32>
    %7 = arith.addf %3, %6 : vector<32x128xf32>
    %c0_6 = arith.constant 0 : index
    %c0_7 = arith.constant 0 : index
    %8 = vector.load %arg8[%c0_6, %c0_7] : memref<32x128xf32, #tpu.memory_space<vmem>>, vector<32x128xf32>
    tpu.vector_store %arg8[%c0_6, %c0_7], %7 {strides = array<i32>} : memref<32x128xf32, #tpu.memory_space<vmem>>, vector<32x128xf32>,
    %c2_i32 = arith.constant 2 : i32
    %9 = arith.cmpi eq, %arg2, %c2_i32 : i32
    %10 = arith.extui %9 : i1 to i32
    %c0_i32_8 = arith.constant 0 : i32
    %11 = arith.cmpi ne, %10, %c0_i32_8 : i32
    scf.if %11 {
      %c0_9 = arith.constant 0 : index
      %c0_10 = arith.constant 0 : index
      %12 = vector.load %arg8[%c0_9, %c0_10] : memref<32x128xf32, #tpu.memory_space<vmem>>, vector<32x128xf32>
      %c0_11 = arith.constant 0 : index
      %c0_12 = arith.constant 0 : index
      %13 = vector.load %arg5[%c0_11, %c0_12] : memref<1x128xf32, #tpu.memory_space<vmem>>, vector<1x128xf32>
      %14 = vector.broadcast %13 : vector<1x128xf32> to vector<32x128xf32>
      %15 = arith.mulf %12, %14 : vector<32x128xf32>
      %c0_13 = arith.constant 0 : index
      %c0_14 = arith.constant 0 : index
      %16 = vector.load %arg6[%c0_13, %c0_14] : memref<1x128xf32, #tpu.memory_space<vmem>>, vector<1x128xf32>
      %17 = vector.broadcast %16 : vector<1x128xf32> to vector<32x128xf32>
      %18 = arith.addf %15, %17 : vector<32x128xf32>
      %cst_15 = arith.constant 0.000000e+00 : f32
      %19 = vector.broadcast %cst_15 : f32 to vector<32x128xf32>
      %20 = arith.maximumf %18, %19 : vector<32x128xf32>
      %c0_16 = arith.constant 0 : index
      %c0_17 = arith.constant 0 : index
      %21 = vector.load %arg7[%c0_16, %c0_17] : memref<32x128xf32, #tpu.memory_space<vmem>>, vector<32x128xf32>
      tpu.vector_store %arg7[%c0_16, %c0_17], %20 {strides = array<i32>} : memref<32x128xf32, #tpu.memory_space<vmem>>, vector<32x128xf32>,
    } else {
    }
    return
  }
  func.func @transform_0(%arg0: i32, %arg1: i32, %arg2: i32) -> (i32, i32) {
    %c0_i32 = arith.constant 0 : i32
    return %arg0, %arg2 : i32, i32
  }
  func.func @transform_1(%arg0: i32, %arg1: i32, %arg2: i32) -> (i32, i32) {
    %c0_i32 = arith.constant 0 : i32
    return %arg2, %arg1 : i32, i32
  }
  func.func @transform_2(%arg0: i32, %arg1: i32, %arg2: i32) -> (i32, i32) {
    %c0_i32 = arith.constant 0 : i32
    %c0_i32_0 = arith.constant 0 : i32
    return %c0_i32, %arg1 : i32, i32
  }
  func.func @transform_3(%arg0: i32, %arg1: i32, %arg2: i32) -> (i32, i32) {
    %c0_i32 = arith.constant 0 : i32
    %c0_i32_0 = arith.constant 0 : i32
    return %c0_i32, %arg1 : i32, i32
  }
  func.func @transform_4(%arg0: i32, %arg1: i32, %arg2: i32) -> (i32, i32) {
    %c0_i32 = arith.constant 0 : i32
    return %arg0, %arg1 : i32, i32
  }
}

module attributes {stable_mosaic.version = 11 : i64} {
  func.func @_mm_bn_kernel(%arg0: i32, %arg1: i32, %arg2: i32, %arg3: memref<32x128xbf16, #tpu.memory_space<vmem>>, %arg4: memref<128x128xbf16, #tpu.memory_space<vmem>>, %arg5: memref<1x128xf32, #tpu.memory_space<vmem>>, %arg6: memref<1x128xf32, #tpu.memory_space<vmem>>, %arg7: memref<32x128xf32, #tpu.memory_space<vmem>>, %arg8: memref<32x128xf32, #tpu.memory_space<vmem>>) attributes {dimension_semantics = [#tpu.dimension_semantics<parallel>, #tpu.dimension_semantics<parallel>, #tpu.dimension_semantics<arbitrary>], iteration_bounds = array<i64: 1, 2, 1>, scalar_prefetch = 0 : i64, scratch_operands = 1 : i64, tpu.core_type = #tpu.core_type<tc>, window_params = [{transform_indices = @transform_0, window_bounds = array<i64: 32, 128>}, {transform_indices = @transform_1, window_bounds = array<i64: 128, 128>}, {transform_indices = @transform_2, window_bounds = array<i64: 1, 128>}, {transform_indices = @transform_3, window_bounds = array<i64: 1, 128>}, {transform_indices = @transform_4, window_bounds = array<i64: 32, 128>}]} {
    %c0_i32 = arith.constant 0 : i32
    %0 = arith.cmpi eq, %arg2, %c0_i32 : i32
    %1 = arith.extui %0 : i1 to i32
    %c0_i32_0 = arith.constant 0 : i32
    %2 = arith.cmpi ne, %1, %c0_i32_0 : i32
    scf.if %2 {
      %cst_10 = arith.constant 0.000000e+00 : f32
      %12 = vector.broadcast %cst_10 : f32 to vector<32x128xf32>
      %c0_11 = arith.constant 0 : index
      %c0_12 = arith.constant 0 : index
      %13 = vector.load %arg8[%c0_11, %c0_12] : memref<32x128xf32, #tpu.memory_space<vmem>>, vector<32x128xf32>
      tpu.vector_store %arg8[%c0_11, %c0_12], %12 {strides = array<i32>} : memref<32x128xf32, #tpu.memory_space<vmem>>, vector<32x128xf32>,
    } else {
    }
    %c0 = arith.constant 0 : index
    %c0_1 = arith.constant 0 : index
    %3 = vector.load %arg8[%c0, %c0_1] : memref<32x128xf32, #tpu.memory_space<vmem>>, vector<32x128xf32>
    %c0_2 = arith.constant 0 : index
    %c0_3 = arith.constant 0 : index
    %4 = vector.load %arg3[%c0_2, %c0_3] : memref<32x128xbf16, #tpu.memory_space<vmem>>, vector<32x128xbf16>
    %c0_4 = arith.constant 0 : index
    %c0_5 = arith.constant 0 : index
    %5 = vector.load %arg4[%c0_4, %c0_5] : memref<128x128xbf16, #tpu.memory_space<vmem>>, vector<128x128xbf16>
    %cst = arith.constant dense<0.000000e+00> : vector<32x128xf32>
    %6 = tpu.matmul %4, %5, %cst {dimension_numbers = #tpu.dot_dimension_numbers<[1], [0], [0], [1], [0, 0, 1, 1], [], []>} : vector<32x128xbf16>, vector<128x128xbf16>, vector<32x128xf32> -> vector<32x128xf32>
    %7 = arith.addf %3, %6 : vector<32x128xf32>
    %c0_6 = arith.constant 0 : index
    %c0_7 = arith.constant 0 : index
    %8 = vector.load %arg8[%c0_6, %c0_7] : memref<32x128xf32, #tpu.memory_space<vmem>>, vector<32x128xf32>
    tpu.vector_store %arg8[%c0_6, %c0_7], %7 {strides = array<i32>} : memref<32x128xf32, #tpu.memory_space<vmem>>, vector<32x128xf32>,
    %c0_i32_8 = arith.constant 0 : i32
    %9 = arith.cmpi eq, %arg2, %c0_i32_8 : i32
    %10 = arith.extui %9 : i1 to i32
    %c0_i32_9 = arith.constant 0 : i32
    %11 = arith.cmpi ne, %10, %c0_i32_9 : i32
    scf.if %11 {
      %c0_10 = arith.constant 0 : index
      %c0_11 = arith.constant 0 : index
      %12 = vector.load %arg8[%c0_10, %c0_11] : memref<32x128xf32, #tpu.memory_space<vmem>>, vector<32x128xf32>
      %c0_12 = arith.constant 0 : index
      %c0_13 = arith.constant 0 : index
      %13 = vector.load %arg5[%c0_12, %c0_13] : memref<1x128xf32, #tpu.memory_space<vmem>>, vector<1x128xf32>
      %14 = vector.broadcast %13 : vector<1x128xf32> to vector<32x128xf32>
      %15 = arith.mulf %12, %14 : vector<32x128xf32>
      %c0_14 = arith.constant 0 : index
      %c0_15 = arith.constant 0 : index
      %16 = vector.load %arg6[%c0_14, %c0_15] : memref<1x128xf32, #tpu.memory_space<vmem>>, vector<1x128xf32>
      %17 = vector.broadcast %16 : vector<1x128xf32> to vector<32x128xf32>
      %18 = arith.addf %15, %17 : vector<32x128xf32>
      %c0_16 = arith.constant 0 : index
      %c0_17 = arith.constant 0 : index
      %19 = vector.load %arg7[%c0_16, %c0_17] : memref<32x128xf32, #tpu.memory_space<vmem>>, vector<32x128xf32>
      tpu.vector_store %arg7[%c0_16, %c0_17], %18 {strides = array<i32>} : memref<32x128xf32, #tpu.memory_space<vmem>>, vector<32x128xf32>,
    } else {
    }
    return
  }
  func.func @transform_0(%arg0: i32, %arg1: i32, %arg2: i32) -> (i32, i32) {
    %c0_i32 = arith.constant 0 : i32
    return %arg0, %arg2 : i32, i32
  }
  func.func @transform_1(%arg0: i32, %arg1: i32, %arg2: i32) -> (i32, i32) {
    %c0_i32 = arith.constant 0 : i32
    return %arg2, %arg1 : i32, i32
  }
  func.func @transform_2(%arg0: i32, %arg1: i32, %arg2: i32) -> (i32, i32) {
    %c0_i32 = arith.constant 0 : i32
    %c0_i32_0 = arith.constant 0 : i32
    return %c0_i32, %arg1 : i32, i32
  }
  func.func @transform_3(%arg0: i32, %arg1: i32, %arg2: i32) -> (i32, i32) {
    %c0_i32 = arith.constant 0 : i32
    %c0_i32_0 = arith.constant 0 : i32
    return %c0_i32, %arg1 : i32, i32
  }
  func.func @transform_4(%arg0: i32, %arg1: i32, %arg2: i32) -> (i32, i32) {
    %c0_i32 = arith.constant 0 : i32
    return %arg0, %arg1 : i32, i32
  }
}

module attributes {stable_mosaic.version = 11 : i64} {
  func.func @_mm_bn_res_kernel(%arg0: i32, %arg1: i32, %arg2: i32, %arg3: memref<32x384xbf16, #tpu.memory_space<vmem>>, %arg4: memref<384x128xbf16, #tpu.memory_space<vmem>>, %arg5: memref<1x128xf32, #tpu.memory_space<vmem>>, %arg6: memref<1x128xf32, #tpu.memory_space<vmem>>, %arg7: memref<32x128xf32, #tpu.memory_space<vmem>>, %arg8: memref<32x128xf32, #tpu.memory_space<vmem>>, %arg9: memref<32x128xf32, #tpu.memory_space<vmem>>) attributes {dimension_semantics = [#tpu.dimension_semantics<parallel>, #tpu.dimension_semantics<parallel>, #tpu.dimension_semantics<arbitrary>], iteration_bounds = array<i64: 1, 2, 6>, scalar_prefetch = 0 : i64, scratch_operands = 1 : i64, tpu.core_type = #tpu.core_type<tc>, window_params = [{transform_indices = @transform_0, window_bounds = array<i64: 32, 384>}, {transform_indices = @transform_1, window_bounds = array<i64: 384, 128>}, {transform_indices = @transform_2, window_bounds = array<i64: 1, 128>}, {transform_indices = @transform_3, window_bounds = array<i64: 1, 128>}, {transform_indices = @transform_4, window_bounds = array<i64: 32, 128>}, {transform_indices = @transform_5, window_bounds = array<i64: 32, 128>}]} {
    %c0_i32 = arith.constant 0 : i32
    %0 = arith.cmpi eq, %arg2, %c0_i32 : i32
    %1 = arith.extui %0 : i1 to i32
    %c0_i32_0 = arith.constant 0 : i32
    %2 = arith.cmpi ne, %1, %c0_i32_0 : i32
    scf.if %2 {
      %cst_9 = arith.constant 0.000000e+00 : f32
      %12 = vector.broadcast %cst_9 : f32 to vector<32x128xf32>
      %c0_10 = arith.constant 0 : index
      %c0_11 = arith.constant 0 : index
      %13 = vector.load %arg9[%c0_10, %c0_11] : memref<32x128xf32, #tpu.memory_space<vmem>>, vector<32x128xf32>
      tpu.vector_store %arg9[%c0_10, %c0_11], %12 {strides = array<i32>} : memref<32x128xf32, #tpu.memory_space<vmem>>, vector<32x128xf32>,
    } else {
    }
    %c0 = arith.constant 0 : index
    %c0_1 = arith.constant 0 : index
    %3 = vector.load %arg9[%c0, %c0_1] : memref<32x128xf32, #tpu.memory_space<vmem>>, vector<32x128xf32>
    %c0_2 = arith.constant 0 : index
    %c0_3 = arith.constant 0 : index
    %4 = vector.load %arg3[%c0_2, %c0_3] : memref<32x384xbf16, #tpu.memory_space<vmem>>, vector<32x384xbf16>
    %c0_4 = arith.constant 0 : index
    %c0_5 = arith.constant 0 : index
    %5 = vector.load %arg4[%c0_4, %c0_5] : memref<384x128xbf16, #tpu.memory_space<vmem>>, vector<384x128xbf16>
    %cst = arith.constant dense<0.000000e+00> : vector<32x128xf32>
    %6 = tpu.matmul %4, %5, %cst {dimension_numbers = #tpu.dot_dimension_numbers<[1], [0], [0], [1], [0, 0, 1, 1], [], []>} : vector<32x384xbf16>, vector<384x128xbf16>, vector<32x128xf32> -> vector<32x128xf32>
    %7 = arith.addf %3, %6 : vector<32x128xf32>
    %c0_6 = arith.constant 0 : index
    %c0_7 = arith.constant 0 : index
    %8 = vector.load %arg9[%c0_6, %c0_7] : memref<32x128xf32, #tpu.memory_space<vmem>>, vector<32x128xf32>
    tpu.vector_store %arg9[%c0_6, %c0_7], %7 {strides = array<i32>} : memref<32x128xf32, #tpu.memory_space<vmem>>, vector<32x128xf32>,
    %c5_i32 = arith.constant 5 : i32
    %9 = arith.cmpi eq, %arg2, %c5_i32 : i32
    %10 = arith.extui %9 : i1 to i32
    %c0_i32_8 = arith.constant 0 : i32
    %11 = arith.cmpi ne, %10, %c0_i32_8 : i32
    scf.if %11 {
      %c0_9 = arith.constant 0 : index
      %c0_10 = arith.constant 0 : index
      %12 = vector.load %arg9[%c0_9, %c0_10] : memref<32x128xf32, #tpu.memory_space<vmem>>, vector<32x128xf32>
      %c0_11 = arith.constant 0 : index
      %c0_12 = arith.constant 0 : index
      %13 = vector.load %arg5[%c0_11, %c0_12] : memref<1x128xf32, #tpu.memory_space<vmem>>, vector<1x128xf32>
      %14 = vector.broadcast %13 : vector<1x128xf32> to vector<32x128xf32>
      %15 = arith.mulf %12, %14 : vector<32x128xf32>
      %c0_13 = arith.constant 0 : index
      %c0_14 = arith.constant 0 : index
      %16 = vector.load %arg6[%c0_13, %c0_14] : memref<1x128xf32, #tpu.memory_space<vmem>>, vector<1x128xf32>
      %17 = vector.broadcast %16 : vector<1x128xf32> to vector<32x128xf32>
      %18 = arith.addf %15, %17 : vector<32x128xf32>
      %c0_15 = arith.constant 0 : index
      %c0_16 = arith.constant 0 : index
      %19 = vector.load %arg7[%c0_15, %c0_16] : memref<32x128xf32, #tpu.memory_space<vmem>>, vector<32x128xf32>
      %20 = arith.addf %18, %19 : vector<32x128xf32>
      %cst_17 = arith.constant 0.000000e+00 : f32
      %21 = vector.broadcast %cst_17 : f32 to vector<32x128xf32>
      %22 = arith.maximumf %20, %21 : vector<32x128xf32>
      %c0_18 = arith.constant 0 : index
      %c0_19 = arith.constant 0 : index
      %23 = vector.load %arg8[%c0_18, %c0_19] : memref<32x128xf32, #tpu.memory_space<vmem>>, vector<32x128xf32>
      tpu.vector_store %arg8[%c0_18, %c0_19], %22 {strides = array<i32>} : memref<32x128xf32, #tpu.memory_space<vmem>>, vector<32x128xf32>,
    } else {
    }
    return
  }
  func.func @transform_0(%arg0: i32, %arg1: i32, %arg2: i32) -> (i32, i32) {
    %c0_i32 = arith.constant 0 : i32
    return %arg0, %arg2 : i32, i32
  }
  func.func @transform_1(%arg0: i32, %arg1: i32, %arg2: i32) -> (i32, i32) {
    %c0_i32 = arith.constant 0 : i32
    return %arg2, %arg1 : i32, i32
  }
  func.func @transform_2(%arg0: i32, %arg1: i32, %arg2: i32) -> (i32, i32) {
    %c0_i32 = arith.constant 0 : i32
    %c0_i32_0 = arith.constant 0 : i32
    return %c0_i32, %arg1 : i32, i32
  }
  func.func @transform_3(%arg0: i32, %arg1: i32, %arg2: i32) -> (i32, i32) {
    %c0_i32 = arith.constant 0 : i32
    %c0_i32_0 = arith.constant 0 : i32
    return %c0_i32, %arg1 : i32, i32
  }
  func.func @transform_4(%arg0: i32, %arg1: i32, %arg2: i32) -> (i32, i32) {
    %c0_i32 = arith.constant 0 : i32
    return %arg0, %arg1 : i32, i32
  }
  func.func @transform_5(%arg0: i32, %arg1: i32, %arg2: i32) -> (i32, i32) {
    %c0_i32 = arith.constant 0 : i32
    return %arg0, %arg1 : i32, i32
  }
}

module attributes {stable_mosaic.version = 11 : i64} {
  func.func @_mm_bn_kernel(%arg0: i32, %arg1: i32, %arg2: i32, %arg3: memref<32x384xbf16, #tpu.memory_space<vmem>>, %arg4: memref<384x128xbf16, #tpu.memory_space<vmem>>, %arg5: memref<1x128xf32, #tpu.memory_space<vmem>>, %arg6: memref<1x128xf32, #tpu.memory_space<vmem>>, %arg7: memref<32x128xf32, #tpu.memory_space<vmem>>, %arg8: memref<32x128xf32, #tpu.memory_space<vmem>>) attributes {dimension_semantics = [#tpu.dimension_semantics<parallel>, #tpu.dimension_semantics<parallel>, #tpu.dimension_semantics<arbitrary>], iteration_bounds = array<i64: 1, 2, 6>, scalar_prefetch = 0 : i64, scratch_operands = 1 : i64, tpu.core_type = #tpu.core_type<tc>, window_params = [{transform_indices = @transform_0, window_bounds = array<i64: 32, 384>}, {transform_indices = @transform_1, window_bounds = array<i64: 384, 128>}, {transform_indices = @transform_2, window_bounds = array<i64: 1, 128>}, {transform_indices = @transform_3, window_bounds = array<i64: 1, 128>}, {transform_indices = @transform_4, window_bounds = array<i64: 32, 128>}]} {
    %c0_i32 = arith.constant 0 : i32
    %0 = arith.cmpi eq, %arg2, %c0_i32 : i32
    %1 = arith.extui %0 : i1 to i32
    %c0_i32_0 = arith.constant 0 : i32
    %2 = arith.cmpi ne, %1, %c0_i32_0 : i32
    scf.if %2 {
      %cst_9 = arith.constant 0.000000e+00 : f32
      %12 = vector.broadcast %cst_9 : f32 to vector<32x128xf32>
      %c0_10 = arith.constant 0 : index
      %c0_11 = arith.constant 0 : index
      %13 = vector.load %arg8[%c0_10, %c0_11] : memref<32x128xf32, #tpu.memory_space<vmem>>, vector<32x128xf32>
      tpu.vector_store %arg8[%c0_10, %c0_11], %12 {strides = array<i32>} : memref<32x128xf32, #tpu.memory_space<vmem>>, vector<32x128xf32>,
    } else {
    }
    %c0 = arith.constant 0 : index
    %c0_1 = arith.constant 0 : index
    %3 = vector.load %arg8[%c0, %c0_1] : memref<32x128xf32, #tpu.memory_space<vmem>>, vector<32x128xf32>
    %c0_2 = arith.constant 0 : index
    %c0_3 = arith.constant 0 : index
    %4 = vector.load %arg3[%c0_2, %c0_3] : memref<32x384xbf16, #tpu.memory_space<vmem>>, vector<32x384xbf16>
    %c0_4 = arith.constant 0 : index
    %c0_5 = arith.constant 0 : index
    %5 = vector.load %arg4[%c0_4, %c0_5] : memref<384x128xbf16, #tpu.memory_space<vmem>>, vector<384x128xbf16>
    %cst = arith.constant dense<0.000000e+00> : vector<32x128xf32>
    %6 = tpu.matmul %4, %5, %cst {dimension_numbers = #tpu.dot_dimension_numbers<[1], [0], [0], [1], [0, 0, 1, 1], [], []>} : vector<32x384xbf16>, vector<384x128xbf16>, vector<32x128xf32> -> vector<32x128xf32>
    %7 = arith.addf %3, %6 : vector<32x128xf32>
    %c0_6 = arith.constant 0 : index
    %c0_7 = arith.constant 0 : index
    %8 = vector.load %arg8[%c0_6, %c0_7] : memref<32x128xf32, #tpu.memory_space<vmem>>, vector<32x128xf32>
    tpu.vector_store %arg8[%c0_6, %c0_7], %7 {strides = array<i32>} : memref<32x128xf32, #tpu.memory_space<vmem>>, vector<32x128xf32>,
    %c5_i32 = arith.constant 5 : i32
    %9 = arith.cmpi eq, %arg2, %c5_i32 : i32
    %10 = arith.extui %9 : i1 to i32
    %c0_i32_8 = arith.constant 0 : i32
    %11 = arith.cmpi ne, %10, %c0_i32_8 : i32
    scf.if %11 {
      %c0_9 = arith.constant 0 : index
      %c0_10 = arith.constant 0 : index
      %12 = vector.load %arg8[%c0_9, %c0_10] : memref<32x128xf32, #tpu.memory_space<vmem>>, vector<32x128xf32>
      %c0_11 = arith.constant 0 : index
      %c0_12 = arith.constant 0 : index
      %13 = vector.load %arg5[%c0_11, %c0_12] : memref<1x128xf32, #tpu.memory_space<vmem>>, vector<1x128xf32>
      %14 = vector.broadcast %13 : vector<1x128xf32> to vector<32x128xf32>
      %15 = arith.mulf %12, %14 : vector<32x128xf32>
      %c0_13 = arith.constant 0 : index
      %c0_14 = arith.constant 0 : index
      %16 = vector.load %arg6[%c0_13, %c0_14] : memref<1x128xf32, #tpu.memory_space<vmem>>, vector<1x128xf32>
      %17 = vector.broadcast %16 : vector<1x128xf32> to vector<32x128xf32>
      %18 = arith.addf %15, %17 : vector<32x128xf32>
      %cst_15 = arith.constant 0.000000e+00 : f32
      %19 = vector.broadcast %cst_15 : f32 to vector<32x128xf32>
      %20 = arith.maximumf %18, %19 : vector<32x128xf32>
      %c0_16 = arith.constant 0 : index
      %c0_17 = arith.constant 0 : index
      %21 = vector.load %arg7[%c0_16, %c0_17] : memref<32x128xf32, #tpu.memory_space<vmem>>, vector<32x128xf32>
      tpu.vector_store %arg7[%c0_16, %c0_17], %20 {strides = array<i32>} : memref<32x128xf32, #tpu.memory_space<vmem>>, vector<32x128xf32>,
    } else {
    }
    return
  }
  func.func @transform_0(%arg0: i32, %arg1: i32, %arg2: i32) -> (i32, i32) {
    %c0_i32 = arith.constant 0 : i32
    return %arg0, %arg2 : i32, i32
  }
  func.func @transform_1(%arg0: i32, %arg1: i32, %arg2: i32) -> (i32, i32) {
    %c0_i32 = arith.constant 0 : i32
    return %arg2, %arg1 : i32, i32
  }
  func.func @transform_2(%arg0: i32, %arg1: i32, %arg2: i32) -> (i32, i32) {
    %c0_i32 = arith.constant 0 : i32
    %c0_i32_0 = arith.constant 0 : i32
    return %c0_i32, %arg1 : i32, i32
  }
  func.func @transform_3(%arg0: i32, %arg1: i32, %arg2: i32) -> (i32, i32) {
    %c0_i32 = arith.constant 0 : i32
    %c0_i32_0 = arith.constant 0 : i32
    return %c0_i32, %arg1 : i32, i32
  }
  func.func @transform_4(%arg0: i32, %arg1: i32, %arg2: i32) -> (i32, i32) {
    %c0_i32 = arith.constant 0 : i32
    return %arg0, %arg1 : i32, i32
  }
}

module attributes {stable_mosaic.version = 11 : i64} {
  func.func @_mm_bn_kernel(%arg0: i32, %arg1: i32, %arg2: i32, %arg3: memref<16x384xbf16, #tpu.memory_space<vmem>>, %arg4: memref<384x256xbf16, #tpu.memory_space<vmem>>, %arg5: memref<1x256xf32, #tpu.memory_space<vmem>>, %arg6: memref<1x256xf32, #tpu.memory_space<vmem>>, %arg7: memref<16x256xf32, #tpu.memory_space<vmem>>, %arg8: memref<16x256xf32, #tpu.memory_space<vmem>>) attributes {dimension_semantics = [#tpu.dimension_semantics<parallel>, #tpu.dimension_semantics<parallel>, #tpu.dimension_semantics<arbitrary>], iteration_bounds = array<i64: 1, 2, 6>, scalar_prefetch = 0 : i64, scratch_operands = 1 : i64, tpu.core_type = #tpu.core_type<tc>, window_params = [{transform_indices = @transform_0, window_bounds = array<i64: 16, 384>}, {transform_indices = @transform_1, window_bounds = array<i64: 384, 256>}, {transform_indices = @transform_2, window_bounds = array<i64: 1, 256>}, {transform_indices = @transform_3, window_bounds = array<i64: 1, 256>}, {transform_indices = @transform_4, window_bounds = array<i64: 16, 256>}]} {
    %c0_i32 = arith.constant 0 : i32
    %0 = arith.cmpi eq, %arg2, %c0_i32 : i32
    %1 = arith.extui %0 : i1 to i32
    %c0_i32_0 = arith.constant 0 : i32
    %2 = arith.cmpi ne, %1, %c0_i32_0 : i32
    scf.if %2 {
      %cst_9 = arith.constant 0.000000e+00 : f32
      %12 = vector.broadcast %cst_9 : f32 to vector<16x256xf32>
      %c0_10 = arith.constant 0 : index
      %c0_11 = arith.constant 0 : index
      %13 = vector.load %arg8[%c0_10, %c0_11] : memref<16x256xf32, #tpu.memory_space<vmem>>, vector<16x256xf32>
      tpu.vector_store %arg8[%c0_10, %c0_11], %12 {strides = array<i32>} : memref<16x256xf32, #tpu.memory_space<vmem>>, vector<16x256xf32>,
    } else {
    }
    %c0 = arith.constant 0 : index
    %c0_1 = arith.constant 0 : index
    %3 = vector.load %arg8[%c0, %c0_1] : memref<16x256xf32, #tpu.memory_space<vmem>>, vector<16x256xf32>
    %c0_2 = arith.constant 0 : index
    %c0_3 = arith.constant 0 : index
    %4 = vector.load %arg3[%c0_2, %c0_3] : memref<16x384xbf16, #tpu.memory_space<vmem>>, vector<16x384xbf16>
    %c0_4 = arith.constant 0 : index
    %c0_5 = arith.constant 0 : index
    %5 = vector.load %arg4[%c0_4, %c0_5] : memref<384x256xbf16, #tpu.memory_space<vmem>>, vector<384x256xbf16>
    %cst = arith.constant dense<0.000000e+00> : vector<16x256xf32>
    %6 = tpu.matmul %4, %5, %cst {dimension_numbers = #tpu.dot_dimension_numbers<[1], [0], [0], [1], [0, 0, 1, 1], [], []>} : vector<16x384xbf16>, vector<384x256xbf16>, vector<16x256xf32> -> vector<16x256xf32>
    %7 = arith.addf %3, %6 : vector<16x256xf32>
    %c0_6 = arith.constant 0 : index
    %c0_7 = arith.constant 0 : index
    %8 = vector.load %arg8[%c0_6, %c0_7] : memref<16x256xf32, #tpu.memory_space<vmem>>, vector<16x256xf32>
    tpu.vector_store %arg8[%c0_6, %c0_7], %7 {strides = array<i32>} : memref<16x256xf32, #tpu.memory_space<vmem>>, vector<16x256xf32>,
    %c5_i32 = arith.constant 5 : i32
    %9 = arith.cmpi eq, %arg2, %c5_i32 : i32
    %10 = arith.extui %9 : i1 to i32
    %c0_i32_8 = arith.constant 0 : i32
    %11 = arith.cmpi ne, %10, %c0_i32_8 : i32
    scf.if %11 {
      %c0_9 = arith.constant 0 : index
      %c0_10 = arith.constant 0 : index
      %12 = vector.load %arg8[%c0_9, %c0_10] : memref<16x256xf32, #tpu.memory_space<vmem>>, vector<16x256xf32>
      %c0_11 = arith.constant 0 : index
      %c0_12 = arith.constant 0 : index
      %13 = vector.load %arg5[%c0_11, %c0_12] : memref<1x256xf32, #tpu.memory_space<vmem>>, vector<1x256xf32>
      %14 = vector.broadcast %13 : vector<1x256xf32> to vector<16x256xf32>
      %15 = arith.mulf %12, %14 : vector<16x256xf32>
      %c0_13 = arith.constant 0 : index
      %c0_14 = arith.constant 0 : index
      %16 = vector.load %arg6[%c0_13, %c0_14] : memref<1x256xf32, #tpu.memory_space<vmem>>, vector<1x256xf32>
      %17 = vector.broadcast %16 : vector<1x256xf32> to vector<16x256xf32>
      %18 = arith.addf %15, %17 : vector<16x256xf32>
      %cst_15 = arith.constant 0.000000e+00 : f32
      %19 = vector.broadcast %cst_15 : f32 to vector<16x256xf32>
      %20 = arith.maximumf %18, %19 : vector<16x256xf32>
      %c0_16 = arith.constant 0 : index
      %c0_17 = arith.constant 0 : index
      %21 = vector.load %arg7[%c0_16, %c0_17] : memref<16x256xf32, #tpu.memory_space<vmem>>, vector<16x256xf32>
      tpu.vector_store %arg7[%c0_16, %c0_17], %20 {strides = array<i32>} : memref<16x256xf32, #tpu.memory_space<vmem>>, vector<16x256xf32>,
    } else {
    }
    return
  }
  func.func @transform_0(%arg0: i32, %arg1: i32, %arg2: i32) -> (i32, i32) {
    %c0_i32 = arith.constant 0 : i32
    return %arg0, %arg2 : i32, i32
  }
  func.func @transform_1(%arg0: i32, %arg1: i32, %arg2: i32) -> (i32, i32) {
    %c0_i32 = arith.constant 0 : i32
    return %arg2, %arg1 : i32, i32
  }
  func.func @transform_2(%arg0: i32, %arg1: i32, %arg2: i32) -> (i32, i32) {
    %c0_i32 = arith.constant 0 : i32
    %c0_i32_0 = arith.constant 0 : i32
    return %c0_i32, %arg1 : i32, i32
  }
  func.func @transform_3(%arg0: i32, %arg1: i32, %arg2: i32) -> (i32, i32) {
    %c0_i32 = arith.constant 0 : i32
    %c0_i32_0 = arith.constant 0 : i32
    return %c0_i32, %arg1 : i32, i32
  }
  func.func @transform_4(%arg0: i32, %arg1: i32, %arg2: i32) -> (i32, i32) {
    %c0_i32 = arith.constant 0 : i32
    return %arg0, %arg1 : i32, i32
  }
}

module attributes {stable_mosaic.version = 11 : i64} {
  func.func @_mm_bn_kernel(%arg0: i32, %arg1: i32, %arg2: i32, %arg3: memref<16x256xbf16, #tpu.memory_space<vmem>>, %arg4: memref<256x256xbf16, #tpu.memory_space<vmem>>, %arg5: memref<1x256xf32, #tpu.memory_space<vmem>>, %arg6: memref<1x256xf32, #tpu.memory_space<vmem>>, %arg7: memref<16x256xf32, #tpu.memory_space<vmem>>, %arg8: memref<16x256xf32, #tpu.memory_space<vmem>>) attributes {dimension_semantics = [#tpu.dimension_semantics<parallel>, #tpu.dimension_semantics<parallel>, #tpu.dimension_semantics<arbitrary>], iteration_bounds = array<i64: 1, 2, 1>, scalar_prefetch = 0 : i64, scratch_operands = 1 : i64, tpu.core_type = #tpu.core_type<tc>, window_params = [{transform_indices = @transform_0, window_bounds = array<i64: 16, 256>}, {transform_indices = @transform_1, window_bounds = array<i64: 256, 256>}, {transform_indices = @transform_2, window_bounds = array<i64: 1, 256>}, {transform_indices = @transform_3, window_bounds = array<i64: 1, 256>}, {transform_indices = @transform_4, window_bounds = array<i64: 16, 256>}]} {
    %c0_i32 = arith.constant 0 : i32
    %0 = arith.cmpi eq, %arg2, %c0_i32 : i32
    %1 = arith.extui %0 : i1 to i32
    %c0_i32_0 = arith.constant 0 : i32
    %2 = arith.cmpi ne, %1, %c0_i32_0 : i32
    scf.if %2 {
      %cst_10 = arith.constant 0.000000e+00 : f32
      %12 = vector.broadcast %cst_10 : f32 to vector<16x256xf32>
      %c0_11 = arith.constant 0 : index
      %c0_12 = arith.constant 0 : index
      %13 = vector.load %arg8[%c0_11, %c0_12] : memref<16x256xf32, #tpu.memory_space<vmem>>, vector<16x256xf32>
      tpu.vector_store %arg8[%c0_11, %c0_12], %12 {strides = array<i32>} : memref<16x256xf32, #tpu.memory_space<vmem>>, vector<16x256xf32>,
    } else {
    }
    %c0 = arith.constant 0 : index
    %c0_1 = arith.constant 0 : index
    %3 = vector.load %arg8[%c0, %c0_1] : memref<16x256xf32, #tpu.memory_space<vmem>>, vector<16x256xf32>
    %c0_2 = arith.constant 0 : index
    %c0_3 = arith.constant 0 : index
    %4 = vector.load %arg3[%c0_2, %c0_3] : memref<16x256xbf16, #tpu.memory_space<vmem>>, vector<16x256xbf16>
    %c0_4 = arith.constant 0 : index
    %c0_5 = arith.constant 0 : index
    %5 = vector.load %arg4[%c0_4, %c0_5] : memref<256x256xbf16, #tpu.memory_space<vmem>>, vector<256x256xbf16>
    %cst = arith.constant dense<0.000000e+00> : vector<16x256xf32>
    %6 = tpu.matmul %4, %5, %cst {dimension_numbers = #tpu.dot_dimension_numbers<[1], [0], [0], [1], [0, 0, 1, 1], [], []>} : vector<16x256xbf16>, vector<256x256xbf16>, vector<16x256xf32> -> vector<16x256xf32>
    %7 = arith.addf %3, %6 : vector<16x256xf32>
    %c0_6 = arith.constant 0 : index
    %c0_7 = arith.constant 0 : index
    %8 = vector.load %arg8[%c0_6, %c0_7] : memref<16x256xf32, #tpu.memory_space<vmem>>, vector<16x256xf32>
    tpu.vector_store %arg8[%c0_6, %c0_7], %7 {strides = array<i32>} : memref<16x256xf32, #tpu.memory_space<vmem>>, vector<16x256xf32>,
    %c0_i32_8 = arith.constant 0 : i32
    %9 = arith.cmpi eq, %arg2, %c0_i32_8 : i32
    %10 = arith.extui %9 : i1 to i32
    %c0_i32_9 = arith.constant 0 : i32
    %11 = arith.cmpi ne, %10, %c0_i32_9 : i32
    scf.if %11 {
      %c0_10 = arith.constant 0 : index
      %c0_11 = arith.constant 0 : index
      %12 = vector.load %arg8[%c0_10, %c0_11] : memref<16x256xf32, #tpu.memory_space<vmem>>, vector<16x256xf32>
      %c0_12 = arith.constant 0 : index
      %c0_13 = arith.constant 0 : index
      %13 = vector.load %arg5[%c0_12, %c0_13] : memref<1x256xf32, #tpu.memory_space<vmem>>, vector<1x256xf32>
      %14 = vector.broadcast %13 : vector<1x256xf32> to vector<16x256xf32>
      %15 = arith.mulf %12, %14 : vector<16x256xf32>
      %c0_14 = arith.constant 0 : index
      %c0_15 = arith.constant 0 : index
      %16 = vector.load %arg6[%c0_14, %c0_15] : memref<1x256xf32, #tpu.memory_space<vmem>>, vector<1x256xf32>
      %17 = vector.broadcast %16 : vector<1x256xf32> to vector<16x256xf32>
      %18 = arith.addf %15, %17 : vector<16x256xf32>
      %c0_16 = arith.constant 0 : index
      %c0_17 = arith.constant 0 : index
      %19 = vector.load %arg7[%c0_16, %c0_17] : memref<16x256xf32, #tpu.memory_space<vmem>>, vector<16x256xf32>
      tpu.vector_store %arg7[%c0_16, %c0_17], %18 {strides = array<i32>} : memref<16x256xf32, #tpu.memory_space<vmem>>, vector<16x256xf32>,
    } else {
    }
    return
  }
  func.func @transform_0(%arg0: i32, %arg1: i32, %arg2: i32) -> (i32, i32) {
    %c0_i32 = arith.constant 0 : i32
    return %arg0, %arg2 : i32, i32
  }
  func.func @transform_1(%arg0: i32, %arg1: i32, %arg2: i32) -> (i32, i32) {
    %c0_i32 = arith.constant 0 : i32
    return %arg2, %arg1 : i32, i32
  }
  func.func @transform_2(%arg0: i32, %arg1: i32, %arg2: i32) -> (i32, i32) {
    %c0_i32 = arith.constant 0 : i32
    %c0_i32_0 = arith.constant 0 : i32
    return %c0_i32, %arg1 : i32, i32
  }
  func.func @transform_3(%arg0: i32, %arg1: i32, %arg2: i32) -> (i32, i32) {
    %c0_i32 = arith.constant 0 : i32
    %c0_i32_0 = arith.constant 0 : i32
    return %c0_i32, %arg1 : i32, i32
  }
  func.func @transform_4(%arg0: i32, %arg1: i32, %arg2: i32) -> (i32, i32) {
    %c0_i32 = arith.constant 0 : i32
    return %arg0, %arg1 : i32, i32
  }
}

module attributes {stable_mosaic.version = 11 : i64} {
  func.func @_mm_bn_res_kernel(%arg0: i32, %arg1: i32, %arg2: i32, %arg3: memref<16x512xbf16, #tpu.memory_space<vmem>>, %arg4: memref<512x256xbf16, #tpu.memory_space<vmem>>, %arg5: memref<1x256xf32, #tpu.memory_space<vmem>>, %arg6: memref<1x256xf32, #tpu.memory_space<vmem>>, %arg7: memref<16x256xf32, #tpu.memory_space<vmem>>, %arg8: memref<16x256xf32, #tpu.memory_space<vmem>>, %arg9: memref<16x256xf32, #tpu.memory_space<vmem>>) attributes {dimension_semantics = [#tpu.dimension_semantics<parallel>, #tpu.dimension_semantics<parallel>, #tpu.dimension_semantics<arbitrary>], iteration_bounds = array<i64: 1, 2, 9>, scalar_prefetch = 0 : i64, scratch_operands = 1 : i64, tpu.core_type = #tpu.core_type<tc>, window_params = [{transform_indices = @transform_0, window_bounds = array<i64: 16, 512>}, {transform_indices = @transform_1, window_bounds = array<i64: 512, 256>}, {transform_indices = @transform_2, window_bounds = array<i64: 1, 256>}, {transform_indices = @transform_3, window_bounds = array<i64: 1, 256>}, {transform_indices = @transform_4, window_bounds = array<i64: 16, 256>}, {transform_indices = @transform_5, window_bounds = array<i64: 16, 256>}]} {
    %c0_i32 = arith.constant 0 : i32
    %0 = arith.cmpi eq, %arg2, %c0_i32 : i32
    %1 = arith.extui %0 : i1 to i32
    %c0_i32_0 = arith.constant 0 : i32
    %2 = arith.cmpi ne, %1, %c0_i32_0 : i32
    scf.if %2 {
      %cst_9 = arith.constant 0.000000e+00 : f32
      %12 = vector.broadcast %cst_9 : f32 to vector<16x256xf32>
      %c0_10 = arith.constant 0 : index
      %c0_11 = arith.constant 0 : index
      %13 = vector.load %arg9[%c0_10, %c0_11] : memref<16x256xf32, #tpu.memory_space<vmem>>, vector<16x256xf32>
      tpu.vector_store %arg9[%c0_10, %c0_11], %12 {strides = array<i32>} : memref<16x256xf32, #tpu.memory_space<vmem>>, vector<16x256xf32>,
    } else {
    }
    %c0 = arith.constant 0 : index
    %c0_1 = arith.constant 0 : index
    %3 = vector.load %arg9[%c0, %c0_1] : memref<16x256xf32, #tpu.memory_space<vmem>>, vector<16x256xf32>
    %c0_2 = arith.constant 0 : index
    %c0_3 = arith.constant 0 : index
    %4 = vector.load %arg3[%c0_2, %c0_3] : memref<16x512xbf16, #tpu.memory_space<vmem>>, vector<16x512xbf16>
    %c0_4 = arith.constant 0 : index
    %c0_5 = arith.constant 0 : index
    %5 = vector.load %arg4[%c0_4, %c0_5] : memref<512x256xbf16, #tpu.memory_space<vmem>>, vector<512x256xbf16>
    %cst = arith.constant dense<0.000000e+00> : vector<16x256xf32>
    %6 = tpu.matmul %4, %5, %cst {dimension_numbers = #tpu.dot_dimension_numbers<[1], [0], [0], [1], [0, 0, 1, 1], [], []>} : vector<16x512xbf16>, vector<512x256xbf16>, vector<16x256xf32> -> vector<16x256xf32>
    %7 = arith.addf %3, %6 : vector<16x256xf32>
    %c0_6 = arith.constant 0 : index
    %c0_7 = arith.constant 0 : index
    %8 = vector.load %arg9[%c0_6, %c0_7] : memref<16x256xf32, #tpu.memory_space<vmem>>, vector<16x256xf32>
    tpu.vector_store %arg9[%c0_6, %c0_7], %7 {strides = array<i32>} : memref<16x256xf32, #tpu.memory_space<vmem>>, vector<16x256xf32>,
    %c8_i32 = arith.constant 8 : i32
    %9 = arith.cmpi eq, %arg2, %c8_i32 : i32
    %10 = arith.extui %9 : i1 to i32
    %c0_i32_8 = arith.constant 0 : i32
    %11 = arith.cmpi ne, %10, %c0_i32_8 : i32
    scf.if %11 {
      %c0_9 = arith.constant 0 : index
      %c0_10 = arith.constant 0 : index
      %12 = vector.load %arg9[%c0_9, %c0_10] : memref<16x256xf32, #tpu.memory_space<vmem>>, vector<16x256xf32>
      %c0_11 = arith.constant 0 : index
      %c0_12 = arith.constant 0 : index
      %13 = vector.load %arg5[%c0_11, %c0_12] : memref<1x256xf32, #tpu.memory_space<vmem>>, vector<1x256xf32>
      %14 = vector.broadcast %13 : vector<1x256xf32> to vector<16x256xf32>
      %15 = arith.mulf %12, %14 : vector<16x256xf32>
      %c0_13 = arith.constant 0 : index
      %c0_14 = arith.constant 0 : index
      %16 = vector.load %arg6[%c0_13, %c0_14] : memref<1x256xf32, #tpu.memory_space<vmem>>, vector<1x256xf32>
      %17 = vector.broadcast %16 : vector<1x256xf32> to vector<16x256xf32>
      %18 = arith.addf %15, %17 : vector<16x256xf32>
      %c0_15 = arith.constant 0 : index
      %c0_16 = arith.constant 0 : index
      %19 = vector.load %arg7[%c0_15, %c0_16] : memref<16x256xf32, #tpu.memory_space<vmem>>, vector<16x256xf32>
      %20 = arith.addf %18, %19 : vector<16x256xf32>
      %cst_17 = arith.constant 0.000000e+00 : f32
      %21 = vector.broadcast %cst_17 : f32 to vector<16x256xf32>
      %22 = arith.maximumf %20, %21 : vector<16x256xf32>
      %c0_18 = arith.constant 0 : index
      %c0_19 = arith.constant 0 : index
      %23 = vector.load %arg8[%c0_18, %c0_19] : memref<16x256xf32, #tpu.memory_space<vmem>>, vector<16x256xf32>
      tpu.vector_store %arg8[%c0_18, %c0_19], %22 {strides = array<i32>} : memref<16x256xf32, #tpu.memory_space<vmem>>, vector<16x256xf32>,
    } else {
    }
    return
  }
  func.func @transform_0(%arg0: i32, %arg1: i32, %arg2: i32) -> (i32, i32) {
    %c0_i32 = arith.constant 0 : i32
    return %arg0, %arg2 : i32, i32
  }
  func.func @transform_1(%arg0: i32, %arg1: i32, %arg2: i32) -> (i32, i32) {
    %c0_i32 = arith.constant 0 : i32
    return %arg2, %arg1 : i32, i32
  }
  func.func @transform_2(%arg0: i32, %arg1: i32, %arg2: i32) -> (i32, i32) {
    %c0_i32 = arith.constant 0 : i32
    %c0_i32_0 = arith.constant 0 : i32
    return %c0_i32, %arg1 : i32, i32
  }
  func.func @transform_3(%arg0: i32, %arg1: i32, %arg2: i32) -> (i32, i32) {
    %c0_i32 = arith.constant 0 : i32
    %c0_i32_0 = arith.constant 0 : i32
    return %c0_i32, %arg1 : i32, i32
  }
  func.func @transform_4(%arg0: i32, %arg1: i32, %arg2: i32) -> (i32, i32) {
    %c0_i32 = arith.constant 0 : i32
    return %arg0, %arg1 : i32, i32
  }
  func.func @transform_5(%arg0: i32, %arg1: i32, %arg2: i32) -> (i32, i32) {
    %c0_i32 = arith.constant 0 : i32
    return %arg0, %arg1 : i32, i32
  }
}

module attributes {stable_mosaic.version = 11 : i64} {
  func.func @_mm_bn_kernel(%arg0: i32, %arg1: i32, %arg2: i32, %arg3: memref<16x512xbf16, #tpu.memory_space<vmem>>, %arg4: memref<512x256xbf16, #tpu.memory_space<vmem>>, %arg5: memref<1x256xf32, #tpu.memory_space<vmem>>, %arg6: memref<1x256xf32, #tpu.memory_space<vmem>>, %arg7: memref<16x256xf32, #tpu.memory_space<vmem>>, %arg8: memref<16x256xf32, #tpu.memory_space<vmem>>) attributes {dimension_semantics = [#tpu.dimension_semantics<parallel>, #tpu.dimension_semantics<parallel>, #tpu.dimension_semantics<arbitrary>], iteration_bounds = array<i64: 1, 2, 9>, scalar_prefetch = 0 : i64, scratch_operands = 1 : i64, tpu.core_type = #tpu.core_type<tc>, window_params = [{transform_indices = @transform_0, window_bounds = array<i64: 16, 512>}, {transform_indices = @transform_1, window_bounds = array<i64: 512, 256>}, {transform_indices = @transform_2, window_bounds = array<i64: 1, 256>}, {transform_indices = @transform_3, window_bounds = array<i64: 1, 256>}, {transform_indices = @transform_4, window_bounds = array<i64: 16, 256>}]} {
    %c0_i32 = arith.constant 0 : i32
    %0 = arith.cmpi eq, %arg2, %c0_i32 : i32
    %1 = arith.extui %0 : i1 to i32
    %c0_i32_0 = arith.constant 0 : i32
    %2 = arith.cmpi ne, %1, %c0_i32_0 : i32
    scf.if %2 {
      %cst_9 = arith.constant 0.000000e+00 : f32
      %12 = vector.broadcast %cst_9 : f32 to vector<16x256xf32>
      %c0_10 = arith.constant 0 : index
      %c0_11 = arith.constant 0 : index
      %13 = vector.load %arg8[%c0_10, %c0_11] : memref<16x256xf32, #tpu.memory_space<vmem>>, vector<16x256xf32>
      tpu.vector_store %arg8[%c0_10, %c0_11], %12 {strides = array<i32>} : memref<16x256xf32, #tpu.memory_space<vmem>>, vector<16x256xf32>,
    } else {
    }
    %c0 = arith.constant 0 : index
    %c0_1 = arith.constant 0 : index
    %3 = vector.load %arg8[%c0, %c0_1] : memref<16x256xf32, #tpu.memory_space<vmem>>, vector<16x256xf32>
    %c0_2 = arith.constant 0 : index
    %c0_3 = arith.constant 0 : index
    %4 = vector.load %arg3[%c0_2, %c0_3] : memref<16x512xbf16, #tpu.memory_space<vmem>>, vector<16x512xbf16>
    %c0_4 = arith.constant 0 : index
    %c0_5 = arith.constant 0 : index
    %5 = vector.load %arg4[%c0_4, %c0_5] : memref<512x256xbf16, #tpu.memory_space<vmem>>, vector<512x256xbf16>
    %cst = arith.constant dense<0.000000e+00> : vector<16x256xf32>
    %6 = tpu.matmul %4, %5, %cst {dimension_numbers = #tpu.dot_dimension_numbers<[1], [0], [0], [1], [0, 0, 1, 1], [], []>} : vector<16x512xbf16>, vector<512x256xbf16>, vector<16x256xf32> -> vector<16x256xf32>
    %7 = arith.addf %3, %6 : vector<16x256xf32>
    %c0_6 = arith.constant 0 : index
    %c0_7 = arith.constant 0 : index
    %8 = vector.load %arg8[%c0_6, %c0_7] : memref<16x256xf32, #tpu.memory_space<vmem>>, vector<16x256xf32>
    tpu.vector_store %arg8[%c0_6, %c0_7], %7 {strides = array<i32>} : memref<16x256xf32, #tpu.memory_space<vmem>>, vector<16x256xf32>,
    %c8_i32 = arith.constant 8 : i32
    %9 = arith.cmpi eq, %arg2, %c8_i32 : i32
    %10 = arith.extui %9 : i1 to i32
    %c0_i32_8 = arith.constant 0 : i32
    %11 = arith.cmpi ne, %10, %c0_i32_8 : i32
    scf.if %11 {
      %c0_9 = arith.constant 0 : index
      %c0_10 = arith.constant 0 : index
      %12 = vector.load %arg8[%c0_9, %c0_10] : memref<16x256xf32, #tpu.memory_space<vmem>>, vector<16x256xf32>
      %c0_11 = arith.constant 0 : index
      %c0_12 = arith.constant 0 : index
      %13 = vector.load %arg5[%c0_11, %c0_12] : memref<1x256xf32, #tpu.memory_space<vmem>>, vector<1x256xf32>
      %14 = vector.broadcast %13 : vector<1x256xf32> to vector<16x256xf32>
      %15 = arith.mulf %12, %14 : vector<16x256xf32>
      %c0_13 = arith.constant 0 : index
      %c0_14 = arith.constant 0 : index
      %16 = vector.load %arg6[%c0_13, %c0_14] : memref<1x256xf32, #tpu.memory_space<vmem>>, vector<1x256xf32>
      %17 = vector.broadcast %16 : vector<1x256xf32> to vector<16x256xf32>
      %18 = arith.addf %15, %17 : vector<16x256xf32>
      %cst_15 = arith.constant 0.000000e+00 : f32
      %19 = vector.broadcast %cst_15 : f32 to vector<16x256xf32>
      %20 = arith.maximumf %18, %19 : vector<16x256xf32>
      %c0_16 = arith.constant 0 : index
      %c0_17 = arith.constant 0 : index
      %21 = vector.load %arg7[%c0_16, %c0_17] : memref<16x256xf32, #tpu.memory_space<vmem>>, vector<16x256xf32>
      tpu.vector_store %arg7[%c0_16, %c0_17], %20 {strides = array<i32>} : memref<16x256xf32, #tpu.memory_space<vmem>>, vector<16x256xf32>,
    } else {
    }
    return
  }
  func.func @transform_0(%arg0: i32, %arg1: i32, %arg2: i32) -> (i32, i32) {
    %c0_i32 = arith.constant 0 : i32
    return %arg0, %arg2 : i32, i32
  }
  func.func @transform_1(%arg0: i32, %arg1: i32, %arg2: i32) -> (i32, i32) {
    %c0_i32 = arith.constant 0 : i32
    return %arg2, %arg1 : i32, i32
  }
  func.func @transform_2(%arg0: i32, %arg1: i32, %arg2: i32) -> (i32, i32) {
    %c0_i32 = arith.constant 0 : i32
    %c0_i32_0 = arith.constant 0 : i32
    return %c0_i32, %arg1 : i32, i32
  }
  func.func @transform_3(%arg0: i32, %arg1: i32, %arg2: i32) -> (i32, i32) {
    %c0_i32 = arith.constant 0 : i32
    %c0_i32_0 = arith.constant 0 : i32
    return %c0_i32, %arg1 : i32, i32
  }
  func.func @transform_4(%arg0: i32, %arg1: i32, %arg2: i32) -> (i32, i32) {
    %c0_i32 = arith.constant 0 : i32
    return %arg0, %arg1 : i32, i32
  }
}

module attributes {stable_mosaic.version = 11 : i64} {
  func.func @_avgpool_kernel(%arg0: i32, %arg1: memref<2x4x128xf32, #tpu.memory_space<vmem>>, %arg2: memref<2x128xf32, #tpu.memory_space<vmem>>) attributes {dimension_semantics = [#tpu.dimension_semantics<parallel>], iteration_bounds = array<i64: 4>, scalar_prefetch = 0 : i64, scratch_operands = 0 : i64, tpu.core_type = #tpu.core_type<tc>, window_params = [{transform_indices = @transform_0, window_bounds = array<i64: 2, 4, 128>}, {transform_indices = @transform_1, window_bounds = array<i64: 2, 128>}]} {
    %c0 = arith.constant 0 : index
    %c0_0 = arith.constant 0 : index
    %c0_1 = arith.constant 0 : index
    %0 = vector.load %arg1[%c0, %c0_0, %c0_1] : memref<2x4x128xf32, #tpu.memory_space<vmem>>, vector<2x4x128xf32>
    %cst = arith.constant dense<0.000000e+00> : vector<2x128xf32>
    %1 = vector.multi_reduction <add>, %0, %cst [1] : vector<2x4x128xf32> to vector<2x128xf32>
    %cst_2 = arith.constant 4.000000e+00 : f32
    %2 = vector.broadcast %cst_2 : f32 to vector<2x128xf32>
    %3 = arith.divf %1, %2 : vector<2x128xf32>
    %c0_3 = arith.constant 0 : index
    %c0_4 = arith.constant 0 : index
    %4 = vector.load %arg2[%c0_3, %c0_4] : memref<2x128xf32, #tpu.memory_space<vmem>>, vector<2x128xf32>
    tpu.vector_store %arg2[%c0_3, %c0_4], %3 {strides = array<i32>} : memref<2x128xf32, #tpu.memory_space<vmem>>, vector<2x128xf32>,
    return
  }
  func.func @transform_0(%arg0: i32) -> (i32, i32, i32) {
    %c0_i32 = arith.constant 0 : i32
    %c0_i32_0 = arith.constant 0 : i32
    %c0_i32_1 = arith.constant 0 : i32
    return %c0_i32, %c0_i32_0, %arg0 : i32, i32, i32
  }
  func.func @transform_1(%arg0: i32) -> (i32, i32) {
    %c0_i32 = arith.constant 0 : i32
    %c0_i32_0 = arith.constant 0 : i32
    return %c0_i32, %arg0 : i32, i32
  }
}

module attributes {stable_mosaic.version = 11 : i64} {
  func.func @_mm_bn_kernel(%arg0: i32, %arg1: i32, %arg2: i32, %arg3: memref<16x512xbf16, #tpu.memory_space<vmem>>, %arg4: memref<512x128xbf16, #tpu.memory_space<vmem>>, %arg5: memref<1x128xf32, #tpu.memory_space<vmem>>, %arg6: memref<1x128xf32, #tpu.memory_space<vmem>>, %arg7: memref<16x128xf32, #tpu.memory_space<vmem>>, %arg8: memref<16x128xf32, #tpu.memory_space<vmem>>) attributes {dimension_semantics = [#tpu.dimension_semantics<parallel>, #tpu.dimension_semantics<parallel>, #tpu.dimension_semantics<arbitrary>], iteration_bounds = array<i64: 1, 1, 1>, scalar_prefetch = 0 : i64, scratch_operands = 1 : i64, tpu.core_type = #tpu.core_type<tc>, window_params = [{transform_indices = @transform_0, window_bounds = array<i64: 16, 512>}, {transform_indices = @transform_1, window_bounds = array<i64: 512, 128>}, {transform_indices = @transform_2, window_bounds = array<i64: 1, 128>}, {transform_indices = @transform_3, window_bounds = array<i64: 1, 128>}, {transform_indices = @transform_4, window_bounds = array<i64: 16, 128>}]} {
    %c0_i32 = arith.constant 0 : i32
    %0 = arith.cmpi eq, %arg2, %c0_i32 : i32
    %1 = arith.extui %0 : i1 to i32
    %c0_i32_0 = arith.constant 0 : i32
    %2 = arith.cmpi ne, %1, %c0_i32_0 : i32
    scf.if %2 {
      %cst_10 = arith.constant 0.000000e+00 : f32
      %12 = vector.broadcast %cst_10 : f32 to vector<16x128xf32>
      %c0_11 = arith.constant 0 : index
      %c0_12 = arith.constant 0 : index
      %13 = vector.load %arg8[%c0_11, %c0_12] : memref<16x128xf32, #tpu.memory_space<vmem>>, vector<16x128xf32>
      tpu.vector_store %arg8[%c0_11, %c0_12], %12 {strides = array<i32>} : memref<16x128xf32, #tpu.memory_space<vmem>>, vector<16x128xf32>,
    } else {
    }
    %c0 = arith.constant 0 : index
    %c0_1 = arith.constant 0 : index
    %3 = vector.load %arg8[%c0, %c0_1] : memref<16x128xf32, #tpu.memory_space<vmem>>, vector<16x128xf32>
    %c0_2 = arith.constant 0 : index
    %c0_3 = arith.constant 0 : index
    %4 = vector.load %arg3[%c0_2, %c0_3] : memref<16x512xbf16, #tpu.memory_space<vmem>>, vector<16x512xbf16>
    %c0_4 = arith.constant 0 : index
    %c0_5 = arith.constant 0 : index
    %5 = vector.load %arg4[%c0_4, %c0_5] : memref<512x128xbf16, #tpu.memory_space<vmem>>, vector<512x128xbf16>
    %cst = arith.constant dense<0.000000e+00> : vector<16x128xf32>
    %6 = tpu.matmul %4, %5, %cst {dimension_numbers = #tpu.dot_dimension_numbers<[1], [0], [0], [1], [0, 0, 1, 1], [], []>} : vector<16x512xbf16>, vector<512x128xbf16>, vector<16x128xf32> -> vector<16x128xf32>
    %7 = arith.addf %3, %6 : vector<16x128xf32>
    %c0_6 = arith.constant 0 : index
    %c0_7 = arith.constant 0 : index
    %8 = vector.load %arg8[%c0_6, %c0_7] : memref<16x128xf32, #tpu.memory_space<vmem>>, vector<16x128xf32>
    tpu.vector_store %arg8[%c0_6, %c0_7], %7 {strides = array<i32>} : memref<16x128xf32, #tpu.memory_space<vmem>>, vector<16x128xf32>,
    %c0_i32_8 = arith.constant 0 : i32
    %9 = arith.cmpi eq, %arg2, %c0_i32_8 : i32
    %10 = arith.extui %9 : i1 to i32
    %c0_i32_9 = arith.constant 0 : i32
    %11 = arith.cmpi ne, %10, %c0_i32_9 : i32
    scf.if %11 {
      %c0_10 = arith.constant 0 : index
      %c0_11 = arith.constant 0 : index
      %12 = vector.load %arg8[%c0_10, %c0_11] : memref<16x128xf32, #tpu.memory_space<vmem>>, vector<16x128xf32>
      %c0_12 = arith.constant 0 : index
      %c0_13 = arith.constant 0 : index
      %13 = vector.load %arg5[%c0_12, %c0_13] : memref<1x128xf32, #tpu.memory_space<vmem>>, vector<1x128xf32>
      %14 = vector.broadcast %13 : vector<1x128xf32> to vector<16x128xf32>
      %15 = arith.mulf %12, %14 : vector<16x128xf32>
      %c0_14 = arith.constant 0 : index
      %c0_15 = arith.constant 0 : index
      %16 = vector.load %arg6[%c0_14, %c0_15] : memref<1x128xf32, #tpu.memory_space<vmem>>, vector<1x128xf32>
      %17 = vector.broadcast %16 : vector<1x128xf32> to vector<16x128xf32>
      %18 = arith.addf %15, %17 : vector<16x128xf32>
      %c0_16 = arith.constant 0 : index
      %c0_17 = arith.constant 0 : index
      %19 = vector.load %arg7[%c0_16, %c0_17] : memref<16x128xf32, #tpu.memory_space<vmem>>, vector<16x128xf32>
      tpu.vector_store %arg7[%c0_16, %c0_17], %18 {strides = array<i32>} : memref<16x128xf32, #tpu.memory_space<vmem>>, vector<16x128xf32>,
    } else {
    }
    return
  }
  func.func @transform_0(%arg0: i32, %arg1: i32, %arg2: i32) -> (i32, i32) {
    %c0_i32 = arith.constant 0 : i32
    return %arg0, %arg2 : i32, i32
  }
  func.func @transform_1(%arg0: i32, %arg1: i32, %arg2: i32) -> (i32, i32) {
    %c0_i32 = arith.constant 0 : i32
    return %arg2, %arg1 : i32, i32
  }
  func.func @transform_2(%arg0: i32, %arg1: i32, %arg2: i32) -> (i32, i32) {
    %c0_i32 = arith.constant 0 : i32
    %c0_i32_0 = arith.constant 0 : i32
    return %c0_i32, %arg1 : i32, i32
  }
  func.func @transform_3(%arg0: i32, %arg1: i32, %arg2: i32) -> (i32, i32) {
    %c0_i32 = arith.constant 0 : i32
    %c0_i32_0 = arith.constant 0 : i32
    return %c0_i32, %arg1 : i32, i32
  }
  func.func @transform_4(%arg0: i32, %arg1: i32, %arg2: i32) -> (i32, i32) {
    %c0_i32 = arith.constant 0 : i32
    return %arg0, %arg1 : i32, i32
  }
}

</mosaic_0001>

<bundles_post_ra>
// kernel: _lambda_.22
= control target key start
LH: loop header
LB: loop body
LE: loop exit
PB: predicated region body
PF: predicated region fallthrough
CT: control target
= control target key end

     0   :  { %s1164_s15 = smov 0   ;;  %s1166_s16 = smov 0   ;;  %s1330_s0 = inlined_call_operand.vmem [shape: bf16[2048,256], index: 0, kind: input, shape index: {}]   ;;  %s1331_s1 = inlined_call_operand.vmem [shape: bf16[256,128], index: 1, kind: input, shape index: {}]   ;;  %s1332_s2 = inlined_call_operand.vmem [shape: f32[1,128], index: 2, kind: input, shape index: {}]   ;;  %s1333_s3 = inlined_call_operand.vmem [shape: f32[1,128], index: 3, kind: input, shape index: {}]   ;;  %s1334_s4 = inlined_call_operand.vmem [shape: f32[2048,128], index: 4, kind: output, shape index: {}]  }
   0x1   :  { %s1168_s17 = smov 0  }
   0x2 LB: > { %s33_s18 = sadd.s32 1, %s1133_s16  ;;  %p928_p0 = scmp.ge.s32.totalorder %s1137_s17, 1  ;;  %s1137_s17 = sphi %s1168_s17, %s14_s17   ;;  %s1133_s16 = sphi %s1166_s16, %s1336_s16   ;;  %s1129_s15 = sphi %s1164_s15, %s1335_s15  }
   0x3   : > { %p35_p1 = scmp.ge.s32.totalorder %s33_s18, 16  ;;  %p224_p2 = scmp.lt.s32.totalorder %s1137_s17, 17 }
   0x5   : > { %s1338_s18 = smov (%p35_p1, %s33_s18), 0  ;;  %p225_p3 = pnand %p928_p0, %p224_p2 }
   0x6   : > { %v1075_v0 = vld [vmem:[%s1331_s1 + $0x40] sm:$0xff] (!%p225_p3)   ;;  %s929_s21 = sshll.u32 (!%p225_p3), %s1129_s15, 4  ;;  %v1077_v2 = vld [vmem:[%s1331_s1 + $0x48] sm:$0xff] (!%p225_p3)   ;;  %v1079_v4 = vld [vmem:[%s1331_s1 + $0x50] sm:$0xff] (!%p225_p3)  }
   0x7   : > { %228 = sbr.rel (%p225_p3) target bundleno = 288 (0x120), region = 36  ;;  %v1076_v1 = vld [vmem:[%s1331_s1] sm:$0xff] (!%p225_p3)   ;;  %971 = vmatprep.subr.bf16.mxu0 (!%p225_p3), %v1075_v0  ;;  %1035 = vmatprep.subr.bf16.mxu1 (!%p225_p3), %v1075_v0  ;;  %v1078_v3 = vld [vmem:[%s1331_s1 + $0x8] sm:$0xff] (!%p225_p3)   ;;  %p274_p4 = scmp.lt.s32.totalorder (!%p225_p3), %s929_s21, 255  ;;  %v1080_v5 = vld [vmem:[%s1331_s1 + $0x10] sm:$0xff] (!%p225_p3)  }
   0x8   : > { %972 = vmatpush3.bf16.msra.mxu0 (!%p225_p3), %v1076_v1  ;;  %1043 = vmatpush3.bf16.msra.mxu1 (!%p225_p3), %v1076_v1  ;;  %v1081_v6 = vld [vmem:[%s1331_s1 + $0x58] sm:$0xff] (!%p225_p3)   ;;  %v1083_v8 = vld [vmem:[%s1331_s1 + $0x60] sm:$0xff] (!%p225_p3)   ;;  %v1085_v10 = vld [vmem:[%s1331_s1 + $0x68] sm:$0xff] (!%p225_p3)  }
   0x9   : > { %973 = vmatprep.subr.bf16.mxu0 (!%p225_p3), %v1077_v2  ;;  %1036 = vmatprep.subr.bf16.mxu1 (!%p225_p3), %v1077_v2  ;;  %v1082_v7 = vld [vmem:[%s1331_s1 + $0x18] sm:$0xff] (!%p225_p3)   ;;  %v1084_v9 = vld [vmem:[%s1331_s1 + $0x20] sm:$0xff] (!%p225_p3)   ;;  %v1086_v13 = vld [vmem:[%s1331_s1 + $0x28] sm:$0xff] (!%p225_p3)  }
   0xa   : > { %v1087_v14 = vld [vmem:[%s1331_s1 + $0x70] sm:$0xff] (!%p225_p3)   ;;  %v1089_v16 = vld [vmem:[%s1331_s1 + $0x78] sm:$0xff] (!%p225_p3)   ;;  %v1259_v35 = vld [vmem:[%s1332_s2] ss:$0 sm:$0xff] (!%p225_p3) }
   0xb   : > { %v1088_v15 = vld [vmem:[%s1331_s1 + $0x30] sm:$0xff] (!%p225_p3)   ;;  %v1090_v17 = vld [vmem:[%s1331_s1 + $0x38] sm:$0xff] (!%p225_p3)   ;;  %v1264_v41 = vld [vmem:[%s1333_s3] ss:$0 sm:$0xff] (!%p225_p3) }
   0xc   : > { %974 = vmatpush3.bf16.msra.mxu0 (!%p225_p3), %v1078_v3  ;;  %1044 = vmatpush3.bf16.msra.mxu1 (!%p225_p3), %v1078_v3 }
   0xd   : > { %975 = vmatprep.subr.bf16.mxu0 (!%p225_p3), %v1079_v4  ;;  %1037 = vmatprep.subr.bf16.mxu1 (!%p225_p3), %v1079_v4 }
   0xe   : > { %s1340_s21 = smov (!%p274_p4, %s929_s21), 255 }
   0xf   : > { %s970_s10 = sshll.u32 %s1340_s21, 3 }
  0x10   : > { %976 = vmatpush3.bf16.msra.mxu0 %v1080_v5  ;;  %1045 = vmatpush3.bf16.msra.mxu1 %v1080_v5  ;;  %s1217_s15 = scalar_lea.vmem %s1330_s0, %s970_s10 }
  0x11   : > { %977 = vmatprep.subr.bf16.mxu0 %v1081_v6  ;;  %1038 = vmatprep.subr.bf16.mxu1 %v1081_v6  ;;  %v1093_v11 = vld [vmem:[%s1217_s15 + $0x4] ss:$8 sps:$4 sm:$0xff]   ;;  %v1091_v18 = vld [vmem:[%s1217_s15] ss:$8 sps:$4 sm:$0xff]   ;;  %v1097_v20 = vld [vmem:[%s1217_s15 + $0x14] ss:$8 sps:$4 sm:$0xff]  }
  0x12   : > { %v1096_v12 = vld [vmem:[%s1217_s15 + $0x44] ss:$8 sps:$4 sm:$0xff]   ;;  %601 = vmatprep.mubr.bf16.mxu0 %v1093_v11  ;;  %v1094_v19 = vld [vmem:[%s1217_s15 + $0x40] ss:$8 sps:$4 sm:$0xff]   ;;  %v1099_v21 = vld [vmem:[%s1217_s15 + $0x54] ss:$8 sps:$4 sm:$0xff]  }
  0x13   : > { %633 = vmatprep.mubr.bf16.mxu1 %v1096_v12  ;;  %v1101_v22 = vld [vmem:[%s1217_s15 + $0x10] ss:$8 sps:$4 sm:$0xff]   ;;  %v1103_v24 = vld [vmem:[%s1217_s15 + $0x24] ss:$8 sps:$4 sm:$0xff]   ;;  %v1107_v26 = vld [vmem:[%s1217_s15 + $0x20] ss:$8 sps:$4 sm:$0xff]  }
  0x14   : > { %978 = vmatpush3.bf16.msra.mxu0 %v1082_v7  ;;  %1046 = vmatpush3.bf16.msra.mxu1 %v1082_v7  ;;  %v1102_v23 = vld [vmem:[%s1217_s15 + $0x50] ss:$8 sps:$4 sm:$0xff]   ;;  %v1105_v25 = vld [vmem:[%s1217_s15 + $0x64] ss:$8 sps:$4 sm:$0xff]   ;;  %v1108_v27 = vld [vmem:[%s1217_s15 + $0x60] ss:$8 sps:$4 sm:$0xff]  }
  0x15   : > { %979 = vmatprep.subr.bf16.mxu0 %v1083_v8  ;;  %1039 = vmatprep.subr.bf16.mxu1 %v1083_v8  ;;  %v1109_v28 = vld [vmem:[%s1217_s15 + $0x34] ss:$8 sps:$4 sm:$0xff]   ;;  %v1113_v30 = vld [vmem:[%s1217_s15 + $0x30] ss:$8 sps:$4 sm:$0xff]  }
  0x16   : > { %v1111_v29 = vld [vmem:[%s1217_s15 + $0x74] ss:$8 sps:$4 sm:$0xff]   ;;  %v1114_v31 = vld [vmem:[%s1217_s15 + $0x70] ss:$8 sps:$4 sm:$0xff]   ;;  %s1277_s15 = scalar_lea.vmem %s1334_s4, %s970_s10 }
  0x18   : > { %980 = vmatpush3.bf16.msra.mxu0 %v1084_v9  ;;  %1047 = vmatpush3.bf16.msra.mxu1 %v1084_v9 }
  0x19   : > { %981 = vmatprep.subr.bf16.mxu0 %v1085_v10  ;;  %1040 = vmatprep.subr.bf16.mxu1 %v1085_v10 }
  0x1c   : > { %982 = vmatpush3.bf16.msra.mxu0 %v1086_v13  ;;  %1048 = vmatpush3.bf16.msra.mxu1 %v1086_v13 }
  0x1d   : > { %983 = vmatprep.subr.bf16.mxu0 %v1087_v14  ;;  %1041 = vmatprep.subr.bf16.mxu1 %v1087_v14 }
  0x20   : > { %984 = vmatpush3.bf16.msra.mxu0 %v1088_v15  ;;  %1049 = vmatpush3.bf16.msra.mxu1 %v1088_v15 }
  0x21   : > { %985 = vmatprep.subr.bf16.mxu0 %v1089_v16  ;;  %1042 = vmatprep.subr.bf16.mxu1 %v1089_v16 }
  0x24   : > { %986 = vmatpush3.bf16.msra.mxu0 %v1090_v17  ;;  %1050 = vmatpush3.bf16.msra.mxu1 %v1090_v17 }
  0x27   : > { %602 = vmatmul.mubr.bf16.vlgmr.msra.gmra.mrb[0].mxu0 %v1091_v18  ;;  %634 = vmatmul.mubr.bf16.vlgmr.msra.gmra.mrb[0].mxu1 %v1094_v19 }
  0x28   : > { %609 = vmatprep.mubr.bf16.mxu0 %v1097_v20  ;;  %641 = vmatprep.mubr.bf16.mxu1 %v1099_v21 }
  0x2f   : > { %610 = vmatmul.mubr.bf16.gmra.mrb[4].mxu0 %v1101_v22  ;;  %642 = vmatmul.mubr.bf16.gmra.mrb[4].mxu1 %v1102_v23 }
  0x30   : > { %617 = vmatprep.mubr.bf16.mxu0 %v1103_v24  ;;  %649 = vmatprep.mubr.bf16.mxu1 %v1105_v25 }
  0x37   : > { %618 = vmatmul.mubr.bf16.gmra.mrb[8].mxu0 %v1107_v26  ;;  %650 = vmatmul.mubr.bf16.gmra.mrb[8].mxu1 %v1108_v27 }
  0x38   : > { %625 = vmatprep.mubr.bf16.mxu0 %v1109_v28  ;;  %657 = vmatprep.mubr.bf16.mxu1 %v1111_v29 }
  0x3f   : > { %626 = vmatmul.mubr.bf16.gmra.mrb[12].mxu0 %v1113_v30  ;;  %658 = vmatmul.mubr.bf16.gmra.mrb[12].mxu1 %v1114_v31 }
  0xfa   : > { %v987_v32 = vpop.f32.mrb[0].mxu0  ;;  %v1011_v33 = vpop.f32.mrb[0].mxu1 }
  0xfb   : > { %v988_v34 = vpop.f32.mrb[1].mxu0  ;;  %v1012_v36 = vpop.f32.mrb[1].mxu1 }
  0xfc   : > { %v989_v37 = vadd.f32 %v988_v34, %v987_v32  ;;  %v1013_v38 = vadd.f32 %v1012_v36, %v1011_v33  ;;  %v990_v39 = vpop.f32.mrb[2].mxu0  ;;  %v1014_v40 = vpop.f32.mrb[2].mxu1 }
  0xfd   : > { %v991_v42 = vpop.f32.mrb[3].mxu0  ;;  %v1015_v43 = vpop.f32.mrb[3].mxu1 }
  0xfe   : > { %v724_v44 = vmul.f32 %v989_v37, %v1259_v35  ;;  %v732_v45 = vmul.f32 %v1013_v38, %v1259_v35  ;;  %v992_v46 = vadd.f32 %v991_v42, %v990_v39  ;;  %v1016_v47 = vadd.f32 %v1015_v43, %v1014_v40 }
 0x100   : > { %v747_v48 = vadd.f32 %v1264_v41, %v724_v44  ;;  %v755_v49 = vadd.f32 %v1264_v41, %v732_v45  ;;  %v725_v50 = vmul.f32 %v992_v46, %v1259_v35  ;;  %v733_v51 = vmul.f32 %v1016_v47, %v1259_v35 }
 0x102   : > { %v763_v52 = vmax.f32 %v747_v48, 0.0  ;;  %v771_v53 = vmax.f32 %v755_v49, 0.0  ;;  %v748_v54 = vadd.f32 %v1264_v41, %v725_v50  ;;  %v756_v55 = vadd.f32 %v1264_v41, %v733_v51  ;;  %v993_v56 = vpop.f32.mrb[4].mxu0  ;;  %v1017_v57 = vpop.f32.mrb[4].mxu1 }
 0x103   : > { %v994_v58 = vpop.f32.mrb[5].mxu0  ;;  %v1018_v59 = vpop.f32.mrb[5].mxu1 }
 0x104   : > { %779 = vst [vmem:[%s1277_s15] sm:$0xff] %v763_v52  ;;  %787 = vst [vmem:[%s1277_s15 + $0x40] sm:$0xff] %v771_v53  ;;  %v764_v60 = vmax.f32 %v748_v54, 0.0  ;;  %v772_v61 = vmax.f32 %v756_v55, 0.0  ;;  %v995_v62 = vadd.f32 %v994_v58, %v993_v56  ;;  %v1019_v63 = vadd.f32 %v1018_v59, %v1017_v57  ;;  %v996_v0 = vpop.f32.mrb[6].mxu0  ;;  %v1020_v1 = vpop.f32.mrb[6].mxu1 }
 0x105   : > { %v997_v2 = vpop.f32.mrb[7].mxu0  ;;  %v1021_v3 = vpop.f32.mrb[7].mxu1 }
 0x106   : > { %780 = vst [vmem:[%s1277_s15 + $0x8] sm:$0xff] %v764_v60  ;;  %788 = vst [vmem:[%s1277_s15 + $0x48] sm:$0xff] %v772_v61  ;;  %v726_v4 = vmul.f32 %v995_v62, %v1259_v35  ;;  %v734_v5 = vmul.f32 %v1019_v63, %v1259_v35  ;;  %v998_v6 = vadd.f32 %v997_v2, %v996_v0 }
 0x107   : > { %v1022_v7 = vadd.f32 %v1021_v3, %v1020_v1 }
 0x108   : > { %v749_v8 = vadd.f32 %v1264_v41, %v726_v4  ;;  %v757_v9 = vadd.f32 %v1264_v41, %v734_v5  ;;  %v727_v10 = vmul.f32 %v998_v6, %v1259_v35 }
 0x109   : > { %v735_v11 = vmul.f32 %v1022_v7, %v1259_v35 }
 0x10a   : > { %v765_v12 = vmax.f32 %v749_v8, 0.0  ;;  %v773_v13 = vmax.f32 %v757_v9, 0.0  ;;  %v750_v14 = vadd.f32 %v1264_v41, %v727_v10  ;;  %v999_v16 = vpop.f32.mrb[8].mxu0  ;;  %v1023_v17 = vpop.f32.mrb[8].mxu1 }
 0x10b   : > { %v758_v15 = vadd.f32 %v1264_v41, %v735_v11  ;;  %v1000_v18 = vpop.f32.mrb[9].mxu0  ;;  %v1024_v19 = vpop.f32.mrb[9].mxu1 }
 0x10c   : > { %781 = vst [vmem:[%s1277_s15 + $0x10] sm:$0xff] %v765_v12  ;;  %789 = vst [vmem:[%s1277_s15 + $0x50] sm:$0xff] %v773_v13  ;;  %v766_v20 = vmax.f32 %v750_v14, 0.0  ;;  %v1001_v22 = vadd.f32 %v1000_v18, %v999_v16  ;;  %v1025_v23 = vadd.f32 %v1024_v19, %v1023_v17  ;;  %v1002_v24 = vpop.f32.mrb[10].mxu0  ;;  %v1026_v25 = vpop.f32.mrb[10].mxu1 }
 0x10d   : > { %v774_v21 = vmax.f32 %v758_v15, 0.0  ;;  %v1003_v26 = vpop.f32.mrb[11].mxu0  ;;  %v1027_v27 = vpop.f32.mrb[11].mxu1 }
 0x10e   : > { %782 = vst [vmem:[%s1277_s15 + $0x18] sm:$0xff] %v766_v20  ;;  %v728_v28 = vmul.f32 %v1001_v22, %v1259_v35  ;;  %v736_v29 = vmul.f32 %v1025_v23, %v1259_v35  ;;  %v1004_v30 = vadd.f32 %v1003_v26, %v1002_v24  ;;  %v1028_v31 = vadd.f32 %v1027_v27, %v1026_v25 }
 0x10f   : > { %790 = vst [vmem:[%s1277_s15 + $0x58] sm:$0xff] %v774_v21 }
 0x110   : > { %v751_v32 = vadd.f32 %v1264_v41, %v728_v28  ;;  %v759_v33 = vadd.f32 %v1264_v41, %v736_v29  ;;  %v729_v34 = vmul.f32 %v1004_v30, %v1259_v35  ;;  %v737_v36 = vmul.f32 %v1028_v31, %v1259_v35 }
 0x112   : > { %v767_v37 = vmax.f32 %v751_v32, 0.0  ;;  %v775_v38 = vmax.f32 %v759_v33, 0.0  ;;  %v752_v39 = vadd.f32 %v1264_v41, %v729_v34  ;;  %v760_v40 = vadd.f32 %v1264_v41, %v737_v36  ;;  %v1005_v42 = vpop.f32.mrb[12].mxu0  ;;  %v1029_v43 = vpop.f32.mrb[12].mxu1 }
 0x113   : > { %v1006_v44 = vpop.f32.mrb[13].mxu0  ;;  %v1030_v45 = vpop.f32.mrb[13].mxu1 }
 0x114   : > { %783 = vst [vmem:[%s1277_s15 + $0x20] sm:$0xff] %v767_v37  ;;  %791 = vst [vmem:[%s1277_s15 + $0x60] sm:$0xff] %v775_v38  ;;  %v768_v46 = vmax.f32 %v752_v39, 0.0  ;;  %v776_v47 = vmax.f32 %v760_v40, 0.0  ;;  %v1007_v48 = vadd.f32 %v1006_v44, %v1005_v42  ;;  %v1031_v49 = vadd.f32 %v1030_v45, %v1029_v43  ;;  %v1008_v50 = vpop.f32.mrb[14].mxu0  ;;  %v1032_v51 = vpop.f32.mrb[14].mxu1 }
 0x115   : > { %v1009_v52 = vpop.f32.mrb[15].mxu0  ;;  %v1033_v53 = vpop.f32.mrb[15].mxu1 }
 0x116   : > { %784 = vst [vmem:[%s1277_s15 + $0x28] sm:$0xff] %v768_v46  ;;  %792 = vst [vmem:[%s1277_s15 + $0x68] sm:$0xff] %v776_v47  ;;  %v730_v54 = vmul.f32 %v1007_v48, %v1259_v35  ;;  %v738_v55 = vmul.f32 %v1031_v49, %v1259_v35  ;;  %v1010_v56 = vadd.f32 %v1009_v52, %v1008_v50 }
 0x117   : > { %v1034_v57 = vadd.f32 %v1033_v53, %v1032_v51 }
 0x118   : > { %v753_v58 = vadd.f32 %v1264_v41, %v730_v54  ;;  %v761_v59 = vadd.f32 %v1264_v41, %v738_v55  ;;  %v731_v60 = vmul.f32 %v1010_v56, %v1259_v35 }
 0x119   : > { %v739_v61 = vmul.f32 %v1034_v57, %v1259_v35 }
 0x11a   : > { %v769_v62 = vmax.f32 %v753_v58, 0.0  ;;  %v777_v63 = vmax.f32 %v761_v59, 0.0  ;;  %v754_v0 = vadd.f32 %v1264_v41, %v731_v60 }
 0x11b   : > { %v762_v1 = vadd.f32 %v1264_v41, %v739_v61 }
 0x11c   : > { %785 = vst [vmem:[%s1277_s15 + $0x30] sm:$0xff] %v769_v62  ;;  %793 = vst [vmem:[%s1277_s15 + $0x70] sm:$0xff] %v777_v63  ;;  %v770_v2 = vmax.f32 %v754_v0, 0.0 }
 0x11d   : > { %v778_v3 = vmax.f32 %v762_v1, 0.0 }
 0x11e   : > { %786 = vst [vmem:[%s1277_s15 + $0x38] sm:$0xff] %v770_v2 }
 0x11f   : > { %794 = vst [vmem:[%s1277_s15 + $0x78] sm:$0xff] %v778_v3 }
 0x120 PF: > { %s14_s17 = sadd.s32 1, %s1137_s17   ;;  %s1335_s15 = smov %s1133_s16 }
 0x121   : > { %p11_p5 = scmp.ge.s32.totalorder %s14_s17, 18   ;;  %s1336_s16 = smov %s1338_s18 }
 0x123   :  { %13 = sbr.rel (!%p11_p5) target bundleno = 2 (0x2), region = 83 }

// kernel: _lambda_.23
= control target key start
LH: loop header
LB: loop body
LE: loop exit
PB: predicated region body
PF: predicated region fallthrough
CT: control target
= control target key end

     0   :  { %s1925_s15 = smov 0   ;;  %s1927_s16 = smov 0   ;;  %s2223_s0 = inlined_call_operand.vmem [shape: bf16[512,640], index: 0, kind: input, shape index: {}]   ;;  %s2224_s1 = inlined_call_operand.vmem [shape: bf16[640,128], index: 1, kind: input, shape index: {}]   ;;  %s2225_s2 = inlined_call_operand.vmem [shape: f32[1,128], index: 2, kind: input, shape index: {}]   ;;  %s2226_s3 = inlined_call_operand.vmem [shape: f32[1,128], index: 3, kind: input, shape index: {}]   ;;  %s2227_s4 = inlined_call_operand.vmem [shape: f32[512,128], index: 4, kind: output, shape index: {}]  }
   0x1   :  { %s1929_s17 = smov 0  }
   0x2 LB: > { %s33_s18 = sadd.s32 1, %s1894_s16  ;;  %p1474_p0 = scmp.ge.s32.totalorder %s1898_s17, 1  ;;  %s1898_s17 = sphi %s1929_s17, %s14_s17   ;;  %s1894_s16 = sphi %s1927_s16, %s2229_s16   ;;  %s1890_s15 = sphi %s1925_s15, %s2228_s15  }
   0x3   : > { %p35_p1 = scmp.ge.s32.totalorder %s33_s18, 4  ;;  %p224_p2 = scmp.lt.s32.totalorder %s1898_s17, 5 }
   0x5   : > { %s2231_s18 = smov (%p35_p1, %s33_s18), 0  ;;  %p225_p3 = pnand %p1474_p0, %p224_p2 }
   0x6   : > { %v1780_v0 = vld [vmem:[%s2224_s1 + $0x40] sm:$0xff] (!%p225_p3)   ;;  %v1784_v4 = vld [vmem:[%s2224_s1 + $0x48] sm:$0xff] (!%p225_p3)   ;;  %v1788_v8 = vld [vmem:[%s2224_s1 + $0x50] sm:$0xff] (!%p225_p3)   ;;  %s1475_s27 = sshll.u32 (!%p225_p3), %s1890_s15, 4 }
   0x7   : > { %228 = sbr.rel (%p225_p3) target bundleno = 338 (0x152), region = 36  ;;  %v1781_v1 = vld [vmem:[%s2224_s1 + $0xc0] sm:$0xff] (!%p225_p3)   ;;  %1563 = vmatprep.subr.bf16.mxu0 (!%p225_p3), %v1780_v0  ;;  %v1785_v5 = vld [vmem:[%s2224_s1 + $0xc8] sm:$0xff] (!%p225_p3)   ;;  %v1789_v9 = vld [vmem:[%s2224_s1 + $0xd0] sm:$0xff] (!%p225_p3)   ;;  %p274_p4 = scmp.lt.s32.totalorder (!%p225_p3), %s1475_s27, 63 }
   0x8   : > { %v1782_v2 = vld [vmem:[%s2224_s1] sm:$0xff] (!%p225_p3)   ;;  %1627 = vmatprep.subr.bf16.mxu1 (!%p225_p3), %v1781_v1  ;;  %v1786_v6 = vld [vmem:[%s2224_s1 + $0x8] sm:$0xff] (!%p225_p3)   ;;  %v1790_v10 = vld [vmem:[%s2224_s1 + $0x10] sm:$0xff] (!%p225_p3)  }
   0x9   : > { %v1783_v3 = vld [vmem:[%s2224_s1 + $0x80] sm:$0xff] (!%p225_p3)   ;;  %1564 = vmatpush3.bf16.msra.mxu0 (!%p225_p3), %v1782_v2  ;;  %v1787_v7 = vld [vmem:[%s2224_s1 + $0x88] sm:$0xff] (!%p225_p3)   ;;  %v1791_v11 = vld [vmem:[%s2224_s1 + $0x90] sm:$0xff] (!%p225_p3)  }
   0xa   : > { %1628 = vmatpush3.bf16.msra.mxu1 (!%p225_p3), %v1783_v3  ;;  %1565 = vmatprep.subr.bf16.mxu0 (!%p225_p3), %v1784_v4  ;;  %v1792_v12 = vld [vmem:[%s2224_s1 + $0x58] sm:$0xff] (!%p225_p3)   ;;  %v1796_v16 = vld [vmem:[%s2224_s1 + $0x60] sm:$0xff] (!%p225_p3)   ;;  %v1800_v20 = vld [vmem:[%s2224_s1 + $0x68] sm:$0xff] (!%p225_p3)  }
   0xb   : > { %1629 = vmatprep.subr.bf16.mxu1 (!%p225_p3), %v1785_v5  ;;  %v1793_v13 = vld [vmem:[%s2224_s1 + $0xd8] sm:$0xff] (!%p225_p3)   ;;  %v1797_v17 = vld [vmem:[%s2224_s1 + $0xe0] sm:$0xff] (!%p225_p3)   ;;  %v1801_v21 = vld [vmem:[%s2224_s1 + $0xe8] sm:$0xff] (!%p225_p3)  }
   0xc   : > { %v1794_v14 = vld [vmem:[%s2224_s1 + $0x18] sm:$0xff] (!%p225_p3)   ;;  %v1798_v18 = vld [vmem:[%s2224_s1 + $0x20] sm:$0xff] (!%p225_p3)   ;;  %v1802_v22 = vld [vmem:[%s2224_s1 + $0x28] sm:$0xff] (!%p225_p3)  }
   0xd   : > { %1566 = vmatpush3.bf16.msra.mxu0 (!%p225_p3), %v1786_v6  ;;  %v1795_v15 = vld [vmem:[%s2224_s1 + $0x98] sm:$0xff] (!%p225_p3)   ;;  %v1799_v19 = vld [vmem:[%s2224_s1 + $0xa0] sm:$0xff] (!%p225_p3)   ;;  %v1803_v23 = vld [vmem:[%s2224_s1 + $0xa8] sm:$0xff] (!%p225_p3)  }
   0xe   : > { %1630 = vmatpush3.bf16.msra.mxu1 %v1787_v7  ;;  %1567 = vmatprep.subr.bf16.mxu0 %v1788_v8  ;;  %s2233_s27 = smov (!%p274_p4, %s1475_s27), 63  ;;  %v1804_v24 = vld [vmem:[%s2224_s1 + $0x70] sm:$0xff]   ;;  %v1808_v28 = vld [vmem:[%s2224_s1 + $0x78] sm:$0xff]   ;;  %v1818_v36 = vld [vmem:[%s2224_s1 + $0x100] sm:$0xff]  }
   0xf   : > { %1631 = vmatprep.subr.bf16.mxu1 %v1789_v9  ;;  %v1805_v25 = vld [vmem:[%s2224_s1 + $0xf0] sm:$0xff]   ;;  %s1755_s28 = smul.u32 20, %s2233_s27  ;;  %v1809_v29 = vld [vmem:[%s2224_s1 + $0xf8] sm:$0xff]   ;;  %v1825_v39 = vld [vmem:[%s2224_s1 + $0x108] sm:$0xff]   ;;  %s1478_s19 = sshll.u32 %s2233_s27, 3 }
  0x10   : > { %v1806_v26 = vld [vmem:[%s2224_s1 + $0x30] sm:$0xff]   ;;  %v1810_v30 = vld [vmem:[%s2224_s1 + $0x38] sm:$0xff]   ;;  %v1846_v50 = vld [vmem:[%s2224_s1 + $0x120] sm:$0xff]   ;;  %s2163_s21 = scalar_lea.vmem %s2227_s4, %s1478_s19 }
  0x11   : > { %1568 = vmatpush3.bf16.msra.mxu0 %v1790_v10  ;;  %v1807_v27 = vld [vmem:[%s2224_s1 + $0xb0] sm:$0xff]   ;;  %s2042_s12 = scalar_lea.vmem %s2223_s0, %s1755_s28  ;;  %v1811_v31 = vld [vmem:[%s2224_s1 + $0xb8] sm:$0xff]   ;;  %v1853_v51 = vld [vmem:[%s2224_s1 + $0x128] sm:$0xff]  }
  0x12   : > { %1632 = vmatpush3.bf16.msra.mxu1 %v1791_v11  ;;  %1569 = vmatprep.subr.bf16.mxu0 %v1792_v12  ;;  %v1812_v32 = vld [vmem:[%s2042_s12] ss:$20 sps:$4 sm:$0xff]   ;;  %v1814_v33 = vld [vmem:[%s2042_s12 + $0x4] ss:$20 sps:$4 sm:$0xff]   ;;  %v1815_v34 = vld [vmem:[%s2042_s12 + $0x8] ss:$20 sps:$4 sm:$0xff]  }
  0x13   : > { %1633 = vmatprep.subr.bf16.mxu1 %v1793_v13  ;;  %v1817_v35 = vld [vmem:[%s2042_s12 + $0xc] ss:$20 sps:$4 sm:$0xff]   ;;  %953 = vmatprep.mubr.bf16.mxu0 %v1814_v33  ;;  %v1821_v38 = vld [vmem:[%s2042_s12 + $0x34] ss:$20 sps:$4 sm:$0xff]   ;;  %v1824_v41 = vld [vmem:[%s2042_s12 + $0x30] ss:$20 sps:$4 sm:$0xff]  }
  0x14   : > { %1050 = vmatprep.mubr.bf16.mxu1 %v1817_v35  ;;  %v1819_v37 = vld [vmem:[%s2042_s12 + $0x2c] ss:$20 sps:$4 sm:$0xff]   ;;  %v1823_v40 = vld [vmem:[%s2042_s12 + $0x28] ss:$20 sps:$4 sm:$0xff]   ;;  %v1832_v44 = vld [vmem:[%s2224_s1 + $0x110] sm:$0xff]  }
  0x15   : > { %1570 = vmatpush3.bf16.msra.mxu0 %v1794_v14  ;;  %v1826_v42 = vld [vmem:[%s2042_s12 + $0x54] ss:$20 sps:$4 sm:$0xff]   ;;  %v1828_v43 = vld [vmem:[%s2042_s12 + $0x5c] ss:$20 sps:$4 sm:$0xff]   ;;  %v1831_v47 = vld [vmem:[%s2042_s12 + $0x58] ss:$20 sps:$4 sm:$0xff]  }
  0x16   : > { %1634 = vmatpush3.bf16.msra.mxu1 %v1795_v15  ;;  %1571 = vmatprep.subr.bf16.mxu0 %v1796_v16  ;;  %v1839_v45 = vld [vmem:[%s2224_s1 + $0x118] sm:$0xff]   ;;  %v1830_v46 = vld [vmem:[%s2042_s12 + $0x50] ss:$20 sps:$4 sm:$0xff]   ;;  %v1838_v53 = vld [vmem:[%s2042_s12 + $0x80] ss:$20 sps:$4 sm:$0xff]  }
  0x17   : > { %1635 = vmatprep.subr.bf16.mxu1 %v1797_v17  ;;  %v1833_v48 = vld [vmem:[%s2042_s12 + $0x7c] ss:$20 sps:$4 sm:$0xff]   ;;  %v1835_v49 = vld [vmem:[%s2042_s12 + $0x84] ss:$20 sps:$4 sm:$0xff]   ;;  %v1842_v56 = vld [vmem:[%s2042_s12 + $0xac] ss:$20 sps:$4 sm:$0xff]  }
  0x18   : > { %v1837_v52 = vld [vmem:[%s2042_s12 + $0x78] ss:$20 sps:$4 sm:$0xff]   ;;  %v1860_v55 = vld [vmem:[%s2224_s1 + $0x130] sm:$0xff]   ;;  %v1845_v59 = vld [vmem:[%s2042_s12 + $0xa8] ss:$20 sps:$4 sm:$0xff]  }
  0x19   : > { %1572 = vmatpush3.bf16.msra.mxu0 %v1798_v18  ;;  %v1840_v54 = vld [vmem:[%s2042_s12 + $0xa4] ss:$20 sps:$4 sm:$0xff]   ;;  %v1844_v58 = vld [vmem:[%s2042_s12 + $0xa0] ss:$20 sps:$4 sm:$0xff]   ;;  %v1851_v62 = vld [vmem:[%s2042_s12 + $0xc8] ss:$20 sps:$4 sm:$0xff]  }
  0x1a   : > { %1636 = vmatpush3.bf16.msra.mxu1 %v1799_v19  ;;  %1573 = vmatprep.subr.bf16.mxu0 %v1800_v20  ;;  %v1867_v57 = vld [vmem:[%s2224_s1 + $0x138] sm:$0xff]   ;;  %v1847_v60 = vld [vmem:[%s2042_s12 + $0xcc] ss:$20 sps:$4 sm:$0xff]   ;;  %v1849_v61 = vld [vmem:[%s2042_s12 + $0xd4] ss:$20 sps:$4 sm:$0xff]  }
  0x1b   : > { %1637 = vmatprep.subr.bf16.mxu1 %v1801_v21  ;;  %v1852_v63 = vld [vmem:[%s2042_s12 + $0xd0] ss:$20 sps:$4 sm:$0xff]   ;;  %v1854_v0 = vld [vmem:[%s2042_s12 + $0xf4] ss:$20 sps:$4 sm:$0xff]   ;;  %v1859_v3 = vld [vmem:[%s2042_s12 + $0xf8] ss:$20 sps:$4 sm:$0xff]  }
  0x1c   : > { %v1856_v1 = vld [vmem:[%s2042_s12 + $0xfc] ss:$20 sps:$4 sm:$0xff]   ;;  %v1863_v5 = vld [vmem:[%s2042_s12 + $0x124] ss:$20 sps:$4 sm:$0xff]   ;;  %v1866_v7 = vld [vmem:[%s2042_s12 + $0x120] ss:$20 sps:$4 sm:$0xff]  }
  0x1d   : > { %1574 = vmatpush3.bf16.msra.mxu0 %v1802_v22  ;;  %v1858_v2 = vld [vmem:[%s2042_s12 + $0xf0] ss:$20 sps:$4 sm:$0xff]   ;;  %v1865_v6 = vld [vmem:[%s2042_s12 + $0x118] ss:$20 sps:$4 sm:$0xff]   ;;  %v1872_v12 = vld [vmem:[%s2042_s12 + $0x60] ss:$20 sps:$4 sm:$0xff]  }
  0x1e   : > { %1638 = vmatpush3.bf16.msra.mxu1 %v1803_v23  ;;  %1575 = vmatprep.subr.bf16.mxu0 %v1804_v24  ;;  %v1861_v4 = vld [vmem:[%s2042_s12 + $0x11c] ss:$20 sps:$4 sm:$0xff]   ;;  %v1870_v10 = vld [vmem:[%s2042_s12 + $0x38] ss:$20 sps:$4 sm:$0xff]   ;;  %v1873_v13 = vld [vmem:[%s2042_s12 + $0x100] ss:$20 sps:$4 sm:$0xff]  }
  0x1f   : > { %1639 = vmatprep.subr.bf16.mxu1 %v1805_v25  ;;  %v1868_v8 = vld [vmem:[%s2042_s12 + $0x10] ss:$20 sps:$4 sm:$0xff]   ;;  %v1871_v11 = vld [vmem:[%s2042_s12 + $0xd8] ss:$20 sps:$4 sm:$0xff]   ;;  %v1874_v14 = vld [vmem:[%s2042_s12 + $0x88] ss:$20 sps:$4 sm:$0xff]  }
  0x20   : > { %v1869_v9 = vld [vmem:[%s2042_s12 + $0xb0] ss:$20 sps:$4 sm:$0xff]   ;;  %v1875_v15 = vld [vmem:[%s2042_s12 + $0x128] ss:$20 sps:$4 sm:$0xff]  }
  0x21   : > { %1576 = vmatpush3.bf16.msra.mxu0 %v1806_v26 }
  0x22   : > { %1640 = vmatpush3.bf16.msra.mxu1 %v1807_v27  ;;  %1577 = vmatprep.subr.bf16.mxu0 %v1808_v28 }
  0x23   : > { %1641 = vmatprep.subr.bf16.mxu1 %v1809_v29 }
  0x25   : > { %1578 = vmatpush3.bf16.msra.mxu0 %v1810_v30 }
  0x26   : > { %1642 = vmatpush3.bf16.msra.mxu1 %v1811_v31  ;;  %1707 = vmatprep.subr.bf16.mxu0 %v1818_v36 }
  0x27   : > { %1739 = vmatprep.subr.bf16.mxu1 %v1818_v36 }
  0x28   : > { %954 = vmatmul.mubr.bf16.vlgmr.msra.gmra.mrb[0].mxu0 %v1812_v32 }
  0x29   : > { %1051 = vmatmul.mubr.bf16.vlgmr.msra.gmra.mrb[0].mxu1 %v1815_v34  ;;  %1708 = vmatpush3.bf16.msra.mxu0 %v1818_v36 }
  0x2a   : > { %1747 = vmatpush3.bf16.msra.mxu1 %v1818_v36  ;;  %961 = vmatprep.mubr.bf16.mxu0 %v1819_v37 }
  0x2b   : > { %1058 = vmatprep.mubr.bf16.mxu1 %v1821_v38  ;;  %1709 = vmatprep.subr.bf16.mxu0 %v1825_v39 }
  0x2c   : > { %1740 = vmatprep.subr.bf16.mxu1 %v1825_v39 }
  0x2d   : > { %1710 = vmatpush3.bf16.msra.mxu0 %v1825_v39 }
  0x2e   : > { %1748 = vmatpush3.bf16.msra.mxu1 %v1825_v39  ;;  %1711 = vmatprep.subr.bf16.mxu0 %v1832_v44 }
  0x2f   : > { %1741 = vmatprep.subr.bf16.mxu1 %v1832_v44 }
  0x30   : > { %962 = vmatmul.mubr.bf16.gmra.mrb[4].mxu0 %v1823_v40 }
  0x31   : > { %1059 = vmatmul.mubr.bf16.gmra.mrb[4].mxu1 %v1824_v41  ;;  %969 = vmatprep.mubr.bf16.mxu0 %v1826_v42 }
  0x32   : > { %1066 = vmatprep.mubr.bf16.mxu1 %v1828_v43  ;;  %1712 = vmatpush3.bf16.msra.mxu0 %v1832_v44 }
  0x33   : > { %1749 = vmatpush3.bf16.msra.mxu1 %v1832_v44  ;;  %1713 = vmatprep.subr.bf16.mxu0 %v1839_v45 }
  0x34   : > { %1742 = vmatprep.subr.bf16.mxu1 %v1839_v45 }
  0x36   : > { %1714 = vmatpush3.bf16.msra.mxu0 %v1839_v45 }
  0x37   : > { %1750 = vmatpush3.bf16.msra.mxu1 %v1839_v45  ;;  %1715 = vmatprep.subr.bf16.mxu0 %v1846_v50 }
  0x38   : > { %970 = vmatmul.mubr.bf16.gmra.mrb[8].mxu0 %v1830_v46  ;;  %1743 = vmatprep.subr.bf16.mxu1 %v1846_v50 }
  0x39   : > { %1067 = vmatmul.mubr.bf16.gmra.mrb[8].mxu1 %v1831_v47  ;;  %977 = vmatprep.mubr.bf16.mxu0 %v1833_v48 }
  0x3a   : > { %1074 = vmatprep.mubr.bf16.mxu1 %v1835_v49  ;;  %1716 = vmatpush3.bf16.msra.mxu0 %v1846_v50 }
  0x3b   : > { %1751 = vmatpush3.bf16.msra.mxu1 %v1846_v50  ;;  %1717 = vmatprep.subr.bf16.mxu0 %v1853_v51 }
  0x3c   : > { %1744 = vmatprep.subr.bf16.mxu1 %v1853_v51 }
  0x3e   : > { %1718 = vmatpush3.bf16.msra.mxu0 %v1853_v51 }
  0x3f   : > { %1752 = vmatpush3.bf16.msra.mxu1 %v1853_v51  ;;  %1719 = vmatprep.subr.bf16.mxu0 %v1860_v55 }
  0x40   : > { %978 = vmatmul.mubr.bf16.gmra.mrb[12].mxu0 %v1837_v52  ;;  %1745 = vmatprep.subr.bf16.mxu1 %v1860_v55 }
  0x41   : > { %1075 = vmatmul.mubr.bf16.gmra.mrb[12].mxu1 %v1838_v53  ;;  %985 = vmatprep.mubr.bf16.mxu0 %v1840_v54 }
  0x42   : > { %1082 = vmatprep.mubr.bf16.mxu1 %v1842_v56  ;;  %1720 = vmatpush3.bf16.msra.mxu0 %v1860_v55 }
  0x43   : > { %1753 = vmatpush3.bf16.msra.mxu1 %v1860_v55  ;;  %1721 = vmatprep.subr.bf16.mxu0 %v1867_v57 }
  0x44   : > { %1746 = vmatprep.subr.bf16.mxu1 %v1867_v57 }
  0x46   : > { %1722 = vmatpush3.bf16.msra.mxu0 %v1867_v57 }
  0x47   : > { %1754 = vmatpush3.bf16.msra.mxu1 %v1867_v57 }
  0x48   : > { %986 = vmatmul.mubr.bf16.gmra.mrb[16].mxu0 %v1844_v58 }
  0x49   : > { %1083 = vmatmul.mubr.bf16.gmra.mrb[16].mxu1 %v1845_v59  ;;  %993 = vmatprep.mubr.bf16.mxu0 %v1847_v60 }
  0x4a   : > { %1090 = vmatprep.mubr.bf16.mxu1 %v1849_v61 }
  0x50   : > { %994 = vmatmul.mubr.bf16.gmra.mrb[20].mxu0 %v1851_v62 }
  0x51   : > { %1091 = vmatmul.mubr.bf16.gmra.mrb[20].mxu1 %v1852_v63  ;;  %1001 = vmatprep.mubr.bf16.mxu0 %v1854_v0 }
  0x52   : > { %1098 = vmatprep.mubr.bf16.mxu1 %v1856_v1 }
  0x58   : > { %1002 = vmatmul.mubr.bf16.gmra.mrb[24].mxu0 %v1858_v2 }
  0x59   : > { %1099 = vmatmul.mubr.bf16.gmra.mrb[24].mxu1 %v1859_v3  ;;  %1009 = vmatprep.mubr.bf16.mxu0 %v1861_v4 }
  0x5a   : > { %1106 = vmatprep.mubr.bf16.mxu1 %v1863_v5 }
  0x60   : > { %1010 = vmatmul.mubr.bf16.gmra.mrb[28].mxu0 %v1865_v6 }
  0x61   : > { %1107 = vmatmul.mubr.bf16.gmra.mrb[28].mxu1 %v1866_v7  ;;  %1723 = vmatprep.mubr.bf16.mxu0 %v1868_v8 }
  0x62   : > { %1731 = vmatprep.mubr.bf16.mxu1 %v1869_v9 }
  0x68   : > { %1724 = vmatmul.mubr.bf16.vlgmr.msra.gmra.mrb[32].mxu0 %v1870_v10 }
  0x69   : > { %1732 = vmatmul.mubr.bf16.vlgmr.msra.gmra.mrb[32].mxu1 %v1871_v11  ;;  %1727 = vmatprep.mubr.bf16.mxu0 %v1872_v12 }
  0x6a   : > { %1735 = vmatprep.mubr.bf16.mxu1 %v1873_v13 }
  0x70   : > { %1728 = vmatmul.mubr.bf16.gmra.mrb[36].mxu0 %v1874_v14 }
  0x71   : > { %1736 = vmatmul.mubr.bf16.gmra.mrb[36].mxu1 %v1875_v15 }
  0xfb   : > { %v1579_v16 = vpop.f32.mrb[0].mxu0 }
  0xfc   : > { %v1643_v17 = vpop.f32.mrb[0].mxu1  ;;  %v1580_v18 = vpop.f32.mrb[1].mxu0 }
  0xfd   : > { %v1581_v19 = vadd.f32 %v1580_v18, %v1579_v16  ;;  %v1644_v20 = vpop.f32.mrb[1].mxu1  ;;  %v1582_v21 = vpop.f32.mrb[2].mxu0 }
  0xfe   : > { %v1645_v22 = vadd.f32 %v1644_v20, %v1643_v17  ;;  %v1646_v23 = vpop.f32.mrb[2].mxu1  ;;  %v1583_v24 = vpop.f32.mrb[3].mxu0 }
  0xff   : > { %v1584_v25 = vadd.f32 %v1583_v24, %v1582_v21  ;;  %v1647_v26 = vpop.f32.mrb[3].mxu1 }
 0x100   : > { %v1648_v27 = vadd.f32 %v1647_v26, %v1646_v23  ;;  %v2114_v28 = vadd.f32 %v1645_v22, %v1581_v19 }
 0x102   : > { %v2116_v29 = vadd.f32 %v1648_v27, %v1584_v25 }
 0x103   : > { %v1585_v30 = vpop.f32.mrb[4].mxu0 }
 0x104   : > { %v1649_v31 = vpop.f32.mrb[4].mxu1  ;;  %v1586_v32 = vpop.f32.mrb[5].mxu0 }
 0x105   : > { %v1587_v33 = vadd.f32 %v1586_v32, %v1585_v30  ;;  %v1650_v34 = vpop.f32.mrb[5].mxu1  ;;  %v1588_v35 = vpop.f32.mrb[6].mxu0 }
 0x106   : > { %v1651_v36 = vadd.f32 %v1650_v34, %v1649_v31  ;;  %v1652_v37 = vpop.f32.mrb[6].mxu1  ;;  %v1589_v38 = vpop.f32.mrb[7].mxu0 }
 0x107   : > { %v1590_v39 = vadd.f32 %v1589_v38, %v1588_v35  ;;  %v1653_v40 = vpop.f32.mrb[7].mxu1 }
 0x108   : > { %v1654_v41 = vadd.f32 %v1653_v40, %v1652_v37  ;;  %v2118_v42 = vadd.f32 %v1651_v36, %v1587_v33 }
 0x10a   : > { %v2120_v43 = vadd.f32 %v1654_v41, %v1590_v39 }
 0x10b   : > { %v1591_v44 = vpop.f32.mrb[8].mxu0 }
 0x10c   : > { %v1655_v45 = vpop.f32.mrb[8].mxu1  ;;  %v1592_v46 = vpop.f32.mrb[9].mxu0 }
 0x10d   : > { %v1593_v47 = vadd.f32 %v1592_v46, %v1591_v44  ;;  %v1656_v48 = vpop.f32.mrb[9].mxu1  ;;  %v1594_v49 = vpop.f32.mrb[10].mxu0 }
 0x10e   : > { %v1657_v50 = vadd.f32 %v1656_v48, %v1655_v45  ;;  %v1658_v51 = vpop.f32.mrb[10].mxu1  ;;  %v1595_v52 = vpop.f32.mrb[11].mxu0 }
 0x10f   : > { %v1596_v53 = vadd.f32 %v1595_v52, %v1594_v49  ;;  %v1659_v54 = vpop.f32.mrb[11].mxu1 }
 0x110   : > { %v1660_v55 = vadd.f32 %v1659_v54, %v1658_v51  ;;  %v2122_v56 = vadd.f32 %v1657_v50, %v1593_v47 }
 0x112   : > { %v2124_v57 = vadd.f32 %v1660_v55, %v1596_v53 }
 0x113   : > { %v1597_v58 = vpop.f32.mrb[12].mxu0 }
 0x114   : > { %v1661_v59 = vpop.f32.mrb[12].mxu1  ;;  %v1598_v60 = vpop.f32.mrb[13].mxu0 }
 0x115   : > { %v1599_v61 = vadd.f32 %v1598_v60, %v1597_v58  ;;  %v1662_v62 = vpop.f32.mrb[13].mxu1  ;;  %v1600_v63 = vpop.f32.mrb[14].mxu0 }
 0x116   : > { %v1663_v0 = vadd.f32 %v1662_v62, %v1661_v59  ;;  %v1664_v1 = vpop.f32.mrb[14].mxu1  ;;  %v1601_v2 = vpop.f32.mrb[15].mxu0 }
 0x117   : > { %v1602_v3 = vadd.f32 %v1601_v2, %v1600_v63  ;;  %v1665_v4 = vpop.f32.mrb[15].mxu1 }
 0x118   : > { %v1666_v5 = vadd.f32 %v1665_v4, %v1664_v1  ;;  %v2126_v6 = vadd.f32 %v1663_v0, %v1599_v61 }
 0x11a   : > { %v2128_v7 = vadd.f32 %v1666_v5, %v1602_v3 }
 0x11b   : > { %v1603_v8 = vpop.f32.mrb[16].mxu0 }
 0x11c   : > { %v1667_v9 = vpop.f32.mrb[16].mxu1  ;;  %v1604_v10 = vpop.f32.mrb[17].mxu0 }
 0x11d   : > { %v1605_v11 = vadd.f32 %v1604_v10, %v1603_v8  ;;  %v1668_v12 = vpop.f32.mrb[17].mxu1  ;;  %v1606_v13 = vpop.f32.mrb[18].mxu0 }
 0x11e   : > { %v1669_v14 = vadd.f32 %v1668_v12, %v1667_v9  ;;  %v1670_v15 = vpop.f32.mrb[18].mxu1  ;;  %v1607_v16 = vpop.f32.mrb[19].mxu0  ;;  %v2141_v9 = vld [vmem:[%s2225_s2] ss:$0 sm:$0xff] }
 0x11f   : > { %v1608_v17 = vadd.f32 %v1607_v16, %v1606_v13  ;;  %v1671_v18 = vpop.f32.mrb[19].mxu1  ;;  %v2147_v13 = vld [vmem:[%s2226_s3] ss:$0 sm:$0xff] }
 0x120   : > { %v1672_v19 = vadd.f32 %v1671_v18, %v1670_v15  ;;  %v1085_v20 = vadd.f32 %v1669_v14, %v1605_v11 }
 0x122   : > { %v2130_v21 = vadd.f32 %v1672_v19, %v1608_v17 }
 0x123   : > { %v1609_v22 = vpop.f32.mrb[20].mxu0 }
 0x124   : > { %v1673_v23 = vpop.f32.mrb[20].mxu1  ;;  %v1610_v24 = vpop.f32.mrb[21].mxu0 }
 0x125   : > { %v1611_v25 = vadd.f32 %v1610_v24, %v1609_v22  ;;  %v1674_v26 = vpop.f32.mrb[21].mxu1  ;;  %v1612_v27 = vpop.f32.mrb[22].mxu0 }
 0x126   : > { %v1675_v30 = vadd.f32 %v1674_v26, %v1673_v23  ;;  %v1676_v31 = vpop.f32.mrb[22].mxu1  ;;  %v1613_v32 = vpop.f32.mrb[23].mxu0 }
 0x127   : > { %v1614_v33 = vadd.f32 %v1613_v32, %v1612_v27  ;;  %v1677_v34 = vpop.f32.mrb[23].mxu1 }
 0x128   : > { %v1678_v35 = vadd.f32 %v1677_v34, %v1676_v31  ;;  %v1093_v36 = vadd.f32 %v1675_v30, %v1611_v25 }
 0x12a   : > { %v1096_v37 = vadd.f32 %v1678_v35, %v1614_v33 }
 0x12b   : > { %v1615_v38 = vpop.f32.mrb[24].mxu0 }
 0x12c   : > { %v1679_v39 = vpop.f32.mrb[24].mxu1  ;;  %v1616_v40 = vpop.f32.mrb[25].mxu0 }
 0x12d   : > { %v1617_v41 = vadd.f32 %v1616_v40, %v1615_v38  ;;  %v1680_v44 = vpop.f32.mrb[25].mxu1  ;;  %v1618_v45 = vpop.f32.mrb[26].mxu0 }
 0x12e   : > { %v1681_v46 = vadd.f32 %v1680_v44, %v1679_v39  ;;  %v1682_v47 = vpop.f32.mrb[26].mxu1  ;;  %v1619_v48 = vpop.f32.mrb[27].mxu0 }
 0x12f   : > { %v1620_v49 = vadd.f32 %v1619_v48, %v1618_v45  ;;  %v1683_v50 = vpop.f32.mrb[27].mxu1 }
 0x130   : > { %v1684_v51 = vadd.f32 %v1683_v50, %v1682_v47  ;;  %v2132_v52 = vadd.f32 %v1681_v46, %v1617_v41 }
 0x132   : > { %v2134_v53 = vadd.f32 %v1684_v51, %v1620_v49 }
 0x133   : > { %v1621_v54 = vpop.f32.mrb[28].mxu0 }
 0x134   : > { %v1685_v55 = vpop.f32.mrb[28].mxu1  ;;  %v1622_v58 = vpop.f32.mrb[29].mxu0 }
 0x135   : > { %v1623_v59 = vadd.f32 %v1622_v58, %v1621_v54  ;;  %v1686_v60 = vpop.f32.mrb[29].mxu1  ;;  %v1624_v61 = vpop.f32.mrb[30].mxu0 }
 0x136   : > { %v1687_v62 = vadd.f32 %v1686_v60, %v1685_v55  ;;  %v1688_v63 = vpop.f32.mrb[30].mxu1  ;;  %v1625_v0 = vpop.f32.mrb[31].mxu0 }
 0x137   : > { %v1626_v1 = vadd.f32 %v1625_v0, %v1624_v61  ;;  %v1689_v2 = vpop.f32.mrb[31].mxu1 }
 0x138   : > { %v1690_v3 = vadd.f32 %v1689_v2, %v1688_v63  ;;  %v1109_v4 = vadd.f32 %v1687_v62, %v1623_v59 }
 0x13a   : > { %v2136_v5 = vadd.f32 %v1690_v3, %v1626_v1 }
 0x13b   : > { %v1725_v8 = vpop.f32.mrb[32].mxu0 }
 0x13c   : > { %v1158_v10 = vadd.f32 %v1725_v8, %v2118_v42  ;;  %v1733_v11 = vpop.f32.mrb[32].mxu1  ;;  %v1149_v12 = vpop.f32.mrb[33].mxu0 }
 0x13d   : > { %v1190_v14 = vadd.f32 %v1733_v11, %v1093_v36  ;;  %v1150_v15 = vadd.f32 %v1149_v12, %v2114_v28  ;;  %v1181_v16 = vpop.f32.mrb[33].mxu1  ;;  %v1726_v17 = vpop.f32.mrb[34].mxu0 }
 0x13e   : > { %v1272_v18 = vmul.f32 %v2141_v9, %v1158_v10  ;;  %v1182_v19 = vadd.f32 %v1181_v16, %v1085_v20  ;;  %v1161_v22 = vadd.f32 %v1726_v17, %v2120_v43  ;;  %v1734_v23 = vpop.f32.mrb[34].mxu1  ;;  %v1152_v42 = vpop.f32.mrb[35].mxu0 }
 0x13f   : > { %v1280_v24 = vmul.f32 %v2141_v9, %v1190_v14  ;;  %v1270_v25 = vmul.f32 %v2141_v9, %v1150_v15  ;;  %v1193_v26 = vadd.f32 %v1734_v23, %v1096_v37  ;;  %v1153_v27 = vadd.f32 %v1152_v42, %v2116_v29  ;;  %v1184_v30 = vpop.f32.mrb[35].mxu1 }
 0x140   : > { %v1295_v28 = vadd.f32 %v2147_v13, %v1272_v18  ;;  %v1278_v31 = vmul.f32 %v2141_v9, %v1182_v19  ;;  %v1273_v32 = vmul.f32 %v2141_v9, %v1161_v22  ;;  %v1185_v20 = vadd.f32 %v1184_v30, %v2130_v21 }
 0x141   : > { %v1303_v43 = vadd.f32 %v2147_v13, %v1280_v24  ;;  %v1293_v33 = vadd.f32 %v2147_v13, %v1270_v25  ;;  %v1281_v29 = vmul.f32 %v2141_v9, %v1193_v26  ;;  %v1271_v34 = vmul.f32 %v2141_v9, %v1153_v27 }
 0x142   : > { %v1311_v35 = vmax.f32 %v1295_v28, 0.0  ;;  %v1301_v36 = vadd.f32 %v2147_v13, %v1278_v31  ;;  %v1296_v21 = vadd.f32 %v2147_v13, %v1273_v32  ;;  %v1279_v37 = vmul.f32 %v2141_v9, %v1185_v20 }
 0x143   : > { %v1319_v38 = vmax.f32 %v1303_v43, 0.0  ;;  %v1309_v39 = vmax.f32 %v1293_v33, 0.0  ;;  %v1304_v40 = vadd.f32 %v2147_v13, %v1281_v29  ;;  %v1294_v41 = vadd.f32 %v2147_v13, %v1271_v34  ;;  %v1729_v44 = vpop.f32.mrb[36].mxu0 }
 0x144   : > { %1327 = vst [vmem:[%s2163_s21 + $0x10] sm:$0xff] %v1311_v35  ;;  %v1317_v45 = vmax.f32 %v1301_v36, 0.0  ;;  %v1312_v46 = vmax.f32 %v1296_v21, 0.0  ;;  %v1302_v47 = vadd.f32 %v2147_v13, %v1279_v37  ;;  %v1174_v48 = vadd.f32 %v1729_v44, %v2126_v6  ;;  %v1737_v49 = vpop.f32.mrb[36].mxu1  ;;  %v1165_v50 = vpop.f32.mrb[37].mxu0 }
 0x145   : > { %1335 = vst [vmem:[%s2163_s21 + $0x50] sm:$0xff] %v1319_v38  ;;  %1325 = vst [vmem:[%s2163_s21] sm:$0xff] %v1309_v39  ;;  %v1320_v51 = vmax.f32 %v1304_v40, 0.0  ;;  %v1310_v54 = vmax.f32 %v1294_v41, 0.0  ;;  %v1206_v55 = vadd.f32 %v1737_v49, %v1109_v4  ;;  %v1166_v58 = vadd.f32 %v1165_v50, %v2122_v56  ;;  %v1197_v59 = vpop.f32.mrb[37].mxu1  ;;  %v1730_v60 = vpop.f32.mrb[38].mxu0 }
 0x146   : > { %1333 = vst [vmem:[%s2163_s21 + $0x40] sm:$0xff] %v1317_v45  ;;  %1328 = vst [vmem:[%s2163_s21 + $0x18] sm:$0xff] %v1312_v46  ;;  %v1318_v61 = vmax.f32 %v1302_v47, 0.0  ;;  %v1276_v62 = vmul.f32 %v2141_v9, %v1174_v48  ;;  %v1198_v6 = vadd.f32 %v1197_v59, %v2132_v52  ;;  %v1177_v63 = vadd.f32 %v1730_v60, %v2128_v7  ;;  %v1738_v0 = vpop.f32.mrb[38].mxu1  ;;  %v1168_v1 = vpop.f32.mrb[39].mxu0 }
 0x147   : > { %1336 = vst [vmem:[%s2163_s21 + $0x58] sm:$0xff] %v1320_v51  ;;  %1326 = vst [vmem:[%s2163_s21 + $0x8] sm:$0xff] %v1310_v54  ;;  %v1284_v2 = vmul.f32 %v2141_v9, %v1206_v55  ;;  %v1274_v56 = vmul.f32 %v2141_v9, %v1166_v58  ;;  %v1209_v3 = vadd.f32 %v1738_v0, %v2136_v5  ;;  %v1200_v8 = vpop.f32.mrb[39].mxu1 }
 0x148   : > { %v1169_v4 = vadd.f32 %v1168_v1, %v2124_v57  ;;  %1334 = vst [vmem:[%s2163_s21 + $0x48] sm:$0xff] %v1318_v61  ;;  %v1299_v10 = vadd.f32 %v2147_v13, %v1276_v62  ;;  %v1282_v52 = vmul.f32 %v2141_v9, %v1198_v6  ;;  %v1277_v7 = vmul.f32 %v2141_v9, %v1177_v63 }
 0x149   : > { %v1201_v11 = vadd.f32 %v1200_v8, %v2134_v53  ;;  %v1307_v12 = vadd.f32 %v2147_v13, %v1284_v2  ;;  %v1297_v14 = vadd.f32 %v2147_v13, %v1274_v56  ;;  %v1285_v5 = vmul.f32 %v2141_v9, %v1209_v3 }
 0x14a   : > { %v1275_v57 = vmul.f32 %v2141_v9, %v1169_v4  ;;  %v1315_v15 = vmax.f32 %v1299_v10, 0.0  ;;  %v1305_v16 = vadd.f32 %v2147_v13, %v1282_v52  ;;  %v1300_v17 = vadd.f32 %v2147_v13, %v1277_v7 }
 0x14b   : > { %v1283_v18 = vmul.f32 %v2141_v9, %v1201_v11  ;;  %v1323_v53 = vmax.f32 %v1307_v12, 0.0  ;;  %v1313_v19 = vmax.f32 %v1297_v14, 0.0  ;;  %v1308_v22 = vadd.f32 %v2147_v13, %v1285_v5 }
 0x14c   : > { %v1298_v23 = vadd.f32 %v2147_v13, %v1275_v57  ;;  %1331 = vst [vmem:[%s2163_s21 + $0x30] sm:$0xff] %v1315_v15  ;;  %v1321_v42 = vmax.f32 %v1305_v16, 0.0  ;;  %v1316_v24 = vmax.f32 %v1300_v17, 0.0 }
 0x14d   : > { %v1306_v25 = vadd.f32 %v2147_v13, %v1283_v18  ;;  %1339 = vst [vmem:[%s2163_s21 + $0x70] sm:$0xff] %v1323_v53  ;;  %1329 = vst [vmem:[%s2163_s21 + $0x20] sm:$0xff] %v1313_v19  ;;  %v1324_v26 = vmax.f32 %v1308_v22, 0.0 }
 0x14e   : > { %v1314_v27 = vmax.f32 %v1298_v23, 0.0  ;;  %1337 = vst [vmem:[%s2163_s21 + $0x60] sm:$0xff] %v1321_v42  ;;  %1332 = vst [vmem:[%s2163_s21 + $0x38] sm:$0xff] %v1316_v24 }
 0x14f   : > { %v1322_v9 = vmax.f32 %v1306_v25, 0.0  ;;  %1340 = vst [vmem:[%s2163_s21 + $0x78] sm:$0xff] %v1324_v26 }
 0x150   : > { %1330 = vst [vmem:[%s2163_s21 + $0x28] sm:$0xff] %v1314_v27 }
 0x151   : > { %1338 = vst [vmem:[%s2163_s21 + $0x68] sm:$0xff] %v1322_v9 }
 0x152 PF: > { %s14_s17 = sadd.s32 1, %s1898_s17   ;;  %s2228_s15 = smov %s1894_s16 }
 0x153   : > { %p11_p5 = scmp.ge.s32.totalorder %s14_s17, 6   ;;  %s2229_s16 = smov %s2231_s18 }
 0x155   :  { %13 = sbr.rel (!%p11_p5) target bundleno = 2 (0x2), region = 83 }

// kernel: _lambda_.24
= control target key start
LH: loop header
LB: loop body
LE: loop exit
PB: predicated region body
PF: predicated region fallthrough
CT: control target
= control target key end

     0   :  { %s2039_s18 = smov 0   ;;  %s2041_s19 = smov 0   ;;  %s2365_s0 = inlined_call_operand.vmem [shape: bf16[512,640], index: 0, kind: input, shape index: {}]   ;;  %s2366_s1 = inlined_call_operand.vmem [shape: bf16[640,128], index: 1, kind: input, shape index: {}]   ;;  %s2367_s2 = inlined_call_operand.vmem [shape: f32[1,128], index: 2, kind: input, shape index: {}]   ;;  %s2368_s3 = inlined_call_operand.vmem [shape: f32[1,128], index: 3, kind: input, shape index: {}]   ;;  %s2369_s4 = inlined_call_operand.vmem [shape: f32[512,128], index: 4, kind: input, shape index: {}]   ;;  %s2370_s5 = inlined_call_operand.vmem [shape: f32[512,128], index: 5, kind: output, shape index: {}]  }
   0x1   :  { %s2043_s20 = smov 0  }
   0x2 LB: > { %s34_s21 = sadd.s32 1, %s2003_s19  ;;  %p1581_p0 = scmp.ge.s32.totalorder %s2007_s20, 1  ;;  %s2007_s20 = sphi %s2043_s20, %s15_s20   ;;  %s2003_s19 = sphi %s2041_s19, %s2372_s19   ;;  %s1999_s18 = sphi %s2039_s18, %s2371_s18  }
   0x3   : > { %p36_p1 = scmp.ge.s32.totalorder %s34_s21, 4  ;;  %p265_p2 = scmp.lt.s32.totalorder %s2007_s20, 5 }
   0x5   : > { %s2374_s21 = smov (%p36_p1, %s34_s21), 0  ;;  %p266_p3 = pnand %p1581_p0, %p265_p2 }
   0x6   : > { %v1889_v0 = vld [vmem:[%s2366_s1 + $0x40] sm:$0xff] (!%p266_p3)   ;;  %v1893_v4 = vld [vmem:[%s2366_s1 + $0x48] sm:$0xff] (!%p266_p3)   ;;  %v1897_v8 = vld [vmem:[%s2366_s1 + $0x50] sm:$0xff] (!%p266_p3)   ;;  %s1582_s6 = sshll.u32 (!%p266_p3), %s1999_s18, 4 }
   0x7   : > { %269 = sbr.rel (%p266_p3) target bundleno = 342 (0x156), region = 40  ;;  %v1890_v1 = vld [vmem:[%s2366_s1 + $0xc0] sm:$0xff] (!%p266_p3)   ;;  %1672 = vmatprep.subr.bf16.mxu0 (!%p266_p3), %v1889_v0  ;;  %v1894_v5 = vld [vmem:[%s2366_s1 + $0xc8] sm:$0xff] (!%p266_p3)   ;;  %v1898_v9 = vld [vmem:[%s2366_s1 + $0xd0] sm:$0xff] (!%p266_p3)   ;;  %p325_p4 = scmp.lt.s32.totalorder (!%p266_p3), %s1582_s6, 63 }
   0x8   : > { %v1891_v2 = vld [vmem:[%s2366_s1] sm:$0xff] (!%p266_p3)   ;;  %1736 = vmatprep.subr.bf16.mxu1 (!%p266_p3), %v1890_v1  ;;  %v1895_v6 = vld [vmem:[%s2366_s1 + $0x8] sm:$0xff] (!%p266_p3)   ;;  %v1899_v10 = vld [vmem:[%s2366_s1 + $0x10] sm:$0xff] (!%p266_p3)  }
   0x9   : > { %v1892_v3 = vld [vmem:[%s2366_s1 + $0x80] sm:$0xff] (!%p266_p3)   ;;  %1673 = vmatpush3.bf16.msra.mxu0 (!%p266_p3), %v1891_v2  ;;  %v1896_v7 = vld [vmem:[%s2366_s1 + $0x88] sm:$0xff] (!%p266_p3)   ;;  %v1900_v11 = vld [vmem:[%s2366_s1 + $0x90] sm:$0xff] (!%p266_p3)  }
   0xa   : > { %1737 = vmatpush3.bf16.msra.mxu1 (!%p266_p3), %v1892_v3  ;;  %1674 = vmatprep.subr.bf16.mxu0 (!%p266_p3), %v1893_v4  ;;  %v1901_v12 = vld [vmem:[%s2366_s1 + $0x58] sm:$0xff] (!%p266_p3)   ;;  %v1905_v16 = vld [vmem:[%s2366_s1 + $0x60] sm:$0xff] (!%p266_p3)   ;;  %v1909_v20 = vld [vmem:[%s2366_s1 + $0x68] sm:$0xff] (!%p266_p3)  }
   0xb   : > { %1738 = vmatprep.subr.bf16.mxu1 (!%p266_p3), %v1894_v5  ;;  %v1902_v13 = vld [vmem:[%s2366_s1 + $0xd8] sm:$0xff] (!%p266_p3)   ;;  %v1906_v17 = vld [vmem:[%s2366_s1 + $0xe0] sm:$0xff] (!%p266_p3)   ;;  %v1910_v21 = vld [vmem:[%s2366_s1 + $0xe8] sm:$0xff] (!%p266_p3)  }
   0xc   : > { %v1903_v14 = vld [vmem:[%s2366_s1 + $0x18] sm:$0xff] (!%p266_p3)   ;;  %v1907_v18 = vld [vmem:[%s2366_s1 + $0x20] sm:$0xff] (!%p266_p3)   ;;  %v1911_v22 = vld [vmem:[%s2366_s1 + $0x28] sm:$0xff] (!%p266_p3)  }
   0xd   : > { %1675 = vmatpush3.bf16.msra.mxu0 (!%p266_p3), %v1895_v6  ;;  %v1904_v15 = vld [vmem:[%s2366_s1 + $0x98] sm:$0xff] (!%p266_p3)   ;;  %v1908_v19 = vld [vmem:[%s2366_s1 + $0xa0] sm:$0xff] (!%p266_p3)   ;;  %v1912_v23 = vld [vmem:[%s2366_s1 + $0xa8] sm:$0xff] (!%p266_p3)  }
   0xe   : > { %1739 = vmatpush3.bf16.msra.mxu1 %v1896_v7  ;;  %1676 = vmatprep.subr.bf16.mxu0 %v1897_v8  ;;  %s2376_s6 = smov (!%p325_p4, %s1582_s6), 63  ;;  %v1913_v24 = vld [vmem:[%s2366_s1 + $0x70] sm:$0xff]   ;;  %v1917_v28 = vld [vmem:[%s2366_s1 + $0x78] sm:$0xff]   ;;  %v1927_v36 = vld [vmem:[%s2366_s1 + $0x100] sm:$0xff]  }
   0xf   : > { %1740 = vmatprep.subr.bf16.mxu1 %v1898_v9  ;;  %v1914_v25 = vld [vmem:[%s2366_s1 + $0xf0] sm:$0xff]   ;;  %s1864_s8 = smul.u32 20, %s2376_s6  ;;  %v1918_v29 = vld [vmem:[%s2366_s1 + $0xf8] sm:$0xff]   ;;  %v1934_v39 = vld [vmem:[%s2366_s1 + $0x108] sm:$0xff]  }
  0x10   : > { %v1915_v26 = vld [vmem:[%s2366_s1 + $0x30] sm:$0xff]   ;;  %v1919_v30 = vld [vmem:[%s2366_s1 + $0x38] sm:$0xff]   ;;  %v1955_v50 = vld [vmem:[%s2366_s1 + $0x120] sm:$0xff]  }
  0x11   : > { %1677 = vmatpush3.bf16.msra.mxu0 %v1899_v10  ;;  %v1916_v27 = vld [vmem:[%s2366_s1 + $0xb0] sm:$0xff]   ;;  %s2156_s22 = scalar_lea.vmem %s2365_s0, %s1864_s8  ;;  %v1920_v31 = vld [vmem:[%s2366_s1 + $0xb8] sm:$0xff]   ;;  %v1962_v51 = vld [vmem:[%s2366_s1 + $0x128] sm:$0xff]  }
  0x12   : > { %1741 = vmatpush3.bf16.msra.mxu1 %v1900_v11  ;;  %1678 = vmatprep.subr.bf16.mxu0 %v1901_v12  ;;  %v1921_v32 = vld [vmem:[%s2156_s22] ss:$20 sps:$4 sm:$0xff]   ;;  %v1923_v33 = vld [vmem:[%s2156_s22 + $0x4] ss:$20 sps:$4 sm:$0xff]   ;;  %v1924_v34 = vld [vmem:[%s2156_s22 + $0x8] ss:$20 sps:$4 sm:$0xff]  }
  0x13   : > { %1742 = vmatprep.subr.bf16.mxu1 %v1902_v13  ;;  %v1926_v35 = vld [vmem:[%s2156_s22 + $0xc] ss:$20 sps:$4 sm:$0xff]   ;;  %1013 = vmatprep.mubr.bf16.mxu0 %v1923_v33  ;;  %v1930_v38 = vld [vmem:[%s2156_s22 + $0x34] ss:$20 sps:$4 sm:$0xff]   ;;  %v1933_v41 = vld [vmem:[%s2156_s22 + $0x30] ss:$20 sps:$4 sm:$0xff]  }
  0x14   : > { %1110 = vmatprep.mubr.bf16.mxu1 %v1926_v35  ;;  %v1928_v37 = vld [vmem:[%s2156_s22 + $0x2c] ss:$20 sps:$4 sm:$0xff]   ;;  %v1932_v40 = vld [vmem:[%s2156_s22 + $0x28] ss:$20 sps:$4 sm:$0xff]   ;;  %v1941_v44 = vld [vmem:[%s2366_s1 + $0x110] sm:$0xff]  }
  0x15   : > { %1679 = vmatpush3.bf16.msra.mxu0 %v1903_v14  ;;  %v1935_v42 = vld [vmem:[%s2156_s22 + $0x54] ss:$20 sps:$4 sm:$0xff]   ;;  %v1937_v43 = vld [vmem:[%s2156_s22 + $0x5c] ss:$20 sps:$4 sm:$0xff]   ;;  %v1940_v47 = vld [vmem:[%s2156_s22 + $0x58] ss:$20 sps:$4 sm:$0xff]  }
  0x16   : > { %1743 = vmatpush3.bf16.msra.mxu1 %v1904_v15  ;;  %1680 = vmatprep.subr.bf16.mxu0 %v1905_v16  ;;  %v1948_v45 = vld [vmem:[%s2366_s1 + $0x118] sm:$0xff]   ;;  %v1939_v46 = vld [vmem:[%s2156_s22 + $0x50] ss:$20 sps:$4 sm:$0xff]   ;;  %v1947_v53 = vld [vmem:[%s2156_s22 + $0x80] ss:$20 sps:$4 sm:$0xff]  }
  0x17   : > { %1744 = vmatprep.subr.bf16.mxu1 %v1906_v17  ;;  %v1942_v48 = vld [vmem:[%s2156_s22 + $0x7c] ss:$20 sps:$4 sm:$0xff]   ;;  %v1944_v49 = vld [vmem:[%s2156_s22 + $0x84] ss:$20 sps:$4 sm:$0xff]   ;;  %v1951_v56 = vld [vmem:[%s2156_s22 + $0xac] ss:$20 sps:$4 sm:$0xff]  }
  0x18   : > { %v1946_v52 = vld [vmem:[%s2156_s22 + $0x78] ss:$20 sps:$4 sm:$0xff]   ;;  %v1969_v55 = vld [vmem:[%s2366_s1 + $0x130] sm:$0xff]   ;;  %v1954_v59 = vld [vmem:[%s2156_s22 + $0xa8] ss:$20 sps:$4 sm:$0xff]  }
  0x19   : > { %1681 = vmatpush3.bf16.msra.mxu0 %v1907_v18  ;;  %v1949_v54 = vld [vmem:[%s2156_s22 + $0xa4] ss:$20 sps:$4 sm:$0xff]   ;;  %v1953_v58 = vld [vmem:[%s2156_s22 + $0xa0] ss:$20 sps:$4 sm:$0xff]   ;;  %v1960_v62 = vld [vmem:[%s2156_s22 + $0xc8] ss:$20 sps:$4 sm:$0xff]  }
  0x1a   : > { %1745 = vmatpush3.bf16.msra.mxu1 %v1908_v19  ;;  %1682 = vmatprep.subr.bf16.mxu0 %v1909_v20  ;;  %v1976_v57 = vld [vmem:[%s2366_s1 + $0x138] sm:$0xff]   ;;  %v1956_v60 = vld [vmem:[%s2156_s22 + $0xcc] ss:$20 sps:$4 sm:$0xff]   ;;  %v1958_v61 = vld [vmem:[%s2156_s22 + $0xd4] ss:$20 sps:$4 sm:$0xff]  }
  0x1b   : > { %1746 = vmatprep.subr.bf16.mxu1 %v1910_v21  ;;  %v1961_v63 = vld [vmem:[%s2156_s22 + $0xd0] ss:$20 sps:$4 sm:$0xff]   ;;  %v1963_v0 = vld [vmem:[%s2156_s22 + $0xf4] ss:$20 sps:$4 sm:$0xff]   ;;  %v1968_v3 = vld [vmem:[%s2156_s22 + $0xf8] ss:$20 sps:$4 sm:$0xff]  }
  0x1c   : > { %v1965_v1 = vld [vmem:[%s2156_s22 + $0xfc] ss:$20 sps:$4 sm:$0xff]   ;;  %v1972_v5 = vld [vmem:[%s2156_s22 + $0x124] ss:$20 sps:$4 sm:$0xff]   ;;  %v1975_v7 = vld [vmem:[%s2156_s22 + $0x120] ss:$20 sps:$4 sm:$0xff]  }
  0x1d   : > { %1683 = vmatpush3.bf16.msra.mxu0 %v1911_v22  ;;  %v1967_v2 = vld [vmem:[%s2156_s22 + $0xf0] ss:$20 sps:$4 sm:$0xff]   ;;  %v1974_v6 = vld [vmem:[%s2156_s22 + $0x118] ss:$20 sps:$4 sm:$0xff]   ;;  %v1981_v12 = vld [vmem:[%s2156_s22 + $0x60] ss:$20 sps:$4 sm:$0xff]  }
  0x1e   : > { %1747 = vmatpush3.bf16.msra.mxu1 %v1912_v23  ;;  %1684 = vmatprep.subr.bf16.mxu0 %v1913_v24  ;;  %v1970_v4 = vld [vmem:[%s2156_s22 + $0x11c] ss:$20 sps:$4 sm:$0xff]   ;;  %v1979_v10 = vld [vmem:[%s2156_s22 + $0x38] ss:$20 sps:$4 sm:$0xff]   ;;  %v1982_v13 = vld [vmem:[%s2156_s22 + $0x100] ss:$20 sps:$4 sm:$0xff]  }
  0x1f   : > { %1748 = vmatprep.subr.bf16.mxu1 %v1914_v25  ;;  %v1977_v8 = vld [vmem:[%s2156_s22 + $0x10] ss:$20 sps:$4 sm:$0xff]   ;;  %v1980_v11 = vld [vmem:[%s2156_s22 + $0xd8] ss:$20 sps:$4 sm:$0xff]   ;;  %v1983_v14 = vld [vmem:[%s2156_s22 + $0x88] ss:$20 sps:$4 sm:$0xff]  }
  0x20   : > { %v1978_v9 = vld [vmem:[%s2156_s22 + $0xb0] ss:$20 sps:$4 sm:$0xff]   ;;  %v1984_v15 = vld [vmem:[%s2156_s22 + $0x128] ss:$20 sps:$4 sm:$0xff]   ;;  %s1585_s22 = sshll.u32 %s2376_s6, 3 }
  0x21   : > { %1685 = vmatpush3.bf16.msra.mxu0 %v1915_v26  ;;  %s2265_s27 = scalar_lea.vmem %s2369_s4, %s1585_s22  ;;  %s2302_s8 = scalar_lea.vmem %s2370_s5, %s1585_s22 }
  0x22   : > { %1749 = vmatpush3.bf16.msra.mxu1 %v1916_v27  ;;  %1686 = vmatprep.subr.bf16.mxu0 %v1917_v28 }
  0x23   : > { %1750 = vmatprep.subr.bf16.mxu1 %v1918_v29 }
  0x25   : > { %1687 = vmatpush3.bf16.msra.mxu0 %v1919_v30 }
  0x26   : > { %1751 = vmatpush3.bf16.msra.mxu1 %v1920_v31  ;;  %1816 = vmatprep.subr.bf16.mxu0 %v1927_v36 }
  0x27   : > { %1848 = vmatprep.subr.bf16.mxu1 %v1927_v36 }
  0x28   : > { %1014 = vmatmul.mubr.bf16.vlgmr.msra.gmra.mrb[0].mxu0 %v1921_v32 }
  0x29   : > { %1111 = vmatmul.mubr.bf16.vlgmr.msra.gmra.mrb[0].mxu1 %v1924_v34  ;;  %1817 = vmatpush3.bf16.msra.mxu0 %v1927_v36 }
  0x2a   : > { %1856 = vmatpush3.bf16.msra.mxu1 %v1927_v36  ;;  %1021 = vmatprep.mubr.bf16.mxu0 %v1928_v37 }
  0x2b   : > { %1118 = vmatprep.mubr.bf16.mxu1 %v1930_v38  ;;  %1818 = vmatprep.subr.bf16.mxu0 %v1934_v39 }
  0x2c   : > { %1849 = vmatprep.subr.bf16.mxu1 %v1934_v39 }
  0x2d   : > { %1819 = vmatpush3.bf16.msra.mxu0 %v1934_v39 }
  0x2e   : > { %1857 = vmatpush3.bf16.msra.mxu1 %v1934_v39  ;;  %1820 = vmatprep.subr.bf16.mxu0 %v1941_v44 }
  0x2f   : > { %1850 = vmatprep.subr.bf16.mxu1 %v1941_v44 }
  0x30   : > { %1022 = vmatmul.mubr.bf16.gmra.mrb[4].mxu0 %v1932_v40 }
  0x31   : > { %1119 = vmatmul.mubr.bf16.gmra.mrb[4].mxu1 %v1933_v41  ;;  %1029 = vmatprep.mubr.bf16.mxu0 %v1935_v42 }
  0x32   : > { %1126 = vmatprep.mubr.bf16.mxu1 %v1937_v43  ;;  %1821 = vmatpush3.bf16.msra.mxu0 %v1941_v44 }
  0x33   : > { %1858 = vmatpush3.bf16.msra.mxu1 %v1941_v44  ;;  %1822 = vmatprep.subr.bf16.mxu0 %v1948_v45 }
  0x34   : > { %1851 = vmatprep.subr.bf16.mxu1 %v1948_v45 }
  0x36   : > { %1823 = vmatpush3.bf16.msra.mxu0 %v1948_v45 }
  0x37   : > { %1859 = vmatpush3.bf16.msra.mxu1 %v1948_v45  ;;  %1824 = vmatprep.subr.bf16.mxu0 %v1955_v50 }
  0x38   : > { %1030 = vmatmul.mubr.bf16.gmra.mrb[8].mxu0 %v1939_v46  ;;  %1852 = vmatprep.subr.bf16.mxu1 %v1955_v50 }
  0x39   : > { %1127 = vmatmul.mubr.bf16.gmra.mrb[8].mxu1 %v1940_v47  ;;  %1037 = vmatprep.mubr.bf16.mxu0 %v1942_v48 }
  0x3a   : > { %1134 = vmatprep.mubr.bf16.mxu1 %v1944_v49  ;;  %1825 = vmatpush3.bf16.msra.mxu0 %v1955_v50 }
  0x3b   : > { %1860 = vmatpush3.bf16.msra.mxu1 %v1955_v50  ;;  %1826 = vmatprep.subr.bf16.mxu0 %v1962_v51 }
  0x3c   : > { %1853 = vmatprep.subr.bf16.mxu1 %v1962_v51 }
  0x3e   : > { %1827 = vmatpush3.bf16.msra.mxu0 %v1962_v51 }
  0x3f   : > { %1861 = vmatpush3.bf16.msra.mxu1 %v1962_v51  ;;  %1828 = vmatprep.subr.bf16.mxu0 %v1969_v55 }
  0x40   : > { %1038 = vmatmul.mubr.bf16.gmra.mrb[12].mxu0 %v1946_v52  ;;  %1854 = vmatprep.subr.bf16.mxu1 %v1969_v55 }
  0x41   : > { %1135 = vmatmul.mubr.bf16.gmra.mrb[12].mxu1 %v1947_v53  ;;  %1045 = vmatprep.mubr.bf16.mxu0 %v1949_v54 }
  0x42   : > { %1142 = vmatprep.mubr.bf16.mxu1 %v1951_v56  ;;  %1829 = vmatpush3.bf16.msra.mxu0 %v1969_v55 }
  0x43   : > { %1862 = vmatpush3.bf16.msra.mxu1 %v1969_v55  ;;  %1830 = vmatprep.subr.bf16.mxu0 %v1976_v57 }
  0x44   : > { %1855 = vmatprep.subr.bf16.mxu1 %v1976_v57 }
  0x46   : > { %1831 = vmatpush3.bf16.msra.mxu0 %v1976_v57 }
  0x47   : > { %1863 = vmatpush3.bf16.msra.mxu1 %v1976_v57 }
  0x48   : > { %1046 = vmatmul.mubr.bf16.gmra.mrb[16].mxu0 %v1953_v58 }
  0x49   : > { %1143 = vmatmul.mubr.bf16.gmra.mrb[16].mxu1 %v1954_v59  ;;  %1053 = vmatprep.mubr.bf16.mxu0 %v1956_v60 }
  0x4a   : > { %1150 = vmatprep.mubr.bf16.mxu1 %v1958_v61 }
  0x50   : > { %1054 = vmatmul.mubr.bf16.gmra.mrb[20].mxu0 %v1960_v62 }
  0x51   : > { %1151 = vmatmul.mubr.bf16.gmra.mrb[20].mxu1 %v1961_v63  ;;  %1061 = vmatprep.mubr.bf16.mxu0 %v1963_v0 }
  0x52   : > { %1158 = vmatprep.mubr.bf16.mxu1 %v1965_v1 }
  0x58   : > { %1062 = vmatmul.mubr.bf16.gmra.mrb[24].mxu0 %v1967_v2 }
  0x59   : > { %1159 = vmatmul.mubr.bf16.gmra.mrb[24].mxu1 %v1968_v3  ;;  %1069 = vmatprep.mubr.bf16.mxu0 %v1970_v4 }
  0x5a   : > { %1166 = vmatprep.mubr.bf16.mxu1 %v1972_v5 }
  0x60   : > { %1070 = vmatmul.mubr.bf16.gmra.mrb[28].mxu0 %v1974_v6 }
  0x61   : > { %1167 = vmatmul.mubr.bf16.gmra.mrb[28].mxu1 %v1975_v7  ;;  %1832 = vmatprep.mubr.bf16.mxu0 %v1977_v8 }
  0x62   : > { %1840 = vmatprep.mubr.bf16.mxu1 %v1978_v9 }
  0x68   : > { %1833 = vmatmul.mubr.bf16.vlgmr.msra.gmra.mrb[32].mxu0 %v1979_v10 }
  0x69   : > { %1841 = vmatmul.mubr.bf16.vlgmr.msra.gmra.mrb[32].mxu1 %v1980_v11  ;;  %1836 = vmatprep.mubr.bf16.mxu0 %v1981_v12 }
  0x6a   : > { %1844 = vmatprep.mubr.bf16.mxu1 %v1982_v13 }
  0x70   : > { %1837 = vmatmul.mubr.bf16.gmra.mrb[36].mxu0 %v1983_v14 }
  0x71   : > { %1845 = vmatmul.mubr.bf16.gmra.mrb[36].mxu1 %v1984_v15 }
  0xfb   : > { %v1688_v16 = vpop.f32.mrb[0].mxu0 }
  0xfc   : > { %v1752_v17 = vpop.f32.mrb[0].mxu1  ;;  %v1689_v18 = vpop.f32.mrb[1].mxu0 }
  0xfd   : > { %v1690_v19 = vadd.f32 %v1689_v18, %v1688_v16  ;;  %v1753_v20 = vpop.f32.mrb[1].mxu1  ;;  %v1691_v21 = vpop.f32.mrb[2].mxu0 }
  0xfe   : > { %v1754_v22 = vadd.f32 %v1753_v20, %v1752_v17  ;;  %v1755_v23 = vpop.f32.mrb[2].mxu1  ;;  %v1692_v24 = vpop.f32.mrb[3].mxu0 }
  0xff   : > { %v1693_v25 = vadd.f32 %v1692_v24, %v1691_v21  ;;  %v1756_v26 = vpop.f32.mrb[3].mxu1 }
 0x100   : > { %v1757_v27 = vadd.f32 %v1756_v26, %v1755_v23  ;;  %v2228_v28 = vadd.f32 %v1754_v22, %v1690_v19 }
 0x102   : > { %v2230_v29 = vadd.f32 %v1757_v27, %v1693_v25 }
 0x103   : > { %v1694_v30 = vpop.f32.mrb[4].mxu0 }
 0x104   : > { %v1758_v31 = vpop.f32.mrb[4].mxu1  ;;  %v1695_v32 = vpop.f32.mrb[5].mxu0 }
 0x105   : > { %v1696_v33 = vadd.f32 %v1695_v32, %v1694_v30  ;;  %v1759_v34 = vpop.f32.mrb[5].mxu1  ;;  %v1697_v35 = vpop.f32.mrb[6].mxu0 }
 0x106   : > { %v1760_v36 = vadd.f32 %v1759_v34, %v1758_v31  ;;  %v1761_v37 = vpop.f32.mrb[6].mxu1  ;;  %v1698_v38 = vpop.f32.mrb[7].mxu0 }
 0x107   : > { %v1699_v39 = vadd.f32 %v1698_v38, %v1697_v35  ;;  %v1762_v40 = vpop.f32.mrb[7].mxu1 }
 0x108   : > { %v1763_v41 = vadd.f32 %v1762_v40, %v1761_v37  ;;  %v2232_v42 = vadd.f32 %v1760_v36, %v1696_v33 }
 0x10a   : > { %v2234_v43 = vadd.f32 %v1763_v41, %v1699_v39 }
 0x10b   : > { %v1700_v44 = vpop.f32.mrb[8].mxu0 }
 0x10c   : > { %v1764_v45 = vpop.f32.mrb[8].mxu1  ;;  %v1701_v46 = vpop.f32.mrb[9].mxu0 }
 0x10d   : > { %v1702_v47 = vadd.f32 %v1701_v46, %v1700_v44  ;;  %v1765_v48 = vpop.f32.mrb[9].mxu1  ;;  %v1703_v49 = vpop.f32.mrb[10].mxu0 }
 0x10e   : > { %v1766_v50 = vadd.f32 %v1765_v48, %v1764_v45  ;;  %v1767_v51 = vpop.f32.mrb[10].mxu1  ;;  %v1704_v52 = vpop.f32.mrb[11].mxu0 }
 0x10f   : > { %v1705_v53 = vadd.f32 %v1704_v52, %v1703_v49  ;;  %v1768_v54 = vpop.f32.mrb[11].mxu1 }
 0x110   : > { %v1769_v55 = vadd.f32 %v1768_v54, %v1767_v51  ;;  %v2236_v56 = vadd.f32 %v1766_v50, %v1702_v47 }
 0x112   : > { %v2238_v57 = vadd.f32 %v1769_v55, %v1705_v53 }
 0x113   : > { %v1706_v58 = vpop.f32.mrb[12].mxu0 }
 0x114   : > { %v1770_v59 = vpop.f32.mrb[12].mxu1  ;;  %v1707_v60 = vpop.f32.mrb[13].mxu0 }
 0x115   : > { %v1708_v61 = vadd.f32 %v1707_v60, %v1706_v58  ;;  %v1771_v62 = vpop.f32.mrb[13].mxu1  ;;  %v1709_v63 = vpop.f32.mrb[14].mxu0 }
 0x116   : > { %v1772_v0 = vadd.f32 %v1771_v62, %v1770_v59  ;;  %v1773_v1 = vpop.f32.mrb[14].mxu1  ;;  %v1710_v2 = vpop.f32.mrb[15].mxu0 }
 0x117   : > { %v1711_v3 = vadd.f32 %v1710_v2, %v1709_v63  ;;  %v1774_v4 = vpop.f32.mrb[15].mxu1 }
 0x118   : > { %v1775_v5 = vadd.f32 %v1774_v4, %v1773_v1  ;;  %v2240_v6 = vadd.f32 %v1772_v0, %v1708_v61 }
 0x11a   : > { %v2242_v7 = vadd.f32 %v1775_v5, %v1711_v3 }
 0x11b   : > { %v1712_v8 = vpop.f32.mrb[16].mxu0 }
 0x11c   : > { %v1776_v9 = vpop.f32.mrb[16].mxu1  ;;  %v1713_v10 = vpop.f32.mrb[17].mxu0 }
 0x11d   : > { %v1714_v11 = vadd.f32 %v1713_v10, %v1712_v8  ;;  %v1777_v12 = vpop.f32.mrb[17].mxu1  ;;  %v1715_v13 = vpop.f32.mrb[18].mxu0 }
 0x11e   : > { %v1778_v14 = vadd.f32 %v1777_v12, %v1776_v9  ;;  %v1779_v15 = vpop.f32.mrb[18].mxu1  ;;  %v1716_v16 = vpop.f32.mrb[19].mxu0  ;;  %v2258_v9 = vld [vmem:[%s2367_s2] ss:$0 sm:$0xff] }
 0x11f   : > { %v1717_v17 = vadd.f32 %v1716_v16, %v1715_v13  ;;  %v1780_v18 = vpop.f32.mrb[19].mxu1  ;;  %v2271_v13 = vld [vmem:[%s2368_s3] ss:$0 sm:$0xff] }
 0x120   : > { %v1781_v19 = vadd.f32 %v1780_v18, %v1779_v15  ;;  %v1145_v20 = vadd.f32 %v1778_v14, %v1714_v11 }
 0x122   : > { %v2244_v21 = vadd.f32 %v1781_v19, %v1717_v17 }
 0x123   : > { %v1718_v22 = vpop.f32.mrb[20].mxu0 }
 0x124   : > { %v1782_v23 = vpop.f32.mrb[20].mxu1  ;;  %v1719_v24 = vpop.f32.mrb[21].mxu0 }
 0x125   : > { %v1720_v25 = vadd.f32 %v1719_v24, %v1718_v22  ;;  %v1783_v26 = vpop.f32.mrb[21].mxu1  ;;  %v1721_v27 = vpop.f32.mrb[22].mxu0  ;;  %v1371_v24 = vld [vmem:[%s2265_s27 + $0x10] sm:$0xff] }
 0x126   : > { %v1784_v30 = vadd.f32 %v1783_v26, %v1782_v23  ;;  %v1785_v31 = vpop.f32.mrb[22].mxu1  ;;  %v1722_v32 = vpop.f32.mrb[23].mxu0 }
 0x127   : > { %v1723_v33 = vadd.f32 %v1722_v32, %v1721_v27  ;;  %v1786_v34 = vpop.f32.mrb[23].mxu1  ;;  %v1369_v32 = vld [vmem:[%s2265_s27] sm:$0xff] }
 0x128   : > { %v1787_v35 = vadd.f32 %v1786_v34, %v1785_v31  ;;  %v1153_v36 = vadd.f32 %v1784_v30, %v1720_v25 }
 0x12a   : > { %v1156_v37 = vadd.f32 %v1787_v35, %v1723_v33 }
 0x12b   : > { %v1724_v38 = vpop.f32.mrb[24].mxu0 }
 0x12c   : > { %v1788_v39 = vpop.f32.mrb[24].mxu1  ;;  %v1725_v40 = vpop.f32.mrb[25].mxu0 }
 0x12d   : > { %v1726_v41 = vadd.f32 %v1725_v40, %v1724_v38  ;;  %v1789_v44 = vpop.f32.mrb[25].mxu1  ;;  %v1727_v45 = vpop.f32.mrb[26].mxu0 }
 0x12e   : > { %v1790_v46 = vadd.f32 %v1789_v44, %v1788_v39  ;;  %v1791_v47 = vpop.f32.mrb[26].mxu1  ;;  %v1728_v48 = vpop.f32.mrb[27].mxu0 }
 0x12f   : > { %v1729_v49 = vadd.f32 %v1728_v48, %v1727_v45  ;;  %v1792_v50 = vpop.f32.mrb[27].mxu1  ;;  %v1380_v45 = vld [vmem:[%s2265_s27 + $0x58] sm:$0xff] }
 0x130   : > { %v1793_v51 = vadd.f32 %v1792_v50, %v1791_v47  ;;  %v2246_v52 = vadd.f32 %v1790_v46, %v1726_v41  ;;  %v1370_v46 = vld [vmem:[%s2265_s27 + $0x8] sm:$0xff] }
 0x132   : > { %v2248_v53 = vadd.f32 %v1793_v51, %v1729_v49  ;;  %v1378_v51 = vld [vmem:[%s2265_s27 + $0x48] sm:$0xff] }
 0x133   : > { %v1730_v54 = vpop.f32.mrb[28].mxu0 }
 0x134   : > { %v1794_v55 = vpop.f32.mrb[28].mxu1  ;;  %v1731_v58 = vpop.f32.mrb[29].mxu0 }
 0x135   : > { %v1732_v59 = vadd.f32 %v1731_v58, %v1730_v54  ;;  %v1795_v60 = vpop.f32.mrb[29].mxu1  ;;  %v1733_v61 = vpop.f32.mrb[30].mxu0 }
 0x136   : > { %v1796_v62 = vadd.f32 %v1795_v60, %v1794_v55  ;;  %v1797_v63 = vpop.f32.mrb[30].mxu1  ;;  %v1734_v0 = vpop.f32.mrb[31].mxu0 }
 0x137   : > { %v1735_v1 = vadd.f32 %v1734_v0, %v1733_v61  ;;  %v1798_v2 = vpop.f32.mrb[31].mxu1 }
 0x138   : > { %v1799_v3 = vadd.f32 %v1798_v2, %v1797_v63  ;;  %v2250_v4 = vadd.f32 %v1796_v62, %v1732_v59 }
 0x13a   : > { %v2253_v5 = vadd.f32 %v1799_v3, %v1735_v1 }
 0x13b   : > { %v1834_v8 = vpop.f32.mrb[32].mxu0 }
 0x13c   : > { %v1218_v10 = vadd.f32 %v1834_v8, %v2232_v42  ;;  %v1842_v11 = vpop.f32.mrb[32].mxu1  ;;  %v1209_v12 = vpop.f32.mrb[33].mxu0 }
 0x13d   : > { %v1250_v14 = vadd.f32 %v1842_v11, %v1153_v36  ;;  %v1210_v15 = vadd.f32 %v1209_v12, %v2228_v28  ;;  %v1241_v16 = vpop.f32.mrb[33].mxu1  ;;  %v1835_v17 = vpop.f32.mrb[34].mxu0 }
 0x13e   : > { %v1332_v18 = vmul.f32 %v2258_v9, %v1218_v10  ;;  %v1242_v19 = vadd.f32 %v1241_v16, %v1145_v20  ;;  %v1221_v22 = vadd.f32 %v1835_v17, %v2234_v43  ;;  %v1843_v42 = vpop.f32.mrb[34].mxu1  ;;  %v1212_v23 = vpop.f32.mrb[35].mxu0  ;;  %v1379_v20 = vld [vmem:[%s2265_s27 + $0x50] sm:$0xff] }
 0x13f   : > { %v1340_v25 = vmul.f32 %v2258_v9, %v1250_v14  ;;  %v1330_v26 = vmul.f32 %v2258_v9, %v1210_v15  ;;  %v1253_v27 = vadd.f32 %v1843_v42, %v1156_v37  ;;  %v1213_v28 = vadd.f32 %v1212_v23, %v2230_v29  ;;  %v1244_v30 = vpop.f32.mrb[35].mxu1  ;;  %v1377_v29 = vld [vmem:[%s2265_s27 + $0x40] sm:$0xff]  ;;  %v1372_v37 = vld [vmem:[%s2265_s27 + $0x18] sm:$0xff] }
 0x140   : > { %v1355_v31 = vadd.f32 %v2271_v13, %v1332_v18  ;;  %v1338_v43 = vmul.f32 %v2258_v9, %v1242_v19  ;;  %v1333_v33 = vmul.f32 %v2258_v9, %v1221_v22  ;;  %v1245_v34 = vadd.f32 %v1244_v30, %v2244_v21 }
 0x141   : > { %v1363_v35 = vadd.f32 %v2271_v13, %v1340_v25  ;;  %v1353_v36 = vadd.f32 %v2271_v13, %v1330_v26  ;;  %v1341_v38 = vmul.f32 %v2258_v9, %v1253_v27  ;;  %v1331_v39 = vmul.f32 %v2258_v9, %v1213_v28 }
 0x142   : > { %v1387_v40 = vadd.f32 %v1371_v24, %v1355_v31  ;;  %v1361_v41 = vadd.f32 %v2271_v13, %v1338_v43  ;;  %v1356_v44 = vadd.f32 %v2271_v13, %v1333_v33  ;;  %v1339_v21 = vmul.f32 %v2258_v9, %v1245_v34  ;;  %v1381_v33 = vld [vmem:[%s2265_s27 + $0x60] sm:$0xff] }
 0x143   : > { %v1395_v47 = vadd.f32 %v1379_v20, %v1363_v35  ;;  %v1385_v48 = vadd.f32 %v1369_v32, %v1353_v36  ;;  %v1364_v49 = vadd.f32 %v2271_v13, %v1341_v38  ;;  %v1354_v50 = vadd.f32 %v2271_v13, %v1331_v39  ;;  %v1838_v54 = vpop.f32.mrb[36].mxu0  ;;  %v1384_v38 = vld [vmem:[%s2265_s27 + $0x78] sm:$0xff]  ;;  %v1374_v39 = vld [vmem:[%s2265_s27 + $0x28] sm:$0xff] }
 0x144   : > { %v1403_v55 = vmax.f32 %v1387_v40, 0.0  ;;  %v1393_v58 = vadd.f32 %v1377_v29, %v1361_v41  ;;  %v1388_v59 = vadd.f32 %v1372_v37, %v1356_v44  ;;  %v1362_v60 = vadd.f32 %v2271_v13, %v1339_v21  ;;  %v1846_v61 = vpop.f32.mrb[36].mxu1  ;;  %v1225_v62 = vpop.f32.mrb[37].mxu0 }
 0x145   : > { %v1411_v63 = vmax.f32 %v1395_v47, 0.0  ;;  %v1401_v0 = vmax.f32 %v1385_v48, 0.0  ;;  %v1396_v1 = vadd.f32 %v1380_v45, %v1364_v49  ;;  %v1386_v2 = vadd.f32 %v1370_v46, %v1354_v50  ;;  %v1257_v3 = vpop.f32.mrb[37].mxu1  ;;  %v1839_v8 = vpop.f32.mrb[38].mxu0  ;;  %v1382_v46 = vld [vmem:[%s2265_s27 + $0x68] sm:$0xff] }
 0x146   : > { %1419 = vst [vmem:[%s2302_s8 + $0x10] sm:$0xff] %v1403_v55  ;;  %v1409_v10 = vmax.f32 %v1393_v58, 0.0  ;;  %v1404_v11 = vmax.f32 %v1388_v59, 0.0  ;;  %v1394_v12 = vadd.f32 %v1378_v51, %v1362_v60  ;;  %v1234_v14 = vadd.f32 %v1838_v54, %v2240_v6  ;;  %v1847_v15 = vpop.f32.mrb[38].mxu1  ;;  %v1228_v16 = vpop.f32.mrb[39].mxu0 }
 0x147   : > { %1427 = vst [vmem:[%s2302_s8 + $0x50] sm:$0xff] %v1411_v63  ;;  %1417 = vst [vmem:[%s2302_s8] sm:$0xff] %v1401_v0  ;;  %v1412_v17 = vmax.f32 %v1396_v1, 0.0  ;;  %v1402_v18 = vmax.f32 %v1386_v2, 0.0  ;;  %v1266_v19 = vadd.f32 %v1846_v61, %v2250_v4  ;;  %v1226_v22 = vadd.f32 %v1225_v62, %v2236_v56  ;;  %v1260_v42 = vpop.f32.mrb[39].mxu1  ;;  %v1375_v4 = vld [vmem:[%s2265_s27 + $0x30] sm:$0xff] }
 0x148   : > { %1425 = vst [vmem:[%s2302_s8 + $0x40] sm:$0xff] %v1409_v10  ;;  %1420 = vst [vmem:[%s2302_s8 + $0x18] sm:$0xff] %v1404_v11  ;;  %v1410_v6 = vmax.f32 %v1394_v12, 0.0  ;;  %v1336_v23 = vmul.f32 %v2258_v9, %v1234_v14  ;;  %v1258_v24 = vadd.f32 %v1257_v3, %v2246_v52  ;;  %v1237_v25 = vadd.f32 %v1839_v8, %v2242_v7  ;;  %v1383_v52 = vld [vmem:[%s2265_s27 + $0x70] sm:$0xff]  ;;  %v1373_v7 = vld [vmem:[%s2265_s27 + $0x20] sm:$0xff] }
 0x149   : > { %1428 = vst [vmem:[%s2302_s8 + $0x58] sm:$0xff] %v1412_v17  ;;  %1418 = vst [vmem:[%s2302_s8 + $0x8] sm:$0xff] %v1402_v18  ;;  %v1344_v26 = vmul.f32 %v2258_v9, %v1266_v19  ;;  %v1334_v56 = vmul.f32 %v2258_v9, %v1226_v22  ;;  %v1269_v27 = vadd.f32 %v1847_v15, %v2253_v5 }
 0x14a   : > { %v1229_v28 = vadd.f32 %v1228_v16, %v2238_v57  ;;  %1426 = vst [vmem:[%s2302_s8 + $0x48] sm:$0xff] %v1410_v6  ;;  %v1359_v30 = vadd.f32 %v2271_v13, %v1336_v23  ;;  %v1342_v31 = vmul.f32 %v2258_v9, %v1258_v24  ;;  %v1337_v20 = vmul.f32 %v2258_v9, %v1237_v25  ;;  %v1376_v57 = vld [vmem:[%s2265_s27 + $0x38] sm:$0xff] }
 0x14b   : > { %v1261_v32 = vadd.f32 %v1260_v42, %v2248_v53  ;;  %v1367_v43 = vadd.f32 %v2271_v13, %v1344_v26  ;;  %v1357_v5 = vadd.f32 %v2271_v13, %v1334_v56  ;;  %v1345_v34 = vmul.f32 %v2258_v9, %v1269_v27 }
 0x14c   : > { %v1335_v35 = vmul.f32 %v2258_v9, %v1229_v28  ;;  %v1391_v36 = vadd.f32 %v1375_v4, %v1359_v30  ;;  %v1365_v29 = vadd.f32 %v2271_v13, %v1342_v31  ;;  %v1360_v37 = vadd.f32 %v2271_v13, %v1337_v20 }
 0x14d   : > { %v1343_v53 = vmul.f32 %v2258_v9, %v1261_v32  ;;  %v1399_v40 = vadd.f32 %v1383_v52, %v1367_v43  ;;  %v1389_v41 = vadd.f32 %v1373_v7, %v1357_v5  ;;  %v1368_v44 = vadd.f32 %v2271_v13, %v1345_v34 }
 0x14e   : > { %v1358_v45 = vadd.f32 %v2271_v13, %v1335_v35  ;;  %v1407_v21 = vmax.f32 %v1391_v36, 0.0  ;;  %v1397_v47 = vadd.f32 %v1381_v33, %v1365_v29  ;;  %v1392_v48 = vadd.f32 %v1376_v57, %v1360_v37 }
 0x14f   : > { %v1366_v49 = vadd.f32 %v2271_v13, %v1343_v53  ;;  %v1415_v50 = vmax.f32 %v1399_v40, 0.0  ;;  %v1405_v9 = vmax.f32 %v1389_v41, 0.0  ;;  %v1400_v51 = vadd.f32 %v1384_v38, %v1368_v44 }
 0x150   : > { %v1390_v54 = vadd.f32 %v1374_v39, %v1358_v45  ;;  %1423 = vst [vmem:[%s2302_s8 + $0x30] sm:$0xff] %v1407_v21  ;;  %v1413_v55 = vmax.f32 %v1397_v47, 0.0  ;;  %v1408_v58 = vmax.f32 %v1392_v48, 0.0 }
 0x151   : > { %v1398_v59 = vadd.f32 %v1382_v46, %v1366_v49  ;;  %1431 = vst [vmem:[%s2302_s8 + $0x70] sm:$0xff] %v1415_v50  ;;  %1421 = vst [vmem:[%s2302_s8 + $0x20] sm:$0xff] %v1405_v9  ;;  %v1416_v60 = vmax.f32 %v1400_v51, 0.0 }
 0x152   : > { %v1406_v61 = vmax.f32 %v1390_v54, 0.0  ;;  %1429 = vst [vmem:[%s2302_s8 + $0x60] sm:$0xff] %v1413_v55  ;;  %1424 = vst [vmem:[%s2302_s8 + $0x38] sm:$0xff] %v1408_v58 }
 0x153   : > { %v1414_v62 = vmax.f32 %v1398_v59, 0.0  ;;  %1432 = vst [vmem:[%s2302_s8 + $0x78] sm:$0xff] %v1416_v60 }
 0x154   : > { %1422 = vst [vmem:[%s2302_s8 + $0x28] sm:$0xff] %v1406_v61 }
 0x155   : > { %1430 = vst [vmem:[%s2302_s8 + $0x68] sm:$0xff] %v1414_v62 }
 0x156 PF: > { %s15_s20 = sadd.s32 1, %s2007_s20   ;;  %s2371_s18 = smov %s2003_s19 }
 0x157   : > { %p12_p5 = scmp.ge.s32.totalorder %s15_s20, 6   ;;  %s2372_s19 = smov %s2374_s21 }
 0x159   :  { %14 = sbr.rel (!%p12_p5) target bundleno = 2 (0x2), region = 90 }

// kernel: _lambda_.27
= control target key start
LH: loop header
LB: loop body
LE: loop exit
PB: predicated region body
PF: predicated region fallthrough
CT: control target
= control target key end

     0   :  { %s1521_s15 = smov 0   ;;  %s1523_s16 = smov 0   ;;  %s1709_s0 = inlined_call_operand.vmem [shape: bf16[128,640], index: 0, kind: input, shape index: {}]   ;;  %s1710_s1 = inlined_call_operand.vmem [shape: bf16[640,128], index: 1, kind: input, shape index: {}]   ;;  %s1711_s2 = inlined_call_operand.vmem [shape: f32[1,128], index: 2, kind: input, shape index: {}]   ;;  %s1712_s3 = inlined_call_operand.vmem [shape: f32[1,128], index: 3, kind: input, shape index: {}]   ;;  %s1713_s4 = inlined_call_operand.vmem [shape: f32[128,128], index: 4, kind: output, shape index: {}]  }
   0x1   :  { %s1525_s17 = smov 0  }
   0x2 LB: > { %s33_s18 = sadd.s32 1, %s1490_s16  ;;  %p1178_p0 = scmp.ge.s32.totalorder %s1494_s17, 1  ;;  %s1494_s17 = sphi %s1525_s17, %s14_s17   ;;  %s1490_s16 = sphi %s1523_s16, %s1715_s16   ;;  %s1486_s15 = sphi %s1521_s15, %s1714_s15  }
   0x3   : > { %p35_p1 = scmp.ge.s32.totalorder %s33_s18, 2  ;;  %p224_p2 = scmp.lt.s32.totalorder %s1494_s17, 3 }
   0x5   : > { %s1717_s18 = smov (%p35_p1, %s33_s18), 0  ;;  %p225_p3 = pnand %p1178_p0, %p224_p2 }
   0x6   : > { %v1404_v0 = vld [vmem:[%s1710_s1 + $0x40] sm:$0xff] (!%p225_p3)   ;;  %v1408_v4 = vld [vmem:[%s1710_s1 + $0x48] sm:$0xff] (!%p225_p3)   ;;  %v1412_v8 = vld [vmem:[%s1710_s1 + $0x50] sm:$0xff] (!%p225_p3)   ;;  %s1179_s27 = sshll.u32 (!%p225_p3), %s1486_s15, 3 }
   0x7   : > { %228 = sbr.rel (%p225_p3) target bundleno = 298 (0x12a), region = 36  ;;  %v1405_v1 = vld [vmem:[%s1710_s1 + $0xc0] sm:$0xff] (!%p225_p3)   ;;  %1247 = vmatprep.subr.bf16.mxu0 (!%p225_p3), %v1404_v0  ;;  %v1409_v5 = vld [vmem:[%s1710_s1 + $0xc8] sm:$0xff] (!%p225_p3)   ;;  %v1413_v9 = vld [vmem:[%s1710_s1 + $0xd0] sm:$0xff] (!%p225_p3)   ;;  %p274_p4 = scmp.lt.s32.totalorder (!%p225_p3), %s1179_s27, 15 }
   0x8   : > { %v1406_v2 = vld [vmem:[%s1710_s1] sm:$0xff] (!%p225_p3)   ;;  %1287 = vmatprep.subr.bf16.mxu1 (!%p225_p3), %v1405_v1  ;;  %v1410_v6 = vld [vmem:[%s1710_s1 + $0x8] sm:$0xff] (!%p225_p3)   ;;  %v1414_v10 = vld [vmem:[%s1710_s1 + $0x10] sm:$0xff] (!%p225_p3)  }
   0x9   : > { %v1407_v3 = vld [vmem:[%s1710_s1 + $0x80] sm:$0xff] (!%p225_p3)   ;;  %1248 = vmatpush3.bf16.msra.mxu0 (!%p225_p3), %v1406_v2  ;;  %v1411_v7 = vld [vmem:[%s1710_s1 + $0x88] sm:$0xff] (!%p225_p3)   ;;  %v1415_v11 = vld [vmem:[%s1710_s1 + $0x90] sm:$0xff] (!%p225_p3)  }
   0xa   : > { %1288 = vmatpush3.bf16.msra.mxu1 (!%p225_p3), %v1407_v3  ;;  %1249 = vmatprep.subr.bf16.mxu0 (!%p225_p3), %v1408_v4  ;;  %v1416_v12 = vld [vmem:[%s1710_s1 + $0x58] sm:$0xff] (!%p225_p3)   ;;  %v1420_v16 = vld [vmem:[%s1710_s1 + $0x60] sm:$0xff] (!%p225_p3)   ;;  %v1424_v20 = vld [vmem:[%s1710_s1 + $0x68] sm:$0xff] (!%p225_p3)  }
   0xb   : > { %1289 = vmatprep.subr.bf16.mxu1 (!%p225_p3), %v1409_v5  ;;  %v1417_v13 = vld [vmem:[%s1710_s1 + $0xd8] sm:$0xff] (!%p225_p3)   ;;  %v1421_v17 = vld [vmem:[%s1710_s1 + $0xe0] sm:$0xff] (!%p225_p3)   ;;  %v1425_v21 = vld [vmem:[%s1710_s1 + $0xe8] sm:$0xff] (!%p225_p3)  }
   0xc   : > { %v1418_v14 = vld [vmem:[%s1710_s1 + $0x18] sm:$0xff] (!%p225_p3)   ;;  %v1422_v18 = vld [vmem:[%s1710_s1 + $0x20] sm:$0xff] (!%p225_p3)   ;;  %v1426_v22 = vld [vmem:[%s1710_s1 + $0x28] sm:$0xff] (!%p225_p3)  }
   0xd   : > { %1250 = vmatpush3.bf16.msra.mxu0 (!%p225_p3), %v1410_v6  ;;  %v1419_v15 = vld [vmem:[%s1710_s1 + $0x98] sm:$0xff] (!%p225_p3)   ;;  %v1423_v19 = vld [vmem:[%s1710_s1 + $0xa0] sm:$0xff] (!%p225_p3)   ;;  %v1427_v23 = vld [vmem:[%s1710_s1 + $0xa8] sm:$0xff] (!%p225_p3)  }
   0xe   : > { %1290 = vmatpush3.bf16.msra.mxu1 %v1411_v7  ;;  %1251 = vmatprep.subr.bf16.mxu0 %v1412_v8  ;;  %s1719_s27 = smov (!%p274_p4, %s1179_s27), 15  ;;  %v1428_v24 = vld [vmem:[%s1710_s1 + $0x70] sm:$0xff]   ;;  %v1432_v28 = vld [vmem:[%s1710_s1 + $0x78] sm:$0xff]   ;;  %v1442_v36 = vld [vmem:[%s1710_s1 + $0x100] sm:$0xff]  }
   0xf   : > { %1291 = vmatprep.subr.bf16.mxu1 %v1413_v9  ;;  %v1429_v25 = vld [vmem:[%s1710_s1 + $0xf0] sm:$0xff]   ;;  %s1379_s28 = smul.u32 20, %s1719_s27  ;;  %v1433_v29 = vld [vmem:[%s1710_s1 + $0xf8] sm:$0xff]   ;;  %v1443_v37 = vld [vmem:[%s1710_s1 + $0x108] sm:$0xff]   ;;  %s1182_s19 = sshll.u32 %s1719_s27, 3 }
  0x10   : > { %v1430_v26 = vld [vmem:[%s1710_s1 + $0x30] sm:$0xff]   ;;  %v1434_v30 = vld [vmem:[%s1710_s1 + $0x38] sm:$0xff]   ;;  %v1458_v46 = vld [vmem:[%s1710_s1 + $0x120] sm:$0xff]   ;;  %s306_s22 = scalar_lea.vmem %s1713_s4, %s1182_s19 }
  0x11   : > { %1252 = vmatpush3.bf16.msra.mxu0 %v1414_v10  ;;  %v1431_v27 = vld [vmem:[%s1710_s1 + $0xb0] sm:$0xff]   ;;  %s1638_s12 = scalar_lea.vmem %s1709_s0, %s1379_s28  ;;  %v1435_v31 = vld [vmem:[%s1710_s1 + $0xb8] sm:$0xff]   ;;  %v1459_v51 = vld [vmem:[%s1710_s1 + $0x128] sm:$0xff]  }
  0x12   : > { %1292 = vmatpush3.bf16.msra.mxu1 %v1415_v11  ;;  %1253 = vmatprep.subr.bf16.mxu0 %v1416_v12  ;;  %v1436_v32 = vld [vmem:[%s1638_s12] ss:$20 sps:$4 sm:$0xff]   ;;  %v1438_v33 = vld [vmem:[%s1638_s12 + $0x4] ss:$20 sps:$4 sm:$0xff]   ;;  %v1439_v34 = vld [vmem:[%s1638_s12 + $0x8] ss:$20 sps:$4 sm:$0xff]  }
  0x13   : > { %1293 = vmatprep.subr.bf16.mxu1 %v1417_v13  ;;  %v1441_v35 = vld [vmem:[%s1638_s12 + $0xc] ss:$20 sps:$4 sm:$0xff]   ;;  %809 = vmatprep.mubr.bf16.mxu0 %v1438_v33  ;;  %v1446_v39 = vld [vmem:[%s1638_s12 + $0x34] ss:$20 sps:$4 sm:$0xff]   ;;  %v1449_v42 = vld [vmem:[%s1638_s12 + $0x30] ss:$20 sps:$4 sm:$0xff]  }
  0x14   : > { %874 = vmatprep.mubr.bf16.mxu1 %v1441_v35  ;;  %v1444_v38 = vld [vmem:[%s1638_s12 + $0x2c] ss:$20 sps:$4 sm:$0xff]   ;;  %v1448_v40 = vld [vmem:[%s1638_s12 + $0x28] ss:$20 sps:$4 sm:$0xff]   ;;  %v1450_v41 = vld [vmem:[%s1710_s1 + $0x110] sm:$0xff]  }
  0x15   : > { %1254 = vmatpush3.bf16.msra.mxu0 %v1418_v14  ;;  %v1452_v43 = vld [vmem:[%s1638_s12 + $0x54] ss:$20 sps:$4 sm:$0xff]   ;;  %v1451_v44 = vld [vmem:[%s1710_s1 + $0x118] sm:$0xff]   ;;  %v1456_v47 = vld [vmem:[%s1638_s12 + $0x50] ss:$20 sps:$4 sm:$0xff]  }
  0x16   : > { %1294 = vmatpush3.bf16.msra.mxu1 %v1419_v15  ;;  %1255 = vmatprep.subr.bf16.mxu0 %v1420_v16  ;;  %v1454_v45 = vld [vmem:[%s1638_s12 + $0x5c] ss:$20 sps:$4 sm:$0xff]   ;;  %v1457_v48 = vld [vmem:[%s1638_s12 + $0x58] ss:$20 sps:$4 sm:$0xff]   ;;  %v1465_v54 = vld [vmem:[%s1638_s12 + $0x80] ss:$20 sps:$4 sm:$0xff]  }
  0x17   : > { %1295 = vmatprep.subr.bf16.mxu1 %v1421_v17  ;;  %v1460_v49 = vld [vmem:[%s1638_s12 + $0x7c] ss:$20 sps:$4 sm:$0xff]   ;;  %v1462_v50 = vld [vmem:[%s1638_s12 + $0x84] ss:$20 sps:$4 sm:$0xff]   ;;  %v1469_v56 = vld [vmem:[%s1638_s12 + $0x60] ss:$20 sps:$4 sm:$0xff]  }
  0x18   : > { %v1466_v52 = vld [vmem:[%s1710_s1 + $0x130] sm:$0xff]   ;;  %v1464_v53 = vld [vmem:[%s1638_s12 + $0x78] ss:$20 sps:$4 sm:$0xff]   ;;  %v1471_v59 = vld [vmem:[%s1638_s12 + $0x88] ss:$20 sps:$4 sm:$0xff]  }
  0x19   : > { %1256 = vmatpush3.bf16.msra.mxu0 %v1422_v18  ;;  %v1468_v55 = vld [vmem:[%s1638_s12 + $0x10] ss:$20 sps:$4 sm:$0xff]   ;;  %v1467_v57 = vld [vmem:[%s1710_s1 + $0x138] sm:$0xff]  }
  0x1a   : > { %1296 = vmatpush3.bf16.msra.mxu1 %v1423_v19  ;;  %1257 = vmatprep.subr.bf16.mxu0 %v1424_v20  ;;  %v1470_v58 = vld [vmem:[%s1638_s12 + $0x38] ss:$20 sps:$4 sm:$0xff]  }
  0x1b   : > { %1297 = vmatprep.subr.bf16.mxu1 %v1425_v21 }
  0x1d   : > { %1258 = vmatpush3.bf16.msra.mxu0 %v1426_v22 }
  0x1e   : > { %1298 = vmatpush3.bf16.msra.mxu1 %v1427_v23  ;;  %1259 = vmatprep.subr.bf16.mxu0 %v1428_v24 }
  0x1f   : > { %1299 = vmatprep.subr.bf16.mxu1 %v1429_v25 }
  0x21   : > { %1260 = vmatpush3.bf16.msra.mxu0 %v1430_v26 }
  0x22   : > { %1300 = vmatpush3.bf16.msra.mxu1 %v1431_v27  ;;  %1261 = vmatprep.subr.bf16.mxu0 %v1432_v28 }
  0x23   : > { %1301 = vmatprep.subr.bf16.mxu1 %v1433_v29 }
  0x25   : > { %1262 = vmatpush3.bf16.msra.mxu0 %v1434_v30 }
  0x26   : > { %1302 = vmatpush3.bf16.msra.mxu1 %v1435_v31  ;;  %1339 = vmatprep.subr.bf16.mxu0 %v1442_v36 }
  0x27   : > { %1363 = vmatprep.subr.bf16.mxu1 %v1442_v36 }
  0x28   : > { %810 = vmatmul.mubr.bf16.vlgmr.msra.gmra.mrb[0].mxu0 %v1436_v32 }
  0x29   : > { %875 = vmatmul.mubr.bf16.vlgmr.msra.gmra.mrb[0].mxu1 %v1439_v34  ;;  %1340 = vmatpush3.bf16.msra.mxu0 %v1442_v36 }
  0x2a   : > { %1371 = vmatpush3.bf16.msra.mxu1 %v1442_v36  ;;  %1341 = vmatprep.subr.bf16.mxu0 %v1443_v37 }
  0x2b   : > { %1364 = vmatprep.subr.bf16.mxu1 %v1443_v37  ;;  %817 = vmatprep.mubr.bf16.mxu0 %v1444_v38 }
  0x2c   : > { %882 = vmatprep.mubr.bf16.mxu1 %v1446_v39 }
  0x2d   : > { %1342 = vmatpush3.bf16.msra.mxu0 %v1443_v37 }
  0x2e   : > { %1372 = vmatpush3.bf16.msra.mxu1 %v1443_v37  ;;  %1343 = vmatprep.subr.bf16.mxu0 %v1450_v41 }
  0x2f   : > { %1365 = vmatprep.subr.bf16.mxu1 %v1450_v41 }
  0x30   : > { %818 = vmatmul.mubr.bf16.gmra.mrb[4].mxu0 %v1448_v40 }
  0x31   : > { %883 = vmatmul.mubr.bf16.gmra.mrb[4].mxu1 %v1449_v42  ;;  %825 = vmatprep.mubr.bf16.mxu0 %v1452_v43 }
  0x32   : > { %1344 = vmatpush3.bf16.msra.mxu0 %v1450_v41  ;;  %890 = vmatprep.mubr.bf16.mxu1 %v1454_v45 }
  0x33   : > { %1373 = vmatpush3.bf16.msra.mxu1 %v1450_v41  ;;  %1345 = vmatprep.subr.bf16.mxu0 %v1451_v44 }
  0x34   : > { %1366 = vmatprep.subr.bf16.mxu1 %v1451_v44 }
  0x36   : > { %1346 = vmatpush3.bf16.msra.mxu0 %v1451_v44 }
  0x37   : > { %1374 = vmatpush3.bf16.msra.mxu1 %v1451_v44  ;;  %1347 = vmatprep.subr.bf16.mxu0 %v1458_v46 }
  0x38   : > { %826 = vmatmul.mubr.bf16.gmra.mrb[8].mxu0 %v1456_v47  ;;  %1367 = vmatprep.subr.bf16.mxu1 %v1458_v46 }
  0x39   : > { %891 = vmatmul.mubr.bf16.gmra.mrb[8].mxu1 %v1457_v48  ;;  %833 = vmatprep.mubr.bf16.mxu0 %v1460_v49 }
  0x3a   : > { %1348 = vmatpush3.bf16.msra.mxu0 %v1458_v46  ;;  %898 = vmatprep.mubr.bf16.mxu1 %v1462_v50 }
  0x3b   : > { %1375 = vmatpush3.bf16.msra.mxu1 %v1458_v46  ;;  %1349 = vmatprep.subr.bf16.mxu0 %v1459_v51 }
  0x3c   : > { %1368 = vmatprep.subr.bf16.mxu1 %v1459_v51 }
  0x3e   : > { %1350 = vmatpush3.bf16.msra.mxu0 %v1459_v51 }
  0x3f   : > { %1376 = vmatpush3.bf16.msra.mxu1 %v1459_v51  ;;  %1351 = vmatprep.subr.bf16.mxu0 %v1466_v52 }
  0x40   : > { %834 = vmatmul.mubr.bf16.gmra.mrb[12].mxu0 %v1464_v53  ;;  %1369 = vmatprep.subr.bf16.mxu1 %v1466_v52  ;;  %v1243_v53 = vld [vmem:[%s1711_s2] ss:$0 sm:$0xff] }
  0x41   : > { %899 = vmatmul.mubr.bf16.gmra.mrb[12].mxu1 %v1465_v54  ;;  %1355 = vmatprep.mubr.bf16.mxu0 %v1468_v55 }
  0x42   : > { %1352 = vmatpush3.bf16.msra.mxu0 %v1466_v52  ;;  %1359 = vmatprep.mubr.bf16.mxu1 %v1469_v56 }
  0x43   : > { %1377 = vmatpush3.bf16.msra.mxu1 %v1466_v52  ;;  %1353 = vmatprep.subr.bf16.mxu0 %v1467_v57 }
  0x44   : > { %1370 = vmatprep.subr.bf16.mxu1 %v1467_v57 }
  0x46   : > { %1354 = vmatpush3.bf16.msra.mxu0 %v1467_v57 }
  0x47   : > { %1378 = vmatpush3.bf16.msra.mxu1 %v1467_v57  ;;  %v1244_v57 = vld [vmem:[%s1712_s3] ss:$0 sm:$0xff] }
  0x49   : > { %1356 = vmatmul.mubr.bf16.vlgmr.msra.gmra.mrb[16].mxu0 %v1470_v58 }
  0x4a   : > { %1360 = vmatmul.mubr.bf16.vlgmr.msra.gmra.mrb[16].mxu1 %v1471_v59 }
  0xfb   : > { %v1263_v60 = vpop.f32.mrb[0].mxu0 }
  0xfc   : > { %v1303_v61 = vpop.f32.mrb[0].mxu1  ;;  %v1264_v62 = vpop.f32.mrb[1].mxu0 }
  0xfd   : > { %v1265_v63 = vadd.f32 %v1264_v62, %v1263_v60  ;;  %v1304_v0 = vpop.f32.mrb[1].mxu1  ;;  %v1266_v1 = vpop.f32.mrb[2].mxu0 }
  0xfe   : > { %v1305_v2 = vadd.f32 %v1304_v0, %v1303_v61  ;;  %v1306_v3 = vpop.f32.mrb[2].mxu1  ;;  %v1267_v4 = vpop.f32.mrb[3].mxu0 }
  0xff   : > { %v1268_v5 = vadd.f32 %v1267_v4, %v1266_v1  ;;  %v1307_v6 = vpop.f32.mrb[3].mxu1 }
 0x100   : > { %v1308_v7 = vadd.f32 %v1307_v6, %v1306_v3  ;;  %v877_v8 = vadd.f32 %v1305_v2, %v1265_v63 }
 0x102   : > { %v880_v9 = vadd.f32 %v1308_v7, %v1268_v5 }
 0x103   : > { %v1269_v10 = vpop.f32.mrb[4].mxu0 }
 0x104   : > { %v1309_v11 = vpop.f32.mrb[4].mxu1  ;;  %v1270_v12 = vpop.f32.mrb[5].mxu0 }
 0x105   : > { %v1271_v13 = vadd.f32 %v1270_v12, %v1269_v10  ;;  %v1310_v14 = vpop.f32.mrb[5].mxu1  ;;  %v1272_v15 = vpop.f32.mrb[6].mxu0 }
 0x106   : > { %v1311_v16 = vadd.f32 %v1310_v14, %v1309_v11  ;;  %v1312_v17 = vpop.f32.mrb[6].mxu1  ;;  %v1273_v18 = vpop.f32.mrb[7].mxu0 }
 0x107   : > { %v1274_v19 = vadd.f32 %v1273_v18, %v1272_v15  ;;  %v1313_v20 = vpop.f32.mrb[7].mxu1 }
 0x108   : > { %v1314_v21 = vadd.f32 %v1313_v20, %v1312_v17  ;;  %v885_v22 = vadd.f32 %v1311_v16, %v1271_v13 }
 0x10a   : > { %v888_v23 = vadd.f32 %v1314_v21, %v1274_v19 }
 0x10b   : > { %v1275_v24 = vpop.f32.mrb[8].mxu0 }
 0x10c   : > { %v1315_v25 = vpop.f32.mrb[8].mxu1  ;;  %v1276_v26 = vpop.f32.mrb[9].mxu0 }
 0x10d   : > { %v1277_v27 = vadd.f32 %v1276_v26, %v1275_v24  ;;  %v1316_v28 = vpop.f32.mrb[9].mxu1  ;;  %v1278_v29 = vpop.f32.mrb[10].mxu0 }
 0x10e   : > { %v1317_v30 = vadd.f32 %v1316_v28, %v1315_v25  ;;  %v1318_v31 = vpop.f32.mrb[10].mxu1  ;;  %v1279_v32 = vpop.f32.mrb[11].mxu0 }
 0x10f   : > { %v1280_v33 = vadd.f32 %v1279_v32, %v1278_v29  ;;  %v1319_v34 = vpop.f32.mrb[11].mxu1 }
 0x110   : > { %v1320_v35 = vadd.f32 %v1319_v34, %v1318_v31  ;;  %v893_v36 = vadd.f32 %v1317_v30, %v1277_v27 }
 0x112   : > { %v896_v37 = vadd.f32 %v1320_v35, %v1280_v33 }
 0x113   : > { %v1281_v38 = vpop.f32.mrb[12].mxu0 }
 0x114   : > { %v1321_v39 = vpop.f32.mrb[12].mxu1  ;;  %v1282_v40 = vpop.f32.mrb[13].mxu0 }
 0x115   : > { %v1283_v41 = vadd.f32 %v1282_v40, %v1281_v38  ;;  %v1322_v42 = vpop.f32.mrb[13].mxu1  ;;  %v1284_v43 = vpop.f32.mrb[14].mxu0 }
 0x116   : > { %v1323_v44 = vadd.f32 %v1322_v42, %v1321_v39  ;;  %v1324_v45 = vpop.f32.mrb[14].mxu1  ;;  %v1285_v46 = vpop.f32.mrb[15].mxu0 }
 0x117   : > { %v1286_v47 = vadd.f32 %v1285_v46, %v1284_v43  ;;  %v1325_v48 = vpop.f32.mrb[15].mxu1 }
 0x118   : > { %v1326_v49 = vadd.f32 %v1325_v48, %v1324_v45  ;;  %v901_v50 = vadd.f32 %v1323_v44, %v1283_v41 }
 0x11a   : > { %v904_v51 = vadd.f32 %v1326_v49, %v1286_v47 }
 0x11c   : > { %v1357_v52 = vpop.f32.mrb[16].mxu0 }
 0x11d   : > { %v950_v54 = vadd.f32 %v1357_v52, %v885_v22  ;;  %v1361_v55 = vpop.f32.mrb[16].mxu1  ;;  %v941_v56 = vpop.f32.mrb[17].mxu0 }
 0x11e   : > { %v966_v58 = vadd.f32 %v1361_v55, %v901_v50  ;;  %v942_v59 = vadd.f32 %v941_v56, %v877_v8  ;;  %v957_v60 = vpop.f32.mrb[17].mxu1  ;;  %v1358_v61 = vpop.f32.mrb[18].mxu0 }
 0x11f   : > { %v1008_v62 = vmul.f32 %v1243_v53, %v950_v54  ;;  %v958_v63 = vadd.f32 %v957_v60, %v893_v36  ;;  %v953_v0 = vadd.f32 %v1358_v61, %v888_v23  ;;  %v1362_v1 = vpop.f32.mrb[18].mxu1  ;;  %v944_v2 = vpop.f32.mrb[19].mxu0 }
 0x120   : > { %v1012_v3 = vmul.f32 %v1243_v53, %v966_v58  ;;  %v1006_v4 = vmul.f32 %v1243_v53, %v942_v59  ;;  %v969_v5 = vadd.f32 %v1362_v1, %v904_v51  ;;  %v945_v6 = vadd.f32 %v944_v2, %v880_v9  ;;  %v960_v7 = vpop.f32.mrb[19].mxu1 }
 0x121   : > { %v1023_v10 = vadd.f32 %v1244_v57, %v1008_v62  ;;  %v1010_v11 = vmul.f32 %v1243_v53, %v958_v63  ;;  %v1009_v12 = vmul.f32 %v1243_v53, %v953_v0  ;;  %v961_v13 = vadd.f32 %v960_v7, %v896_v37 }
 0x122   : > { %v1027_v8 = vadd.f32 %v1244_v57, %v1012_v3  ;;  %v1021_v14 = vadd.f32 %v1244_v57, %v1006_v4  ;;  %v1013_v15 = vmul.f32 %v1243_v53, %v969_v5  ;;  %v1007_v16 = vmul.f32 %v1243_v53, %v945_v6 }
 0x123   : > { %v1031_v17 = vmax.f32 %v1023_v10, 0.0  ;;  %v1025_v18 = vadd.f32 %v1244_v57, %v1010_v11  ;;  %v1024_v19 = vadd.f32 %v1244_v57, %v1009_v12  ;;  %v1011_v20 = vmul.f32 %v1243_v53, %v961_v13 }
 0x124   : > { %v1035_v21 = vmax.f32 %v1027_v8, 0.0  ;;  %v1029_v22 = vmax.f32 %v1021_v14, 0.0  ;;  %v1028_v9 = vadd.f32 %v1244_v57, %v1013_v15  ;;  %v1022_v23 = vadd.f32 %v1244_v57, %v1007_v16 }
 0x125   : > { %1039 = vst [vmem:[%s306_s22 + $0x10] sm:$0xff] %v1031_v17  ;;  %v1033_v24 = vmax.f32 %v1025_v18, 0.0  ;;  %v1032_v25 = vmax.f32 %v1024_v19, 0.0  ;;  %v1026_v26 = vadd.f32 %v1244_v57, %v1011_v20 }
 0x126   : > { %1043 = vst [vmem:[%s306_s22 + $0x30] sm:$0xff] %v1035_v21  ;;  %1037 = vst [vmem:[%s306_s22] sm:$0xff] %v1029_v22  ;;  %v1036_v27 = vmax.f32 %v1028_v9, 0.0  ;;  %v1030_v28 = vmax.f32 %v1022_v23, 0.0 }
 0x127   : > { %1041 = vst [vmem:[%s306_s22 + $0x20] sm:$0xff] %v1033_v24  ;;  %1040 = vst [vmem:[%s306_s22 + $0x18] sm:$0xff] %v1032_v25  ;;  %v1034_v29 = vmax.f32 %v1026_v26, 0.0 }
 0x128   : > { %1044 = vst [vmem:[%s306_s22 + $0x38] sm:$0xff] %v1036_v27  ;;  %1038 = vst [vmem:[%s306_s22 + $0x8] sm:$0xff] %v1030_v28 }
 0x129   : > { %1042 = vst [vmem:[%s306_s22 + $0x28] sm:$0xff] %v1034_v29 }
 0x12a PF: > { %s14_s17 = sadd.s32 1, %s1494_s17   ;;  %s1714_s15 = smov %s1490_s16 }
 0x12b   : > { %p11_p5 = scmp.ge.s32.totalorder %s14_s17, 4   ;;  %s1715_s16 = smov %s1717_s18 }
 0x12d   :  { %13 = sbr.rel (!%p11_p5) target bundleno = 2 (0x2), region = 83 }

// kernel: _lambda_.28
= control target key start
LH: loop header
LB: loop body
LE: loop exit
PB: predicated region body
PF: predicated region fallthrough
CT: control target
= control target key end

     0   :  { %s835_s15 = smov 0   ;;  %s837_s16 = smov 0   ;;  %s908_s0 = inlined_call_operand.vmem [shape: bf16[128,128], index: 0, kind: input, shape index: {}]   ;;  %s909_s1 = inlined_call_operand.vmem [shape: bf16[128,128], index: 1, kind: input, shape index: {}]   ;;  %s910_s2 = inlined_call_operand.vmem [shape: f32[1,128], index: 2, kind: input, shape index: {}]   ;;  %s911_s3 = inlined_call_operand.vmem [shape: f32[1,128], index: 3, kind: input, shape index: {}]   ;;  %s912_s4 = inlined_call_operand.vmem [shape: f32[128,128], index: 4, kind: output, shape index: {}]  }
   0x1   :  { %s839_s17 = smov 0  }
   0x2 LB: > { %s33_s18 = sadd.s32 1, %s804_s16  ;;  %p677_p0 = scmp.ge.s32.totalorder %s808_s17, 1  ;;  %s808_s17 = sphi %s839_s17, %s14_s17   ;;  %s804_s16 = sphi %s837_s16, %s914_s16   ;;  %s800_s15 = sphi %s835_s15, %s913_s15  }
   0x3   : > { %p35_p1 = scmp.ge.s32.totalorder %s33_s18, 2  ;;  %p221_p2 = scmp.lt.s32.totalorder %s808_s17, 3 }
   0x5   : > { %s916_s18 = smov (%p35_p1, %s33_s18), 0  ;;  %p222_p3 = pnand %p677_p0, %p221_p2 }
   0x6   : > { %v774_v0 = vld [vmem:[%s909_s1] sm:$0xff] (!%p222_p3)   ;;  %s678_s21 = sshll.u32 (!%p222_p3), %s800_s15, 3  ;;  %v775_v1 = vld [vmem:[%s909_s1 + $0x8] sm:$0xff] (!%p222_p3)   ;;  %v776_v2 = vld [vmem:[%s909_s1 + $0x10] sm:$0xff] (!%p222_p3)  }
   0x7   : > { %225 = sbr.rel (%p222_p3) target bundleno = 259 (0x103), region = 36  ;;  %p268_p4 = scmp.lt.s32.totalorder (!%p222_p3), %s678_s21, 15  ;;  %710 = vmatprep.subr.bf16.mxu0 (!%p222_p3), %v774_v0  ;;  %734 = vmatprep.subr.bf16.mxu1 (!%p222_p3), %v774_v0  ;;  %v777_v3 = vld [vmem:[%s909_s1 + $0x18] sm:$0xff] (!%p222_p3)   ;;  %v778_v6 = vld [vmem:[%s909_s1 + $0x20] sm:$0xff] (!%p222_p3)   ;;  %v779_v7 = vld [vmem:[%s909_s1 + $0x28] sm:$0xff] (!%p222_p3)  }
   0x8   : > { %711 = vmatpush3.bf16.msra.mxu0 (!%p222_p3), %v774_v0  ;;  %742 = vmatpush3.bf16.msra.mxu1 (!%p222_p3), %v774_v0  ;;  %v780_v8 = vld [vmem:[%s909_s1 + $0x30] sm:$0xff] (!%p222_p3)   ;;  %v781_v9 = vld [vmem:[%s909_s1 + $0x38] sm:$0xff] (!%p222_p3)   ;;  %v694_v12 = vld [vmem:[%s910_s2] ss:$0 sm:$0xff] (!%p222_p3) }
   0x9   : > { %712 = vmatprep.subr.bf16.mxu0 (!%p222_p3), %v775_v1  ;;  %735 = vmatprep.subr.bf16.mxu1 (!%p222_p3), %v775_v1  ;;  %v695_v14 = vld [vmem:[%s911_s3] ss:$0 sm:$0xff] (!%p222_p3) }
   0xc   : > { %713 = vmatpush3.bf16.msra.mxu0 (!%p222_p3), %v775_v1  ;;  %743 = vmatpush3.bf16.msra.mxu1 (!%p222_p3), %v775_v1 }
   0xd   : > { %714 = vmatprep.subr.bf16.mxu0 (!%p222_p3), %v776_v2  ;;  %736 = vmatprep.subr.bf16.mxu1 (!%p222_p3), %v776_v2 }
   0xe   : > { %s918_s21 = smov (!%p268_p4, %s678_s21), 15 }
   0xf   : > { %s679_s26 = sshll.u32 %s918_s21, 2  ;;  %s681_s19 = sshll.u32 %s918_s21, 3 }
  0x10   : > { %s868_s29 = scalar_lea.vmem %s908_s0, %s679_s26  ;;  %715 = vmatpush3.bf16.msra.mxu0 %v776_v2  ;;  %744 = vmatpush3.bf16.msra.mxu1 %v776_v2  ;;  %s298_s25 = scalar_lea.vmem %s912_s4, %s681_s19 }
  0x11   : > { %v782_v4 = vld [vmem:[%s868_s29] sm:$0xff]   ;;  %v783_v5 = vld [vmem:[%s868_s29 + $0x10] sm:$0xff]   ;;  %716 = vmatprep.subr.bf16.mxu0 %v777_v3  ;;  %737 = vmatprep.subr.bf16.mxu1 %v777_v3  ;;  %v784_v10 = vld [vmem:[%s868_s29 + $0x8] sm:$0xff]  }
  0x12   : > { %726 = vmatprep.mubr.bf16.mxu0 %v782_v4  ;;  %730 = vmatprep.mubr.bf16.mxu1 %v783_v5  ;;  %v785_v11 = vld [vmem:[%s868_s29 + $0x18] sm:$0xff]  }
  0x14   : > { %717 = vmatpush3.bf16.msra.mxu0 %v777_v3  ;;  %745 = vmatpush3.bf16.msra.mxu1 %v777_v3 }
  0x15   : > { %718 = vmatprep.subr.bf16.mxu0 %v778_v6  ;;  %738 = vmatprep.subr.bf16.mxu1 %v778_v6 }
  0x18   : > { %719 = vmatpush3.bf16.msra.mxu0 %v778_v6  ;;  %746 = vmatpush3.bf16.msra.mxu1 %v778_v6 }
  0x19   : > { %720 = vmatprep.subr.bf16.mxu0 %v779_v7  ;;  %739 = vmatprep.subr.bf16.mxu1 %v779_v7 }
  0x1c   : > { %721 = vmatpush3.bf16.msra.mxu0 %v779_v7  ;;  %747 = vmatpush3.bf16.msra.mxu1 %v779_v7 }
  0x1d   : > { %722 = vmatprep.subr.bf16.mxu0 %v780_v8  ;;  %740 = vmatprep.subr.bf16.mxu1 %v780_v8 }
  0x20   : > { %723 = vmatpush3.bf16.msra.mxu0 %v780_v8  ;;  %748 = vmatpush3.bf16.msra.mxu1 %v780_v8 }
  0x21   : > { %724 = vmatprep.subr.bf16.mxu0 %v781_v9  ;;  %741 = vmatprep.subr.bf16.mxu1 %v781_v9 }
  0x24   : > { %725 = vmatpush3.bf16.msra.mxu0 %v781_v9  ;;  %749 = vmatpush3.bf16.msra.mxu1 %v781_v9 }
  0x27   : > { %727 = vmatmul.mubr.bf16.vlgmr.msra.gmra.mrb[0].mxu0 %v784_v10  ;;  %731 = vmatmul.mubr.bf16.vlgmr.msra.gmra.mrb[0].mxu1 %v785_v11 }
  0xfa   : > { %v728_v13 = vpop.f32.mrb[0].mxu0  ;;  %v732_v15 = vpop.f32.mrb[0].mxu1 }
  0xfb   : > { %v518_v16 = vmul.f32 %v728_v13, %v694_v12  ;;  %v522_v17 = vmul.f32 %v732_v15, %v694_v12  ;;  %v451_v18 = vpop.f32.mrb[1].mxu0  ;;  %v467_v19 = vpop.f32.mrb[1].mxu1 }
  0xfc   : > { %v516_v20 = vmul.f32 %v694_v12, %v451_v18  ;;  %v520_v21 = vmul.f32 %v694_v12, %v467_v19  ;;  %v729_v22 = vpop.f32.mrb[2].mxu0  ;;  %v733_v23 = vpop.f32.mrb[2].mxu1 }
  0xfd   : > { %v533_v24 = vadd.f32 %v695_v14, %v518_v16  ;;  %v537_v25 = vadd.f32 %v695_v14, %v522_v17  ;;  %v519_v26 = vmul.f32 %v729_v22, %v694_v12  ;;  %v523_v27 = vmul.f32 %v733_v23, %v694_v12  ;;  %v454_v28 = vpop.f32.mrb[3].mxu0  ;;  %v470_v29 = vpop.f32.mrb[3].mxu1 }
  0xfe   : > { %v531_v30 = vadd.f32 %v695_v14, %v516_v20  ;;  %v535_v31 = vadd.f32 %v695_v14, %v520_v21  ;;  %v517_v32 = vmul.f32 %v694_v12, %v454_v28  ;;  %v521_v33 = vmul.f32 %v694_v12, %v470_v29 }
  0xff   : > { %541 = vst [vmem:[%s298_s25 + $0x10] sm:$0xff] %v533_v24  ;;  %545 = vst [vmem:[%s298_s25 + $0x30] sm:$0xff] %v537_v25  ;;  %v534_v34 = vadd.f32 %v695_v14, %v519_v26  ;;  %v538_v35 = vadd.f32 %v695_v14, %v523_v27 }
 0x100   : > { %539 = vst [vmem:[%s298_s25] sm:$0xff] %v531_v30  ;;  %543 = vst [vmem:[%s298_s25 + $0x20] sm:$0xff] %v535_v31  ;;  %v532_v36 = vadd.f32 %v695_v14, %v517_v32  ;;  %v536_v37 = vadd.f32 %v695_v14, %v521_v33 }
 0x101   : > { %542 = vst [vmem:[%s298_s25 + $0x18] sm:$0xff] %v534_v34  ;;  %546 = vst [vmem:[%s298_s25 + $0x38] sm:$0xff] %v538_v35 }
 0x102   : > { %540 = vst [vmem:[%s298_s25 + $0x8] sm:$0xff] %v532_v36  ;;  %544 = vst [vmem:[%s298_s25 + $0x28] sm:$0xff] %v536_v37 }
 0x103 PF: > { %s14_s17 = sadd.s32 1, %s808_s17   ;;  %s913_s15 = smov %s804_s16 }
 0x104   : > { %p11_p5 = scmp.ge.s32.totalorder %s14_s17, 4   ;;  %s914_s16 = smov %s916_s18 }
 0x106   :  { %13 = sbr.rel (!%p11_p5) target bundleno = 2 (0x2), region = 83 }

// kernel: _lambda_.29
= control target key start
LH: loop header
LB: loop body
LE: loop exit
PB: predicated region body
PF: predicated region fallthrough
CT: control target
= control target key end

     0   :  { %s1410_s18 = smov 0   ;;  %s1412_s19 = smov 0   ;;  %s1591_s0 = inlined_call_operand.vmem [shape: bf16[128,1152], index: 0, kind: input, shape index: {}]   ;;  %s1592_s1 = inlined_call_operand.vmem [shape: bf16[1152,128], index: 1, kind: input, shape index: {}]   ;;  %s1593_s2 = inlined_call_operand.vmem [shape: f32[1,128], index: 2, kind: input, shape index: {}]   ;;  %s1594_s3 = inlined_call_operand.vmem [shape: f32[1,128], index: 3, kind: input, shape index: {}]   ;;  %s1595_s4 = inlined_call_operand.vmem [shape: f32[128,128], index: 4, kind: input, shape index: {}]   ;;  %s1596_s5 = inlined_call_operand.vmem [shape: f32[128,128], index: 5, kind: output, shape index: {}]  }
   0x1   :  { %s1414_s20 = smov 0   ;;  %s1416_s21 = smov 0  }
   0x2   :  { %s1418_s22 = smov 0   ;;  %s1420_s23 = smov 0  }
   0x3   :  { %s1422_s24 = smov 0  }
   0x4 LB: > { %s27_s25 = sadd.s32 1, %s1369_s22  ;;  %s34_s26 = sadd.s32 1, %s1373_s23  ;;  %s1377_s24 = sphi %s1422_s24, %s15_s24   ;;  %s1373_s23 = sphi %s1420_s23, %s1602_s23   ;;  %s1369_s22 = sphi %s1418_s22, %s1601_s22   ;;  %s1365_s21 = sphi %s1416_s21, %s1600_s21   ;;  %s1361_s20 = sphi %s1414_s20, %s1599_s20   ;;  %s1357_s19 = sphi %s1412_s19, %s1598_s19   ;;  %s1353_s18 = sphi %s1410_s18, %s1597_s18  }
   0x5   : > { %p28_p0 = scmp.ge.s32.totalorder %s27_s25, 3  ;;  %p50_p1 = scmp.ne.s32.totalorder %s1357_s19, %s1353_s18 }
   0x6   : > { %p51_p2 = scmp.eq.s32.totalorder %s1377_s24, 0  ;;  %s43_s30 = sadd.s32 1, %s1357_s19 }
   0x7   : > { %s1604_s25 = smov (%p28_p0, %s27_s25), 0  ;;  %s1606_s26 = smov (!%p28_p0, %s34_s26), %s1373_s23 }
   0x8   : > { %p52_p3 = por %p51_p2, %p50_p1  ;;  %p36_p4 = scmp.ge.s32.totalorder %s1606_s26, 2 }
   0x9   : > { %s39_s27 = ssub.s32 %s1369_s22, %s1604_s25  ;;  %p1079_p6 = scmp.ge.s32.totalorder %s1377_s24, 6 }
   0xa   : > { %s1608_s26 = smov (%p36_p4, %s1606_s26), 0 }
   0xb   : > { %s38_s28 = ssub.s32 %s1373_s23, %s1608_s26  ;;  %224 = sbr.rel (%p1079_p6) target bundleno = 36 (0x24), region = 24 }
   0xc   : > { %s40_s29 = sor.u32 %s39_s27, %s38_s28 }
   0xd   : > { %p41_p5 = scmp.eq.s32.totalorder %s40_s29, 0 }
   0xf   : > { %s1461_s6 = scalar_select %p41_p5, %s1357_s19, %s43_s30  }
  0x12   : > { %227 = sbr.rel (!%p52_p3) target bundleno = 36 (0x24), region = 28  ;;  %s229_s7 = sand.u32 (%p52_p3), 1, %s1357_s19  }
  0x13   : > { %s233_s8 = smul.u32 (%p52_p3), 3, %s1369_s22 }
  0x14   : > { %s1223_s9 = smul.u32 (%p52_p3), 96, %s229_s7 }
  0x15   : > { %s1224_s10 = smul.u32 (%p52_p3), 72, %s1373_s23 }
  0x16   : > { %s231_s16 = scalar_lea.vmem (%p52_p3), [#allocation3], %s1223_s9 }
  0x17   : > { %s235_s11 = sadd.s32 (%p52_p3), %s1224_s10, %s233_s8 }
  0x18   : > { %s1082_s12 = sshll.u32 (%p52_p3), %s235_s11, 2 }
  0x19   : > { %s1470_s15 = scalar_lea.vmem %s1591_s0, %s1082_s12 }
  0x1a   : > { %v252_v0 = vld [vmem:[%s1470_s15] sm:$0xff]  ;;  %v256_v2 = vld [vmem:[%s1470_s15 + $0x48] sm:$0xff]  ;;  %v260_v4 = vld [vmem:[%s1470_s15 + $0x90] sm:$0xff] }
  0x1b   : > { %v254_v1 = vld [vmem:[%s1470_s15 + $0x24] sm:$0xff]  ;;  %253 = vst [vmem:[%s231_s16] sm:$0xff] %v252_v0  ;;  %257 = vst [vmem:[%s231_s16 + $0x18] sm:$0xff] %v256_v2  ;;  %v258_v3 = vld [vmem:[%s1470_s15 + $0x6c] sm:$0xff] }
  0x1c   : > { %255 = vst [vmem:[%s231_s16 + $0xc] sm:$0xff] %v254_v1  ;;  %v262_v5 = vld [vmem:[%s1470_s15 + $0xb4] sm:$0xff]  ;;  %259 = vst [vmem:[%s231_s16 + $0x24] sm:$0xff] %v258_v3  ;;  %v266_v7 = vld [vmem:[%s1470_s15 + $0xfc] sm:$0xff] }
  0x1d   : > { %261 = vst [vmem:[%s231_s16 + $0x30] sm:$0xff] %v260_v4  ;;  %263 = vst [vmem:[%s231_s16 + $0x3c] sm:$0xff] %v262_v5  ;;  %v264_v6 = vld [vmem:[%s1470_s15 + $0xd8] sm:$0xff]  ;;  %v1083_v8 = vld [vmem:[%s1470_s15 + $0x8] sm:$0xf] }
  0x1e   : > { %265 = vst [vmem:[%s231_s16 + $0x48] sm:$0xff] %v264_v6  ;;  %267 = vst [vmem:[%s231_s16 + $0x54] sm:$0xff] %v266_v7  ;;  %v1085_v9 = vld [vmem:[%s1470_s15 + $0x2c] sm:$0xf]  ;;  %v1087_v10 = vld [vmem:[%s1470_s15 + $0x50] sm:$0xf] }
  0x1f   : > { %1084 = vst [vmem:[%s231_s16 + $0x8] sm:$0xf] %v1083_v8  ;;  %v1089_v11 = vld [vmem:[%s1470_s15 + $0x74] sm:$0xf]  ;;  %1086 = vst [vmem:[%s231_s16 + $0x14] sm:$0xf] %v1085_v9 }
  0x20   : > { %1088 = vst [vmem:[%s231_s16 + $0x20] sm:$0xf] %v1087_v10  ;;  %1090 = vst [vmem:[%s231_s16 + $0x2c] sm:$0xf] %v1089_v11  ;;  %v1091_v12 = vld [vmem:[%s1470_s15 + $0x98] sm:$0xf] }
  0x21   : > { %v1093_v13 = vld [vmem:[%s1470_s15 + $0xbc] sm:$0xf]  ;;  %v1095_v14 = vld [vmem:[%s1470_s15 + $0xe0] sm:$0xf]  ;;  %1092 = vst [vmem:[%s231_s16 + $0x38] sm:$0xf] %v1091_v12 }
  0x22   : > { %1094 = vst [vmem:[%s231_s16 + $0x44] sm:$0xf] %v1093_v13  ;;  %1096 = vst [vmem:[%s231_s16 + $0x50] sm:$0xf] %v1095_v14  ;;  %v1097_v15 = vld [vmem:[%s1470_s15 + $0x104] sm:$0xf] }
  0x23   : > { %1098 = vst [vmem:[%s231_s16 + $0x5c] sm:$0xf] %v1097_v15 }
  0x24 PF: > { %p1099_p7 = scmp.ge.s32.totalorder %s1377_s24, 1  ;;  %p319_p8 = scmp.lt.s32.totalorder %s1377_s24, 7 }
  0x26   : > { %p320_p9 = pnand %p1099_p7, %p319_p8 }
  0x27   : > { %s326_s17 = sand.u32 (!%p320_p9), 1, %s1353_s18   ;;  %s380_s27 = smul.u32 (!%p320_p9), 48, %s1361_s20 }
  0x28   : > { %323 = sbr.rel (%p320_p9) target bundleno = 352 (0x160), region = 62  ;;  %s1101_s29 = sshll.u32 (!%p320_p9), %s1365_s21, 3 }
  0x29   : > { %s1225_s28 = smul.u32 (!%p320_p9), 96, %s326_s17  ;;  %p381_p10 = scmp.lt.s32.totalorder (!%p320_p9), %s380_s27, 143 }
  0x2a   : > { %p396_p11 = scmp.lt.s32.totalorder (!%p320_p9), %s1101_s29, 15  ;;  %p1105_p12 = scmp.ne.s32.totalorder (!%p320_p9), %s1361_s20, 0 }
  0x2b   : > { %s1508_s15 = scalar_lea.vmem (!%p320_p9), [#allocation3], %s1225_s28 }
  0x2f   : > { %s1610_s27 = smov (!%p381_p10, %s380_s27), 143  ;;  %s1612_s29 = smov (!%p396_p11, %s1101_s29), 15 }
  0x30   : > { %s1100_s30 = sshll.u32 %s1610_s27, 2  ;;  %s1102_s10 = sshll.u32 %s1612_s29, 3  ;;  %v1379_v16 = vmov (!%p1105_p12), 0.0  }
  0x31   : > { %s1496_s9 = scalar_lea.vmem %s1592_s1, %s1100_s30  ;;  %s1501_s13 = scalar_lea.vmem %s1595_s4, %s1102_s10  ;;  %418 = vst [vmem:[#allocation2] sm:$0xff] (!%p1105_p12), %v1379_v16  ;;  %419 = vst [vmem:[#allocation2 + $0x8] sm:$0xff] (!%p1105_p12), %v1379_v16 }
  0x32   : > { %s1506_s21 = scalar_lea.vmem %s1596_s5, %s1102_s10  ;;  %417 = sbr.rel (%p1105_p12) target bundleno = 57 (0x39), region = 70  ;;  %420 = vst [vmem:[#allocation2 + $0x10] sm:$0xff] (!%p1105_p12), %v1379_v16  ;;  %421 = vst [vmem:[#allocation2 + $0x18] sm:$0xff] (!%p1105_p12), %v1379_v16 }
  0x33   : > { %422 = vst [vmem:[#allocation2 + $0x20] sm:$0xff] (!%p1105_p12), %v1379_v16  ;;  %423 = vst [vmem:[#allocation2 + $0x28] sm:$0xff] (!%p1105_p12), %v1379_v16 }
  0x34   : > { %424 = vst [vmem:[#allocation2 + $0x30] sm:$0xff] (!%p1105_p12), %v1379_v16  ;;  %425 = vst [vmem:[#allocation2 + $0x38] sm:$0xff] (!%p1105_p12), %v1379_v16 }
  0x39 PF: > { %v1283_v17 = vld [vmem:[%s1496_s9 + $0x40] sm:$0xff]   ;;  %v1286_v20 = vld [vmem:[%s1496_s9 + $0x48] sm:$0xff]   ;;  %v1289_v23 = vld [vmem:[%s1496_s9 + $0x50] sm:$0xff]   ;;  %p1142_p13 = scmp.ne.s32.totalorder %s1361_s20, 2 }
  0x3a   : > { %v1284_v18 = vld [vmem:[%s1496_s9] sm:$0xff]   ;;  %1147 = vmatprep.subr.bf16.mxu0 %v1283_v17  ;;  %v1287_v21 = vld [vmem:[%s1496_s9 + $0x8] sm:$0xff]   ;;  %v1290_v24 = vld [vmem:[%s1496_s9 + $0x10] sm:$0xff]  }
  0x3b   : > { %v1285_v19 = vld [vmem:[%s1496_s9 + $0x80] sm:$0xff]   ;;  %1148 = vmatpush3.bf16.msra.mxu0 %v1284_v18  ;;  %v1288_v22 = vld [vmem:[%s1496_s9 + $0x88] sm:$0xff]   ;;  %v1291_v25 = vld [vmem:[%s1496_s9 + $0x90] sm:$0xff]  }
  0x3c   : > { %1199 = vmatprep.subr.bf16.mxu1 %v1285_v19  ;;  %1149 = vmatprep.subr.bf16.mxu0 %v1286_v20  ;;  %v1292_v26 = vld [vmem:[%s1496_s9 + $0x58] sm:$0xff]   ;;  %v1295_v29 = vld [vmem:[%s1496_s9 + $0x60] sm:$0xff]   ;;  %v1298_v32 = vld [vmem:[%s1496_s9 + $0x68] sm:$0xff]  }
  0x3d   : > { %1200 = vmatpush3.bf16.msra.mxu1 %v1285_v19  ;;  %v1293_v27 = vld [vmem:[%s1496_s9 + $0x18] sm:$0xff]   ;;  %v1297_v30 = vld [vmem:[%s1496_s9 + $0xa0] sm:$0xff]   ;;  %v1300_v33 = vld [vmem:[%s1496_s9 + $0xa8] sm:$0xff]  }
  0x3e   : > { %1201 = vmatprep.subr.bf16.mxu1 %v1288_v22  ;;  %v1294_v28 = vld [vmem:[%s1496_s9 + $0x98] sm:$0xff]   ;;  %v1296_v31 = vld [vmem:[%s1496_s9 + $0x20] sm:$0xff]   ;;  %v1299_v34 = vld [vmem:[%s1496_s9 + $0x28] sm:$0xff]  }
  0x3f   : > { %1150 = vmatpush3.bf16.msra.mxu0 %v1287_v21  ;;  %v1301_v35 = vld [vmem:[%s1496_s9 + $0x70] sm:$0xff]   ;;  %v1304_v38 = vld [vmem:[%s1496_s9 + $0x78] sm:$0xff]   ;;  %v1307_v43 = vld [vmem:[%s1508_s15] ss:$12 sps:$4 sm:$0xff]  }
  0x40   : > { %1151 = vmatprep.subr.bf16.mxu0 %v1289_v23  ;;  %v1302_v36 = vld [vmem:[%s1496_s9 + $0x30] sm:$0xff]   ;;  %v1306_v39 = vld [vmem:[%s1496_s9 + $0xb8] sm:$0xff]   ;;  %v1311_v45 = vld [vmem:[%s1508_s15 + $0x20] ss:$12 sps:$4 sm:$0xff]  }
  0x41   : > { %1202 = vmatpush3.bf16.msra.mxu1 %v1288_v22  ;;  %v1303_v37 = vld [vmem:[%s1496_s9 + $0xb0] sm:$0xff]   ;;  %v1305_v42 = vld [vmem:[%s1496_s9 + $0x38] sm:$0xff]   ;;  %v426_v59 = vld [vmem:[#allocation2] sm:$0xff] }
  0x42   : > { %1203 = vmatprep.subr.bf16.mxu1 %v1291_v25  ;;  %v1309_v40 = vld [vmem:[%s1508_s15 + $0x4] ss:$12 sps:$4 sm:$0xff]   ;;  %v1310_v41 = vld [vmem:[%s1508_s15 + $0x8] ss:$12 sps:$4 sm:$0xff]   ;;  %v1320_v51 = vld [vmem:[%s1508_s15 + $0x4c] ss:$12 sps:$4 sm:$0xff]  }
  0x43   : > { %1152 = vmatpush3.bf16.msra.mxu0 %v1290_v24  ;;  %738 = vmatprep.mubr.bf16.mxu0 %v1309_v40  ;;  %v1312_v44 = vld [vmem:[%s1508_s15 + $0x1c] ss:$12 sps:$4 sm:$0xff]   ;;  %v1318_v46 = vld [vmem:[%s1508_s15 + $0x38] ss:$12 sps:$4 sm:$0xff]   ;;  %v1315_v48 = vld [vmem:[%s1508_s15 + $0x34] ss:$12 sps:$4 sm:$0xff]  }
  0x44   : > { %1153 = vmatprep.subr.bf16.mxu0 %v1292_v26  ;;  %1215 = vmatprep.mubr.bf16.mxu1 %v1310_v41  ;;  %v1314_v47 = vld [vmem:[%s1508_s15 + $0x18] ss:$12 sps:$4 sm:$0xff]   ;;  %v1319_v49 = vld [vmem:[%s1508_s15 + $0x50] ss:$12 sps:$4 sm:$0xff]   ;;  %v1322_v52 = vld [vmem:[%s1508_s15 + $0x48] ss:$12 sps:$4 sm:$0xff]  }
  0x45   : > { %1204 = vmatpush3.bf16.msra.mxu1 %v1291_v25  ;;  %v1317_v50 = vld [vmem:[%s1508_s15 + $0x30] ss:$12 sps:$4 sm:$0xff]   ;;  %v427_v0 = vld [vmem:[#allocation2 + $0x8] sm:$0xff]  ;;  %v430_v26 = vld [vmem:[#allocation2 + $0x20] sm:$0xff] }
  0x46   : > { %1205 = vmatprep.subr.bf16.mxu1 %v1294_v28  ;;  %v428_v10 = vld [vmem:[#allocation2 + $0x10] sm:$0xff]  ;;  %v429_v16 = vld [vmem:[#allocation2 + $0x18] sm:$0xff] }
  0x47   : > { %1154 = vmatpush3.bf16.msra.mxu0 %v1293_v27  ;;  %v433_v41 = vld [vmem:[#allocation2 + $0x38] sm:$0xff] }
  0x48   : > { %1155 = vmatprep.subr.bf16.mxu0 %v1295_v29  ;;  %v431_v29 = vld [vmem:[#allocation2 + $0x28] sm:$0xff] }
  0x49   : > { %1206 = vmatpush3.bf16.msra.mxu1 %v1294_v28 }
  0x4a   : > { %1207 = vmatprep.subr.bf16.mxu1 %v1297_v30 }
  0x4b   : > { %1156 = vmatpush3.bf16.msra.mxu0 %v1296_v31 }
  0x4c   : > { %1157 = vmatprep.subr.bf16.mxu0 %v1298_v32 }
  0x4d   : > { %1208 = vmatpush3.bf16.msra.mxu1 %v1297_v30 }
  0x4e   : > { %1209 = vmatprep.subr.bf16.mxu1 %v1300_v33 }
  0x4f   : > { %1158 = vmatpush3.bf16.msra.mxu0 %v1299_v34 }
  0x50   : > { %1159 = vmatprep.subr.bf16.mxu0 %v1301_v35 }
  0x51   : > { %1210 = vmatpush3.bf16.msra.mxu1 %v1300_v33 }
  0x52   : > { %1211 = vmatprep.subr.bf16.mxu1 %v1303_v37 }
  0x53   : > { %1160 = vmatpush3.bf16.msra.mxu0 %v1302_v36 }
  0x54   : > { %1161 = vmatprep.subr.bf16.mxu0 %v1304_v38 }
  0x55   : > { %1212 = vmatpush3.bf16.msra.mxu1 %v1303_v37  ;;  %v432_v37 = vld [vmem:[#allocation2 + $0x30] sm:$0xff] }
  0x56   : > { %1213 = vmatprep.subr.bf16.mxu1 %v1306_v39 }
  0x57   : > { %1162 = vmatpush3.bf16.msra.mxu0 %v1305_v42 }
  0x59   : > { %1214 = vmatpush3.bf16.msra.mxu1 %v1306_v39 }
  0x5a   : > { %739 = vmatmul.mubr.bf16.vlgmr.msra.gmra.mrb[0].mxu0 %v1307_v43 }
  0x5b   : > { %746 = vmatprep.mubr.bf16.mxu0 %v1312_v44 }
  0x5c   : > { %1216 = vmatmul.mubr.bf16.vlgmr.msra.gmra.mrb[0].mxu1 %v1311_v45 }
  0x5d   : > { %1219 = vmatprep.mubr.bf16.mxu1 %v1318_v46  ;;  %v1143_v46 = vld [vmem:[%s1593_s2] ss:$0 sm:$0xff] (!%p1142_p13) }
  0x62   : > { %747 = vmatmul.mubr.bf16.gmra.mrb[4].mxu0 %v1314_v47  ;;  %v1144_v47 = vld [vmem:[%s1594_s3] ss:$0 sm:$0xff] (!%p1142_p13) }
  0x63   : > { %754 = vmatprep.mubr.bf16.mxu0 %v1315_v48 }
  0x64   : > { %1220 = vmatmul.mubr.bf16.gmra.mrb[4].mxu1 %v1319_v49 }
  0x6a   : > { %755 = vmatmul.mubr.bf16.gmra.mrb[8].mxu0 %v1317_v50  ;;  %v894_v50 = vld [vmem:[%s1501_s13] sm:$0xff] (!%p1142_p13) }
  0x6b   : > { %762 = vmatprep.mubr.bf16.mxu0 %v1320_v51 }
  0x72   : > { %763 = vmatmul.mubr.bf16.gmra.mrb[12].mxu0 %v1322_v52 }
 0x12d   : > { %v1163_v53 = vpop.f32.mrb[0].mxu0 }
 0x12e   : > { %v1164_v54 = vpop.f32.mrb[1].mxu0 }
 0x12f   : > { %v1165_v55 = vadd.f32 %v1164_v54, %v1163_v53  ;;  %v1166_v56 = vpop.f32.mrb[2].mxu0  ;;  %v1217_v57 = vpop.f32.mrb[0].mxu1 }
 0x130   : > { %v1167_v58 = vpop.f32.mrb[3].mxu0  ;;  %v805_v60 = vpop.f32.mrb[1].mxu1 }
 0x131   : > { %v1168_v61 = vadd.f32 %v1167_v58, %v1166_v56  ;;  %v806_v62 = vadd.f32 %v1165_v55, %v805_v60  ;;  %v1218_v63 = vpop.f32.mrb[2].mxu1  ;;  %v895_v55 = vld [vmem:[%s1501_s13 + $0x8] sm:$0xff] (!%p1142_p13) }
 0x132   : > { %v808_v1 = vpop.f32.mrb[3].mxu1 }
 0x133   : > { %v836_v2 = vadd.f32 %v806_v62, %v426_v59  ;;  %v809_v3 = vadd.f32 %v1168_v61, %v808_v1  ;;  %v897_v61 = vld [vmem:[%s1501_s13 + $0x18] sm:$0xff] (!%p1142_p13) }
 0x135   : > { %844 = vst [vmem:[#allocation2] sm:$0xff] %v836_v2  ;;  %v837_v4 = vadd.f32 %v809_v3, %v427_v0  ;;  %v1169_v5 = vpop.f32.mrb[4].mxu0 }
 0x136   : > { %v1170_v6 = vpop.f32.mrb[5].mxu0 }
 0x137   : > { %845 = vst [vmem:[#allocation2 + $0x8] sm:$0xff] %v837_v4  ;;  %v1171_v7 = vadd.f32 %v1170_v6, %v1169_v5  ;;  %v1172_v8 = vpop.f32.mrb[6].mxu0  ;;  %v1221_v9 = vpop.f32.mrb[4].mxu1  ;;  %v898_v4 = vld [vmem:[%s1501_s13 + $0x20] sm:$0xff] (!%p1142_p13) }
 0x138   : > { %v1173_v11 = vpop.f32.mrb[7].mxu0  ;;  %v821_v12 = vpop.f32.mrb[5].mxu1 }
 0x139   : > { %v814_v13 = vadd.f32 %v1217_v57, %v1171_v7  ;;  %v1174_v14 = vadd.f32 %v1173_v11, %v1172_v8  ;;  %v1222_v15 = vpop.f32.mrb[6].mxu1  ;;  %v896_v57 = vld [vmem:[%s1501_s13 + $0x10] sm:$0xff] (!%p1142_p13) }
 0x13a   : > { %v824_v17 = vpop.f32.mrb[7].mxu1 }
 0x13b   : > { %v838_v18 = vadd.f32 %v814_v13, %v428_v10  ;;  %v817_v19 = vadd.f32 %v1218_v63, %v1174_v14 }
 0x13c   : > { %v856_v45 = vld [vmem:[#allocation2] sm:$0xff] (!%p1142_p13) }
 0x13d   : > { %846 = vst [vmem:[#allocation2 + $0x10] sm:$0xff] %v838_v18  ;;  %v839_v20 = vadd.f32 %v817_v19, %v429_v16  ;;  %v1175_v21 = vpop.f32.mrb[8].mxu0  ;;  %v871_v48 = vmul.f32 (!%p1142_p13), %v1143_v46, %v856_v45  ;;  %v900_v16 = vld [vmem:[%s1501_s13 + $0x30] sm:$0xff] (!%p1142_p13) }
 0x13e   : > { %v1176_v22 = vpop.f32.mrb[9].mxu0  ;;  %v857_v49 = vld [vmem:[#allocation2 + $0x8] sm:$0xff] (!%p1142_p13) }
 0x13f   : > { %847 = vst [vmem:[#allocation2 + $0x18] sm:$0xff] %v839_v20  ;;  %v1177_v23 = vadd.f32 %v1176_v22, %v1175_v21  ;;  %v1178_v24 = vpop.f32.mrb[10].mxu0  ;;  %v872_v51 = vmul.f32 (!%p1142_p13), %v1143_v46, %v857_v49  ;;  %v886_v54 = vadd.f32 (!%p1142_p13), %v1144_v47, %v871_v48 }
 0x140   : > { %v1179_v25 = vpop.f32.mrb[11].mxu0 }
 0x141   : > { %v1180_v27 = vadd.f32 %v1179_v25, %v1178_v24  ;;  %v822_v28 = vadd.f32 %v1177_v23, %v821_v12  ;;  %v887_v60 = vadd.f32 (!%p1142_p13), %v1144_v47, %v872_v51  ;;  %v902_v1 = vadd.f32 (!%p1142_p13), %v894_v50, %v886_v54 }
 0x143   : > { %v840_v30 = vadd.f32 %v822_v28, %v430_v26  ;;  %v825_v31 = vadd.f32 %v1180_v27, %v824_v17  ;;  %v903_v7 = vadd.f32 (!%p1142_p13), %v895_v55, %v887_v60  ;;  %v910_v12 = vmax.f32 (!%p1142_p13), %v902_v1, 0.0  ;;  %v901_v17 = vld [vmem:[%s1501_s13 + $0x38] sm:$0xff] (!%p1142_p13) }
 0x144   : > { %v858_v52 = vld [vmem:[#allocation2 + $0x10] sm:$0xff] (!%p1142_p13) }
 0x145   : > { %848 = vst [vmem:[#allocation2 + $0x20] sm:$0xff] %v840_v30  ;;  %v841_v32 = vadd.f32 %v825_v31, %v431_v29  ;;  %v1181_v33 = vpop.f32.mrb[12].mxu0  ;;  %v873_v56 = vmul.f32 (!%p1142_p13), %v1143_v46, %v858_v52  ;;  %v911_v18 = vmax.f32 (!%p1142_p13), %v903_v7, 0.0  ;;  %918 = vst [vmem:[%s1506_s21] sm:$0xff] (!%p1142_p13), %v910_v12 }
 0x146   : > { %v1182_v34 = vpop.f32.mrb[13].mxu0  ;;  %v859_v53 = vld [vmem:[#allocation2 + $0x18] sm:$0xff] (!%p1142_p13) }
 0x147   : > { %849 = vst [vmem:[#allocation2 + $0x28] sm:$0xff] %v841_v32  ;;  %v1183_v35 = vadd.f32 %v1182_v34, %v1181_v33  ;;  %v1184_v36 = vpop.f32.mrb[14].mxu0  ;;  %v874_v58 = vmul.f32 (!%p1142_p13), %v1143_v46, %v859_v53  ;;  %v888_v2 = vadd.f32 (!%p1142_p13), %v1144_v47, %v873_v56  ;;  %919 = vst [vmem:[%s1506_s21 + $0x8] sm:$0xff] (!%p1142_p13), %v911_v18 }
 0x148   : > { %v1185_v38 = vpop.f32.mrb[15].mxu0 }
 0x149   : > { %v830_v39 = vadd.f32 %v1221_v9, %v1183_v35  ;;  %v1186_v40 = vadd.f32 %v1185_v38, %v1184_v36  ;;  %855 = sbr.rel (%p1142_p13) target bundleno = 352 (0x160), region = 74  ;;  %v889_v3 = vadd.f32 (!%p1142_p13), %v1144_v47, %v874_v58  ;;  %v899_v9 = vld [vmem:[%s1501_s13 + $0x28] sm:$0xff] (!%p1142_p13)  ;;  %v904_v13 = vadd.f32 (!%p1142_p13), %v896_v57, %v888_v2 }
 0x14b   : > { %v842_v42 = vadd.f32 %v830_v39, %v432_v37  ;;  %v833_v43 = vadd.f32 %v1222_v15, %v1186_v40  ;;  %v905_v14 = vadd.f32 (!%p1142_p13), %v897_v61, %v889_v3  ;;  %v912_v22 = vmax.f32 (!%p1142_p13), %v904_v13, 0.0 }
 0x14c   : > { %v860_v59 = vld [vmem:[#allocation2 + $0x20] sm:$0xff] (!%p1142_p13) }
 0x14d   : > { %850 = vst [vmem:[#allocation2 + $0x30] sm:$0xff] %v842_v42  ;;  %v843_v44 = vadd.f32 %v833_v43, %v433_v41  ;;  %v875_v62 = vmul.f32 (!%p1142_p13), %v1143_v46, %v860_v59  ;;  %v913_v23 = vmax.f32 (!%p1142_p13), %v905_v14, 0.0  ;;  %920 = vst [vmem:[%s1506_s21 + $0x10] sm:$0xff] (!%p1142_p13), %v912_v22 }
 0x14e   : > { %v861_v63 = vld [vmem:[#allocation2 + $0x28] sm:$0xff] (!%p1142_p13) }
 0x14f   : > { %851 = vst [vmem:[#allocation2 + $0x38] sm:$0xff] %v843_v44  ;;  %v876_v5 = vmul.f32 (!%p1142_p13), %v1143_v46, %v861_v63  ;;  %v890_v8 = vadd.f32 (!%p1142_p13), %v1144_v47, %v875_v62  ;;  %921 = vst [vmem:[%s1506_s21 + $0x18] sm:$0xff] (!%p1142_p13), %v913_v23 }
 0x151   : > { %v891_v15 = vadd.f32 %v1144_v47, %v876_v5  ;;  %v906_v19 = vadd.f32 %v898_v4, %v890_v8 }
 0x153   : > { %v907_v24 = vadd.f32 %v899_v9, %v891_v15  ;;  %v914_v25 = vmax.f32 %v906_v19, 0.0 }
 0x154   : > { %v862_v0 = vld [vmem:[#allocation2 + $0x30] sm:$0xff] }
 0x155   : > { %v877_v10 = vmul.f32 %v1143_v46, %v862_v0  ;;  %v915_v28 = vmax.f32 %v907_v24, 0.0  ;;  %922 = vst [vmem:[%s1506_s21 + $0x20] sm:$0xff] %v914_v25 }
 0x156   : > { %v863_v6 = vld [vmem:[#allocation2 + $0x38] sm:$0xff] }
 0x157   : > { %v878_v11 = vmul.f32 %v1143_v46, %v863_v6  ;;  %v892_v20 = vadd.f32 %v1144_v47, %v877_v10  ;;  %923 = vst [vmem:[%s1506_s21 + $0x28] sm:$0xff] %v915_v28 }
 0x159   : > { %v893_v21 = vadd.f32 %v1144_v47, %v878_v11  ;;  %v908_v26 = vadd.f32 %v900_v16, %v892_v20 }
 0x15b   : > { %v909_v27 = vadd.f32 %v901_v17, %v893_v21  ;;  %v916_v29 = vmax.f32 %v908_v26, 0.0 }
 0x15d   : > { %v917_v30 = vmax.f32 %v909_v27, 0.0  ;;  %924 = vst [vmem:[%s1506_s21 + $0x30] sm:$0xff] %v916_v29 }
 0x15f   : > { %925 = vst [vmem:[%s1506_s21 + $0x38] sm:$0xff] %v917_v30 }
 0x160 PF: > { %s15_s24 = sadd.s32 1, %s1377_s24   ;;  %s1597_s18 = smov %s1357_s19 }
 0x161   : > { %p12_p0 = scmp.ge.s32.totalorder %s15_s24, 8   ;;  %s1598_s19 = smov %s1461_s6 }
 0x162   : > { %s1599_s20 = smov %s1369_s22  ;;  %s1600_s21 = smov %s1373_s23 }
 0x163   : > { %s1601_s22 = smov %s1604_s25  ;;  %s1602_s23 = smov %s1608_s26 }
 0x164   :  { %14 = sbr.rel (!%p12_p0) target bundleno = 4 (0x4), region = 127 }

// kernel: _lambda_.30
= control target key start
LH: loop header
LB: loop body
LE: loop exit
PB: predicated region body
PF: predicated region fallthrough
CT: control target
= control target key end

     0   :  { %s1312_s15 = smov 0   ;;  %s1314_s16 = smov 0   ;;  %s1480_s0 = inlined_call_operand.vmem [shape: bf16[128,1152], index: 0, kind: input, shape index: {}]   ;;  %s1481_s1 = inlined_call_operand.vmem [shape: bf16[1152,128], index: 1, kind: input, shape index: {}]   ;;  %s1482_s2 = inlined_call_operand.vmem [shape: f32[1,128], index: 2, kind: input, shape index: {}]   ;;  %s1483_s3 = inlined_call_operand.vmem [shape: f32[1,128], index: 3, kind: input, shape index: {}]   ;;  %s1484_s4 = inlined_call_operand.vmem [shape: f32[128,128], index: 4, kind: output, shape index: {}]  }
   0x1   :  { %s1316_s17 = smov 0   ;;  %s1318_s18 = smov 0  }
   0x2   :  { %s1320_s19 = smov 0   ;;  %s1322_s20 = smov 0  }
   0x3   :  { %s1324_s21 = smov 0  }
   0x4 LB: > { %s26_s22 = sadd.s32 1, %s1276_s19  ;;  %s33_s23 = sadd.s32 1, %s1280_s20  ;;  %s1284_s21 = sphi %s1324_s21, %s14_s21   ;;  %s1280_s20 = sphi %s1322_s20, %s1490_s20   ;;  %s1276_s19 = sphi %s1320_s19, %s1489_s19   ;;  %s1272_s18 = sphi %s1318_s18, %s1488_s18   ;;  %s1268_s17 = sphi %s1316_s17, %s1487_s17   ;;  %s1264_s16 = sphi %s1314_s16, %s1486_s16   ;;  %s1260_s15 = sphi %s1312_s15, %s1485_s15  }
   0x5   : > { %p27_p0 = scmp.ge.s32.totalorder %s26_s22, 3  ;;  %p49_p1 = scmp.ne.s32.totalorder %s1264_s16, %s1260_s15 }
   0x6   : > { %p50_p2 = scmp.eq.s32.totalorder %s1284_s21, 0  ;;  %s42_s27 = sadd.s32 1, %s1264_s16 }
   0x7   : > { %s1492_s22 = smov (%p27_p0, %s26_s22), 0  ;;  %s1494_s23 = smov (!%p27_p0, %s33_s23), %s1280_s20 }
   0x8   : > { %p51_p3 = por %p50_p2, %p49_p1  ;;  %p35_p4 = scmp.ge.s32.totalorder %s1494_s23, 2 }
   0x9   : > { %s38_s24 = ssub.s32 %s1276_s19, %s1492_s22  ;;  %p988_p6 = scmp.ge.s32.totalorder %s1284_s21, 6 }
   0xa   : > { %s1496_s23 = smov (%p35_p4, %s1494_s23), 0 }
   0xb   : > { %s37_s25 = ssub.s32 %s1280_s20, %s1496_s23  ;;  %195 = sbr.rel (%p988_p6) target bundleno = 36 (0x24), region = 24 }
   0xc   : > { %s39_s26 = sor.u32 %s38_s24, %s37_s25 }
   0xd   : > { %p40_p5 = scmp.eq.s32.totalorder %s39_s26, 0 }
   0xf   : > { %s1363_s28 = scalar_select %p40_p5, %s1264_s16, %s42_s27  }
  0x12   : > { %198 = sbr.rel (!%p51_p3) target bundleno = 36 (0x24), region = 28  ;;  %s200_s29 = sand.u32 (%p51_p3), 1, %s1264_s16  }
  0x13   : > { %s204_s30 = smul.u32 (%p51_p3), 3, %s1276_s19 }
  0x14   : > { %s1130_s5 = smul.u32 (%p51_p3), 96, %s200_s29 }
  0x15   : > { %s1131_s6 = smul.u32 (%p51_p3), 72, %s1280_s20 }
  0x16   : > { %s202_s12 = scalar_lea.vmem (%p51_p3), [#allocation3], %s1130_s5 }
  0x17   : > { %s206_s7 = sadd.s32 (%p51_p3), %s1131_s6, %s204_s30 }
  0x18   : > { %s991_s8 = sshll.u32 (%p51_p3), %s206_s7, 2 }
  0x19   : > { %s1372_s11 = scalar_lea.vmem %s1480_s0, %s991_s8 }
  0x1a   : > { %v223_v0 = vld [vmem:[%s1372_s11] sm:$0xff]  ;;  %v227_v2 = vld [vmem:[%s1372_s11 + $0x48] sm:$0xff]  ;;  %v231_v4 = vld [vmem:[%s1372_s11 + $0x90] sm:$0xff] }
  0x1b   : > { %v225_v1 = vld [vmem:[%s1372_s11 + $0x24] sm:$0xff]  ;;  %224 = vst [vmem:[%s202_s12] sm:$0xff] %v223_v0  ;;  %228 = vst [vmem:[%s202_s12 + $0x18] sm:$0xff] %v227_v2  ;;  %v229_v3 = vld [vmem:[%s1372_s11 + $0x6c] sm:$0xff] }
  0x1c   : > { %226 = vst [vmem:[%s202_s12 + $0xc] sm:$0xff] %v225_v1  ;;  %v233_v5 = vld [vmem:[%s1372_s11 + $0xb4] sm:$0xff]  ;;  %230 = vst [vmem:[%s202_s12 + $0x24] sm:$0xff] %v229_v3  ;;  %v237_v7 = vld [vmem:[%s1372_s11 + $0xfc] sm:$0xff] }
  0x1d   : > { %232 = vst [vmem:[%s202_s12 + $0x30] sm:$0xff] %v231_v4  ;;  %234 = vst [vmem:[%s202_s12 + $0x3c] sm:$0xff] %v233_v5  ;;  %v235_v6 = vld [vmem:[%s1372_s11 + $0xd8] sm:$0xff]  ;;  %v992_v8 = vld [vmem:[%s1372_s11 + $0x8] sm:$0xf] }
  0x1e   : > { %236 = vst [vmem:[%s202_s12 + $0x48] sm:$0xff] %v235_v6  ;;  %238 = vst [vmem:[%s202_s12 + $0x54] sm:$0xff] %v237_v7  ;;  %v994_v9 = vld [vmem:[%s1372_s11 + $0x2c] sm:$0xf]  ;;  %v996_v10 = vld [vmem:[%s1372_s11 + $0x50] sm:$0xf] }
  0x1f   : > { %993 = vst [vmem:[%s202_s12 + $0x8] sm:$0xf] %v992_v8  ;;  %v998_v11 = vld [vmem:[%s1372_s11 + $0x74] sm:$0xf]  ;;  %995 = vst [vmem:[%s202_s12 + $0x14] sm:$0xf] %v994_v9 }
  0x20   : > { %997 = vst [vmem:[%s202_s12 + $0x20] sm:$0xf] %v996_v10  ;;  %999 = vst [vmem:[%s202_s12 + $0x2c] sm:$0xf] %v998_v11  ;;  %v1000_v12 = vld [vmem:[%s1372_s11 + $0x98] sm:$0xf] }
  0x21   : > { %v1002_v13 = vld [vmem:[%s1372_s11 + $0xbc] sm:$0xf]  ;;  %v1004_v14 = vld [vmem:[%s1372_s11 + $0xe0] sm:$0xf]  ;;  %1001 = vst [vmem:[%s202_s12 + $0x38] sm:$0xf] %v1000_v12 }
  0x22   : > { %1003 = vst [vmem:[%s202_s12 + $0x44] sm:$0xf] %v1002_v13  ;;  %1005 = vst [vmem:[%s202_s12 + $0x50] sm:$0xf] %v1004_v14  ;;  %v1006_v15 = vld [vmem:[%s1372_s11 + $0x104] sm:$0xf] }
  0x23   : > { %1007 = vst [vmem:[%s202_s12 + $0x5c] sm:$0xf] %v1006_v15 }
  0x24 PF: > { %p1008_p7 = scmp.ge.s32.totalorder %s1284_s21, 1  ;;  %p278_p8 = scmp.lt.s32.totalorder %s1284_s21, 7 }
  0x26   : > { %p279_p9 = pnand %p1008_p7, %p278_p8 }
  0x27   : > { %s285_s13 = sand.u32 (!%p279_p9), 1, %s1260_s15   ;;  %s329_s14 = smul.u32 (!%p279_p9), 48, %s1268_s17 }
  0x28   : > { %282 = sbr.rel (%p279_p9) target bundleno = 350 (0x15e), region = 58  ;;  %s1010_s25 = sshll.u32 (!%p279_p9), %s1272_s18, 3 }
  0x29   : > { %s1132_s24 = smul.u32 (!%p279_p9), 96, %s285_s13  ;;  %p330_p10 = scmp.lt.s32.totalorder (!%p279_p9), %s329_s14, 143 }
  0x2a   : > { %p345_p11 = scmp.lt.s32.totalorder (!%p279_p9), %s1010_s25, 15  ;;  %p1012_p12 = scmp.ne.s32.totalorder (!%p279_p9), %s1268_s17, 0 }
  0x2b   : > { %s1405_s15 = scalar_lea.vmem (!%p279_p9), [#allocation3], %s1132_s24 }
  0x2f   : > { %s1498_s14 = smov (!%p330_p10, %s329_s14), 143  ;;  %s1500_s25 = smov (!%p345_p11, %s1010_s25), 15 }
  0x30   : > { %s1009_s26 = sshll.u32 %s1498_s14, 2  ;;  %s1011_s5 = sshll.u32 %s1500_s25, 3  ;;  %v1286_v16 = vmov (!%p1012_p12), 0.0  }
  0x31   : > { %s1398_s30 = scalar_lea.vmem %s1481_s1, %s1009_s26  ;;  %s1403_s8 = scalar_lea.vmem %s1484_s4, %s1011_s5  ;;  %358 = vst [vmem:[#allocation2] sm:$0xff] (!%p1012_p12), %v1286_v16  ;;  %359 = vst [vmem:[#allocation2 + $0x8] sm:$0xff] (!%p1012_p12), %v1286_v16 }
  0x32   : > { %357 = sbr.rel (%p1012_p12) target bundleno = 57 (0x39), region = 66  ;;  %360 = vst [vmem:[#allocation2 + $0x10] sm:$0xff] (!%p1012_p12), %v1286_v16  ;;  %361 = vst [vmem:[#allocation2 + $0x18] sm:$0xff] (!%p1012_p12), %v1286_v16 }
  0x33   : > { %362 = vst [vmem:[#allocation2 + $0x20] sm:$0xff] (!%p1012_p12), %v1286_v16  ;;  %363 = vst [vmem:[#allocation2 + $0x28] sm:$0xff] (!%p1012_p12), %v1286_v16 }
  0x34   : > { %364 = vst [vmem:[#allocation2 + $0x30] sm:$0xff] (!%p1012_p12), %v1286_v16  ;;  %365 = vst [vmem:[#allocation2 + $0x38] sm:$0xff] (!%p1012_p12), %v1286_v16 }
  0x39 PF: > { %v1190_v17 = vld [vmem:[%s1398_s30 + $0x40] sm:$0xff]   ;;  %v1193_v20 = vld [vmem:[%s1398_s30 + $0x48] sm:$0xff]   ;;  %v1196_v23 = vld [vmem:[%s1398_s30 + $0x50] sm:$0xff]   ;;  %p1049_p13 = scmp.ne.s32.totalorder %s1268_s17, 2 }
  0x3a   : > { %v1191_v18 = vld [vmem:[%s1398_s30] sm:$0xff]   ;;  %1054 = vmatprep.subr.bf16.mxu0 %v1190_v17  ;;  %v1194_v21 = vld [vmem:[%s1398_s30 + $0x8] sm:$0xff]   ;;  %v1197_v24 = vld [vmem:[%s1398_s30 + $0x10] sm:$0xff]  }
  0x3b   : > { %v1192_v19 = vld [vmem:[%s1398_s30 + $0x80] sm:$0xff]   ;;  %1055 = vmatpush3.bf16.msra.mxu0 %v1191_v18  ;;  %v1195_v22 = vld [vmem:[%s1398_s30 + $0x88] sm:$0xff]   ;;  %v1198_v25 = vld [vmem:[%s1398_s30 + $0x90] sm:$0xff]  }
  0x3c   : > { %1106 = vmatprep.subr.bf16.mxu1 %v1192_v19  ;;  %1056 = vmatprep.subr.bf16.mxu0 %v1193_v20  ;;  %v1199_v26 = vld [vmem:[%s1398_s30 + $0x58] sm:$0xff]   ;;  %v1202_v29 = vld [vmem:[%s1398_s30 + $0x60] sm:$0xff]   ;;  %v1205_v32 = vld [vmem:[%s1398_s30 + $0x68] sm:$0xff]  }
  0x3d   : > { %1107 = vmatpush3.bf16.msra.mxu1 %v1192_v19  ;;  %v1200_v27 = vld [vmem:[%s1398_s30 + $0x18] sm:$0xff]   ;;  %v1204_v30 = vld [vmem:[%s1398_s30 + $0xa0] sm:$0xff]   ;;  %v1207_v33 = vld [vmem:[%s1398_s30 + $0xa8] sm:$0xff]  }
  0x3e   : > { %1108 = vmatprep.subr.bf16.mxu1 %v1195_v22  ;;  %v1201_v28 = vld [vmem:[%s1398_s30 + $0x98] sm:$0xff]   ;;  %v1203_v31 = vld [vmem:[%s1398_s30 + $0x20] sm:$0xff]   ;;  %v1206_v34 = vld [vmem:[%s1398_s30 + $0x28] sm:$0xff]  }
  0x3f   : > { %1057 = vmatpush3.bf16.msra.mxu0 %v1194_v21  ;;  %v1208_v35 = vld [vmem:[%s1398_s30 + $0x70] sm:$0xff]   ;;  %v1211_v38 = vld [vmem:[%s1398_s30 + $0x78] sm:$0xff]   ;;  %v1214_v43 = vld [vmem:[%s1405_s15] ss:$12 sps:$4 sm:$0xff]  }
  0x40   : > { %1058 = vmatprep.subr.bf16.mxu0 %v1196_v23  ;;  %v1209_v36 = vld [vmem:[%s1398_s30 + $0x30] sm:$0xff]   ;;  %v1213_v39 = vld [vmem:[%s1398_s30 + $0xb8] sm:$0xff]   ;;  %v1218_v45 = vld [vmem:[%s1405_s15 + $0x20] ss:$12 sps:$4 sm:$0xff]  }
  0x41   : > { %1109 = vmatpush3.bf16.msra.mxu1 %v1195_v22  ;;  %v1210_v37 = vld [vmem:[%s1398_s30 + $0xb0] sm:$0xff]   ;;  %v1212_v42 = vld [vmem:[%s1398_s30 + $0x38] sm:$0xff]   ;;  %v366_v59 = vld [vmem:[#allocation2] sm:$0xff] }
  0x42   : > { %1110 = vmatprep.subr.bf16.mxu1 %v1198_v25  ;;  %v1216_v40 = vld [vmem:[%s1405_s15 + $0x4] ss:$12 sps:$4 sm:$0xff]   ;;  %v1217_v41 = vld [vmem:[%s1405_s15 + $0x8] ss:$12 sps:$4 sm:$0xff]   ;;  %v1227_v51 = vld [vmem:[%s1405_s15 + $0x4c] ss:$12 sps:$4 sm:$0xff]  }
  0x43   : > { %1059 = vmatpush3.bf16.msra.mxu0 %v1197_v24  ;;  %678 = vmatprep.mubr.bf16.mxu0 %v1216_v40  ;;  %v1219_v44 = vld [vmem:[%s1405_s15 + $0x1c] ss:$12 sps:$4 sm:$0xff]   ;;  %v1225_v46 = vld [vmem:[%s1405_s15 + $0x38] ss:$12 sps:$4 sm:$0xff]   ;;  %v1222_v48 = vld [vmem:[%s1405_s15 + $0x34] ss:$12 sps:$4 sm:$0xff]  }
  0x44   : > { %1060 = vmatprep.subr.bf16.mxu0 %v1199_v26  ;;  %1122 = vmatprep.mubr.bf16.mxu1 %v1217_v41  ;;  %v1221_v47 = vld [vmem:[%s1405_s15 + $0x18] ss:$12 sps:$4 sm:$0xff]   ;;  %v1226_v49 = vld [vmem:[%s1405_s15 + $0x50] ss:$12 sps:$4 sm:$0xff]   ;;  %v1229_v52 = vld [vmem:[%s1405_s15 + $0x48] ss:$12 sps:$4 sm:$0xff]  }
  0x45   : > { %1111 = vmatpush3.bf16.msra.mxu1 %v1198_v25  ;;  %v1224_v50 = vld [vmem:[%s1405_s15 + $0x30] ss:$12 sps:$4 sm:$0xff]   ;;  %v367_v0 = vld [vmem:[#allocation2 + $0x8] sm:$0xff]  ;;  %v370_v26 = vld [vmem:[#allocation2 + $0x20] sm:$0xff] }
  0x46   : > { %1112 = vmatprep.subr.bf16.mxu1 %v1201_v28  ;;  %v368_v10 = vld [vmem:[#allocation2 + $0x10] sm:$0xff]  ;;  %v369_v16 = vld [vmem:[#allocation2 + $0x18] sm:$0xff] }
  0x47   : > { %1061 = vmatpush3.bf16.msra.mxu0 %v1200_v27  ;;  %v373_v41 = vld [vmem:[#allocation2 + $0x38] sm:$0xff] }
  0x48   : > { %1062 = vmatprep.subr.bf16.mxu0 %v1202_v29  ;;  %v371_v29 = vld [vmem:[#allocation2 + $0x28] sm:$0xff] }
  0x49   : > { %1113 = vmatpush3.bf16.msra.mxu1 %v1201_v28 }
  0x4a   : > { %1114 = vmatprep.subr.bf16.mxu1 %v1204_v30 }
  0x4b   : > { %1063 = vmatpush3.bf16.msra.mxu0 %v1203_v31 }
  0x4c   : > { %1064 = vmatprep.subr.bf16.mxu0 %v1205_v32 }
  0x4d   : > { %1115 = vmatpush3.bf16.msra.mxu1 %v1204_v30 }
  0x4e   : > { %1116 = vmatprep.subr.bf16.mxu1 %v1207_v33 }
  0x4f   : > { %1065 = vmatpush3.bf16.msra.mxu0 %v1206_v34 }
  0x50   : > { %1066 = vmatprep.subr.bf16.mxu0 %v1208_v35 }
  0x51   : > { %1117 = vmatpush3.bf16.msra.mxu1 %v1207_v33 }
  0x52   : > { %1118 = vmatprep.subr.bf16.mxu1 %v1210_v37 }
  0x53   : > { %1067 = vmatpush3.bf16.msra.mxu0 %v1209_v36 }
  0x54   : > { %1068 = vmatprep.subr.bf16.mxu0 %v1211_v38 }
  0x55   : > { %1119 = vmatpush3.bf16.msra.mxu1 %v1210_v37  ;;  %v372_v37 = vld [vmem:[#allocation2 + $0x30] sm:$0xff] }
  0x56   : > { %1120 = vmatprep.subr.bf16.mxu1 %v1213_v39 }
  0x57   : > { %1069 = vmatpush3.bf16.msra.mxu0 %v1212_v42 }
  0x59   : > { %1121 = vmatpush3.bf16.msra.mxu1 %v1213_v39 }
  0x5a   : > { %679 = vmatmul.mubr.bf16.vlgmr.msra.gmra.mrb[0].mxu0 %v1214_v43 }
  0x5b   : > { %686 = vmatprep.mubr.bf16.mxu0 %v1219_v44 }
  0x5c   : > { %1123 = vmatmul.mubr.bf16.vlgmr.msra.gmra.mrb[0].mxu1 %v1218_v45 }
  0x5d   : > { %1126 = vmatprep.mubr.bf16.mxu1 %v1225_v46  ;;  %v1050_v46 = vld [vmem:[%s1482_s2] ss:$0 sm:$0xff] (!%p1049_p13) }
  0x62   : > { %687 = vmatmul.mubr.bf16.gmra.mrb[4].mxu0 %v1221_v47  ;;  %v1051_v47 = vld [vmem:[%s1483_s3] ss:$0 sm:$0xff] (!%p1049_p13) }
  0x63   : > { %694 = vmatprep.mubr.bf16.mxu0 %v1222_v48 }
  0x64   : > { %1127 = vmatmul.mubr.bf16.gmra.mrb[4].mxu1 %v1226_v49 }
  0x6a   : > { %695 = vmatmul.mubr.bf16.gmra.mrb[8].mxu0 %v1224_v50 }
  0x6b   : > { %702 = vmatprep.mubr.bf16.mxu0 %v1227_v51 }
  0x72   : > { %703 = vmatmul.mubr.bf16.gmra.mrb[12].mxu0 %v1229_v52 }
 0x12d   : > { %v1070_v53 = vpop.f32.mrb[0].mxu0 }
 0x12e   : > { %v1071_v54 = vpop.f32.mrb[1].mxu0 }
 0x12f   : > { %v1072_v55 = vadd.f32 %v1071_v54, %v1070_v53  ;;  %v1073_v56 = vpop.f32.mrb[2].mxu0  ;;  %v1124_v57 = vpop.f32.mrb[0].mxu1 }
 0x130   : > { %v1074_v58 = vpop.f32.mrb[3].mxu0  ;;  %v745_v60 = vpop.f32.mrb[1].mxu1 }
 0x131   : > { %v1075_v61 = vadd.f32 %v1074_v58, %v1073_v56  ;;  %v746_v62 = vadd.f32 %v1072_v55, %v745_v60  ;;  %v1125_v63 = vpop.f32.mrb[2].mxu1 }
 0x132   : > { %v748_v1 = vpop.f32.mrb[3].mxu1 }
 0x133   : > { %v776_v2 = vadd.f32 %v746_v62, %v366_v59  ;;  %v749_v3 = vadd.f32 %v1075_v61, %v748_v1 }
 0x135   : > { %784 = vst [vmem:[#allocation2] sm:$0xff] %v776_v2  ;;  %v777_v4 = vadd.f32 %v749_v3, %v367_v0  ;;  %v1076_v5 = vpop.f32.mrb[4].mxu0 }
 0x136   : > { %v1077_v6 = vpop.f32.mrb[5].mxu0 }
 0x137   : > { %785 = vst [vmem:[#allocation2 + $0x8] sm:$0xff] %v777_v4  ;;  %v1078_v7 = vadd.f32 %v1077_v6, %v1076_v5  ;;  %v1079_v8 = vpop.f32.mrb[6].mxu0  ;;  %v1128_v9 = vpop.f32.mrb[4].mxu1 }
 0x138   : > { %v1080_v11 = vpop.f32.mrb[7].mxu0  ;;  %v761_v12 = vpop.f32.mrb[5].mxu1 }
 0x139   : > { %v754_v13 = vadd.f32 %v1124_v57, %v1078_v7  ;;  %v1081_v14 = vadd.f32 %v1080_v11, %v1079_v8  ;;  %v1129_v15 = vpop.f32.mrb[6].mxu1 }
 0x13a   : > { %v764_v17 = vpop.f32.mrb[7].mxu1 }
 0x13b   : > { %v778_v18 = vadd.f32 %v754_v13, %v368_v10  ;;  %v757_v19 = vadd.f32 %v1125_v63, %v1081_v14 }
 0x13c   : > { %v796_v45 = vld [vmem:[#allocation2] sm:$0xff] (!%p1049_p13) }
 0x13d   : > { %786 = vst [vmem:[#allocation2 + $0x10] sm:$0xff] %v778_v18  ;;  %v779_v20 = vadd.f32 %v757_v19, %v369_v16  ;;  %v1082_v21 = vpop.f32.mrb[8].mxu0  ;;  %v811_v48 = vmul.f32 (!%p1049_p13), %v1050_v46, %v796_v45 }
 0x13e   : > { %v1083_v22 = vpop.f32.mrb[9].mxu0  ;;  %v797_v49 = vld [vmem:[#allocation2 + $0x8] sm:$0xff] (!%p1049_p13) }
 0x13f   : > { %787 = vst [vmem:[#allocation2 + $0x18] sm:$0xff] %v779_v20  ;;  %v1084_v23 = vadd.f32 %v1083_v22, %v1082_v21  ;;  %v1085_v24 = vpop.f32.mrb[10].mxu0  ;;  %v812_v52 = vmul.f32 (!%p1049_p13), %v1050_v46, %v797_v49  ;;  %v826_v58 = vadd.f32 (!%p1049_p13), %v1051_v47, %v811_v48 }
 0x140   : > { %v1086_v25 = vpop.f32.mrb[11].mxu0 }
 0x141   : > { %v1087_v27 = vadd.f32 %v1086_v25, %v1085_v24  ;;  %v762_v28 = vadd.f32 %v1084_v23, %v761_v12  ;;  %v827_v63 = vadd.f32 (!%p1049_p13), %v1051_v47, %v812_v52  ;;  %v834_v3 = vmax.f32 (!%p1049_p13), %v826_v58, 0.0 }
 0x143   : > { %v780_v30 = vadd.f32 %v762_v28, %v370_v26  ;;  %v765_v31 = vadd.f32 %v1087_v27, %v764_v17  ;;  %v835_v7 = vmax.f32 (!%p1049_p13), %v827_v63, 0.0  ;;  %842 = vst [vmem:[%s1403_s8] sm:$0xff] (!%p1049_p13), %v834_v3 }
 0x144   : > { %v798_v50 = vld [vmem:[#allocation2 + $0x10] sm:$0xff] (!%p1049_p13) }
 0x145   : > { %788 = vst [vmem:[#allocation2 + $0x20] sm:$0xff] %v780_v30  ;;  %v781_v32 = vadd.f32 %v765_v31, %v371_v29  ;;  %v1088_v33 = vpop.f32.mrb[12].mxu0  ;;  %v813_v53 = vmul.f32 (!%p1049_p13), %v1050_v46, %v798_v50  ;;  %843 = vst [vmem:[%s1403_s8 + $0x8] sm:$0xff] (!%p1049_p13), %v835_v7 }
 0x146   : > { %v1089_v34 = vpop.f32.mrb[13].mxu0  ;;  %v799_v51 = vld [vmem:[#allocation2 + $0x18] sm:$0xff] (!%p1049_p13) }
 0x147   : > { %789 = vst [vmem:[#allocation2 + $0x28] sm:$0xff] %v781_v32  ;;  %v1090_v35 = vadd.f32 %v1089_v34, %v1088_v33  ;;  %v1091_v36 = vpop.f32.mrb[14].mxu0  ;;  %v814_v54 = vmul.f32 (!%p1049_p13), %v1050_v46, %v799_v51  ;;  %v828_v0 = vadd.f32 (!%p1049_p13), %v1051_v47, %v813_v53 }
 0x148   : > { %v1092_v38 = vpop.f32.mrb[15].mxu0 }
 0x149   : > { %v770_v39 = vadd.f32 %v1128_v9, %v1090_v35  ;;  %v1093_v40 = vadd.f32 %v1092_v38, %v1091_v36  ;;  %795 = sbr.rel (%p1049_p13) target bundleno = 350 (0x15e), region = 70  ;;  %v829_v1 = vadd.f32 (!%p1049_p13), %v1051_v47, %v814_v54  ;;  %v836_v8 = vmax.f32 (!%p1049_p13), %v828_v0, 0.0 }
 0x14b   : > { %v782_v42 = vadd.f32 %v770_v39, %v372_v37  ;;  %v773_v43 = vadd.f32 %v1129_v15, %v1093_v40  ;;  %v837_v9 = vmax.f32 (!%p1049_p13), %v829_v1, 0.0  ;;  %844 = vst [vmem:[%s1403_s8 + $0x10] sm:$0xff] (!%p1049_p13), %v836_v8 }
 0x14c   : > { %v800_v55 = vld [vmem:[#allocation2 + $0x20] sm:$0xff] (!%p1049_p13) }
 0x14d   : > { %790 = vst [vmem:[#allocation2 + $0x30] sm:$0xff] %v782_v42  ;;  %v783_v44 = vadd.f32 %v773_v43, %v373_v41  ;;  %v815_v59 = vmul.f32 (!%p1049_p13), %v1050_v46, %v800_v55  ;;  %845 = vst [vmem:[%s1403_s8 + $0x18] sm:$0xff] (!%p1049_p13), %v837_v9 }
 0x14e   : > { %v801_v56 = vld [vmem:[#allocation2 + $0x28] sm:$0xff] (!%p1049_p13) }
 0x14f   : > { %791 = vst [vmem:[#allocation2 + $0x38] sm:$0xff] %v783_v44  ;;  %v816_v60 = vmul.f32 (!%p1049_p13), %v1050_v46, %v801_v56  ;;  %v830_v4 = vadd.f32 (!%p1049_p13), %v1051_v47, %v815_v59 }
 0x151   : > { %v831_v5 = vadd.f32 %v1051_v47, %v816_v60  ;;  %v838_v11 = vmax.f32 %v830_v4, 0.0 }
 0x153   : > { %v839_v12 = vmax.f32 %v831_v5, 0.0  ;;  %846 = vst [vmem:[%s1403_s8 + $0x20] sm:$0xff] %v838_v11 }
 0x154   : > { %v802_v57 = vld [vmem:[#allocation2 + $0x30] sm:$0xff] }
 0x155   : > { %v817_v61 = vmul.f32 %v1050_v46, %v802_v57  ;;  %847 = vst [vmem:[%s1403_s8 + $0x28] sm:$0xff] %v839_v12 }
 0x156   : > { %v803_v62 = vld [vmem:[#allocation2 + $0x38] sm:$0xff] }
 0x157   : > { %v818_v2 = vmul.f32 %v1050_v46, %v803_v62  ;;  %v832_v6 = vadd.f32 %v1051_v47, %v817_v61 }
 0x159   : > { %v833_v10 = vadd.f32 %v1051_v47, %v818_v2  ;;  %v840_v13 = vmax.f32 %v832_v6, 0.0 }
 0x15b   : > { %v841_v14 = vmax.f32 %v833_v10, 0.0  ;;  %848 = vst [vmem:[%s1403_s8 + $0x30] sm:$0xff] %v840_v13 }
 0x15d   : > { %849 = vst [vmem:[%s1403_s8 + $0x38] sm:$0xff] %v841_v14 }
 0x15e PF: > { %s14_s21 = sadd.s32 1, %s1284_s21   ;;  %s1485_s15 = smov %s1264_s16 }
 0x15f   : > { %p11_p0 = scmp.ge.s32.totalorder %s14_s21, 8   ;;  %s1486_s16 = smov %s1363_s28 }
 0x160   : > { %s1487_s17 = smov %s1276_s19  ;;  %s1488_s18 = smov %s1280_s20 }
 0x161   : > { %s1489_s19 = smov %s1492_s22  ;;  %s1490_s20 = smov %s1496_s23 }
 0x162   :  { %13 = sbr.rel (!%p11_p0) target bundleno = 4 (0x4), region = 120 }

// kernel: _lambda_.32
= control target key start
LH: loop header
LB: loop body
LE: loop exit
PB: predicated region body
PF: predicated region fallthrough
CT: control target
= control target key end

     0   :  { %s1790_s0 = inlined_call_operand.vmem [shape: bf16[32,1152], index: 0, kind: input, shape index: {}]   ;;  %s1791_s1 = inlined_call_operand.vmem [shape: bf16[1152,256], index: 1, kind: input, shape index: {}]   ;;  %s1792_s2 = inlined_call_operand.vmem [shape: f32[1,256], index: 2, kind: input, shape index: {}]   ;;  %s1793_s3 = inlined_call_operand.vmem [shape: f32[1,256], index: 3, kind: input, shape index: {}]   ;;  %s1794_s4 = inlined_call_operand.vmem [shape: f32[32,256], index: 4, kind: output, shape index: {}]  }
   0x1   :  { %1798 = sst [smem:[#allocation9_spill]] %s1790_s0 }
   0x2   :  { %1799 = sst [smem:[#allocation10_spill]] %s1791_s1 }
   0x3   :  { %s1464_s15 = smov 0   ;;  %s1466_s16 = smov 0  }
   0x4   :  { %s1468_s17 = smov 0   ;;  %s1470_s18 = smov 0  }
   0x5   :  { %s1472_s19 = smov 0   ;;  %s1474_s20 = smov 0  }
   0x6   :  { %s1476_s21 = smov 0   ;;  %s1478_s22 = smov 0  }
   0x7   :  { %s1480_s23 = smov 0   ;;  %s1482_s24 = smov 0  }
   0x8   :  { %s1484_s25 = smov 0  }
   0x9 LB: > { %1800 = sst [smem:[#allocation6_spill]] %s1432_s24  ;;  %s1110_s26 = sadd.s32 4294967295, %s1436_s25   ;;  %s1436_s25 = sphi %s1484_s25, %s14_s25   ;;  %s1432_s24 = sphi %s1482_s24, %s1810_s24   ;;  %s1428_s23 = sphi %s1480_s23, %s1818_s23   ;;  %s1424_s22 = sphi %s1478_s22, %s1808_s22   ;;  %s1420_s21 = sphi %s1476_s21, %s1817_s21   ;;  %s1416_s20 = sphi %s1474_s20, %s1816_s20   ;;  %s1412_s19 = sphi %s1472_s19, %s1815_s19   ;;  %s1408_s18 = sphi %s1470_s18, %s1814_s18   ;;  %s1404_s17 = sphi %s1468_s17, %s1813_s17   ;;  %s1400_s16 = sphi %s1466_s16, %s1812_s16   ;;  %s1396_s15 = sphi %s1464_s15, %s1811_s15  }
   0xa   : > { %s26_s27 = sadd.s32 1, %s1428_s23  ;;  %s29_s28 = sadd.s32 1, %s1432_s24 }
   0xb   : > { %p27_p0 = scmp.ge.s32.totalorder %s26_s27, 3  ;;  %s42_s29 = sadd.s32 1, %s1416_s20 }
   0xc   : > { %p49_p1 = scmp.ne.s32.totalorder %s1416_s20, %s1412_s19  ;;  %p50_p2 = scmp.eq.s32.totalorder %s1436_s25, 0 }
   0xd   : > { %s1820_s27 = smov (%p27_p0, %s26_s27), 0  ;;  %s1822_s28 = smov (!%p27_p0, %s29_s28), %s1432_s24 }
   0xe   : > { %1801 = sst [smem:[#allocation7_spill]] %s1820_s27  ;;  %s38_s30 = ssub.s32 %s1428_s23, %s1820_s27 }
   0xf   : > { %p31_p3 = scmp.ge.s32.totalorder %s1822_s28, 2  ;;  %p40_p4 = scmp.eq.s32.totalorder %s38_s30, 0 }
  0x10   : > { %p1531_p5 = por %p50_p2, %p49_p1  ;;  %s70_s6 = sadd.s32 1, %s1408_s18 }
  0x11   : > { %s1824_s28 = smov (%p31_p3, %s1822_s28), 0  ;;  %p77_p6 = scmp.ne.s32.totalorder %s1408_s18, %s1404_s17 }
  0x12   : > { %1803 = sst [smem:[#allocation8_spill]] %s1824_s28  ;;  %s66_s8 = ssub.s32 %s1432_s24, %s1824_s28 }
  0x13   : > { %s1539_s7 = scalar_select %p40_p4, %s1416_s20, %s42_s29  }
  0x14   : > { %s67_s9 = sor.u32 %s66_s8, %s38_s30  ;;  %p148_p7 = scmp.eq.s32.totalorder %s66_s8, 0 }
  0x15   : > { %p68_p8 = scmp.eq.s32.totalorder %s67_s9, 0  ;;  %p1545_p9 = por %p77_p6, %p50_p2 }
  0x16   : > { %s150_s11 = sadd.s32 1, %s1400_s16  ;;  %p160_p10 = scmp.ne.s32.totalorder %s1400_s16, %s1396_s15 }
  0x17   : > { %s1553_s12 = scalar_select %p68_p8, %s1408_s18, %s70_s6  }
  0x18   : > { %s1556_s13 = scalar_select %p148_p7, %s1400_s16, %s150_s11  }
  0x19   : > { %p161_p11 = scmp.eq.s32.totalorder %s1110_s26, 5  ;;  %p1113_p13 = scmp.ge.s32.totalorder %s1436_s25, 6 }
  0x1b   : > { %p1558_p12 = por %p161_p11, %p160_p10  ;;  %183 = sbr.rel (%p1113_p13) target bundleno = 88 (0x58), region = 16 }
  0x22   : > { %186 = sbr.rel (!%p1531_p5) target bundleno = 47 (0x2f), region = 20  ;;  %s188_s29 = sand.u32 (%p1531_p5), 1, %s1416_s20  }
  0x23   : > { %s1165_s30 = smul.u32 (%p1531_p5), 12, %s1428_s23  ;;  %s1806_s0 = sld [smem:[#allocation9_spill]] (%p1531_p5) }
  0x24   : > { %s1225_s8 = smul.u32 (%p1531_p5), 48, %s188_s29 }
  0x26   : > { %s190_s26 = scalar_lea.vmem (%p1531_p5), [#allocation3], %s1225_s8 }
  0x29   : > { %s196_s11 = scalar_lea.vmem %s1806_s0, %s1165_s30 }
  0x2a   : > { %v211_v0 = vld [vmem:[%s196_s11] sm:$0xff]  ;;  %v215_v2 = vld [vmem:[%s196_s11 + $0x48] sm:$0xff]  ;;  %v1119_v6 = vld [vmem:[%s196_s11 + $0x50] sm:$0xf] }
  0x2b   : > { %v213_v1 = vld [vmem:[%s196_s11 + $0x24] sm:$0xff]  ;;  %212 = vst [vmem:[%s190_s26] sm:$0xff] %v211_v0  ;;  %216 = vst [vmem:[%s190_s26 + $0x18] sm:$0xff] %v215_v2  ;;  %v217_v3 = vld [vmem:[%s196_s11 + $0x6c] sm:$0xff] }
  0x2c   : > { %214 = vst [vmem:[%s190_s26 + $0xc] sm:$0xff] %v213_v1  ;;  %v1115_v4 = vld [vmem:[%s196_s11 + $0x8] sm:$0xf]  ;;  %v1117_v5 = vld [vmem:[%s196_s11 + $0x2c] sm:$0xf]  ;;  %218 = vst [vmem:[%s190_s26 + $0x24] sm:$0xff] %v217_v3 }
  0x2d   : > { %1116 = vst [vmem:[%s190_s26 + $0x8] sm:$0xf] %v1115_v4  ;;  %1118 = vst [vmem:[%s190_s26 + $0x14] sm:$0xf] %v1117_v5  ;;  %v1121_v7 = vld [vmem:[%s196_s11 + $0x74] sm:$0xf] }
  0x2e   : > { %1120 = vst [vmem:[%s190_s26 + $0x20] sm:$0xf] %v1119_v6  ;;  %1122 = vst [vmem:[%s190_s26 + $0x2c] sm:$0xf] %v1121_v7 }
  0x2f PF: > { %239 = sbr.rel (!%p1545_p9) target bundleno = 88 (0x58), region = 46  ;;  %s241_s5 = sand.u32 (%p1545_p9), 1, %s1408_s18  }
  0x30   : > { %s1166_s29 = smul.u32 (%p1545_p9), 96, %s1428_s23  ;;  %s1807_s1 = sld [smem:[#allocation10_spill]] (%p1545_p9) }
  0x31   : > { %s1226_s30 = smul.u32 (%p1545_p9), 192, %s241_s5 }
  0x32   : > { %s246_s8 = sadd.s32 (%p1545_p9), %s1432_s24, %s1166_s29 }
  0x33   : > { %s1124_s6 = sshll.u32 (%p1545_p9), %s246_s8, 2  ;;  %s1583_s10 = scalar_lea.vmem (%p1545_p9), [#allocation4], %s1226_s30 }
  0x36   : > { %s1578_s28 = scalar_lea.vmem %s1807_s1, %s1124_s6 }
  0x37   : > { %v264_v8 = vld [vmem:[%s1578_s28] sm:$0xf]  ;;  %v266_v9 = vld [vmem:[%s1578_s28 + $0x8] sm:$0xf]  ;;  %v268_v10 = vld [vmem:[%s1578_s28 + $0x10] sm:$0xf] }
  0x38   : > { %265 = vst [vmem:[%s1583_s10] sm:$0xf] %v264_v8  ;;  %267 = vst [vmem:[%s1583_s10 + $0x4] sm:$0xf] %v266_v9  ;;  %v270_v11 = vld [vmem:[%s1578_s28 + $0x18] sm:$0xf] }
  0x39   : > { %269 = vst [vmem:[%s1583_s10 + $0x8] sm:$0xf] %v268_v10  ;;  %v272_v12 = vld [vmem:[%s1578_s28 + $0x20] sm:$0xf]  ;;  %v274_v13 = vld [vmem:[%s1578_s28 + $0x28] sm:$0xf] }
  0x3a   : > { %271 = vst [vmem:[%s1583_s10 + $0xc] sm:$0xf] %v270_v11  ;;  %273 = vst [vmem:[%s1583_s10 + $0x10] sm:$0xf] %v272_v12  ;;  %v276_v14 = vld [vmem:[%s1578_s28 + $0x30] sm:$0xf] }
  0x3b   : > { %275 = vst [vmem:[%s1583_s10 + $0x14] sm:$0xf] %v274_v13  ;;  %v278_v15 = vld [vmem:[%s1578_s28 + $0x38] sm:$0xf]  ;;  %v280_v16 = vld [vmem:[%s1578_s28 + $0x40] sm:$0xf] }
  0x3c   : > { %277 = vst [vmem:[%s1583_s10 + $0x18] sm:$0xf] %v276_v14  ;;  %279 = vst [vmem:[%s1583_s10 + $0x1c] sm:$0xf] %v278_v15  ;;  %v282_v17 = vld [vmem:[%s1578_s28 + $0x48] sm:$0xf] }
  0x3d   : > { %281 = vst [vmem:[%s1583_s10 + $0x20] sm:$0xf] %v280_v16  ;;  %v284_v18 = vld [vmem:[%s1578_s28 + $0x50] sm:$0xf]  ;;  %v286_v19 = vld [vmem:[%s1578_s28 + $0x58] sm:$0xf] }
  0x3e   : > { %283 = vst [vmem:[%s1583_s10 + $0x24] sm:$0xf] %v282_v17  ;;  %285 = vst [vmem:[%s1583_s10 + $0x28] sm:$0xf] %v284_v18  ;;  %v288_v20 = vld [vmem:[%s1578_s28 + $0x60] sm:$0xf] }
  0x3f   : > { %287 = vst [vmem:[%s1583_s10 + $0x2c] sm:$0xf] %v286_v19  ;;  %v290_v21 = vld [vmem:[%s1578_s28 + $0x68] sm:$0xf]  ;;  %v292_v22 = vld [vmem:[%s1578_s28 + $0x70] sm:$0xf] }
  0x40   : > { %289 = vst [vmem:[%s1583_s10 + $0x30] sm:$0xf] %v288_v20  ;;  %291 = vst [vmem:[%s1583_s10 + $0x34] sm:$0xf] %v290_v21  ;;  %v294_v23 = vld [vmem:[%s1578_s28 + $0x78] sm:$0xf] }
  0x41   : > { %293 = vst [vmem:[%s1583_s10 + $0x38] sm:$0xf] %v292_v22  ;;  %v296_v24 = vld [vmem:[%s1578_s28 + $0x80] sm:$0xf]  ;;  %v298_v25 = vld [vmem:[%s1578_s28 + $0x88] sm:$0xf] }
  0x42   : > { %295 = vst [vmem:[%s1583_s10 + $0x3c] sm:$0xf] %v294_v23  ;;  %297 = vst [vmem:[%s1583_s10 + $0x40] sm:$0xf] %v296_v24  ;;  %v300_v26 = vld [vmem:[%s1578_s28 + $0x90] sm:$0xf] }
  0x43   : > { %299 = vst [vmem:[%s1583_s10 + $0x44] sm:$0xf] %v298_v25  ;;  %v302_v27 = vld [vmem:[%s1578_s28 + $0x98] sm:$0xf]  ;;  %v304_v28 = vld [vmem:[%s1578_s28 + $0xa0] sm:$0xf] }
  0x44   : > { %301 = vst [vmem:[%s1583_s10 + $0x48] sm:$0xf] %v300_v26  ;;  %303 = vst [vmem:[%s1583_s10 + $0x4c] sm:$0xf] %v302_v27  ;;  %v306_v29 = vld [vmem:[%s1578_s28 + $0xa8] sm:$0xf] }
  0x45   : > { %305 = vst [vmem:[%s1583_s10 + $0x50] sm:$0xf] %v304_v28  ;;  %v308_v30 = vld [vmem:[%s1578_s28 + $0xb0] sm:$0xf]  ;;  %v310_v31 = vld [vmem:[%s1578_s28 + $0xb8] sm:$0xf] }
  0x46   : > { %307 = vst [vmem:[%s1583_s10 + $0x54] sm:$0xf] %v306_v29  ;;  %309 = vst [vmem:[%s1583_s10 + $0x58] sm:$0xf] %v308_v30  ;;  %v312_v32 = vld [vmem:[%s1578_s28 + $0xc0] sm:$0xf] }
  0x47   : > { %311 = vst [vmem:[%s1583_s10 + $0x5c] sm:$0xf] %v310_v31  ;;  %v314_v33 = vld [vmem:[%s1578_s28 + $0xc8] sm:$0xf]  ;;  %v316_v34 = vld [vmem:[%s1578_s28 + $0xd0] sm:$0xf] }
  0x48   : > { %313 = vst [vmem:[%s1583_s10 + $0x60] sm:$0xf] %v312_v32  ;;  %315 = vst [vmem:[%s1583_s10 + $0x64] sm:$0xf] %v314_v33  ;;  %v318_v35 = vld [vmem:[%s1578_s28 + $0xd8] sm:$0xf] }
  0x49   : > { %317 = vst [vmem:[%s1583_s10 + $0x68] sm:$0xf] %v316_v34  ;;  %v320_v36 = vld [vmem:[%s1578_s28 + $0xe0] sm:$0xf]  ;;  %v322_v37 = vld [vmem:[%s1578_s28 + $0xe8] sm:$0xf] }
  0x4a   : > { %319 = vst [vmem:[%s1583_s10 + $0x6c] sm:$0xf] %v318_v35  ;;  %321 = vst [vmem:[%s1583_s10 + $0x70] sm:$0xf] %v320_v36  ;;  %v324_v38 = vld [vmem:[%s1578_s28 + $0xf0] sm:$0xf] }
  0x4b   : > { %323 = vst [vmem:[%s1583_s10 + $0x74] sm:$0xf] %v322_v37  ;;  %v326_v39 = vld [vmem:[%s1578_s28 + $0xf8] sm:$0xf]  ;;  %v328_v40 = vld [vmem:[%s1578_s28 + $0x100] sm:$0xf] }
  0x4c   : > { %325 = vst [vmem:[%s1583_s10 + $0x78] sm:$0xf] %v324_v38  ;;  %327 = vst [vmem:[%s1583_s10 + $0x7c] sm:$0xf] %v326_v39  ;;  %v330_v41 = vld [vmem:[%s1578_s28 + $0x108] sm:$0xf] }
  0x4d   : > { %329 = vst [vmem:[%s1583_s10 + $0x80] sm:$0xf] %v328_v40  ;;  %v332_v42 = vld [vmem:[%s1578_s28 + $0x110] sm:$0xf]  ;;  %v334_v43 = vld [vmem:[%s1578_s28 + $0x118] sm:$0xf] }
  0x4e   : > { %331 = vst [vmem:[%s1583_s10 + $0x84] sm:$0xf] %v330_v41  ;;  %333 = vst [vmem:[%s1583_s10 + $0x88] sm:$0xf] %v332_v42  ;;  %v336_v44 = vld [vmem:[%s1578_s28 + $0x120] sm:$0xf] }
  0x4f   : > { %335 = vst [vmem:[%s1583_s10 + $0x8c] sm:$0xf] %v334_v43  ;;  %v338_v45 = vld [vmem:[%s1578_s28 + $0x128] sm:$0xf]  ;;  %v340_v46 = vld [vmem:[%s1578_s28 + $0x130] sm:$0xf] }
  0x50   : > { %337 = vst [vmem:[%s1583_s10 + $0x90] sm:$0xf] %v336_v44  ;;  %339 = vst [vmem:[%s1583_s10 + $0x94] sm:$0xf] %v338_v45  ;;  %v342_v47 = vld [vmem:[%s1578_s28 + $0x138] sm:$0xf] }
  0x51   : > { %341 = vst [vmem:[%s1583_s10 + $0x98] sm:$0xf] %v340_v46  ;;  %v344_v48 = vld [vmem:[%s1578_s28 + $0x140] sm:$0xf]  ;;  %v346_v49 = vld [vmem:[%s1578_s28 + $0x148] sm:$0xf] }
  0x52   : > { %343 = vst [vmem:[%s1583_s10 + $0x9c] sm:$0xf] %v342_v47  ;;  %345 = vst [vmem:[%s1583_s10 + $0xa0] sm:$0xf] %v344_v48  ;;  %v348_v50 = vld [vmem:[%s1578_s28 + $0x150] sm:$0xf] }
  0x53   : > { %347 = vst [vmem:[%s1583_s10 + $0xa4] sm:$0xf] %v346_v49  ;;  %v350_v51 = vld [vmem:[%s1578_s28 + $0x158] sm:$0xf]  ;;  %v352_v52 = vld [vmem:[%s1578_s28 + $0x160] sm:$0xf] }
  0x54   : > { %349 = vst [vmem:[%s1583_s10 + $0xa8] sm:$0xf] %v348_v50  ;;  %351 = vst [vmem:[%s1583_s10 + $0xac] sm:$0xf] %v350_v51  ;;  %v354_v53 = vld [vmem:[%s1578_s28 + $0x168] sm:$0xf] }
  0x55   : > { %353 = vst [vmem:[%s1583_s10 + $0xb0] sm:$0xf] %v352_v52  ;;  %v356_v54 = vld [vmem:[%s1578_s28 + $0x170] sm:$0xf]  ;;  %v358_v55 = vld [vmem:[%s1578_s28 + $0x178] sm:$0xf] }
  0x56   : > { %355 = vst [vmem:[%s1583_s10 + $0xb4] sm:$0xf] %v354_v53  ;;  %357 = vst [vmem:[%s1583_s10 + $0xb8] sm:$0xf] %v356_v54 }
  0x57   : > { %359 = vst [vmem:[%s1583_s10 + $0xbc] sm:$0xf] %v358_v55 }
  0x58 PF: > { %p1125_p0 = scmp.ge.s32.totalorder %s1436_s25, 1  ;;  %p489_p1 = scmp.lt.s32.totalorder %s1436_s25, 7 }
  0x5a   : > { %p490_p2 = pnand %p1125_p0, %p489_p1 }
  0x5b   : > { %s496_s0 = sand.u32 (!%p490_p2), 1, %s1412_s19   ;;  %s503_s11 = sand.u32 (!%p490_p2), 1, %s1404_s17  }
  0x5c   : > { %493 = sbr.rel (%p490_p2) target bundleno = 392 (0x188), region = 95  ;;  %s534_s28 = sand.u32 (!%p490_p2), 1, %s1396_s15  }
  0x5d   : > { %s1227_s26 = smul.u32 (!%p490_p2), 48, %s496_s0  ;;  %s1126_s29 = sshll.u32 (!%p490_p2), %s534_s28, 5 }
  0x5e   : > { %s1228_s5 = smul.u32 (!%p490_p2), 192, %s503_s11  ;;  %p540_p3 = scmp.lt.s32.totalorder (!%p490_p2), %s1424_s22, 1 }
  0x5f   : > { %s1695_s24 = scalar_lea.vmem (!%p490_p2), [#allocation3], %s1227_s26  ;;  %s1699_s15 = scalar_lea.vmem (!%p490_p2), [#allocation5], %s1126_s29 }
  0x60   : > { %s1697_s17 = scalar_lea.vmem (!%p490_p2), [#allocation4], %s1228_s5  ;;  %p1127_p4 = scmp.ne.s32.totalorder (!%p490_p2), %s1420_s21, 0 }
  0x63   : > { %s1685_s30 = scalar_select %p540_p3, %s1424_s22, 1 }
  0x64   : > { %551 = sbr.rel (%p1127_p4) target bundleno = 107 (0x6b), region = 107  ;;  %v1438_v56 = vmov (!%p1127_p4), 0.0  }
  0x65   : > { %s542_s9 = scalar_lea.vmem %s1792_s2, %s1685_s30  ;;  %s545_s27 = scalar_lea.vmem %s1793_s3, %s1685_s30  ;;  %552 = vst [vmem:[#allocation2] sm:$0xff] (!%p1127_p4), %v1438_v56  ;;  %553 = vst [vmem:[#allocation2 + $0x8] sm:$0xff] (!%p1127_p4), %v1438_v56 }
  0x66   : > { %554 = vst [vmem:[#allocation2 + $0x10] sm:$0xff] (!%p1127_p4), %v1438_v56  ;;  %555 = vst [vmem:[#allocation2 + $0x18] sm:$0xff] (!%p1127_p4), %v1438_v56 }
  0x6b PF: > { %v1318_v57 = vld [vmem:[%s1697_s17 + $0x40] sm:$0xff]   ;;  %v1321_v60 = vld [vmem:[%s1697_s17 + $0x48] sm:$0xff]   ;;  %v1324_v63 = vld [vmem:[%s1697_s17 + $0x50] sm:$0xff]   ;;  %p1158_p5 = scmp.ne.s32.totalorder %s1420_s21, 2 }
  0x6c   : > { %v1319_v58 = vld [vmem:[%s1697_s17] sm:$0xff]   ;;  %1167 = vmatprep.subr.bf16.mxu0 %v1318_v57  ;;  %v1322_v61 = vld [vmem:[%s1697_s17 + $0x8] sm:$0xff]   ;;  %v1325_v0 = vld [vmem:[%s1697_s17 + $0x10] sm:$0xff]  }
  0x6d   : > { %v1320_v59 = vld [vmem:[%s1697_s17 + $0x80] sm:$0xff]   ;;  %1168 = vmatpush3.bf16.msra.mxu0 %v1319_v58  ;;  %v1323_v62 = vld [vmem:[%s1697_s17 + $0x88] sm:$0xff]   ;;  %v1326_v1 = vld [vmem:[%s1697_s17 + $0x90] sm:$0xff]  }
  0x6e   : > { %1205 = vmatprep.subr.bf16.mxu1 %v1320_v59  ;;  %1169 = vmatprep.subr.bf16.mxu0 %v1321_v60  ;;  %v1327_v2 = vld [vmem:[%s1697_s17 + $0x58] sm:$0xff]   ;;  %v1330_v5 = vld [vmem:[%s1697_s17 + $0x60] sm:$0xff]   ;;  %v1333_v8 = vld [vmem:[%s1697_s17 + $0x68] sm:$0xff]  }
  0x6f   : > { %1206 = vmatpush3.bf16.msra.mxu1 %v1320_v59  ;;  %v1328_v3 = vld [vmem:[%s1697_s17 + $0x18] sm:$0xff]   ;;  %v1332_v6 = vld [vmem:[%s1697_s17 + $0xa0] sm:$0xff]   ;;  %v1335_v9 = vld [vmem:[%s1697_s17 + $0xa8] sm:$0xff]  }
  0x70   : > { %1207 = vmatprep.subr.bf16.mxu1 %v1323_v62  ;;  %v1329_v4 = vld [vmem:[%s1697_s17 + $0x98] sm:$0xff]   ;;  %v1331_v7 = vld [vmem:[%s1697_s17 + $0x20] sm:$0xff]   ;;  %v1334_v10 = vld [vmem:[%s1697_s17 + $0x28] sm:$0xff]  }
  0x71   : > { %1170 = vmatpush3.bf16.msra.mxu0 %v1322_v61  ;;  %v1336_v11 = vld [vmem:[%s1697_s17 + $0x70] sm:$0xff]   ;;  %v1339_v14 = vld [vmem:[%s1697_s17 + $0x78] sm:$0xff]   ;;  %v556_v29 = vld [vmem:[#allocation2] sm:$0xff] }
  0x72   : > { %1171 = vmatprep.subr.bf16.mxu0 %v1324_v63  ;;  %v1337_v12 = vld [vmem:[%s1697_s17 + $0x30] sm:$0xff]   ;;  %v1341_v15 = vld [vmem:[%s1697_s17 + $0xb8] sm:$0xff]   ;;  %v557_v34 = vld [vmem:[#allocation2 + $0x8] sm:$0xff] }
  0x73   : > { %1208 = vmatpush3.bf16.msra.mxu1 %v1323_v62  ;;  %v1338_v13 = vld [vmem:[%s1697_s17 + $0xb0] sm:$0xff]   ;;  %v1340_v18 = vld [vmem:[%s1697_s17 + $0x38] sm:$0xff]   ;;  %v1159_v52 = vld [vmem:[%s542_s9] ss:$0 sm:$0xff] (!%p1158_p5) }
  0x74   : > { %1209 = vmatprep.subr.bf16.mxu1 %v1326_v1  ;;  %v1344_v16 = vld [vmem:[%s1695_s24 + $0x4] ss:$12 sps:$4 sm:$0xff]   ;;  %v1345_v17 = vld [vmem:[%s1695_s24 + $0x8] ss:$12 sps:$4 sm:$0xff]   ;;  %v1342_v19 = vld [vmem:[%s1695_s24] ss:$12 sps:$4 sm:$0xff]  }
  0x75   : > { %1172 = vmatpush3.bf16.msra.mxu0 %v1325_v0  ;;  %824 = vmatprep.mubr.bf16.mxu0 %v1344_v16  ;;  %v1347_v20 = vld [vmem:[%s1695_s24 + $0x1c] ss:$12 sps:$4 sm:$0xff]   ;;  %v1346_v21 = vld [vmem:[%s1695_s24 + $0x20] ss:$12 sps:$4 sm:$0xff]   ;;  %v1349_v22 = vld [vmem:[%s1695_s24 + $0x18] ss:$12 sps:$4 sm:$0xff]  }
  0x76   : > { %1173 = vmatprep.subr.bf16.mxu0 %v1327_v2  ;;  %1221 = vmatprep.mubr.bf16.mxu1 %v1345_v17  ;;  %v558_v43 = vld [vmem:[#allocation2 + $0x10] sm:$0xff]  ;;  %v559_v47 = vld [vmem:[#allocation2 + $0x18] sm:$0xff]  ;;  %v1160_v53 = vld [vmem:[%s545_s27] ss:$0 sm:$0xff] (!%p1158_p5) }
  0x77   : > { %1210 = vmatpush3.bf16.msra.mxu1 %v1326_v1 }
  0x78   : > { %1211 = vmatprep.subr.bf16.mxu1 %v1329_v4 }
  0x79   : > { %1174 = vmatpush3.bf16.msra.mxu0 %v1328_v3 }
  0x7a   : > { %1175 = vmatprep.subr.bf16.mxu0 %v1330_v5 }
  0x7b   : > { %1212 = vmatpush3.bf16.msra.mxu1 %v1329_v4 }
  0x7c   : > { %1213 = vmatprep.subr.bf16.mxu1 %v1332_v6 }
  0x7d   : > { %1176 = vmatpush3.bf16.msra.mxu0 %v1331_v7 }
  0x7e   : > { %1177 = vmatprep.subr.bf16.mxu0 %v1333_v8 }
  0x7f   : > { %1214 = vmatpush3.bf16.msra.mxu1 %v1332_v6 }
  0x80   : > { %1215 = vmatprep.subr.bf16.mxu1 %v1335_v9 }
  0x81   : > { %1178 = vmatpush3.bf16.msra.mxu0 %v1334_v10 }
  0x82   : > { %1179 = vmatprep.subr.bf16.mxu0 %v1336_v11 }
  0x83   : > { %1216 = vmatpush3.bf16.msra.mxu1 %v1335_v9 }
  0x84   : > { %1217 = vmatprep.subr.bf16.mxu1 %v1338_v13 }
  0x85   : > { %1180 = vmatpush3.bf16.msra.mxu0 %v1337_v12 }
  0x86   : > { %1181 = vmatprep.subr.bf16.mxu0 %v1339_v14 }
  0x87   : > { %1218 = vmatpush3.bf16.msra.mxu1 %v1338_v13 }
  0x88   : > { %1219 = vmatprep.subr.bf16.mxu1 %v1341_v15 }
  0x89   : > { %1182 = vmatpush3.bf16.msra.mxu0 %v1340_v18 }
  0x8b   : > { %1220 = vmatpush3.bf16.msra.mxu1 %v1341_v15 }
  0x8c   : > { %825 = vmatmul.mubr.bf16.vlgmr.msra.gmra.mrb[0].mxu0 %v1342_v19 }
  0x8d   : > { %832 = vmatprep.mubr.bf16.mxu0 %v1347_v20 }
  0x8e   : > { %1222 = vmatmul.mubr.bf16.vlgmr.msra.gmra.mrb[0].mxu1 %v1346_v21 }
  0x94   : > { %833 = vmatmul.mubr.bf16.gmra.mrb[4].mxu0 %v1349_v22 }
 0x15f   : > { %v1183_v23 = vpop.f32.mrb[0].mxu0 }
 0x160   : > { %v1184_v24 = vpop.f32.mrb[1].mxu0 }
 0x161   : > { %v1185_v25 = vadd.f32 %v1184_v24, %v1183_v23  ;;  %v1186_v26 = vpop.f32.mrb[2].mxu0  ;;  %v1223_v27 = vpop.f32.mrb[0].mxu1 }
 0x162   : > { %v1187_v28 = vpop.f32.mrb[3].mxu0  ;;  %v875_v30 = vpop.f32.mrb[1].mxu1 }
 0x163   : > { %v1188_v31 = vadd.f32 %v1187_v28, %v1186_v26  ;;  %v876_v32 = vadd.f32 %v1185_v25, %v875_v30  ;;  %v1224_v33 = vpop.f32.mrb[2].mxu1 }
 0x164   : > { %v878_v35 = vpop.f32.mrb[3].mxu1 }
 0x165   : > { %v890_v36 = vadd.f32 %v876_v32, %v556_v29  ;;  %v879_v37 = vadd.f32 %v1188_v31, %v878_v35 }
 0x167   : > { %894 = vst [vmem:[#allocation2] sm:$0xff] %v890_v36  ;;  %v891_v38 = vadd.f32 %v879_v37, %v557_v34  ;;  %v1189_v39 = vpop.f32.mrb[4].mxu0 }
 0x168   : > { %v1190_v40 = vpop.f32.mrb[5].mxu0 }
 0x169   : > { %895 = vst [vmem:[#allocation2 + $0x8] sm:$0xff] %v891_v38  ;;  %v1191_v41 = vadd.f32 %v1190_v40, %v1189_v39  ;;  %v1192_v42 = vpop.f32.mrb[6].mxu0 }
 0x16a   : > { %v1193_v44 = vpop.f32.mrb[7].mxu0 }
 0x16b   : > { %v884_v45 = vadd.f32 %v1223_v27, %v1191_v41  ;;  %v1194_v46 = vadd.f32 %v1193_v44, %v1192_v42  ;;  %901 = sbr.rel (%p1158_p5) target bundleno = 384 (0x180), region = 111 }
 0x16d   : > { %v892_v48 = vadd.f32 %v884_v45, %v558_v43  ;;  %v887_v49 = vadd.f32 %v1224_v33, %v1194_v46 }
 0x16e   : > { %v902_v51 = vld [vmem:[#allocation2] sm:$0xff] (!%p1158_p5) }
 0x16f   : > { %896 = vst [vmem:[#allocation2 + $0x10] sm:$0xff] %v892_v48  ;;  %v893_v50 = vadd.f32 %v887_v49, %v559_v47  ;;  %v913_v54 = vmul.f32 (!%p1158_p5), %v1159_v52, %v902_v51 }
 0x170   : > { %v903_v55 = vld [vmem:[#allocation2 + $0x8] sm:$0xff] (!%p1158_p5) }
 0x171   : > { %897 = vst [vmem:[#allocation2 + $0x18] sm:$0xff] %v893_v50  ;;  %v914_v58 = vmul.f32 (!%p1158_p5), %v1159_v52, %v903_v55  ;;  %v924_v61 = vadd.f32 (!%p1158_p5), %v1160_v53, %v913_v54 }
 0x173   : > { %v925_v62 = vadd.f32 %v1160_v53, %v914_v58  ;;  %v928_v1 = vmax.f32 %v924_v61, 0.0 }
 0x175   : > { %v929_v2 = vmax.f32 %v925_v62, 0.0  ;;  %932 = vst [vmem:[%s1699_s15] sm:$0xff] %v928_v1 }
 0x176   : > { %v904_v56 = vld [vmem:[#allocation2 + $0x10] sm:$0xff] }
 0x177   : > { %v915_v59 = vmul.f32 %v1159_v52, %v904_v56  ;;  %933 = vst [vmem:[%s1699_s15 + $0x8] sm:$0xff] %v929_v2 }
 0x178   : > { %v905_v57 = vld [vmem:[#allocation2 + $0x18] sm:$0xff] }
 0x179   : > { %v916_v60 = vmul.f32 %v1159_v52, %v905_v57  ;;  %v926_v63 = vadd.f32 %v1160_v53, %v915_v59 }
 0x17b   : > { %v927_v0 = vadd.f32 %v1160_v53, %v916_v60  ;;  %v930_v3 = vmax.f32 %v926_v63, 0.0 }
 0x17d   : > { %v931_v4 = vmax.f32 %v927_v0, 0.0  ;;  %934 = vst [vmem:[%s1699_s15 + $0x10] sm:$0xff] %v930_v3 }
 0x17f   : > { %935 = vst [vmem:[%s1699_s15 + $0x18] sm:$0xff] %v931_v4 }
 0x180 PF: > { %942 = sbr.rel (!%p1558_p12) target bundleno = 392 (0x188), region = 115  ;;  %s1162_s21 = sshll.u32 (%p1558_p12), %s1424_s22, 3  ;;  %v981_v5 = vld [vmem:[%s1699_s15] sm:$0xff] (%p1558_p12)  ;;  %v983_v6 = vld [vmem:[%s1699_s15 + $0x8] sm:$0xff] (%p1558_p12) }
 0x181   : > { %s947_s26 = scalar_lea.vmem (%p1558_p12), %s1794_s4, %s1162_s21 }
 0x182   : > { %982 = vst [vmem:[%s947_s26] sm:$0xff] (%p1558_p12), %v981_v5  ;;  %984 = vst [vmem:[%s947_s26 + $0x10] sm:$0xff] (%p1558_p12), %v983_v6 }
 0x184   : > { %v985_v7 = vld [vmem:[%s1699_s15 + $0x10] sm:$0xff] (%p1558_p12) }
 0x185   : > { %986 = vst [vmem:[%s947_s26 + $0x20] sm:$0xff] (%p1558_p12), %v985_v7 }
 0x186   : > { %v987_v8 = vld [vmem:[%s1699_s15 + $0x18] sm:$0xff] (%p1558_p12) }
 0x187   : > { %988 = vst [vmem:[%s947_s26 + $0x30] sm:$0xff] %v987_v8 }
 0x188 PF: > { %s14_s25 = sadd.s32 1, %s1436_s25   ;;  %s1808_s22 = sld [smem:[#allocation6_spill]] }
 0x189   : > { %p11_p6 = scmp.ge.s32.totalorder %s14_s25, 8   ;;  %s1809_s14 = sld [smem:[#allocation7_spill]] }
 0x18a   : > { %s1810_s24 = sld [smem:[#allocation8_spill]]  ;;  %s1811_s15 = smov %s1400_s16 }
 0x18b   : > { %s1812_s16 = smov %s1556_s13  ;;  %s1813_s17 = smov %s1408_s18 }
 0x18c   : > { %s1814_s18 = smov %s1553_s12  ;;  %s1815_s19 = smov %s1416_s20 }
 0x18d   : > { %s1816_s20 = smov %s1539_s7  ;;  %s1817_s21 = smov %s1428_s23 }
 0x18e   :  { %13 = sbr.rel (!%p11_p6) target bundleno = 9 (0x9), region = 204 }
 0x18f   : > { %s1818_s23 = smov %s1809_s14 }

// kernel: _lambda_.33
= control target key start
LH: loop header
LB: loop body
LE: loop exit
PB: predicated region body
PF: predicated region fallthrough
CT: control target
= control target key end

     0   :  { %s900_s15 = smov 0   ;;  %s902_s16 = smov 0   ;;  %s1008_s0 = inlined_call_operand.vmem [shape: bf16[32,128], index: 0, kind: input, shape index: {}]   ;;  %s1009_s1 = inlined_call_operand.vmem [shape: bf16[128,256], index: 1, kind: input, shape index: {}]   ;;  %s1010_s2 = inlined_call_operand.vmem [shape: f32[1,256], index: 2, kind: input, shape index: {}]   ;;  %s1011_s3 = inlined_call_operand.vmem [shape: f32[1,256], index: 3, kind: input, shape index: {}]   ;;  %s1012_s4 = inlined_call_operand.vmem [shape: f32[32,256], index: 4, kind: output, shape index: {}]  }
   0x1   :  { %s904_s17 = smov 0   ;;  %s906_s18 = smov 0  }
   0x2   :  { %s908_s19 = smov 0  }
   0x3 LB: > { %s29_s20 = sadd.s32 1, %s869_s18  ;;  %s729_s21 = sadd.s32 4294967295, %s873_s19   ;;  %s873_s19 = sphi %s908_s19, %s14_s19   ;;  %s869_s18 = sphi %s906_s18, %s1017_s18   ;;  %s865_s17 = sphi %s904_s17, %s1016_s17   ;;  %s861_s16 = sphi %s902_s16, %s1015_s16   ;;  %s857_s15 = sphi %s900_s15, %s1014_s15  }
   0x4   : > { %p31_p0 = scmp.ge.s32.totalorder %s29_s20, 2  ;;  %p77_p1 = scmp.ne.s32.totalorder %s861_s16, %s857_s15 }
   0x5   : > { %p78_p2 = scmp.eq.s32.totalorder %s873_s19, 0  ;;  %p161_p4 = scmp.eq.s32.totalorder %s729_s21, 1 }
   0x6   : > { %s1019_s20 = smov (%p31_p0, %s29_s20), 0  ;;  %s70_s23 = sadd.s32 1, %s861_s16 }
   0x7   : > { %p79_p3 = por %p78_p2, %p77_p1  ;;  %s66_s22 = ssub.s32 %s869_s18, %s1019_s20 }
   0x8   : > { %p68_p5 = scmp.eq.s32.totalorder %s66_s22, 0  ;;  %p935_p6 = por %p161_p4, %p77_p1 }
   0x9   : > { %p733_p7 = scmp.ge.s32.totalorder %s873_s19, 2 }
   0xa   : > { %s940_s25 = scalar_select %p68_p5, %s861_s16, %s70_s23  }
   0xb   : > { %195 = sbr.rel (%p733_p7) target bundleno = 32 (0x20), region = 20 }
  0x12   : > { %198 = sbr.rel (!%p79_p3) target bundleno = 32 (0x20), region = 24  ;;  %s200_s26 = sand.u32 (%p79_p3), 1, %s861_s16  }
  0x13   : > { %s735_s27 = sshll.u32 (%p79_p3), %s869_s18, 2  ;;  %s734_s28 = sshll.u32 (%p79_p3), %s200_s26, 6 }
  0x14   : > { %s948_s5 = scalar_lea.vmem (%p79_p3), %s1009_s1, %s735_s27  ;;  %s202_s6 = scalar_lea.vmem (%p79_p3), [#allocation3], %s734_s28 }
  0x15   : > { %v223_v0 = vld [vmem:[%s948_s5] sm:$0xf] (%p79_p3)  ;;  %v225_v1 = vld [vmem:[%s948_s5 + $0x8] sm:$0xf] (%p79_p3)  ;;  %v227_v2 = vld [vmem:[%s948_s5 + $0x10] sm:$0xf] (%p79_p3) }
  0x16   : > { %224 = vst [vmem:[%s202_s6] sm:$0xf] (%p79_p3), %v223_v0  ;;  %226 = vst [vmem:[%s202_s6 + $0x4] sm:$0xf] (%p79_p3), %v225_v1  ;;  %v229_v3 = vld [vmem:[%s948_s5 + $0x18] sm:$0xf] (%p79_p3) }
  0x17   : > { %v231_v4 = vld [vmem:[%s948_s5 + $0x20] sm:$0xf] (%p79_p3)  ;;  %228 = vst [vmem:[%s202_s6 + $0x8] sm:$0xf] (%p79_p3), %v227_v2  ;;  %230 = vst [vmem:[%s202_s6 + $0xc] sm:$0xf] (%p79_p3), %v229_v3 }
  0x18   : > { %232 = vst [vmem:[%s202_s6 + $0x10] sm:$0xf] (%p79_p3), %v231_v4  ;;  %v233_v5 = vld [vmem:[%s948_s5 + $0x28] sm:$0xf] (%p79_p3)  ;;  %v235_v6 = vld [vmem:[%s948_s5 + $0x30] sm:$0xf] (%p79_p3) }
  0x19   : > { %v237_v7 = vld [vmem:[%s948_s5 + $0x38] sm:$0xf]  ;;  %234 = vst [vmem:[%s202_s6 + $0x14] sm:$0xf] %v233_v5  ;;  %236 = vst [vmem:[%s202_s6 + $0x18] sm:$0xf] %v235_v6 }
  0x1a   : > { %238 = vst [vmem:[%s202_s6 + $0x1c] sm:$0xf] %v237_v7  ;;  %v239_v8 = vld [vmem:[%s948_s5 + $0x40] sm:$0xf]  ;;  %v241_v9 = vld [vmem:[%s948_s5 + $0x48] sm:$0xf] }
  0x1b   : > { %v243_v10 = vld [vmem:[%s948_s5 + $0x50] sm:$0xf]  ;;  %240 = vst [vmem:[%s202_s6 + $0x20] sm:$0xf] %v239_v8  ;;  %242 = vst [vmem:[%s202_s6 + $0x24] sm:$0xf] %v241_v9 }
  0x1c   : > { %244 = vst [vmem:[%s202_s6 + $0x28] sm:$0xf] %v243_v10  ;;  %v245_v11 = vld [vmem:[%s948_s5 + $0x58] sm:$0xf]  ;;  %v247_v12 = vld [vmem:[%s948_s5 + $0x60] sm:$0xf] }
  0x1d   : > { %v249_v13 = vld [vmem:[%s948_s5 + $0x68] sm:$0xf]  ;;  %246 = vst [vmem:[%s202_s6 + $0x2c] sm:$0xf] %v245_v11  ;;  %248 = vst [vmem:[%s202_s6 + $0x30] sm:$0xf] %v247_v12 }
  0x1e   : > { %250 = vst [vmem:[%s202_s6 + $0x34] sm:$0xf] %v249_v13  ;;  %v251_v14 = vld [vmem:[%s948_s5 + $0x70] sm:$0xf]  ;;  %v253_v15 = vld [vmem:[%s948_s5 + $0x78] sm:$0xf] }
  0x1f   : > { %252 = vst [vmem:[%s202_s6 + $0x38] sm:$0xf] %v251_v14  ;;  %254 = vst [vmem:[%s202_s6 + $0x3c] sm:$0xf] %v253_v15 }
  0x20 PF: > { %p736_p8 = scmp.ge.s32.totalorder %s873_s19, 1  ;;  %p320_p9 = scmp.lt.s32.totalorder %s873_s19, 3 }
  0x22   : > { %p321_p10 = pnand %p736_p8, %p320_p9 }
  0x23   : > { %s327_s7 = sand.u32 (!%p321_p10), 1, %s857_s15   ;;  %v833_v16 = vld [vmem:[%s1008_s0] sm:$0xff] (!%p321_p10)   ;;  %v834_v25 = vld [vmem:[%s1008_s0 + $0x8] sm:$0xff] (!%p321_p10)   ;;  %p375_p11 = scmp.lt.s32.totalorder (!%p321_p10), %s865_s17, 1 }
  0x24   : > { %324 = sbr.rel (%p321_p10) target bundleno = 299 (0x12b), region = 73  ;;  %s737_s10 = sshll.u32 (!%p321_p10), %s327_s7, 6  ;;  %781 = vmatprep.mubr.bf16.mxu0 (!%p321_p10), %v833_v16 }
  0x25   : > { %s329_s11 = scalar_lea.vmem (!%p321_p10), [#allocation3], %s737_s10  ;;  %s738_s29 = sshll.u32 (!%p321_p10), %s327_s7, 5 }
  0x26   : > { %v825_v17 = vld [vmem:[%s329_s11] sm:$0xff] (!%p321_p10)   ;;  %v826_v18 = vld [vmem:[%s329_s11 + $0x8] sm:$0xff] (!%p321_p10)   ;;  %v827_v19 = vld [vmem:[%s329_s11 + $0x10] sm:$0xff] (!%p321_p10)   ;;  %s364_s30 = scalar_lea.vmem (!%p321_p10), [#allocation4], %s738_s29 }
  0x27   : > { %765 = vmatprep.subr.bf16.mxu0 (!%p321_p10), %v825_v17  ;;  %v828_v20 = vld [vmem:[%s329_s11 + $0x18] sm:$0xff] (!%p321_p10)   ;;  %v829_v21 = vld [vmem:[%s329_s11 + $0x20] sm:$0xff] (!%p321_p10)   ;;  %v830_v22 = vld [vmem:[%s329_s11 + $0x28] sm:$0xff] (!%p321_p10)  }
  0x28   : > { %766 = vmatpush3.bf16.msra.mxu0 (!%p321_p10), %v825_v17  ;;  %v831_v23 = vld [vmem:[%s329_s11 + $0x30] sm:$0xff] (!%p321_p10)   ;;  %v832_v24 = vld [vmem:[%s329_s11 + $0x38] sm:$0xff] (!%p321_p10)  }
  0x29   : > { %767 = vmatprep.subr.bf16.mxu0 (!%p321_p10), %v826_v18 }
  0x2b   : > { %s376_s14 = scalar_select %p375_p11, %s865_s17, 1 }
  0x2c   : > { %768 = vmatpush3.bf16.msra.mxu0 %v826_v18  ;;  %s752_s15 = sshll.u32 (%p935_p6), %s865_s17, 3 }
  0x2d   : > { %769 = vmatprep.subr.bf16.mxu0 %v827_v19  ;;  %s377_s23 = scalar_lea.vmem %s1010_s2, %s376_s14  ;;  %s380_s28 = scalar_lea.vmem %s1011_s3, %s376_s14 }
  0x2e   : > { %v749_v26 = vld [vmem:[%s377_s23] ss:$0 sm:$0xff]  ;;  %s576_s7 = scalar_lea.vmem (%p935_p6), %s1012_s4, %s752_s15 }
  0x2f   : > { %v750_v28 = vld [vmem:[%s380_s28] ss:$0 sm:$0xff] }
  0x30   : > { %770 = vmatpush3.bf16.msra.mxu0 %v827_v19 }
  0x31   : > { %771 = vmatprep.subr.bf16.mxu0 %v828_v20 }
  0x34   : > { %772 = vmatpush3.bf16.msra.mxu0 %v828_v20 }
  0x35   : > { %773 = vmatprep.subr.bf16.mxu0 %v829_v21 }
  0x38   : > { %774 = vmatpush3.bf16.msra.mxu0 %v829_v21 }
  0x39   : > { %775 = vmatprep.subr.bf16.mxu0 %v830_v22 }
  0x3c   : > { %776 = vmatpush3.bf16.msra.mxu0 %v830_v22 }
  0x3d   : > { %777 = vmatprep.subr.bf16.mxu0 %v831_v23 }
  0x40   : > { %778 = vmatpush3.bf16.msra.mxu0 %v831_v23 }
  0x41   : > { %779 = vmatprep.subr.bf16.mxu0 %v832_v24 }
  0x44   : > { %780 = vmatpush3.bf16.msra.mxu0 %v832_v24 }
  0x47   : > { %782 = vmatmul.mubr.bf16.vlgmr.msra.gmra.mrb[0].mxu0 %v834_v25 }
 0x11a   : > { %v783_v27 = vpop.f32.mrb[0].mxu0 }
 0x11b   : > { %v548_v29 = vmul.f32 %v783_v27, %v749_v26  ;;  %v509_v30 = vpop.f32.mrb[1].mxu0 }
 0x11c   : > { %v546_v31 = vmul.f32 %v749_v26, %v509_v30  ;;  %v784_v32 = vpop.f32.mrb[2].mxu0  ;;  %571 = sbr.rel (!%p935_p6) target bundleno = 299 (0x12b), region = 89 }
 0x11d   : > { %v559_v33 = vadd.f32 %v750_v28, %v548_v29  ;;  %v549_v34 = vmul.f32 %v784_v32, %v749_v26  ;;  %v512_v35 = vpop.f32.mrb[3].mxu0 }
 0x11e   : > { %v557_v36 = vadd.f32 %v750_v28, %v546_v31  ;;  %v547_v37 = vmul.f32 %v749_v26, %v512_v35 }
 0x11f   : > { %563 = vst [vmem:[%s364_s30 + $0x10] sm:$0xff] %v559_v33  ;;  %v560_v38 = vadd.f32 %v750_v28, %v549_v34 }
 0x120   : > { %561 = vst [vmem:[%s364_s30] sm:$0xff] %v557_v36  ;;  %v558_v39 = vadd.f32 %v750_v28, %v547_v37 }
 0x121   : > { %564 = vst [vmem:[%s364_s30 + $0x18] sm:$0xff] %v560_v38 }
 0x122   : > { %562 = vst [vmem:[%s364_s30 + $0x8] sm:$0xff] %v558_v39 }
 0x126   : > { %v614_v42 = vld [vmem:[%s364_s30 + $0x10] sm:$0xff] }
 0x127   : > { %v610_v40 = vld [vmem:[%s364_s30] sm:$0xff]  ;;  %615 = vst [vmem:[%s576_s7 + $0x20] sm:$0xff] %v614_v42 }
 0x128   : > { %v616_v43 = vld [vmem:[%s364_s30 + $0x18] sm:$0xff]  ;;  %611 = vst [vmem:[%s576_s7] sm:$0xff] %v610_v40 }
 0x129   : > { %v612_v41 = vld [vmem:[%s364_s30 + $0x8] sm:$0xff]  ;;  %617 = vst [vmem:[%s576_s7 + $0x30] sm:$0xff] %v616_v43 }
 0x12a   : > { %613 = vst [vmem:[%s576_s7 + $0x10] sm:$0xff] %v612_v41 }
 0x12b PF: > { %s14_s19 = sadd.s32 1, %s873_s19   ;;  %s1014_s15 = smov %s861_s16 }
 0x12c   : > { %p11_p12 = scmp.ge.s32.totalorder %s14_s19, 4   ;;  %s1015_s16 = smov %s940_s25 }
 0x12d   : > { %s1016_s17 = smov %s869_s18  ;;  %s1017_s18 = smov %s1019_s20 }
 0x12e   :  { %13 = sbr.rel (!%p11_p12) target bundleno = 3 (0x3), region = 167 }

// kernel: _lambda_.34
= control target key start
LH: loop header
LB: loop body
LE: loop exit
PB: predicated region body
PF: predicated region fallthrough
CT: control target
= control target key end

     0   :  { %s1948_s0 = inlined_call_operand.vmem [shape: bf16[32,2304], index: 0, kind: input, shape index: {}]   ;;  %s1949_s1 = inlined_call_operand.vmem [shape: bf16[2304,256], index: 1, kind: input, shape index: {}]   ;;  %s1950_s2 = inlined_call_operand.vmem [shape: f32[1,256], index: 2, kind: input, shape index: {}]   ;;  %s1951_s3 = inlined_call_operand.vmem [shape: f32[1,256], index: 3, kind: input, shape index: {}]   ;;  %s1952_s4 = inlined_call_operand.vmem [shape: f32[32,256], index: 4, kind: input, shape index: {}]   ;;  %s1953_s5 = inlined_call_operand.vmem [shape: f32[32,256], index: 5, kind: output, shape index: {}]  }
   0x1   :  { %1956 = sst [smem:[#allocation10_spill]] %s1948_s0 }
   0x2   :  { %1957 = sst [smem:[#allocation11_spill]] %s1949_s1 }
   0x3   :  { %1958 = sst [smem:[#allocation12_spill]] %s1952_s4 }
   0x4   :  { %s1599_s18 = smov 0   ;;  %s1601_s19 = smov 0  }
   0x5   :  { %s1603_s20 = smov 0   ;;  %s1605_s21 = smov 0  }
   0x6   :  { %s1607_s22 = smov 0   ;;  %s1609_s23 = smov 0  }
   0x7   :  { %s1611_s24 = smov 0   ;;  %s1613_s25 = smov 0  }
   0x8   :  { %s1615_s26 = smov 0   ;;  %s1617_s27 = smov 0  }
   0x9   :  { %s1619_s28 = smov 0  }
   0xa LB: > { %s1237_s29 = sadd.s32 4294967295, %s1566_s28   ;;  %s27_s30 = sadd.s32 1, %s1558_s26  ;;  %s1566_s28 = sphi %s1619_s28, %s15_s28   ;;  %s1562_s27 = sphi %s1617_s27, %s1981_s27   ;;  %s1558_s26 = sphi %s1615_s26, %s1980_s26   ;;  %s1554_s25 = sphi %s1613_s25, %s1979_s25   ;;  %s1550_s24 = sphi %s1611_s24, %s1978_s24   ;;  %s1546_s23 = sphi %s1609_s23, %s1977_s23   ;;  %s1542_s22 = sphi %s1607_s22, %s1976_s22   ;;  %s1538_s21 = sphi %s1605_s21, %s1975_s21   ;;  %s1534_s20 = sphi %s1603_s20, %s1974_s20   ;;  %s1530_s19 = sphi %s1601_s19, %s1973_s19   ;;  %s1526_s18 = sphi %s1599_s18, %s1972_s18  }
   0xb   : > { %p28_p0 = scmp.ge.s32.totalorder %s27_s30, 6  ;;  %s30_s6 = sadd.s32 1, %s1562_s27 }
   0xc   : > { %s43_s7 = sadd.s32 1, %s1546_s23  ;;  %p50_p1 = scmp.ne.s32.totalorder %s1546_s23, %s1542_s22 }
   0xd   : > { %s1983_s30 = smov (%p28_p0, %s27_s30), 0  ;;  %s1985_s6 = smov (!%p28_p0, %s30_s6), %s1562_s27 }
   0xe   : > { %1959 = sst [smem:[#allocation7_spill]] %s1983_s30  ;;  %s39_s8 = ssub.s32 %s1558_s26, %s1983_s30 }
   0xf   : > { %p51_p2 = scmp.eq.s32.totalorder %s1566_s28, 0  ;;  %p32_p3 = scmp.ge.s32.totalorder %s1985_s6, 2 }
  0x10   : > { %p41_p4 = scmp.eq.s32.totalorder %s39_s8, 0  ;;  %s71_s10 = sadd.s32 1, %s1538_s21 }
  0x11   : > { %p1668_p5 = por %p51_p2, %p50_p1  ;;  %s1987_s6 = smov (%p32_p3, %s1985_s6), 0 }
  0x12   : > { %1961 = sst [smem:[#allocation8_spill]] %s1987_s6  ;;  %s67_s12 = ssub.s32 %s1562_s27, %s1987_s6 }
  0x13   : > { %s1676_s11 = scalar_select %p41_p4, %s1546_s23, %s43_s7  }
  0x14   : > { %p78_p6 = scmp.ne.s32.totalorder %s1538_s21, %s1534_s20  ;;  %s68_s13 = sor.u32 %s67_s12, %s39_s8 }
  0x15   : > { %1962 = sst [smem:[#allocation9_spill]] %s1676_s11  ;;  %p149_p7 = scmp.eq.s32.totalorder %s67_s12, 0 }
  0x16   : > { %p69_p8 = scmp.eq.s32.totalorder %s68_s13, 0  ;;  %p1684_p9 = por %p78_p6, %p51_p2 }
  0x17   : > { %s151_s15 = sadd.s32 1, %s1530_s19  ;;  %p158_p10 = scmp.ne.s32.totalorder %s1530_s19, %s1526_s18 }
  0x18   : > { %s1692_s16 = scalar_select %p69_p8, %s1538_s21, %s71_s10  }
  0x19   : > { %s1695_s17 = scalar_select %p149_p7, %s1530_s19, %s151_s15  }
  0x1a   : > { %p1699_p11 = por %p158_p10, %p51_p2  ;;  %p190_p12 = scmp.eq.s32.totalorder %s1237_s29, 11 }
  0x1b   : > { %p1240_p0 = scmp.ge.s32.totalorder %s1566_s28, 12 }
  0x1c   : > { %p1703_p13 = por %p190_p12, %p158_p10 }
  0x1d   : > { %212 = sbr.rel (%p1240_p0) target bundleno = 102 (0x66), region = 16 }
  0x24   : > { %215 = sbr.rel (!%p1668_p5) target bundleno = 49 (0x31), region = 20  ;;  %s217_s10 = sand.u32 (%p1668_p5), 1, %s1546_s23  }
  0x25   : > { %s1295_s12 = smul.u32 (%p1668_p5), 12, %s1558_s26  ;;  %s1966_s0 = sld [smem:[#allocation10_spill]] (%p1668_p5) }
  0x26   : > { %s1355_s13 = smul.u32 (%p1668_p5), 48, %s217_s10 }
  0x28   : > { %s219_s29 = scalar_lea.vmem (%p1668_p5), [#allocation3], %s1355_s13 }
  0x2b   : > { %s225_s30 = scalar_lea.vmem %s1966_s0, %s1295_s12 }
  0x2c   : > { %v240_v0 = vld [vmem:[%s225_s30] sm:$0xff]  ;;  %v242_v1 = vld [vmem:[%s225_s30 + $0x48] sm:$0xff]  ;;  %v244_v2 = vld [vmem:[%s225_s30 + $0x90] sm:$0xff] }
  0x2d   : > { %241 = vst [vmem:[%s219_s29] sm:$0xff] %v240_v0  ;;  %243 = vst [vmem:[%s219_s29 + $0xc] sm:$0xff] %v242_v1  ;;  %v246_v3 = vld [vmem:[%s225_s30 + $0xd8] sm:$0xff]  ;;  %v1242_v4 = vld [vmem:[%s225_s30 + $0x8] sm:$0xf] }
  0x2e   : > { %245 = vst [vmem:[%s219_s29 + $0x18] sm:$0xff] %v244_v2  ;;  %v1244_v5 = vld [vmem:[%s225_s30 + $0x50] sm:$0xf]  ;;  %247 = vst [vmem:[%s219_s29 + $0x24] sm:$0xff] %v246_v3  ;;  %v1246_v6 = vld [vmem:[%s225_s30 + $0x98] sm:$0xf] }
  0x2f   : > { %1243 = vst [vmem:[%s219_s29 + $0x8] sm:$0xf] %v1242_v4  ;;  %1245 = vst [vmem:[%s219_s29 + $0x14] sm:$0xf] %v1244_v5  ;;  %v1248_v7 = vld [vmem:[%s225_s30 + $0xe0] sm:$0xf] }
  0x30   : > { %1247 = vst [vmem:[%s219_s29 + $0x20] sm:$0xf] %v1246_v6  ;;  %1249 = vst [vmem:[%s219_s29 + $0x2c] sm:$0xf] %v1248_v7 }
  0x31 PF: > { %268 = sbr.rel (!%p1684_p9) target bundleno = 90 (0x5a), region = 46  ;;  %s270_s6 = sand.u32 (%p1684_p9), 1, %s1538_s21  }
  0x32   : > { %s1296_s9 = smul.u32 (%p1684_p9), 96, %s1558_s26  ;;  %s1967_s1 = sld [smem:[#allocation11_spill]] (%p1684_p9) }
  0x33   : > { %s1356_s10 = smul.u32 (%p1684_p9), 192, %s270_s6 }
  0x34   : > { %s275_s12 = sadd.s32 (%p1684_p9), %s1562_s27, %s1296_s9 }
  0x35   : > { %s1251_s13 = sshll.u32 (%p1684_p9), %s275_s12, 2  ;;  %s1728_s30 = scalar_lea.vmem (%p1684_p9), [#allocation4], %s1356_s10 }
  0x38   : > { %s1723_s11 = scalar_lea.vmem %s1967_s1, %s1251_s13 }
  0x39   : > { %v293_v8 = vld [vmem:[%s1723_s11] sm:$0xf]  ;;  %v295_v9 = vld [vmem:[%s1723_s11 + $0x8] sm:$0xf]  ;;  %v297_v10 = vld [vmem:[%s1723_s11 + $0x10] sm:$0xf] }
  0x3a   : > { %294 = vst [vmem:[%s1728_s30] sm:$0xf] %v293_v8  ;;  %296 = vst [vmem:[%s1728_s30 + $0x4] sm:$0xf] %v295_v9  ;;  %v299_v11 = vld [vmem:[%s1723_s11 + $0x18] sm:$0xf] }
  0x3b   : > { %298 = vst [vmem:[%s1728_s30 + $0x8] sm:$0xf] %v297_v10  ;;  %v301_v12 = vld [vmem:[%s1723_s11 + $0x20] sm:$0xf]  ;;  %v303_v13 = vld [vmem:[%s1723_s11 + $0x28] sm:$0xf] }
  0x3c   : > { %300 = vst [vmem:[%s1728_s30 + $0xc] sm:$0xf] %v299_v11  ;;  %302 = vst [vmem:[%s1728_s30 + $0x10] sm:$0xf] %v301_v12  ;;  %v305_v14 = vld [vmem:[%s1723_s11 + $0x30] sm:$0xf] }
  0x3d   : > { %304 = vst [vmem:[%s1728_s30 + $0x14] sm:$0xf] %v303_v13  ;;  %v307_v15 = vld [vmem:[%s1723_s11 + $0x38] sm:$0xf]  ;;  %v309_v16 = vld [vmem:[%s1723_s11 + $0x40] sm:$0xf] }
  0x3e   : > { %306 = vst [vmem:[%s1728_s30 + $0x18] sm:$0xf] %v305_v14  ;;  %308 = vst [vmem:[%s1728_s30 + $0x1c] sm:$0xf] %v307_v15  ;;  %v311_v17 = vld [vmem:[%s1723_s11 + $0x48] sm:$0xf] }
  0x3f   : > { %310 = vst [vmem:[%s1728_s30 + $0x20] sm:$0xf] %v309_v16  ;;  %v313_v18 = vld [vmem:[%s1723_s11 + $0x50] sm:$0xf]  ;;  %v315_v19 = vld [vmem:[%s1723_s11 + $0x58] sm:$0xf] }
  0x40   : > { %312 = vst [vmem:[%s1728_s30 + $0x24] sm:$0xf] %v311_v17  ;;  %314 = vst [vmem:[%s1728_s30 + $0x28] sm:$0xf] %v313_v18  ;;  %v317_v20 = vld [vmem:[%s1723_s11 + $0x60] sm:$0xf] }
  0x41   : > { %316 = vst [vmem:[%s1728_s30 + $0x2c] sm:$0xf] %v315_v19  ;;  %v319_v21 = vld [vmem:[%s1723_s11 + $0x68] sm:$0xf]  ;;  %v321_v22 = vld [vmem:[%s1723_s11 + $0x70] sm:$0xf] }
  0x42   : > { %318 = vst [vmem:[%s1728_s30 + $0x30] sm:$0xf] %v317_v20  ;;  %320 = vst [vmem:[%s1728_s30 + $0x34] sm:$0xf] %v319_v21  ;;  %v323_v23 = vld [vmem:[%s1723_s11 + $0x78] sm:$0xf] }
  0x43   : > { %322 = vst [vmem:[%s1728_s30 + $0x38] sm:$0xf] %v321_v22  ;;  %v325_v24 = vld [vmem:[%s1723_s11 + $0x80] sm:$0xf]  ;;  %v327_v25 = vld [vmem:[%s1723_s11 + $0x88] sm:$0xf] }
  0x44   : > { %324 = vst [vmem:[%s1728_s30 + $0x3c] sm:$0xf] %v323_v23  ;;  %326 = vst [vmem:[%s1728_s30 + $0x40] sm:$0xf] %v325_v24  ;;  %v329_v26 = vld [vmem:[%s1723_s11 + $0x90] sm:$0xf] }
  0x45   : > { %328 = vst [vmem:[%s1728_s30 + $0x44] sm:$0xf] %v327_v25  ;;  %v331_v27 = vld [vmem:[%s1723_s11 + $0x98] sm:$0xf]  ;;  %v333_v28 = vld [vmem:[%s1723_s11 + $0xa0] sm:$0xf] }
  0x46   : > { %330 = vst [vmem:[%s1728_s30 + $0x48] sm:$0xf] %v329_v26  ;;  %332 = vst [vmem:[%s1728_s30 + $0x4c] sm:$0xf] %v331_v27  ;;  %v335_v29 = vld [vmem:[%s1723_s11 + $0xa8] sm:$0xf] }
  0x47   : > { %334 = vst [vmem:[%s1728_s30 + $0x50] sm:$0xf] %v333_v28  ;;  %v337_v30 = vld [vmem:[%s1723_s11 + $0xb0] sm:$0xf]  ;;  %v339_v31 = vld [vmem:[%s1723_s11 + $0xb8] sm:$0xf] }
  0x48   : > { %336 = vst [vmem:[%s1728_s30 + $0x54] sm:$0xf] %v335_v29  ;;  %338 = vst [vmem:[%s1728_s30 + $0x58] sm:$0xf] %v337_v30  ;;  %v341_v32 = vld [vmem:[%s1723_s11 + $0xc0] sm:$0xf] }
  0x49   : > { %340 = vst [vmem:[%s1728_s30 + $0x5c] sm:$0xf] %v339_v31  ;;  %v343_v33 = vld [vmem:[%s1723_s11 + $0xc8] sm:$0xf]  ;;  %v345_v34 = vld [vmem:[%s1723_s11 + $0xd0] sm:$0xf] }
  0x4a   : > { %342 = vst [vmem:[%s1728_s30 + $0x60] sm:$0xf] %v341_v32  ;;  %344 = vst [vmem:[%s1728_s30 + $0x64] sm:$0xf] %v343_v33  ;;  %v347_v35 = vld [vmem:[%s1723_s11 + $0xd8] sm:$0xf] }
  0x4b   : > { %346 = vst [vmem:[%s1728_s30 + $0x68] sm:$0xf] %v345_v34  ;;  %v349_v36 = vld [vmem:[%s1723_s11 + $0xe0] sm:$0xf]  ;;  %v351_v37 = vld [vmem:[%s1723_s11 + $0xe8] sm:$0xf] }
  0x4c   : > { %348 = vst [vmem:[%s1728_s30 + $0x6c] sm:$0xf] %v347_v35  ;;  %350 = vst [vmem:[%s1728_s30 + $0x70] sm:$0xf] %v349_v36  ;;  %v353_v38 = vld [vmem:[%s1723_s11 + $0xf0] sm:$0xf] }
  0x4d   : > { %352 = vst [vmem:[%s1728_s30 + $0x74] sm:$0xf] %v351_v37  ;;  %v355_v39 = vld [vmem:[%s1723_s11 + $0xf8] sm:$0xf]  ;;  %v357_v40 = vld [vmem:[%s1723_s11 + $0x100] sm:$0xf] }
  0x4e   : > { %354 = vst [vmem:[%s1728_s30 + $0x78] sm:$0xf] %v353_v38  ;;  %356 = vst [vmem:[%s1728_s30 + $0x7c] sm:$0xf] %v355_v39  ;;  %v359_v41 = vld [vmem:[%s1723_s11 + $0x108] sm:$0xf] }
  0x4f   : > { %358 = vst [vmem:[%s1728_s30 + $0x80] sm:$0xf] %v357_v40  ;;  %v361_v42 = vld [vmem:[%s1723_s11 + $0x110] sm:$0xf]  ;;  %v363_v43 = vld [vmem:[%s1723_s11 + $0x118] sm:$0xf] }
  0x50   : > { %360 = vst [vmem:[%s1728_s30 + $0x84] sm:$0xf] %v359_v41  ;;  %362 = vst [vmem:[%s1728_s30 + $0x88] sm:$0xf] %v361_v42  ;;  %v365_v44 = vld [vmem:[%s1723_s11 + $0x120] sm:$0xf] }
  0x51   : > { %364 = vst [vmem:[%s1728_s30 + $0x8c] sm:$0xf] %v363_v43  ;;  %v367_v45 = vld [vmem:[%s1723_s11 + $0x128] sm:$0xf]  ;;  %v369_v46 = vld [vmem:[%s1723_s11 + $0x130] sm:$0xf] }
  0x52   : > { %366 = vst [vmem:[%s1728_s30 + $0x90] sm:$0xf] %v365_v44  ;;  %368 = vst [vmem:[%s1728_s30 + $0x94] sm:$0xf] %v367_v45  ;;  %v371_v47 = vld [vmem:[%s1723_s11 + $0x138] sm:$0xf] }
  0x53   : > { %370 = vst [vmem:[%s1728_s30 + $0x98] sm:$0xf] %v369_v46  ;;  %v373_v48 = vld [vmem:[%s1723_s11 + $0x140] sm:$0xf]  ;;  %v375_v49 = vld [vmem:[%s1723_s11 + $0x148] sm:$0xf] }
  0x54   : > { %372 = vst [vmem:[%s1728_s30 + $0x9c] sm:$0xf] %v371_v47  ;;  %374 = vst [vmem:[%s1728_s30 + $0xa0] sm:$0xf] %v373_v48  ;;  %v377_v50 = vld [vmem:[%s1723_s11 + $0x150] sm:$0xf] }
  0x55   : > { %376 = vst [vmem:[%s1728_s30 + $0xa4] sm:$0xf] %v375_v49  ;;  %v379_v51 = vld [vmem:[%s1723_s11 + $0x158] sm:$0xf]  ;;  %v381_v52 = vld [vmem:[%s1723_s11 + $0x160] sm:$0xf] }
  0x56   : > { %378 = vst [vmem:[%s1728_s30 + $0xa8] sm:$0xf] %v377_v50  ;;  %380 = vst [vmem:[%s1728_s30 + $0xac] sm:$0xf] %v379_v51  ;;  %v383_v53 = vld [vmem:[%s1723_s11 + $0x168] sm:$0xf] }
  0x57   : > { %382 = vst [vmem:[%s1728_s30 + $0xb0] sm:$0xf] %v381_v52  ;;  %v385_v54 = vld [vmem:[%s1723_s11 + $0x170] sm:$0xf]  ;;  %v387_v55 = vld [vmem:[%s1723_s11 + $0x178] sm:$0xf] }
  0x58   : > { %384 = vst [vmem:[%s1728_s30 + $0xb4] sm:$0xf] %v383_v53  ;;  %386 = vst [vmem:[%s1728_s30 + $0xb8] sm:$0xf] %v385_v54 }
  0x59   : > { %388 = vst [vmem:[%s1728_s30 + $0xbc] sm:$0xf] %v387_v55 }
  0x5a PF: > { %519 = sbr.rel (!%p1699_p11) target bundleno = 102 (0x66), region = 95  ;;  %s521_s0 = sand.u32 (%p1699_p11), 1, %s1530_s19  }
  0x5b   : > { %s1253_s14 = sshll.u32 (%p1699_p11), %s1562_s27, 3  ;;  %s1252_s29 = sshll.u32 (%p1699_p11), %s521_s0, 5 }
  0x5c   : > { %s1968_s4 = sld [smem:[#allocation12_spill]] (%p1699_p11)  ;;  %s523_s11 = scalar_lea.vmem (%p1699_p11), [#allocation5], %s1252_s29 }
  0x62   : > { %s528_s10 = scalar_lea.vmem %s1968_s4, %s1253_s14 }
  0x63   : > { %v562_v56 = vld [vmem:[%s528_s10] sm:$0xff]  ;;  %v564_v57 = vld [vmem:[%s528_s10 + $0x10] sm:$0xff] }
  0x64   : > { %v566_v58 = vld [vmem:[%s528_s10 + $0x20] sm:$0xff]  ;;  %563 = vst [vmem:[%s523_s11] sm:$0xff] %v562_v56  ;;  %565 = vst [vmem:[%s523_s11 + $0x8] sm:$0xff] %v564_v57  ;;  %v568_v59 = vld [vmem:[%s528_s10 + $0x30] sm:$0xff] }
  0x65   : > { %567 = vst [vmem:[%s523_s11 + $0x10] sm:$0xff] %v566_v58  ;;  %569 = vst [vmem:[%s523_s11 + $0x18] sm:$0xff] %v568_v59 }
  0x66 PF: > { %p1254_p1 = scmp.ge.s32.totalorder %s1566_s28, 1  ;;  %p574_p2 = scmp.lt.s32.totalorder %s1566_s28, 13 }
  0x68   : > { %p575_p3 = pnand %p1254_p1, %p574_p2 }
  0x69   : > { %s581_s7 = sand.u32 (!%p575_p3), 1, %s1542_s22   ;;  %s588_s12 = sand.u32 (!%p575_p3), 1, %s1534_s20  }
  0x6a   : > { %578 = sbr.rel (%p575_p3) target bundleno = 408 (0x198), region = 133  ;;  %s595_s15 = sand.u32 (!%p575_p3), 1, %s1526_s18  }
  0x6b   : > { %s1357_s13 = smul.u32 (!%p575_p3), 48, %s581_s7  ;;  %s1255_s0 = sshll.u32 (!%p575_p3), %s595_s15, 5 }
  0x6c   : > { %s1358_s30 = smul.u32 (!%p575_p3), 192, %s588_s12  ;;  %p638_p4 = scmp.lt.s32.totalorder (!%p575_p3), %s1554_s25, 1 }
  0x6d   : > { %s1847_s4 = scalar_lea.vmem (!%p575_p3), [#allocation3], %s1357_s13  ;;  %s1851_s18 = scalar_lea.vmem (!%p575_p3), [#allocation5], %s1255_s0 }
  0x6e   : > { %s1849_s20 = scalar_lea.vmem (!%p575_p3), [#allocation4], %s1358_s30  ;;  %s1853_s22 = scalar_lea.vmem (!%p575_p3), [#allocation6], %s1255_s0 }
  0x6f   : > { %p1257_p5 = scmp.ne.s32.totalorder (!%p575_p3), %s1550_s24, 0 }
  0x71   : > { %s1837_s14 = scalar_select %p638_p4, %s1554_s25, 1 }
  0x72   : > { %650 = sbr.rel (%p1257_p5) target bundleno = 121 (0x79), region = 149  ;;  %v1568_v60 = vmov (!%p1257_p5), 0.0  }
  0x73   : > { %s640_s9 = scalar_lea.vmem %s1950_s2, %s1837_s14  ;;  %s643_s1 = scalar_lea.vmem %s1951_s3, %s1837_s14  ;;  %651 = vst [vmem:[#allocation2] sm:$0xff] (!%p1257_p5), %v1568_v60  ;;  %652 = vst [vmem:[#allocation2 + $0x8] sm:$0xff] (!%p1257_p5), %v1568_v60 }
  0x74   : > { %653 = vst [vmem:[#allocation2 + $0x10] sm:$0xff] (!%p1257_p5), %v1568_v60  ;;  %654 = vst [vmem:[#allocation2 + $0x18] sm:$0xff] (!%p1257_p5), %v1568_v60 }
  0x79 PF: > { %v1448_v61 = vld [vmem:[%s1849_s20 + $0x40] sm:$0xff]   ;;  %v1451_v0 = vld [vmem:[%s1849_s20 + $0x48] sm:$0xff]   ;;  %v1454_v3 = vld [vmem:[%s1849_s20 + $0x50] sm:$0xff]   ;;  %p1288_p6 = scmp.ne.s32.totalorder %s1550_s24, 5 }
  0x7a   : > { %v1449_v62 = vld [vmem:[%s1849_s20] sm:$0xff]   ;;  %1297 = vmatprep.subr.bf16.mxu0 %v1448_v61  ;;  %v1452_v1 = vld [vmem:[%s1849_s20 + $0x8] sm:$0xff]   ;;  %v1455_v4 = vld [vmem:[%s1849_s20 + $0x10] sm:$0xff]  }
  0x7b   : > { %v1450_v63 = vld [vmem:[%s1849_s20 + $0x80] sm:$0xff]   ;;  %1298 = vmatpush3.bf16.msra.mxu0 %v1449_v62  ;;  %v1453_v2 = vld [vmem:[%s1849_s20 + $0x88] sm:$0xff]   ;;  %v1456_v5 = vld [vmem:[%s1849_s20 + $0x90] sm:$0xff]  }
  0x7c   : > { %1335 = vmatprep.subr.bf16.mxu1 %v1450_v63  ;;  %1299 = vmatprep.subr.bf16.mxu0 %v1451_v0  ;;  %v1457_v6 = vld [vmem:[%s1849_s20 + $0x58] sm:$0xff]   ;;  %v1460_v9 = vld [vmem:[%s1849_s20 + $0x60] sm:$0xff]   ;;  %v1463_v12 = vld [vmem:[%s1849_s20 + $0x68] sm:$0xff]  }
  0x7d   : > { %1336 = vmatpush3.bf16.msra.mxu1 %v1450_v63  ;;  %v1458_v7 = vld [vmem:[%s1849_s20 + $0x18] sm:$0xff]   ;;  %v1462_v10 = vld [vmem:[%s1849_s20 + $0xa0] sm:$0xff]   ;;  %v1465_v13 = vld [vmem:[%s1849_s20 + $0xa8] sm:$0xff]  }
  0x7e   : > { %1337 = vmatprep.subr.bf16.mxu1 %v1453_v2  ;;  %v1459_v8 = vld [vmem:[%s1849_s20 + $0x98] sm:$0xff]   ;;  %v1461_v11 = vld [vmem:[%s1849_s20 + $0x20] sm:$0xff]   ;;  %v1464_v14 = vld [vmem:[%s1849_s20 + $0x28] sm:$0xff]  }
  0x7f   : > { %1300 = vmatpush3.bf16.msra.mxu0 %v1452_v1  ;;  %v1466_v15 = vld [vmem:[%s1849_s20 + $0x70] sm:$0xff]   ;;  %v1469_v18 = vld [vmem:[%s1849_s20 + $0x78] sm:$0xff]   ;;  %v655_v33 = vld [vmem:[#allocation2] sm:$0xff] }
  0x80   : > { %1301 = vmatprep.subr.bf16.mxu0 %v1454_v3  ;;  %v1467_v16 = vld [vmem:[%s1849_s20 + $0x30] sm:$0xff]   ;;  %v1471_v19 = vld [vmem:[%s1849_s20 + $0xb8] sm:$0xff]   ;;  %v656_v38 = vld [vmem:[#allocation2 + $0x8] sm:$0xff] }
  0x81   : > { %1338 = vmatpush3.bf16.msra.mxu1 %v1453_v2  ;;  %v1468_v17 = vld [vmem:[%s1849_s20 + $0xb0] sm:$0xff]   ;;  %v1470_v22 = vld [vmem:[%s1849_s20 + $0x38] sm:$0xff]   ;;  %v1289_v56 = vld [vmem:[%s640_s9] ss:$0 sm:$0xff] (!%p1288_p6) }
  0x82   : > { %1339 = vmatprep.subr.bf16.mxu1 %v1456_v5  ;;  %v1474_v20 = vld [vmem:[%s1847_s4 + $0x4] ss:$12 sps:$4 sm:$0xff]   ;;  %v1475_v21 = vld [vmem:[%s1847_s4 + $0x8] ss:$12 sps:$4 sm:$0xff]   ;;  %v1472_v23 = vld [vmem:[%s1847_s4] ss:$12 sps:$4 sm:$0xff]  }
  0x83   : > { %1302 = vmatpush3.bf16.msra.mxu0 %v1455_v4  ;;  %923 = vmatprep.mubr.bf16.mxu0 %v1474_v20  ;;  %v1477_v24 = vld [vmem:[%s1847_s4 + $0x1c] ss:$12 sps:$4 sm:$0xff]   ;;  %v1476_v25 = vld [vmem:[%s1847_s4 + $0x20] ss:$12 sps:$4 sm:$0xff]   ;;  %v1479_v26 = vld [vmem:[%s1847_s4 + $0x18] ss:$12 sps:$4 sm:$0xff]  }
  0x84   : > { %1303 = vmatprep.subr.bf16.mxu0 %v1457_v6  ;;  %1351 = vmatprep.mubr.bf16.mxu1 %v1475_v21  ;;  %v657_v47 = vld [vmem:[#allocation2 + $0x10] sm:$0xff]  ;;  %v658_v51 = vld [vmem:[#allocation2 + $0x18] sm:$0xff]  ;;  %v1290_v57 = vld [vmem:[%s643_s1] ss:$0 sm:$0xff] (!%p1288_p6) }
  0x85   : > { %1340 = vmatpush3.bf16.msra.mxu1 %v1456_v5  ;;  %v1027_v60 = vld [vmem:[%s1851_s18] sm:$0xff] (!%p1288_p6)  ;;  %v1028_v1 = vld [vmem:[%s1851_s18 + $0x8] sm:$0xff] (!%p1288_p6)  ;;  %v1029_v5 = vld [vmem:[%s1851_s18 + $0x10] sm:$0xff] (!%p1288_p6) }
  0x86   : > { %1341 = vmatprep.subr.bf16.mxu1 %v1459_v8  ;;  %v1030_v6 = vld [vmem:[%s1851_s18 + $0x18] sm:$0xff] (!%p1288_p6) }
  0x87   : > { %1304 = vmatpush3.bf16.msra.mxu0 %v1458_v7 }
  0x88   : > { %1305 = vmatprep.subr.bf16.mxu0 %v1460_v9 }
  0x89   : > { %1342 = vmatpush3.bf16.msra.mxu1 %v1459_v8 }
  0x8a   : > { %1343 = vmatprep.subr.bf16.mxu1 %v1462_v10 }
  0x8b   : > { %1306 = vmatpush3.bf16.msra.mxu0 %v1461_v11 }
  0x8c   : > { %1307 = vmatprep.subr.bf16.mxu0 %v1463_v12 }
  0x8d   : > { %1344 = vmatpush3.bf16.msra.mxu1 %v1462_v10 }
  0x8e   : > { %1345 = vmatprep.subr.bf16.mxu1 %v1465_v13 }
  0x8f   : > { %1308 = vmatpush3.bf16.msra.mxu0 %v1464_v14 }
  0x90   : > { %1309 = vmatprep.subr.bf16.mxu0 %v1466_v15 }
  0x91   : > { %1346 = vmatpush3.bf16.msra.mxu1 %v1465_v13 }
  0x92   : > { %1347 = vmatprep.subr.bf16.mxu1 %v1468_v17 }
  0x93   : > { %1310 = vmatpush3.bf16.msra.mxu0 %v1467_v16 }
  0x94   : > { %1311 = vmatprep.subr.bf16.mxu0 %v1469_v18 }
  0x95   : > { %1348 = vmatpush3.bf16.msra.mxu1 %v1468_v17 }
  0x96   : > { %1349 = vmatprep.subr.bf16.mxu1 %v1471_v19 }
  0x97   : > { %1312 = vmatpush3.bf16.msra.mxu0 %v1470_v22 }
  0x99   : > { %1350 = vmatpush3.bf16.msra.mxu1 %v1471_v19 }
  0x9a   : > { %924 = vmatmul.mubr.bf16.vlgmr.msra.gmra.mrb[0].mxu0 %v1472_v23 }
  0x9b   : > { %931 = vmatprep.mubr.bf16.mxu0 %v1477_v24 }
  0x9c   : > { %1352 = vmatmul.mubr.bf16.vlgmr.msra.gmra.mrb[0].mxu1 %v1476_v25 }
  0xa2   : > { %932 = vmatmul.mubr.bf16.gmra.mrb[4].mxu0 %v1479_v26 }
 0x16d   : > { %v1313_v27 = vpop.f32.mrb[0].mxu0 }
 0x16e   : > { %v1314_v28 = vpop.f32.mrb[1].mxu0 }
 0x16f   : > { %v1315_v29 = vadd.f32 %v1314_v28, %v1313_v27  ;;  %v1316_v30 = vpop.f32.mrb[2].mxu0  ;;  %v1353_v31 = vpop.f32.mrb[0].mxu1 }
 0x170   : > { %v1317_v32 = vpop.f32.mrb[3].mxu0  ;;  %v974_v34 = vpop.f32.mrb[1].mxu1 }
 0x171   : > { %v1318_v35 = vadd.f32 %v1317_v32, %v1316_v30  ;;  %v975_v36 = vadd.f32 %v1315_v29, %v974_v34  ;;  %v1354_v37 = vpop.f32.mrb[2].mxu1 }
 0x172   : > { %v977_v39 = vpop.f32.mrb[3].mxu1 }
 0x173   : > { %v989_v40 = vadd.f32 %v975_v36, %v655_v33  ;;  %v978_v41 = vadd.f32 %v1318_v35, %v977_v39 }
 0x175   : > { %993 = vst [vmem:[#allocation2] sm:$0xff] %v989_v40  ;;  %v990_v42 = vadd.f32 %v978_v41, %v656_v38  ;;  %v1319_v43 = vpop.f32.mrb[4].mxu0 }
 0x176   : > { %v1320_v44 = vpop.f32.mrb[5].mxu0 }
 0x177   : > { %994 = vst [vmem:[#allocation2 + $0x8] sm:$0xff] %v990_v42  ;;  %v1321_v45 = vadd.f32 %v1320_v44, %v1319_v43  ;;  %v1322_v46 = vpop.f32.mrb[6].mxu0 }
 0x178   : > { %v1323_v48 = vpop.f32.mrb[7].mxu0 }
 0x179   : > { %v983_v49 = vadd.f32 %v1353_v31, %v1321_v45  ;;  %v1324_v50 = vadd.f32 %v1323_v48, %v1322_v46  ;;  %1000 = sbr.rel (%p1288_p6) target bundleno = 400 (0x190), region = 153 }
 0x17b   : > { %v991_v52 = vadd.f32 %v983_v49, %v657_v47  ;;  %v986_v53 = vadd.f32 %v1354_v37, %v1324_v50 }
 0x17c   : > { %v1001_v55 = vld [vmem:[#allocation2] sm:$0xff] (!%p1288_p6) }
 0x17d   : > { %995 = vst [vmem:[#allocation2 + $0x10] sm:$0xff] %v991_v52  ;;  %v992_v54 = vadd.f32 %v986_v53, %v658_v51  ;;  %v1012_v58 = vmul.f32 (!%p1288_p6), %v1289_v56, %v1001_v55 }
 0x17e   : > { %v1002_v59 = vld [vmem:[#allocation2 + $0x8] sm:$0xff] (!%p1288_p6) }
 0x17f   : > { %996 = vst [vmem:[#allocation2 + $0x18] sm:$0xff] %v992_v54  ;;  %v1013_v61 = vmul.f32 (!%p1288_p6), %v1289_v56, %v1002_v59  ;;  %v1023_v0 = vadd.f32 (!%p1288_p6), %v1290_v57, %v1012_v58 }
 0x181   : > { %v1024_v4 = vadd.f32 %v1290_v57, %v1013_v61  ;;  %v1031_v7 = vadd.f32 %v1027_v60, %v1023_v0 }
 0x183   : > { %v1032_v10 = vadd.f32 %v1028_v1, %v1024_v4  ;;  %v1035_v11 = vmax.f32 %v1031_v7, 0.0 }
 0x184   : > { %v1003_v62 = vld [vmem:[#allocation2 + $0x10] sm:$0xff] }
 0x185   : > { %v1014_v2 = vmul.f32 %v1289_v56, %v1003_v62  ;;  %v1036_v14 = vmax.f32 %v1032_v10, 0.0  ;;  %1039 = vst [vmem:[%s1853_s22] sm:$0xff] %v1035_v11 }
 0x186   : > { %v1004_v63 = vld [vmem:[#allocation2 + $0x18] sm:$0xff] }
 0x187   : > { %v1015_v3 = vmul.f32 %v1289_v56, %v1004_v63  ;;  %v1025_v8 = vadd.f32 %v1290_v57, %v1014_v2  ;;  %1040 = vst [vmem:[%s1853_s22 + $0x8] sm:$0xff] %v1036_v14 }
 0x189   : > { %v1026_v9 = vadd.f32 %v1290_v57, %v1015_v3  ;;  %v1033_v12 = vadd.f32 %v1029_v5, %v1025_v8 }
 0x18b   : > { %v1034_v13 = vadd.f32 %v1030_v6, %v1026_v9  ;;  %v1037_v15 = vmax.f32 %v1033_v12, 0.0 }
 0x18d   : > { %v1038_v16 = vmax.f32 %v1034_v13, 0.0  ;;  %1041 = vst [vmem:[%s1853_s22 + $0x10] sm:$0xff] %v1037_v15 }
 0x18f   : > { %1042 = vst [vmem:[%s1853_s22 + $0x18] sm:$0xff] %v1038_v16 }
 0x190 PF: > { %1049 = sbr.rel (!%p1703_p13) target bundleno = 408 (0x198), region = 157  ;;  %s1292_s1 = sshll.u32 (%p1703_p13), %s1554_s25, 3  ;;  %v1088_v17 = vld [vmem:[%s1853_s22] sm:$0xff] (%p1703_p13)  ;;  %v1090_v18 = vld [vmem:[%s1853_s22 + $0x8] sm:$0xff] (%p1703_p13) }
 0x191   : > { %s1054_s30 = scalar_lea.vmem (%p1703_p13), %s1953_s5, %s1292_s1 }
 0x192   : > { %1089 = vst [vmem:[%s1054_s30] sm:$0xff] (%p1703_p13), %v1088_v17  ;;  %1091 = vst [vmem:[%s1054_s30 + $0x10] sm:$0xff] (%p1703_p13), %v1090_v18 }
 0x194   : > { %v1092_v19 = vld [vmem:[%s1853_s22 + $0x10] sm:$0xff] (%p1703_p13) }
 0x195   : > { %1093 = vst [vmem:[%s1054_s30 + $0x20] sm:$0xff] (%p1703_p13), %v1092_v19 }
 0x196   : > { %v1094_v20 = vld [vmem:[%s1853_s22 + $0x18] sm:$0xff] (%p1703_p13) }
 0x197   : > { %1095 = vst [vmem:[%s1054_s30 + $0x30] sm:$0xff] %v1094_v20 }
 0x198 PF: > { %s15_s28 = sadd.s32 1, %s1566_s28   ;;  %s1969_s25 = sld [smem:[#allocation9_spill]] }
 0x199   : > { %p12_p7 = scmp.ge.s32.totalorder %s15_s28, 14   ;;  %s1970_s8 = sld [smem:[#allocation7_spill]] }
 0x19a   : > { %s1971_s0 = sld [smem:[#allocation8_spill]]  ;;  %s1972_s18 = smov %s1530_s19 }
 0x19b   : > { %s1973_s19 = smov %s1695_s17  ;;  %s1974_s20 = smov %s1538_s21 }
 0x19c   : > { %s1975_s21 = smov %s1692_s16  ;;  %s1976_s22 = smov %s1546_s23 }
 0x19d   : > { %s1978_s24 = smov %s1558_s26  ;;  %14 = sbr.rel (!%p12_p7) target bundleno = 10 (0xa), region = 254 }
 0x19e   : > { %s1977_s23 = smov %s1969_s25  ;;  %s1979_s25 = smov %s1562_s27 }
 0x19f   : > { %s1980_s26 = smov %s1970_s8 }
 0x1a0   : > { %s1981_s27 = smov %s1971_s0 }

// kernel: _lambda_.35
= control target key start
LH: loop header
LB: loop body
LE: loop exit
PB: predicated region body
PF: predicated region fallthrough
CT: control target
= control target key end

     0   :  { %s1790_s0 = inlined_call_operand.vmem [shape: bf16[32,2304], index: 0, kind: input, shape index: {}]   ;;  %s1791_s1 = inlined_call_operand.vmem [shape: bf16[2304,256], index: 1, kind: input, shape index: {}]   ;;  %s1792_s2 = inlined_call_operand.vmem [shape: f32[1,256], index: 2, kind: input, shape index: {}]   ;;  %s1793_s3 = inlined_call_operand.vmem [shape: f32[1,256], index: 3, kind: input, shape index: {}]   ;;  %s1794_s4 = inlined_call_operand.vmem [shape: f32[32,256], index: 4, kind: output, shape index: {}]  }
   0x1   :  { %1798 = sst [smem:[#allocation9_spill]] %s1790_s0 }
   0x2   :  { %1799 = sst [smem:[#allocation10_spill]] %s1791_s1 }
   0x3   :  { %s1464_s15 = smov 0   ;;  %s1466_s16 = smov 0  }
   0x4   :  { %s1468_s17 = smov 0   ;;  %s1470_s18 = smov 0  }
   0x5   :  { %s1472_s19 = smov 0   ;;  %s1474_s20 = smov 0  }
   0x6   :  { %s1476_s21 = smov 0   ;;  %s1478_s22 = smov 0  }
   0x7   :  { %s1480_s23 = smov 0   ;;  %s1482_s24 = smov 0  }
   0x8   :  { %s1484_s25 = smov 0  }
   0x9 LB: > { %1800 = sst [smem:[#allocation6_spill]] %s1432_s24  ;;  %s1110_s26 = sadd.s32 4294967295, %s1436_s25   ;;  %s1436_s25 = sphi %s1484_s25, %s14_s25   ;;  %s1432_s24 = sphi %s1482_s24, %s1810_s24   ;;  %s1428_s23 = sphi %s1480_s23, %s1818_s23   ;;  %s1424_s22 = sphi %s1478_s22, %s1808_s22   ;;  %s1420_s21 = sphi %s1476_s21, %s1817_s21   ;;  %s1416_s20 = sphi %s1474_s20, %s1816_s20   ;;  %s1412_s19 = sphi %s1472_s19, %s1815_s19   ;;  %s1408_s18 = sphi %s1470_s18, %s1814_s18   ;;  %s1404_s17 = sphi %s1468_s17, %s1813_s17   ;;  %s1400_s16 = sphi %s1466_s16, %s1812_s16   ;;  %s1396_s15 = sphi %s1464_s15, %s1811_s15  }
   0xa   : > { %s26_s27 = sadd.s32 1, %s1428_s23  ;;  %s29_s28 = sadd.s32 1, %s1432_s24 }
   0xb   : > { %p27_p0 = scmp.ge.s32.totalorder %s26_s27, 6  ;;  %s42_s29 = sadd.s32 1, %s1416_s20 }
   0xc   : > { %p49_p1 = scmp.ne.s32.totalorder %s1416_s20, %s1412_s19  ;;  %p50_p2 = scmp.eq.s32.totalorder %s1436_s25, 0 }
   0xd   : > { %s1820_s27 = smov (%p27_p0, %s26_s27), 0  ;;  %s1822_s28 = smov (!%p27_p0, %s29_s28), %s1432_s24 }
   0xe   : > { %1801 = sst [smem:[#allocation7_spill]] %s1820_s27  ;;  %s38_s30 = ssub.s32 %s1428_s23, %s1820_s27 }
   0xf   : > { %p31_p3 = scmp.ge.s32.totalorder %s1822_s28, 2  ;;  %p40_p4 = scmp.eq.s32.totalorder %s38_s30, 0 }
  0x10   : > { %p1531_p5 = por %p50_p2, %p49_p1  ;;  %s70_s6 = sadd.s32 1, %s1408_s18 }
  0x11   : > { %s1824_s28 = smov (%p31_p3, %s1822_s28), 0  ;;  %p77_p6 = scmp.ne.s32.totalorder %s1408_s18, %s1404_s17 }
  0x12   : > { %1803 = sst [smem:[#allocation8_spill]] %s1824_s28  ;;  %s66_s8 = ssub.s32 %s1432_s24, %s1824_s28 }
  0x13   : > { %s1539_s7 = scalar_select %p40_p4, %s1416_s20, %s42_s29  }
  0x14   : > { %s67_s9 = sor.u32 %s66_s8, %s38_s30  ;;  %p148_p7 = scmp.eq.s32.totalorder %s66_s8, 0 }
  0x15   : > { %p68_p8 = scmp.eq.s32.totalorder %s67_s9, 0  ;;  %p1545_p9 = por %p77_p6, %p50_p2 }
  0x16   : > { %s150_s11 = sadd.s32 1, %s1400_s16  ;;  %p160_p10 = scmp.ne.s32.totalorder %s1400_s16, %s1396_s15 }
  0x17   : > { %s1553_s12 = scalar_select %p68_p8, %s1408_s18, %s70_s6  }
  0x18   : > { %s1556_s13 = scalar_select %p148_p7, %s1400_s16, %s150_s11  }
  0x19   : > { %p161_p11 = scmp.eq.s32.totalorder %s1110_s26, 11  ;;  %p1113_p13 = scmp.ge.s32.totalorder %s1436_s25, 12 }
  0x1b   : > { %p1558_p12 = por %p161_p11, %p160_p10  ;;  %183 = sbr.rel (%p1113_p13) target bundleno = 88 (0x58), region = 16 }
  0x22   : > { %186 = sbr.rel (!%p1531_p5) target bundleno = 47 (0x2f), region = 20  ;;  %s188_s29 = sand.u32 (%p1531_p5), 1, %s1416_s20  }
  0x23   : > { %s1165_s30 = smul.u32 (%p1531_p5), 12, %s1428_s23  ;;  %s1806_s0 = sld [smem:[#allocation9_spill]] (%p1531_p5) }
  0x24   : > { %s1225_s8 = smul.u32 (%p1531_p5), 48, %s188_s29 }
  0x26   : > { %s190_s26 = scalar_lea.vmem (%p1531_p5), [#allocation3], %s1225_s8 }
  0x29   : > { %s196_s11 = scalar_lea.vmem %s1806_s0, %s1165_s30 }
  0x2a   : > { %v211_v0 = vld [vmem:[%s196_s11] sm:$0xff]  ;;  %v213_v1 = vld [vmem:[%s196_s11 + $0x48] sm:$0xff]  ;;  %v215_v2 = vld [vmem:[%s196_s11 + $0x90] sm:$0xff] }
  0x2b   : > { %212 = vst [vmem:[%s190_s26] sm:$0xff] %v211_v0  ;;  %214 = vst [vmem:[%s190_s26 + $0xc] sm:$0xff] %v213_v1  ;;  %v217_v3 = vld [vmem:[%s196_s11 + $0xd8] sm:$0xff]  ;;  %v1115_v4 = vld [vmem:[%s196_s11 + $0x8] sm:$0xf] }
  0x2c   : > { %216 = vst [vmem:[%s190_s26 + $0x18] sm:$0xff] %v215_v2  ;;  %v1117_v5 = vld [vmem:[%s196_s11 + $0x50] sm:$0xf]  ;;  %218 = vst [vmem:[%s190_s26 + $0x24] sm:$0xff] %v217_v3  ;;  %v1119_v6 = vld [vmem:[%s196_s11 + $0x98] sm:$0xf] }
  0x2d   : > { %1116 = vst [vmem:[%s190_s26 + $0x8] sm:$0xf] %v1115_v4  ;;  %1118 = vst [vmem:[%s190_s26 + $0x14] sm:$0xf] %v1117_v5  ;;  %v1121_v7 = vld [vmem:[%s196_s11 + $0xe0] sm:$0xf] }
  0x2e   : > { %1120 = vst [vmem:[%s190_s26 + $0x20] sm:$0xf] %v1119_v6  ;;  %1122 = vst [vmem:[%s190_s26 + $0x2c] sm:$0xf] %v1121_v7 }
  0x2f PF: > { %239 = sbr.rel (!%p1545_p9) target bundleno = 88 (0x58), region = 46  ;;  %s241_s5 = sand.u32 (%p1545_p9), 1, %s1408_s18  }
  0x30   : > { %s1166_s29 = smul.u32 (%p1545_p9), 96, %s1428_s23  ;;  %s1807_s1 = sld [smem:[#allocation10_spill]] (%p1545_p9) }
  0x31   : > { %s1226_s30 = smul.u32 (%p1545_p9), 192, %s241_s5 }
  0x32   : > { %s246_s8 = sadd.s32 (%p1545_p9), %s1432_s24, %s1166_s29 }
  0x33   : > { %s1124_s6 = sshll.u32 (%p1545_p9), %s246_s8, 2  ;;  %s1583_s10 = scalar_lea.vmem (%p1545_p9), [#allocation4], %s1226_s30 }
  0x36   : > { %s1578_s28 = scalar_lea.vmem %s1807_s1, %s1124_s6 }
  0x37   : > { %v264_v8 = vld [vmem:[%s1578_s28] sm:$0xf]  ;;  %v266_v9 = vld [vmem:[%s1578_s28 + $0x8] sm:$0xf]  ;;  %v268_v10 = vld [vmem:[%s1578_s28 + $0x10] sm:$0xf] }
  0x38   : > { %265 = vst [vmem:[%s1583_s10] sm:$0xf] %v264_v8  ;;  %267 = vst [vmem:[%s1583_s10 + $0x4] sm:$0xf] %v266_v9  ;;  %v270_v11 = vld [vmem:[%s1578_s28 + $0x18] sm:$0xf] }
  0x39   : > { %269 = vst [vmem:[%s1583_s10 + $0x8] sm:$0xf] %v268_v10  ;;  %v272_v12 = vld [vmem:[%s1578_s28 + $0x20] sm:$0xf]  ;;  %v274_v13 = vld [vmem:[%s1578_s28 + $0x28] sm:$0xf] }
  0x3a   : > { %271 = vst [vmem:[%s1583_s10 + $0xc] sm:$0xf] %v270_v11  ;;  %273 = vst [vmem:[%s1583_s10 + $0x10] sm:$0xf] %v272_v12  ;;  %v276_v14 = vld [vmem:[%s1578_s28 + $0x30] sm:$0xf] }
  0x3b   : > { %275 = vst [vmem:[%s1583_s10 + $0x14] sm:$0xf] %v274_v13  ;;  %v278_v15 = vld [vmem:[%s1578_s28 + $0x38] sm:$0xf]  ;;  %v280_v16 = vld [vmem:[%s1578_s28 + $0x40] sm:$0xf] }
  0x3c   : > { %277 = vst [vmem:[%s1583_s10 + $0x18] sm:$0xf] %v276_v14  ;;  %279 = vst [vmem:[%s1583_s10 + $0x1c] sm:$0xf] %v278_v15  ;;  %v282_v17 = vld [vmem:[%s1578_s28 + $0x48] sm:$0xf] }
  0x3d   : > { %281 = vst [vmem:[%s1583_s10 + $0x20] sm:$0xf] %v280_v16  ;;  %v284_v18 = vld [vmem:[%s1578_s28 + $0x50] sm:$0xf]  ;;  %v286_v19 = vld [vmem:[%s1578_s28 + $0x58] sm:$0xf] }
  0x3e   : > { %283 = vst [vmem:[%s1583_s10 + $0x24] sm:$0xf] %v282_v17  ;;  %285 = vst [vmem:[%s1583_s10 + $0x28] sm:$0xf] %v284_v18  ;;  %v288_v20 = vld [vmem:[%s1578_s28 + $0x60] sm:$0xf] }
  0x3f   : > { %287 = vst [vmem:[%s1583_s10 + $0x2c] sm:$0xf] %v286_v19  ;;  %v290_v21 = vld [vmem:[%s1578_s28 + $0x68] sm:$0xf]  ;;  %v292_v22 = vld [vmem:[%s1578_s28 + $0x70] sm:$0xf] }
  0x40   : > { %289 = vst [vmem:[%s1583_s10 + $0x30] sm:$0xf] %v288_v20  ;;  %291 = vst [vmem:[%s1583_s10 + $0x34] sm:$0xf] %v290_v21  ;;  %v294_v23 = vld [vmem:[%s1578_s28 + $0x78] sm:$0xf] }
  0x41   : > { %293 = vst [vmem:[%s1583_s10 + $0x38] sm:$0xf] %v292_v22  ;;  %v296_v24 = vld [vmem:[%s1578_s28 + $0x80] sm:$0xf]  ;;  %v298_v25 = vld [vmem:[%s1578_s28 + $0x88] sm:$0xf] }
  0x42   : > { %295 = vst [vmem:[%s1583_s10 + $0x3c] sm:$0xf] %v294_v23  ;;  %297 = vst [vmem:[%s1583_s10 + $0x40] sm:$0xf] %v296_v24  ;;  %v300_v26 = vld [vmem:[%s1578_s28 + $0x90] sm:$0xf] }
  0x43   : > { %299 = vst [vmem:[%s1583_s10 + $0x44] sm:$0xf] %v298_v25  ;;  %v302_v27 = vld [vmem:[%s1578_s28 + $0x98] sm:$0xf]  ;;  %v304_v28 = vld [vmem:[%s1578_s28 + $0xa0] sm:$0xf] }
  0x44   : > { %301 = vst [vmem:[%s1583_s10 + $0x48] sm:$0xf] %v300_v26  ;;  %303 = vst [vmem:[%s1583_s10 + $0x4c] sm:$0xf] %v302_v27  ;;  %v306_v29 = vld [vmem:[%s1578_s28 + $0xa8] sm:$0xf] }
  0x45   : > { %305 = vst [vmem:[%s1583_s10 + $0x50] sm:$0xf] %v304_v28  ;;  %v308_v30 = vld [vmem:[%s1578_s28 + $0xb0] sm:$0xf]  ;;  %v310_v31 = vld [vmem:[%s1578_s28 + $0xb8] sm:$0xf] }
  0x46   : > { %307 = vst [vmem:[%s1583_s10 + $0x54] sm:$0xf] %v306_v29  ;;  %309 = vst [vmem:[%s1583_s10 + $0x58] sm:$0xf] %v308_v30  ;;  %v312_v32 = vld [vmem:[%s1578_s28 + $0xc0] sm:$0xf] }
  0x47   : > { %311 = vst [vmem:[%s1583_s10 + $0x5c] sm:$0xf] %v310_v31  ;;  %v314_v33 = vld [vmem:[%s1578_s28 + $0xc8] sm:$0xf]  ;;  %v316_v34 = vld [vmem:[%s1578_s28 + $0xd0] sm:$0xf] }
  0x48   : > { %313 = vst [vmem:[%s1583_s10 + $0x60] sm:$0xf] %v312_v32  ;;  %315 = vst [vmem:[%s1583_s10 + $0x64] sm:$0xf] %v314_v33  ;;  %v318_v35 = vld [vmem:[%s1578_s28 + $0xd8] sm:$0xf] }
  0x49   : > { %317 = vst [vmem:[%s1583_s10 + $0x68] sm:$0xf] %v316_v34  ;;  %v320_v36 = vld [vmem:[%s1578_s28 + $0xe0] sm:$0xf]  ;;  %v322_v37 = vld [vmem:[%s1578_s28 + $0xe8] sm:$0xf] }
  0x4a   : > { %319 = vst [vmem:[%s1583_s10 + $0x6c] sm:$0xf] %v318_v35  ;;  %321 = vst [vmem:[%s1583_s10 + $0x70] sm:$0xf] %v320_v36  ;;  %v324_v38 = vld [vmem:[%s1578_s28 + $0xf0] sm:$0xf] }
  0x4b   : > { %323 = vst [vmem:[%s1583_s10 + $0x74] sm:$0xf] %v322_v37  ;;  %v326_v39 = vld [vmem:[%s1578_s28 + $0xf8] sm:$0xf]  ;;  %v328_v40 = vld [vmem:[%s1578_s28 + $0x100] sm:$0xf] }
  0x4c   : > { %325 = vst [vmem:[%s1583_s10 + $0x78] sm:$0xf] %v324_v38  ;;  %327 = vst [vmem:[%s1583_s10 + $0x7c] sm:$0xf] %v326_v39  ;;  %v330_v41 = vld [vmem:[%s1578_s28 + $0x108] sm:$0xf] }
  0x4d   : > { %329 = vst [vmem:[%s1583_s10 + $0x80] sm:$0xf] %v328_v40  ;;  %v332_v42 = vld [vmem:[%s1578_s28 + $0x110] sm:$0xf]  ;;  %v334_v43 = vld [vmem:[%s1578_s28 + $0x118] sm:$0xf] }
  0x4e   : > { %331 = vst [vmem:[%s1583_s10 + $0x84] sm:$0xf] %v330_v41  ;;  %333 = vst [vmem:[%s1583_s10 + $0x88] sm:$0xf] %v332_v42  ;;  %v336_v44 = vld [vmem:[%s1578_s28 + $0x120] sm:$0xf] }
  0x4f   : > { %335 = vst [vmem:[%s1583_s10 + $0x8c] sm:$0xf] %v334_v43  ;;  %v338_v45 = vld [vmem:[%s1578_s28 + $0x128] sm:$0xf]  ;;  %v340_v46 = vld [vmem:[%s1578_s28 + $0x130] sm:$0xf] }
  0x50   : > { %337 = vst [vmem:[%s1583_s10 + $0x90] sm:$0xf] %v336_v44  ;;  %339 = vst [vmem:[%s1583_s10 + $0x94] sm:$0xf] %v338_v45  ;;  %v342_v47 = vld [vmem:[%s1578_s28 + $0x138] sm:$0xf] }
  0x51   : > { %341 = vst [vmem:[%s1583_s10 + $0x98] sm:$0xf] %v340_v46  ;;  %v344_v48 = vld [vmem:[%s1578_s28 + $0x140] sm:$0xf]  ;;  %v346_v49 = vld [vmem:[%s1578_s28 + $0x148] sm:$0xf] }
  0x52   : > { %343 = vst [vmem:[%s1583_s10 + $0x9c] sm:$0xf] %v342_v47  ;;  %345 = vst [vmem:[%s1583_s10 + $0xa0] sm:$0xf] %v344_v48  ;;  %v348_v50 = vld [vmem:[%s1578_s28 + $0x150] sm:$0xf] }
  0x53   : > { %347 = vst [vmem:[%s1583_s10 + $0xa4] sm:$0xf] %v346_v49  ;;  %v350_v51 = vld [vmem:[%s1578_s28 + $0x158] sm:$0xf]  ;;  %v352_v52 = vld [vmem:[%s1578_s28 + $0x160] sm:$0xf] }
  0x54   : > { %349 = vst [vmem:[%s1583_s10 + $0xa8] sm:$0xf] %v348_v50  ;;  %351 = vst [vmem:[%s1583_s10 + $0xac] sm:$0xf] %v350_v51  ;;  %v354_v53 = vld [vmem:[%s1578_s28 + $0x168] sm:$0xf] }
  0x55   : > { %353 = vst [vmem:[%s1583_s10 + $0xb0] sm:$0xf] %v352_v52  ;;  %v356_v54 = vld [vmem:[%s1578_s28 + $0x170] sm:$0xf]  ;;  %v358_v55 = vld [vmem:[%s1578_s28 + $0x178] sm:$0xf] }
  0x56   : > { %355 = vst [vmem:[%s1583_s10 + $0xb4] sm:$0xf] %v354_v53  ;;  %357 = vst [vmem:[%s1583_s10 + $0xb8] sm:$0xf] %v356_v54 }
  0x57   : > { %359 = vst [vmem:[%s1583_s10 + $0xbc] sm:$0xf] %v358_v55 }
  0x58 PF: > { %p1125_p0 = scmp.ge.s32.totalorder %s1436_s25, 1  ;;  %p489_p1 = scmp.lt.s32.totalorder %s1436_s25, 13 }
  0x5a   : > { %p490_p2 = pnand %p1125_p0, %p489_p1 }
  0x5b   : > { %s496_s0 = sand.u32 (!%p490_p2), 1, %s1412_s19   ;;  %s503_s11 = sand.u32 (!%p490_p2), 1, %s1404_s17  }
  0x5c   : > { %493 = sbr.rel (%p490_p2) target bundleno = 392 (0x188), region = 95  ;;  %s534_s28 = sand.u32 (!%p490_p2), 1, %s1396_s15  }
  0x5d   : > { %s1227_s26 = smul.u32 (!%p490_p2), 48, %s496_s0  ;;  %s1126_s29 = sshll.u32 (!%p490_p2), %s534_s28, 5 }
  0x5e   : > { %s1228_s5 = smul.u32 (!%p490_p2), 192, %s503_s11  ;;  %p540_p3 = scmp.lt.s32.totalorder (!%p490_p2), %s1424_s22, 1 }
  0x5f   : > { %s1695_s24 = scalar_lea.vmem (!%p490_p2), [#allocation3], %s1227_s26  ;;  %s1699_s15 = scalar_lea.vmem (!%p490_p2), [#allocation5], %s1126_s29 }
  0x60   : > { %s1697_s17 = scalar_lea.vmem (!%p490_p2), [#allocation4], %s1228_s5  ;;  %p1127_p4 = scmp.ne.s32.totalorder (!%p490_p2), %s1420_s21, 0 }
  0x63   : > { %s1685_s30 = scalar_select %p540_p3, %s1424_s22, 1 }
  0x64   : > { %551 = sbr.rel (%p1127_p4) target bundleno = 107 (0x6b), region = 107  ;;  %v1438_v56 = vmov (!%p1127_p4), 0.0  }
  0x65   : > { %s542_s9 = scalar_lea.vmem %s1792_s2, %s1685_s30  ;;  %s545_s27 = scalar_lea.vmem %s1793_s3, %s1685_s30  ;;  %552 = vst [vmem:[#allocation2] sm:$0xff] (!%p1127_p4), %v1438_v56  ;;  %553 = vst [vmem:[#allocation2 + $0x8] sm:$0xff] (!%p1127_p4), %v1438_v56 }
  0x66   : > { %554 = vst [vmem:[#allocation2 + $0x10] sm:$0xff] (!%p1127_p4), %v1438_v56  ;;  %555 = vst [vmem:[#allocation2 + $0x18] sm:$0xff] (!%p1127_p4), %v1438_v56 }
  0x6b PF: > { %v1318_v57 = vld [vmem:[%s1697_s17 + $0x40] sm:$0xff]   ;;  %v1321_v60 = vld [vmem:[%s1697_s17 + $0x48] sm:$0xff]   ;;  %v1324_v63 = vld [vmem:[%s1697_s17 + $0x50] sm:$0xff]   ;;  %p1158_p5 = scmp.ne.s32.totalorder %s1420_s21, 5 }
  0x6c   : > { %v1319_v58 = vld [vmem:[%s1697_s17] sm:$0xff]   ;;  %1167 = vmatprep.subr.bf16.mxu0 %v1318_v57  ;;  %v1322_v61 = vld [vmem:[%s1697_s17 + $0x8] sm:$0xff]   ;;  %v1325_v0 = vld [vmem:[%s1697_s17 + $0x10] sm:$0xff]  }
  0x6d   : > { %v1320_v59 = vld [vmem:[%s1697_s17 + $0x80] sm:$0xff]   ;;  %1168 = vmatpush3.bf16.msra.mxu0 %v1319_v58  ;;  %v1323_v62 = vld [vmem:[%s1697_s17 + $0x88] sm:$0xff]   ;;  %v1326_v1 = vld [vmem:[%s1697_s17 + $0x90] sm:$0xff]  }
  0x6e   : > { %1205 = vmatprep.subr.bf16.mxu1 %v1320_v59  ;;  %1169 = vmatprep.subr.bf16.mxu0 %v1321_v60  ;;  %v1327_v2 = vld [vmem:[%s1697_s17 + $0x58] sm:$0xff]   ;;  %v1330_v5 = vld [vmem:[%s1697_s17 + $0x60] sm:$0xff]   ;;  %v1333_v8 = vld [vmem:[%s1697_s17 + $0x68] sm:$0xff]  }
  0x6f   : > { %1206 = vmatpush3.bf16.msra.mxu1 %v1320_v59  ;;  %v1328_v3 = vld [vmem:[%s1697_s17 + $0x18] sm:$0xff]   ;;  %v1332_v6 = vld [vmem:[%s1697_s17 + $0xa0] sm:$0xff]   ;;  %v1335_v9 = vld [vmem:[%s1697_s17 + $0xa8] sm:$0xff]  }
  0x70   : > { %1207 = vmatprep.subr.bf16.mxu1 %v1323_v62  ;;  %v1329_v4 = vld [vmem:[%s1697_s17 + $0x98] sm:$0xff]   ;;  %v1331_v7 = vld [vmem:[%s1697_s17 + $0x20] sm:$0xff]   ;;  %v1334_v10 = vld [vmem:[%s1697_s17 + $0x28] sm:$0xff]  }
  0x71   : > { %1170 = vmatpush3.bf16.msra.mxu0 %v1322_v61  ;;  %v1336_v11 = vld [vmem:[%s1697_s17 + $0x70] sm:$0xff]   ;;  %v1339_v14 = vld [vmem:[%s1697_s17 + $0x78] sm:$0xff]   ;;  %v556_v29 = vld [vmem:[#allocation2] sm:$0xff] }
  0x72   : > { %1171 = vmatprep.subr.bf16.mxu0 %v1324_v63  ;;  %v1337_v12 = vld [vmem:[%s1697_s17 + $0x30] sm:$0xff]   ;;  %v1341_v15 = vld [vmem:[%s1697_s17 + $0xb8] sm:$0xff]   ;;  %v557_v34 = vld [vmem:[#allocation2 + $0x8] sm:$0xff] }
  0x73   : > { %1208 = vmatpush3.bf16.msra.mxu1 %v1323_v62  ;;  %v1338_v13 = vld [vmem:[%s1697_s17 + $0xb0] sm:$0xff]   ;;  %v1340_v18 = vld [vmem:[%s1697_s17 + $0x38] sm:$0xff]   ;;  %v1159_v52 = vld [vmem:[%s542_s9] ss:$0 sm:$0xff] (!%p1158_p5) }
  0x74   : > { %1209 = vmatprep.subr.bf16.mxu1 %v1326_v1  ;;  %v1344_v16 = vld [vmem:[%s1695_s24 + $0x4] ss:$12 sps:$4 sm:$0xff]   ;;  %v1345_v17 = vld [vmem:[%s1695_s24 + $0x8] ss:$12 sps:$4 sm:$0xff]   ;;  %v1342_v19 = vld [vmem:[%s1695_s24] ss:$12 sps:$4 sm:$0xff]  }
  0x75   : > { %1172 = vmatpush3.bf16.msra.mxu0 %v1325_v0  ;;  %824 = vmatprep.mubr.bf16.mxu0 %v1344_v16  ;;  %v1347_v20 = vld [vmem:[%s1695_s24 + $0x1c] ss:$12 sps:$4 sm:$0xff]   ;;  %v1346_v21 = vld [vmem:[%s1695_s24 + $0x20] ss:$12 sps:$4 sm:$0xff]   ;;  %v1349_v22 = vld [vmem:[%s1695_s24 + $0x18] ss:$12 sps:$4 sm:$0xff]  }
  0x76   : > { %1173 = vmatprep.subr.bf16.mxu0 %v1327_v2  ;;  %1221 = vmatprep.mubr.bf16.mxu1 %v1345_v17  ;;  %v558_v43 = vld [vmem:[#allocation2 + $0x10] sm:$0xff]  ;;  %v559_v47 = vld [vmem:[#allocation2 + $0x18] sm:$0xff]  ;;  %v1160_v53 = vld [vmem:[%s545_s27] ss:$0 sm:$0xff] (!%p1158_p5) }
  0x77   : > { %1210 = vmatpush3.bf16.msra.mxu1 %v1326_v1 }
  0x78   : > { %1211 = vmatprep.subr.bf16.mxu1 %v1329_v4 }
  0x79   : > { %1174 = vmatpush3.bf16.msra.mxu0 %v1328_v3 }
  0x7a   : > { %1175 = vmatprep.subr.bf16.mxu0 %v1330_v5 }
  0x7b   : > { %1212 = vmatpush3.bf16.msra.mxu1 %v1329_v4 }
  0x7c   : > { %1213 = vmatprep.subr.bf16.mxu1 %v1332_v6 }
  0x7d   : > { %1176 = vmatpush3.bf16.msra.mxu0 %v1331_v7 }
  0x7e   : > { %1177 = vmatprep.subr.bf16.mxu0 %v1333_v8 }
  0x7f   : > { %1214 = vmatpush3.bf16.msra.mxu1 %v1332_v6 }
  0x80   : > { %1215 = vmatprep.subr.bf16.mxu1 %v1335_v9 }
  0x81   : > { %1178 = vmatpush3.bf16.msra.mxu0 %v1334_v10 }
  0x82   : > { %1179 = vmatprep.subr.bf16.mxu0 %v1336_v11 }
  0x83   : > { %1216 = vmatpush3.bf16.msra.mxu1 %v1335_v9 }
  0x84   : > { %1217 = vmatprep.subr.bf16.mxu1 %v1338_v13 }
  0x85   : > { %1180 = vmatpush3.bf16.msra.mxu0 %v1337_v12 }
  0x86   : > { %1181 = vmatprep.subr.bf16.mxu0 %v1339_v14 }
  0x87   : > { %1218 = vmatpush3.bf16.msra.mxu1 %v1338_v13 }
  0x88   : > { %1219 = vmatprep.subr.bf16.mxu1 %v1341_v15 }
  0x89   : > { %1182 = vmatpush3.bf16.msra.mxu0 %v1340_v18 }
  0x8b   : > { %1220 = vmatpush3.bf16.msra.mxu1 %v1341_v15 }
  0x8c   : > { %825 = vmatmul.mubr.bf16.vlgmr.msra.gmra.mrb[0].mxu0 %v1342_v19 }
  0x8d   : > { %832 = vmatprep.mubr.bf16.mxu0 %v1347_v20 }
  0x8e   : > { %1222 = vmatmul.mubr.bf16.vlgmr.msra.gmra.mrb[0].mxu1 %v1346_v21 }
  0x94   : > { %833 = vmatmul.mubr.bf16.gmra.mrb[4].mxu0 %v1349_v22 }
 0x15f   : > { %v1183_v23 = vpop.f32.mrb[0].mxu0 }
 0x160   : > { %v1184_v24 = vpop.f32.mrb[1].mxu0 }
 0x161   : > { %v1185_v25 = vadd.f32 %v1184_v24, %v1183_v23  ;;  %v1186_v26 = vpop.f32.mrb[2].mxu0  ;;  %v1223_v27 = vpop.f32.mrb[0].mxu1 }
 0x162   : > { %v1187_v28 = vpop.f32.mrb[3].mxu0  ;;  %v875_v30 = vpop.f32.mrb[1].mxu1 }
 0x163   : > { %v1188_v31 = vadd.f32 %v1187_v28, %v1186_v26  ;;  %v876_v32 = vadd.f32 %v1185_v25, %v875_v30  ;;  %v1224_v33 = vpop.f32.mrb[2].mxu1 }
 0x164   : > { %v878_v35 = vpop.f32.mrb[3].mxu1 }
 0x165   : > { %v890_v36 = vadd.f32 %v876_v32, %v556_v29  ;;  %v879_v37 = vadd.f32 %v1188_v31, %v878_v35 }
 0x167   : > { %894 = vst [vmem:[#allocation2] sm:$0xff] %v890_v36  ;;  %v891_v38 = vadd.f32 %v879_v37, %v557_v34  ;;  %v1189_v39 = vpop.f32.mrb[4].mxu0 }
 0x168   : > { %v1190_v40 = vpop.f32.mrb[5].mxu0 }
 0x169   : > { %895 = vst [vmem:[#allocation2 + $0x8] sm:$0xff] %v891_v38  ;;  %v1191_v41 = vadd.f32 %v1190_v40, %v1189_v39  ;;  %v1192_v42 = vpop.f32.mrb[6].mxu0 }
 0x16a   : > { %v1193_v44 = vpop.f32.mrb[7].mxu0 }
 0x16b   : > { %v884_v45 = vadd.f32 %v1223_v27, %v1191_v41  ;;  %v1194_v46 = vadd.f32 %v1193_v44, %v1192_v42  ;;  %901 = sbr.rel (%p1158_p5) target bundleno = 384 (0x180), region = 111 }
 0x16d   : > { %v892_v48 = vadd.f32 %v884_v45, %v558_v43  ;;  %v887_v49 = vadd.f32 %v1224_v33, %v1194_v46 }
 0x16e   : > { %v902_v51 = vld [vmem:[#allocation2] sm:$0xff] (!%p1158_p5) }
 0x16f   : > { %896 = vst [vmem:[#allocation2 + $0x10] sm:$0xff] %v892_v48  ;;  %v893_v50 = vadd.f32 %v887_v49, %v559_v47  ;;  %v913_v54 = vmul.f32 (!%p1158_p5), %v1159_v52, %v902_v51 }
 0x170   : > { %v903_v55 = vld [vmem:[#allocation2 + $0x8] sm:$0xff] (!%p1158_p5) }
 0x171   : > { %897 = vst [vmem:[#allocation2 + $0x18] sm:$0xff] %v893_v50  ;;  %v914_v58 = vmul.f32 (!%p1158_p5), %v1159_v52, %v903_v55  ;;  %v924_v61 = vadd.f32 (!%p1158_p5), %v1160_v53, %v913_v54 }
 0x173   : > { %v925_v62 = vadd.f32 %v1160_v53, %v914_v58  ;;  %v928_v1 = vmax.f32 %v924_v61, 0.0 }
 0x175   : > { %v929_v2 = vmax.f32 %v925_v62, 0.0  ;;  %932 = vst [vmem:[%s1699_s15] sm:$0xff] %v928_v1 }
 0x176   : > { %v904_v56 = vld [vmem:[#allocation2 + $0x10] sm:$0xff] }
 0x177   : > { %v915_v59 = vmul.f32 %v1159_v52, %v904_v56  ;;  %933 = vst [vmem:[%s1699_s15 + $0x8] sm:$0xff] %v929_v2 }
 0x178   : > { %v905_v57 = vld [vmem:[#allocation2 + $0x18] sm:$0xff] }
 0x179   : > { %v916_v60 = vmul.f32 %v1159_v52, %v905_v57  ;;  %v926_v63 = vadd.f32 %v1160_v53, %v915_v59 }
 0x17b   : > { %v927_v0 = vadd.f32 %v1160_v53, %v916_v60  ;;  %v930_v3 = vmax.f32 %v926_v63, 0.0 }
 0x17d   : > { %v931_v4 = vmax.f32 %v927_v0, 0.0  ;;  %934 = vst [vmem:[%s1699_s15 + $0x10] sm:$0xff] %v930_v3 }
 0x17f   : > { %935 = vst [vmem:[%s1699_s15 + $0x18] sm:$0xff] %v931_v4 }
 0x180 PF: > { %942 = sbr.rel (!%p1558_p12) target bundleno = 392 (0x188), region = 115  ;;  %s1162_s21 = sshll.u32 (%p1558_p12), %s1424_s22, 3  ;;  %v981_v5 = vld [vmem:[%s1699_s15] sm:$0xff] (%p1558_p12)  ;;  %v983_v6 = vld [vmem:[%s1699_s15 + $0x8] sm:$0xff] (%p1558_p12) }
 0x181   : > { %s947_s26 = scalar_lea.vmem (%p1558_p12), %s1794_s4, %s1162_s21 }
 0x182   : > { %982 = vst [vmem:[%s947_s26] sm:$0xff] (%p1558_p12), %v981_v5  ;;  %984 = vst [vmem:[%s947_s26 + $0x10] sm:$0xff] (%p1558_p12), %v983_v6 }
 0x184   : > { %v985_v7 = vld [vmem:[%s1699_s15 + $0x10] sm:$0xff] (%p1558_p12) }
 0x185   : > { %986 = vst [vmem:[%s947_s26 + $0x20] sm:$0xff] (%p1558_p12), %v985_v7 }
 0x186   : > { %v987_v8 = vld [vmem:[%s1699_s15 + $0x18] sm:$0xff] (%p1558_p12) }
 0x187   : > { %988 = vst [vmem:[%s947_s26 + $0x30] sm:$0xff] %v987_v8 }
 0x188 PF: > { %s14_s25 = sadd.s32 1, %s1436_s25   ;;  %s1808_s22 = sld [smem:[#allocation6_spill]] }
 0x189   : > { %p11_p6 = scmp.ge.s32.totalorder %s14_s25, 14   ;;  %s1809_s14 = sld [smem:[#allocation7_spill]] }
 0x18a   : > { %s1810_s24 = sld [smem:[#allocation8_spill]]  ;;  %s1811_s15 = smov %s1400_s16 }
 0x18b   : > { %s1812_s16 = smov %s1556_s13  ;;  %s1813_s17 = smov %s1408_s18 }
 0x18c   : > { %s1814_s18 = smov %s1553_s12  ;;  %s1815_s19 = smov %s1416_s20 }
 0x18d   : > { %s1816_s20 = smov %s1539_s7  ;;  %s1817_s21 = smov %s1428_s23 }
 0x18e   :  { %13 = sbr.rel (!%p11_p6) target bundleno = 9 (0x9), region = 204 }
 0x18f   : > { %s1818_s23 = smov %s1809_s14 }

// kernel: _lambda_.37
= control target key start
LH: loop header
LB: loop body
LE: loop exit
PB: predicated region body
PF: predicated region fallthrough
CT: control target
= control target key end

     0   :  { %s1876_s0 = inlined_call_operand.vmem [shape: bf16[16,2304], index: 0, kind: input, shape index: {}]   ;;  %s1877_s1 = inlined_call_operand.vmem [shape: bf16[2304,512], index: 1, kind: input, shape index: {}]   ;;  %s1878_s2 = inlined_call_operand.vmem [shape: f32[1,512], index: 2, kind: input, shape index: {}]   ;;  %s1879_s3 = inlined_call_operand.vmem [shape: f32[1,512], index: 3, kind: input, shape index: {}]   ;;  %s1880_s4 = inlined_call_operand.vmem [shape: f32[16,512], index: 4, kind: output, shape index: {}]  }
   0x1   :  { %1883 = sst [smem:[#allocation8_spill]] %s1876_s0 }
   0x2   :  { %1884 = sst [smem:[#allocation9_spill]] %s1877_s1 }
   0x3   :  { %s1530_s15 = smov 0   ;;  %s1532_s16 = smov 0  }
   0x4   :  { %s1534_s17 = smov 0   ;;  %s1536_s18 = smov 0  }
   0x5   :  { %s1538_s19 = smov 0   ;;  %s1540_s20 = smov 0  }
   0x6   :  { %s1542_s21 = smov 0   ;;  %s1544_s22 = smov 0  }
   0x7   :  { %s1546_s23 = smov 0   ;;  %s1548_s24 = smov 0  }
   0x8   :  { %s1550_s25 = smov 0  }
   0x9 LB: > { %s1164_s26 = sadd.s32 4294967295, %s1501_s25   ;;  %s26_s27 = sadd.s32 1, %s1493_s23  ;;  %s1501_s25 = sphi %s1550_s25, %s14_s25   ;;  %s1497_s24 = sphi %s1548_s24, %s1903_s24   ;;  %s1493_s23 = sphi %s1546_s23, %s1902_s23   ;;  %s1489_s22 = sphi %s1544_s22, %s1901_s22   ;;  %s1485_s21 = sphi %s1542_s21, %s1900_s21   ;;  %s1481_s20 = sphi %s1540_s20, %s1899_s20   ;;  %s1477_s19 = sphi %s1538_s19, %s1898_s19   ;;  %s1473_s18 = sphi %s1536_s18, %s1897_s18   ;;  %s1469_s17 = sphi %s1534_s17, %s1896_s17   ;;  %s1465_s16 = sphi %s1532_s16, %s1895_s16   ;;  %s1461_s15 = sphi %s1530_s15, %s1894_s15  }
   0xa   : > { %p27_p0 = scmp.ge.s32.totalorder %s26_s27, 6  ;;  %s29_s28 = sadd.s32 1, %s1497_s24 }
   0xb   : > { %s42_s29 = sadd.s32 1, %s1481_s20  ;;  %p49_p1 = scmp.ne.s32.totalorder %s1481_s20, %s1477_s19 }
   0xc   : > { %s1905_s27 = smov (%p27_p0, %s26_s27), 0  ;;  %s1907_s28 = smov (!%p27_p0, %s29_s28), %s1497_s24 }
   0xd   : > { %1885 = sst [smem:[#allocation6_spill]] %s1905_s27  ;;  %s38_s30 = ssub.s32 %s1493_s23, %s1905_s27 }
   0xe   : > { %p50_p2 = scmp.eq.s32.totalorder %s1501_s25, 0  ;;  %p31_p3 = scmp.ge.s32.totalorder %s1907_s28, 2 }
   0xf   : > { %p40_p4 = scmp.eq.s32.totalorder %s38_s30, 0  ;;  %s70_s6 = sadd.s32 1, %s1473_s18 }
  0x10   : > { %p1597_p5 = por %p50_p2, %p49_p1  ;;  %s1909_s28 = smov (%p31_p3, %s1907_s28), 0 }
  0x11   : > { %1887 = sst [smem:[#allocation7_spill]] %s1909_s28  ;;  %s66_s8 = ssub.s32 %s1497_s24, %s1909_s28 }
  0x12   : > { %s1605_s7 = scalar_select %p40_p4, %s1481_s20, %s42_s29  }
  0x13   : > { %p77_p6 = scmp.ne.s32.totalorder %s1473_s18, %s1469_s17  ;;  %s67_s9 = sor.u32 %s66_s8, %s38_s30 }
  0x14   : > { %p148_p7 = scmp.eq.s32.totalorder %s66_s8, 0  ;;  %p68_p8 = scmp.eq.s32.totalorder %s67_s9, 0 }
  0x15   : > { %p1611_p9 = por %p77_p6, %p50_p2  ;;  %s150_s11 = sadd.s32 1, %s1465_s16 }
  0x16   : > { %p160_p10 = scmp.ne.s32.totalorder %s1465_s16, %s1461_s15  ;;  %p161_p11 = scmp.eq.s32.totalorder %s1164_s26, 11 }
  0x17   : > { %s1619_s12 = scalar_select %p68_p8, %s1473_s18, %s70_s6  }
  0x18   : > { %s1622_s13 = scalar_select %p148_p7, %s1465_s16, %s150_s11  }
  0x19   : > { %p1624_p12 = por %p161_p11, %p160_p10  ;;  %p1167_p13 = scmp.ge.s32.totalorder %s1501_s25, 12 }
  0x1b   : > { %183 = sbr.rel (%p1167_p13) target bundleno = 79 (0x4f), region = 16 }
  0x22   : > { %186 = sbr.rel (!%p1597_p5) target bundleno = 45 (0x2d), region = 20  ;;  %s188_s29 = sand.u32 (%p1597_p5), 1, %s1481_s20  }
  0x23   : > { %s1238_s30 = smul.u32 (%p1597_p5), 12, %s1493_s23  ;;  %s1890_s0 = sld [smem:[#allocation8_spill]] (%p1597_p5) }
  0x24   : > { %s1245_s8 = smul.u32 (%p1597_p5), 24, %s188_s29 }
  0x26   : > { %s190_s26 = scalar_lea.vmem (%p1597_p5), [#allocation3], %s1245_s8 }
  0x29   : > { %s196_s11 = scalar_lea.vmem %s1890_s0, %s1238_s30 }
  0x2a   : > { %v211_v0 = vld [vmem:[%s196_s11] sm:$0xff]  ;;  %v213_v1 = vld [vmem:[%s196_s11 + $0x48] sm:$0xff]  ;;  %v1171_v3 = vld [vmem:[%s196_s11 + $0x50] sm:$0xf] }
  0x2b   : > { %v1169_v2 = vld [vmem:[%s196_s11 + $0x8] sm:$0xf]  ;;  %212 = vst [vmem:[%s190_s26] sm:$0xff] %v211_v0  ;;  %214 = vst [vmem:[%s190_s26 + $0xc] sm:$0xff] %v213_v1 }
  0x2c   : > { %1170 = vst [vmem:[%s190_s26 + $0x8] sm:$0xf] %v1169_v2  ;;  %1172 = vst [vmem:[%s190_s26 + $0x14] sm:$0xf] %v1171_v3 }
  0x2d PF: > { %231 = sbr.rel (!%p1611_p9) target bundleno = 79 (0x4f), region = 46  ;;  %s233_s5 = sand.u32 (%p1611_p9), 1, %s1473_s18  }
  0x2e   : > { %s1246_s29 = smul.u32 (%p1611_p9), 384, %s233_s5  ;;  %s1173_s6 = sshll.u32 (%p1611_p9), %s1497_s24, 1 }
  0x2f   : > { %s1239_s30 = smul.u32 (%p1611_p9), 192, %s1493_s23  ;;  %s1891_s1 = sld [smem:[#allocation9_spill]] (%p1611_p9) }
  0x30   : > { %s1649_s10 = scalar_lea.vmem (%p1611_p9), [#allocation4], %s1246_s29 }
  0x31   : > { %s239_s9 = sadd.s32 (%p1611_p9), %s1239_s30, %s1173_s6 }
  0x32   : > { %s1175_s0 = sshll.u32 (%p1611_p9), %s239_s9, 2 }
  0x35   : > { %s1644_s27 = scalar_lea.vmem %s1891_s1, %s1175_s0 }
  0x36   : > { %v363_v4 = vld [vmem:[%s1644_s27] sm:$0xff]  ;;  %v365_v5 = vld [vmem:[%s1644_s27 + $0x10] sm:$0xff] }
  0x37   : > { %v367_v6 = vld [vmem:[%s1644_s27 + $0x20] sm:$0xff]  ;;  %364 = vst [vmem:[%s1649_s10] sm:$0xff] %v363_v4  ;;  %366 = vst [vmem:[%s1649_s10 + $0x8] sm:$0xff] %v365_v5  ;;  %v369_v7 = vld [vmem:[%s1644_s27 + $0x30] sm:$0xff] }
  0x38   : > { %368 = vst [vmem:[%s1649_s10 + $0x10] sm:$0xff] %v367_v6  ;;  %v371_v8 = vld [vmem:[%s1644_s27 + $0x40] sm:$0xff]  ;;  %v373_v9 = vld [vmem:[%s1644_s27 + $0x50] sm:$0xff]  ;;  %370 = vst [vmem:[%s1649_s10 + $0x18] sm:$0xff] %v369_v7 }
  0x39   : > { %372 = vst [vmem:[%s1649_s10 + $0x20] sm:$0xff] %v371_v8  ;;  %374 = vst [vmem:[%s1649_s10 + $0x28] sm:$0xff] %v373_v9  ;;  %v375_v10 = vld [vmem:[%s1644_s27 + $0x60] sm:$0xff]  ;;  %v377_v11 = vld [vmem:[%s1644_s27 + $0x70] sm:$0xff] }
  0x3a   : > { %v379_v12 = vld [vmem:[%s1644_s27 + $0x80] sm:$0xff]  ;;  %376 = vst [vmem:[%s1649_s10 + $0x30] sm:$0xff] %v375_v10  ;;  %378 = vst [vmem:[%s1649_s10 + $0x38] sm:$0xff] %v377_v11  ;;  %v381_v13 = vld [vmem:[%s1644_s27 + $0x90] sm:$0xff] }
  0x3b   : > { %380 = vst [vmem:[%s1649_s10 + $0x40] sm:$0xff] %v379_v12  ;;  %v383_v14 = vld [vmem:[%s1644_s27 + $0xa0] sm:$0xff]  ;;  %v385_v15 = vld [vmem:[%s1644_s27 + $0xb0] sm:$0xff]  ;;  %382 = vst [vmem:[%s1649_s10 + $0x48] sm:$0xff] %v381_v13 }
  0x3c   : > { %384 = vst [vmem:[%s1649_s10 + $0x50] sm:$0xff] %v383_v14  ;;  %386 = vst [vmem:[%s1649_s10 + $0x58] sm:$0xff] %v385_v15  ;;  %v387_v16 = vld [vmem:[%s1644_s27 + $0xc0] sm:$0xff]  ;;  %v389_v17 = vld [vmem:[%s1644_s27 + $0xd0] sm:$0xff] }
  0x3d   : > { %v391_v18 = vld [vmem:[%s1644_s27 + $0xe0] sm:$0xff]  ;;  %388 = vst [vmem:[%s1649_s10 + $0x60] sm:$0xff] %v387_v16  ;;  %390 = vst [vmem:[%s1649_s10 + $0x68] sm:$0xff] %v389_v17  ;;  %v393_v19 = vld [vmem:[%s1644_s27 + $0xf0] sm:$0xff] }
  0x3e   : > { %392 = vst [vmem:[%s1649_s10 + $0x70] sm:$0xff] %v391_v18  ;;  %v395_v20 = vld [vmem:[%s1644_s27 + $0x100] sm:$0xff]  ;;  %v397_v21 = vld [vmem:[%s1644_s27 + $0x110] sm:$0xff]  ;;  %394 = vst [vmem:[%s1649_s10 + $0x78] sm:$0xff] %v393_v19 }
  0x3f   : > { %396 = vst [vmem:[%s1649_s10 + $0x80] sm:$0xff] %v395_v20  ;;  %398 = vst [vmem:[%s1649_s10 + $0x88] sm:$0xff] %v397_v21  ;;  %v399_v22 = vld [vmem:[%s1644_s27 + $0x120] sm:$0xff]  ;;  %v401_v23 = vld [vmem:[%s1644_s27 + $0x130] sm:$0xff] }
  0x40   : > { %v403_v24 = vld [vmem:[%s1644_s27 + $0x140] sm:$0xff]  ;;  %400 = vst [vmem:[%s1649_s10 + $0x90] sm:$0xff] %v399_v22  ;;  %402 = vst [vmem:[%s1649_s10 + $0x98] sm:$0xff] %v401_v23  ;;  %v405_v25 = vld [vmem:[%s1644_s27 + $0x150] sm:$0xff] }
  0x41   : > { %404 = vst [vmem:[%s1649_s10 + $0xa0] sm:$0xff] %v403_v24  ;;  %v407_v26 = vld [vmem:[%s1644_s27 + $0x160] sm:$0xff]  ;;  %v409_v27 = vld [vmem:[%s1644_s27 + $0x170] sm:$0xff]  ;;  %406 = vst [vmem:[%s1649_s10 + $0xa8] sm:$0xff] %v405_v25 }
  0x42   : > { %408 = vst [vmem:[%s1649_s10 + $0xb0] sm:$0xff] %v407_v26  ;;  %410 = vst [vmem:[%s1649_s10 + $0xb8] sm:$0xff] %v409_v27  ;;  %v411_v28 = vld [vmem:[%s1644_s27 + $0x180] sm:$0xff]  ;;  %v413_v29 = vld [vmem:[%s1644_s27 + $0x190] sm:$0xff] }
  0x43   : > { %v415_v30 = vld [vmem:[%s1644_s27 + $0x1a0] sm:$0xff]  ;;  %412 = vst [vmem:[%s1649_s10 + $0xc0] sm:$0xff] %v411_v28  ;;  %414 = vst [vmem:[%s1649_s10 + $0xc8] sm:$0xff] %v413_v29  ;;  %v417_v31 = vld [vmem:[%s1644_s27 + $0x1b0] sm:$0xff] }
  0x44   : > { %416 = vst [vmem:[%s1649_s10 + $0xd0] sm:$0xff] %v415_v30  ;;  %v419_v32 = vld [vmem:[%s1644_s27 + $0x1c0] sm:$0xff]  ;;  %v421_v33 = vld [vmem:[%s1644_s27 + $0x1d0] sm:$0xff]  ;;  %418 = vst [vmem:[%s1649_s10 + $0xd8] sm:$0xff] %v417_v31 }
  0x45   : > { %420 = vst [vmem:[%s1649_s10 + $0xe0] sm:$0xff] %v419_v32  ;;  %422 = vst [vmem:[%s1649_s10 + $0xe8] sm:$0xff] %v421_v33  ;;  %v423_v34 = vld [vmem:[%s1644_s27 + $0x1e0] sm:$0xff]  ;;  %v425_v35 = vld [vmem:[%s1644_s27 + $0x1f0] sm:$0xff] }
  0x46   : > { %v427_v36 = vld [vmem:[%s1644_s27 + $0x200] sm:$0xff]  ;;  %424 = vst [vmem:[%s1649_s10 + $0xf0] sm:$0xff] %v423_v34  ;;  %426 = vst [vmem:[%s1649_s10 + $0xf8] sm:$0xff] %v425_v35  ;;  %v429_v37 = vld [vmem:[%s1644_s27 + $0x210] sm:$0xff] }
  0x47   : > { %428 = vst [vmem:[%s1649_s10 + $0x100] sm:$0xff] %v427_v36  ;;  %v431_v38 = vld [vmem:[%s1644_s27 + $0x220] sm:$0xff]  ;;  %v433_v39 = vld [vmem:[%s1644_s27 + $0x230] sm:$0xff]  ;;  %430 = vst [vmem:[%s1649_s10 + $0x108] sm:$0xff] %v429_v37 }
  0x48   : > { %432 = vst [vmem:[%s1649_s10 + $0x110] sm:$0xff] %v431_v38  ;;  %434 = vst [vmem:[%s1649_s10 + $0x118] sm:$0xff] %v433_v39  ;;  %v435_v40 = vld [vmem:[%s1644_s27 + $0x240] sm:$0xff]  ;;  %v437_v41 = vld [vmem:[%s1644_s27 + $0x250] sm:$0xff] }
  0x49   : > { %v439_v42 = vld [vmem:[%s1644_s27 + $0x260] sm:$0xff]  ;;  %436 = vst [vmem:[%s1649_s10 + $0x120] sm:$0xff] %v435_v40  ;;  %438 = vst [vmem:[%s1649_s10 + $0x128] sm:$0xff] %v437_v41  ;;  %v441_v43 = vld [vmem:[%s1644_s27 + $0x270] sm:$0xff] }
  0x4a   : > { %440 = vst [vmem:[%s1649_s10 + $0x130] sm:$0xff] %v439_v42  ;;  %v443_v44 = vld [vmem:[%s1644_s27 + $0x280] sm:$0xff]  ;;  %v445_v45 = vld [vmem:[%s1644_s27 + $0x290] sm:$0xff]  ;;  %442 = vst [vmem:[%s1649_s10 + $0x138] sm:$0xff] %v441_v43 }
  0x4b   : > { %444 = vst [vmem:[%s1649_s10 + $0x140] sm:$0xff] %v443_v44  ;;  %446 = vst [vmem:[%s1649_s10 + $0x148] sm:$0xff] %v445_v45  ;;  %v447_v46 = vld [vmem:[%s1644_s27 + $0x2a0] sm:$0xff]  ;;  %v449_v47 = vld [vmem:[%s1644_s27 + $0x2b0] sm:$0xff] }
  0x4c   : > { %v451_v48 = vld [vmem:[%s1644_s27 + $0x2c0] sm:$0xff]  ;;  %448 = vst [vmem:[%s1649_s10 + $0x150] sm:$0xff] %v447_v46  ;;  %450 = vst [vmem:[%s1649_s10 + $0x158] sm:$0xff] %v449_v47  ;;  %v453_v49 = vld [vmem:[%s1644_s27 + $0x2d0] sm:$0xff] }
  0x4d   : > { %452 = vst [vmem:[%s1649_s10 + $0x160] sm:$0xff] %v451_v48  ;;  %v455_v50 = vld [vmem:[%s1644_s27 + $0x2e0] sm:$0xff]  ;;  %v457_v51 = vld [vmem:[%s1644_s27 + $0x2f0] sm:$0xff]  ;;  %454 = vst [vmem:[%s1649_s10 + $0x168] sm:$0xff] %v453_v49 }
  0x4e   : > { %456 = vst [vmem:[%s1649_s10 + $0x170] sm:$0xff] %v455_v50  ;;  %458 = vst [vmem:[%s1649_s10 + $0x178] sm:$0xff] %v457_v51 }
  0x4f PF: > { %p1176_p0 = scmp.ge.s32.totalorder %s1501_s25, 1  ;;  %p479_p1 = scmp.lt.s32.totalorder %s1501_s25, 13 }
  0x51   : > { %p480_p2 = pnand %p1176_p0, %p479_p1 }
  0x52   : > { %s486_s0 = sand.u32 (!%p480_p2), 1, %s1477_s19   ;;  %s493_s28 = sand.u32 (!%p480_p2), 1, %s1469_s17  }
  0x53   : > { %483 = sbr.rel (%p480_p2) target bundleno = 404 (0x194), region = 92  ;;  %s526_s26 = sand.u32 (!%p480_p2), 1, %s1461_s15  }
  0x54   : > { %s1247_s11 = smul.u32 (!%p480_p2), 24, %s486_s0  ;;  %s1177_s5 = sshll.u32 (!%p480_p2), %s526_s26, 5 }
  0x55   : > { %s1248_s27 = smul.u32 (!%p480_p2), 384, %s493_s28  ;;  %s1178_s29 = sshll.u32 (!%p480_p2), %s1489_s22, 1 }
  0x56   : > { %p534_p3 = scmp.lt.s32.totalorder (!%p480_p2), %s1178_s29, 3  ;;  %s1760_s19 = scalar_lea.vmem (!%p480_p2), [#allocation3], %s1247_s11 }
  0x57   : > { %s1762_s17 = scalar_lea.vmem (!%p480_p2), [#allocation4], %s1248_s27  ;;  %s1764_s15 = scalar_lea.vmem (!%p480_p2), [#allocation5], %s1177_s5 }
  0x58   : > { %p1180_p4 = scmp.ne.s32.totalorder (!%p480_p2), %s1485_s21, 0 }
  0x5a   : > { %s1911_s29 = smov (!%p534_p3, %s1178_s29), 3  ;;  %549 = sbr.rel (%p1180_p4) target bundleno = 97 (0x61), region = 104 }
  0x5b   : > { %s536_s9 = scalar_lea.vmem %s1878_s2, %s1911_s29  ;;  %s541_s1 = scalar_lea.vmem %s1879_s3, %s1911_s29  ;;  %v1503_v52 = vmov (!%p1180_p4), 0.0  }
  0x5c   : > { %550 = vst [vmem:[#allocation2] sm:$0xff] (!%p1180_p4), %v1503_v52  ;;  %551 = vst [vmem:[#allocation2 + $0x8] sm:$0xff] (!%p1180_p4), %v1503_v52 }
  0x5d   : > { %552 = vst [vmem:[#allocation2 + $0x10] sm:$0xff] (!%p1180_p4), %v1503_v52  ;;  %553 = vst [vmem:[#allocation2 + $0x18] sm:$0xff] (!%p1180_p4), %v1503_v52 }
  0x61 PF: > { %v1339_v53 = vld [vmem:[%s1762_s17 + $0x4] ss:$8 sps:$4 sm:$0xff]   ;;  %v1341_v54 = vld [vmem:[%s1762_s17] ss:$8 sps:$4 sm:$0xff]   ;;  %v1504_v55 = vmov 0   ;;  %p1232_p5 = scmp.ne.s32.totalorder %s1485_s21, 5 }
  0x62   : > { %941 = vmatprep.mubr.bf16.mxu0 %v1504_v55  ;;  %866 = vmatprep.subr.bf16.mxu1 %v1339_v53  ;;  %v1342_v56 = vld [vmem:[%s1762_s17 + $0x14] ss:$8 sps:$4 sm:$0xff]   ;;  %v1344_v57 = vld [vmem:[%s1762_s17 + $0x10] ss:$8 sps:$4 sm:$0xff]   ;;  %v1345_v58 = vld [vmem:[%s1762_s17 + $0x24] ss:$8 sps:$4 sm:$0xff]  }
  0x63   : > { %867 = vmatpush1.bf16.msra.mxu1 %v1341_v54  ;;  %v1347_v59 = vld [vmem:[%s1762_s17 + $0x20] ss:$8 sps:$4 sm:$0xff]   ;;  %v1348_v60 = vld [vmem:[%s1762_s17 + $0x34] ss:$8 sps:$4 sm:$0xff]   ;;  %v1350_v61 = vld [vmem:[%s1762_s17 + $0x30] ss:$8 sps:$4 sm:$0xff]  }
  0x64   : > { %868 = vmatprep.subr.bf16.mxu1 %v1342_v56  ;;  %v1363_v62 = vld [vmem:[%s1762_s17 + $0x104] ss:$8 sps:$4 sm:$0xff]   ;;  %v1365_v63 = vld [vmem:[%s1762_s17 + $0x100] ss:$8 sps:$4 sm:$0xff]   ;;  %v1369_v1 = vld [vmem:[%s1762_s17 + $0x114] ss:$8 sps:$4 sm:$0xff]  }
  0x65   : > { %v1351_v0 = vld [vmem:[%s1762_s17 + $0x44] ss:$8 sps:$4 sm:$0xff]   ;;  %909 = vmatprep.subr.bf16.mxu0 %v1363_v62  ;;  %v1371_v2 = vld [vmem:[%s1762_s17 + $0x110] ss:$8 sps:$4 sm:$0xff]   ;;  %v1353_v3 = vld [vmem:[%s1762_s17 + $0x40] ss:$8 sps:$4 sm:$0xff]  }
  0x66   : > { %910 = vmatpush1.bf16.msra.mxu0 %v1365_v63  ;;  %v1354_v4 = vld [vmem:[%s1762_s17 + $0x54] ss:$8 sps:$4 sm:$0xff]   ;;  %v1375_v5 = vld [vmem:[%s1762_s17 + $0x124] ss:$8 sps:$4 sm:$0xff]   ;;  %v1377_v6 = vld [vmem:[%s1762_s17 + $0x120] ss:$8 sps:$4 sm:$0xff]  }
  0x67   : > { %869 = vmatpush1.bf16.msra.mxu1 %v1344_v57  ;;  %911 = vmatprep.subr.bf16.mxu0 %v1369_v1  ;;  %v1356_v7 = vld [vmem:[%s1762_s17 + $0x50] ss:$8 sps:$4 sm:$0xff]   ;;  %v1381_v8 = vld [vmem:[%s1762_s17 + $0x134] ss:$8 sps:$4 sm:$0xff]   ;;  %v1357_v9 = vld [vmem:[%s1762_s17 + $0x64] ss:$8 sps:$4 sm:$0xff]  }
  0x68   : > { %870 = vmatprep.subr.bf16.mxu1 %v1345_v58  ;;  %v1383_v10 = vld [vmem:[%s1762_s17 + $0x130] ss:$8 sps:$4 sm:$0xff]   ;;  %v1359_v11 = vld [vmem:[%s1762_s17 + $0x60] ss:$8 sps:$4 sm:$0xff]   ;;  %v1387_v12 = vld [vmem:[%s1762_s17 + $0x144] ss:$8 sps:$4 sm:$0xff]  }
  0x69   : > { %v1360_v13 = vld [vmem:[%s1762_s17 + $0x74] ss:$8 sps:$4 sm:$0xff]   ;;  %v1389_v14 = vld [vmem:[%s1762_s17 + $0x140] ss:$8 sps:$4 sm:$0xff]   ;;  %v1362_v15 = vld [vmem:[%s1762_s17 + $0x70] ss:$8 sps:$4 sm:$0xff]  }
  0x6a   : > { %912 = vmatpush1.bf16.msra.mxu0 %v1371_v2  ;;  %v1393_v16 = vld [vmem:[%s1762_s17 + $0x154] ss:$8 sps:$4 sm:$0xff]   ;;  %v1366_v17 = vld [vmem:[%s1762_s17 + $0x84] ss:$8 sps:$4 sm:$0xff]   ;;  %v1395_v18 = vld [vmem:[%s1762_s17 + $0x150] ss:$8 sps:$4 sm:$0xff]  }
  0x6b   : > { %871 = vmatpush1.bf16.msra.mxu1 %v1347_v59  ;;  %913 = vmatprep.subr.bf16.mxu0 %v1375_v5  ;;  %v1368_v19 = vld [vmem:[%s1762_s17 + $0x80] ss:$8 sps:$4 sm:$0xff]   ;;  %v1399_v20 = vld [vmem:[%s1762_s17 + $0x164] ss:$8 sps:$4 sm:$0xff]   ;;  %v1372_v21 = vld [vmem:[%s1762_s17 + $0x94] ss:$8 sps:$4 sm:$0xff]  }
  0x6c   : > { %872 = vmatprep.subr.bf16.mxu1 %v1348_v60  ;;  %v1401_v22 = vld [vmem:[%s1762_s17 + $0x160] ss:$8 sps:$4 sm:$0xff]   ;;  %v1374_v24 = vld [vmem:[%s1762_s17 + $0x90] ss:$8 sps:$4 sm:$0xff]   ;;  %v1405_v25 = vld [vmem:[%s1762_s17 + $0x174] ss:$8 sps:$4 sm:$0xff]  }
  0x6d   : > { %v1414_v23 = vld [vmem:[%s1760_s19 + $0x4] ss:$12 sps:$4 sm:$0xff]   ;;  %v1411_v30 = vld [vmem:[%s1760_s19 + $0x8] ss:$12 sps:$4 sm:$0xff]   ;;  %v1412_v40 = vld [vmem:[%s1760_s19] ss:$12 sps:$4 sm:$0xff]  }
  0x6e   : > { %914 = vmatpush1.bf16.msra.mxu0 %v1377_v6  ;;  %v1378_v26 = vld [vmem:[%s1762_s17 + $0xa4] ss:$8 sps:$4 sm:$0xff]   ;;  %898 = vmatprep.mubr.bf16.mxu1 %v1414_v23  ;;  %v1407_v27 = vld [vmem:[%s1762_s17 + $0x170] ss:$8 sps:$4 sm:$0xff]   ;;  %v1380_v28 = vld [vmem:[%s1762_s17 + $0xa0] ss:$8 sps:$4 sm:$0xff]  }
  0x6f   : > { %873 = vmatpush1.bf16.msra.mxu1 %v1350_v61  ;;  %915 = vmatprep.subr.bf16.mxu0 %v1381_v8  ;;  %v1384_v29 = vld [vmem:[%s1762_s17 + $0xb4] ss:$8 sps:$4 sm:$0xff]   ;;  %v1386_v31 = vld [vmem:[%s1762_s17 + $0xb0] ss:$8 sps:$4 sm:$0xff]   ;;  %v1390_v32 = vld [vmem:[%s1762_s17 + $0xc4] ss:$8 sps:$4 sm:$0xff]   ;;  %v970_v61 = vlaneseq (!%p1232_p5) }
  0x70   : > { %874 = vmatprep.subr.bf16.mxu1 %v1351_v0  ;;  %v1392_v33 = vld [vmem:[%s1762_s17 + $0xc0] ss:$8 sps:$4 sm:$0xff]   ;;  %v1396_v34 = vld [vmem:[%s1762_s17 + $0xd4] ss:$8 sps:$4 sm:$0xff]   ;;  %v1398_v35 = vld [vmem:[%s1762_s17 + $0xd0] ss:$8 sps:$4 sm:$0xff]  }
  0x71   : > { %v1402_v36 = vld [vmem:[%s1762_s17 + $0xe4] ss:$8 sps:$4 sm:$0xff]   ;;  %v1404_v37 = vld [vmem:[%s1762_s17 + $0xe0] ss:$8 sps:$4 sm:$0xff]   ;;  %v1408_v38 = vld [vmem:[%s1762_s17 + $0xf4] ss:$8 sps:$4 sm:$0xff]  }
  0x72   : > { %916 = vmatpush1.bf16.msra.mxu0 %v1383_v10  ;;  %v1410_v39 = vld [vmem:[%s1762_s17 + $0xf0] ss:$8 sps:$4 sm:$0xff]   ;;  %v556_v51 = vld [vmem:[#allocation2 + $0x10] sm:$0xff]  ;;  %v557_v55 = vld [vmem:[#allocation2 + $0x18] sm:$0xff]  ;;  %v971_v62 = vshrl.u32 (!%p1232_p5), %v970_v61, 7 }
  0x73   : > { %875 = vmatpush1.bf16.msra.mxu1 %v1353_v3  ;;  %917 = vmatprep.subr.bf16.mxu0 %v1387_v12  ;;  %v554_v45 = vld [vmem:[#allocation2] sm:$0xff]  ;;  %v555_v48 = vld [vmem:[#allocation2 + $0x8] sm:$0xff] }
  0x74   : > { %876 = vmatprep.subr.bf16.mxu1 %v1354_v4  ;;  %v968_v63 = vld [vmem:[%s536_s9] sm:$0x3] (!%p1232_p5)  ;;  %v972_v2 = vsub.s32 (!%p1232_p5), 0, %v971_v62  ;;  %v976_v3 = vsub.s32 (!%p1232_p5), 1, %v971_v62 }
  0x75   : > { %v984_v0 = vld [vmem:[%s541_s1] sm:$0x3] (!%p1232_p5) }
  0x76   : > { %918 = vmatpush1.bf16.msra.mxu0 %v1389_v14  ;;  %v989_v8 = vrot.slane (!%p1232_p5), %v984_v0, %v972_v2  ;;  %v993_v10 = vrot.slane (!%p1232_p5), %v984_v0, %v976_v3 }
  0x77   : > { %877 = vmatpush1.bf16.msra.mxu1 %v1356_v7  ;;  %919 = vmatprep.subr.bf16.mxu0 %v1393_v16  ;;  %v973_v7 = vrot.slane (!%p1232_p5), %v968_v63, %v972_v2 }
  0x78   : > { %878 = vmatprep.subr.bf16.mxu1 %v1357_v9  ;;  %v977_v9 = vrot.slane (!%p1232_p5), %v968_v63, %v976_v3 }
  0x7a   : > { %920 = vmatpush1.bf16.msra.mxu0 %v1395_v18 }
  0x7b   : > { %879 = vmatpush1.bf16.msra.mxu1 %v1359_v11  ;;  %921 = vmatprep.subr.bf16.mxu0 %v1399_v20 }
  0x7c   : > { %880 = vmatprep.subr.bf16.mxu1 %v1360_v13 }
  0x7e   : > { %922 = vmatpush1.bf16.msra.mxu0 %v1401_v22 }
  0x7f   : > { %881 = vmatpush1.bf16.msra.mxu1 %v1362_v15  ;;  %923 = vmatprep.subr.bf16.mxu0 %v1405_v25 }
  0x80   : > { %882 = vmatprep.subr.bf16.mxu1 %v1366_v17 }
  0x82   : > { %924 = vmatpush1.bf16.msra.mxu0 %v1407_v27 }
  0x83   : > { %883 = vmatpush1.bf16.msra.mxu1 %v1368_v19 }
  0x84   : > { %884 = vmatprep.subr.bf16.mxu1 %v1372_v21 }
  0x85   : > { %942 = vmatmul.mubr.bf16.vlgmr.msra.gmra.mrb[0].mxu0 %v1411_v30 }
  0x87   : > { %885 = vmatpush1.bf16.msra.mxu1 %v1374_v24 }
  0x88   : > { %886 = vmatprep.subr.bf16.mxu1 %v1378_v26 }
  0x8b   : > { %887 = vmatpush1.bf16.msra.mxu1 %v1380_v28 }
  0x8c   : > { %888 = vmatprep.subr.bf16.mxu1 %v1384_v29 }
  0x8f   : > { %889 = vmatpush1.bf16.msra.mxu1 %v1386_v31 }
  0x90   : > { %890 = vmatprep.subr.bf16.mxu1 %v1390_v32 }
  0x93   : > { %891 = vmatpush1.bf16.msra.mxu1 %v1392_v33 }
  0x94   : > { %892 = vmatprep.subr.bf16.mxu1 %v1396_v34 }
  0x97   : > { %893 = vmatpush1.bf16.msra.mxu1 %v1398_v35 }
  0x98   : > { %894 = vmatprep.subr.bf16.mxu1 %v1402_v36 }
  0x9b   : > { %895 = vmatpush1.bf16.msra.mxu1 %v1404_v37 }
  0x9c   : > { %896 = vmatprep.subr.bf16.mxu1 %v1408_v38 }
  0x9f   : > { %897 = vmatpush1.bf16.msra.mxu1 %v1410_v39 }
  0xa2   : > { %899 = vmatmul.mubr.bf16.vlgmr.msra.gmra.mrb[0].mxu1 %v1412_v40 }
 0x158   : > { %v943_v41 = vpop.f32.mrb[0].mxu0 }
 0x159   : > { %v945_v42 = vpop.f32.mrb[1].mxu0 }
 0x15a   : > { %v947_v43 = vpop.f32.mrb[2].mxu0 }
 0x15b   : > { %v949_v44 = vpop.f32.mrb[3].mxu0 }
 0x175   : > { %v900_v46 = vpop.f32.mrb[0].mxu1 }
 0x176   : > { %v944_v47 = vadd.f32 %v943_v41, %v900_v46  ;;  %v902_v49 = vpop.f32.mrb[1].mxu1 }
 0x177   : > { %v946_v50 = vadd.f32 %v945_v42, %v902_v49  ;;  %v904_v52 = vpop.f32.mrb[2].mxu1  ;;  %963 = sbr.rel (%p1232_p5) target bundleno = 396 (0x18c), region = 108 }
 0x178   : > { %v952_v53 = vadd.f32 %v944_v47, %v554_v45  ;;  %v948_v54 = vadd.f32 %v947_v43, %v904_v52  ;;  %v906_v56 = vpop.f32.mrb[3].mxu1 }
 0x179   : > { %v953_v57 = vadd.f32 %v946_v50, %v555_v48  ;;  %v950_v58 = vadd.f32 %v949_v44, %v906_v56 }
 0x17a   : > { %956 = vst [vmem:[#allocation2] sm:$0xff] %v952_v53  ;;  %v954_v59 = vadd.f32 %v948_v54, %v556_v51 }
 0x17b   : > { %957 = vst [vmem:[#allocation2 + $0x8] sm:$0xff] %v953_v57  ;;  %v955_v60 = vadd.f32 %v950_v58, %v557_v55 }
 0x17c   : > { %958 = vst [vmem:[#allocation2 + $0x10] sm:$0xff] %v954_v59 }
 0x17d   : > { %959 = vst [vmem:[#allocation2 + $0x18] sm:$0xff] %v955_v60 }
 0x181   : > { %v964_v1 = vld [vmem:[#allocation2] sm:$0xff] }
 0x182   : > { %v965_v4 = vld [vmem:[#allocation2 + $0x8] sm:$0xff]  ;;  %v980_v11 = vmul.f32 %v973_v7, %v964_v1 }
 0x183   : > { %v966_v5 = vld [vmem:[#allocation2 + $0x10] sm:$0xff]  ;;  %v981_v12 = vmul.f32 %v977_v9, %v965_v4 }
 0x184   : > { %v967_v6 = vld [vmem:[#allocation2 + $0x18] sm:$0xff]  ;;  %v982_v13 = vmul.f32 %v973_v7, %v966_v5  ;;  %v996_v15 = vadd.f32 %v989_v8, %v980_v11 }
 0x185   : > { %v983_v14 = vmul.f32 %v977_v9, %v967_v6  ;;  %v997_v16 = vadd.f32 %v993_v10, %v981_v12 }
 0x186   : > { %v998_v17 = vadd.f32 %v989_v8, %v982_v13  ;;  %v1000_v19 = vmax.f32 %v996_v15, 0.0 }
 0x187   : > { %v999_v18 = vadd.f32 %v993_v10, %v983_v14  ;;  %v1001_v20 = vmax.f32 %v997_v16, 0.0 }
 0x188   : > { %v1002_v21 = vmax.f32 %v998_v17, 0.0  ;;  %1004 = vst [vmem:[%s1764_s15] sm:$0xff] %v1000_v19 }
 0x189   : > { %v1003_v22 = vmax.f32 %v999_v18, 0.0  ;;  %1005 = vst [vmem:[%s1764_s15 + $0x8] sm:$0xff] %v1001_v20 }
 0x18a   : > { %1006 = vst [vmem:[%s1764_s15 + $0x10] sm:$0xff] %v1002_v21 }
 0x18b   : > { %1007 = vst [vmem:[%s1764_s15 + $0x18] sm:$0xff] %v1003_v22 }
 0x18c PF: > { %1014 = sbr.rel (!%p1624_p12) target bundleno = 404 (0x194), region = 112  ;;  %s1240_s1 = sshll.u32 (%p1624_p12), %s1489_s22, 4 }
 0x18d   : > { %s1020_s5 = scalar_lea.vmem (%p1624_p12), %s1880_s4, %s1240_s1 }
 0x18f   : > { %v1033_v23 = vld [vmem:[%s1764_s15] sm:$0xff] (%p1624_p12) }
 0x190   : > { %v1035_v24 = vld [vmem:[%s1764_s15 + $0x8] sm:$0xff] (%p1624_p12)  ;;  %1034 = vst [vmem:[%s1020_s5] sm:$0xff] (%p1624_p12), %v1033_v23 }
 0x191   : > { %v1037_v25 = vld [vmem:[%s1764_s15 + $0x10] sm:$0xff] (%p1624_p12)  ;;  %1036 = vst [vmem:[%s1020_s5 + $0x8] sm:$0xff] (%p1624_p12), %v1035_v24 }
 0x192   : > { %v1039_v26 = vld [vmem:[%s1764_s15 + $0x18] sm:$0xff] (%p1624_p12)  ;;  %1038 = vst [vmem:[%s1020_s5 + $0x20] sm:$0xff] (%p1624_p12), %v1037_v25 }
 0x193   : > { %1040 = vst [vmem:[%s1020_s5 + $0x28] sm:$0xff] %v1039_v26 }
 0x194 PF: > { %s14_s25 = sadd.s32 1, %s1501_s25   ;;  %s1892_s14 = sld [smem:[#allocation6_spill]] }
 0x195   : > { %p11_p6 = scmp.ge.s32.totalorder %s14_s25, 14   ;;  %s1893_s29 = sld [smem:[#allocation7_spill]] }
 0x196   : > { %s1894_s15 = smov %s1465_s16  ;;  %s1895_s16 = smov %s1622_s13 }
 0x197   : > { %s1896_s17 = smov %s1473_s18  ;;  %s1897_s18 = smov %s1619_s12 }
 0x198   : > { %s1898_s19 = smov %s1481_s20  ;;  %s1899_s20 = smov %s1605_s7 }
 0x199   : > { %s1900_s21 = smov %s1493_s23  ;;  %s1901_s22 = smov %s1497_s24 }
 0x19a   : > { %s1902_s23 = smov %s1892_s14  ;;  %13 = sbr.rel (!%p11_p6) target bundleno = 9 (0x9), region = 186 }
 0x19b   : > { %s1903_s24 = smov %s1893_s29 }

// kernel: _lambda_.38
= control target key start
LH: loop header
LB: loop body
LE: loop exit
PB: predicated region body
PF: predicated region fallthrough
CT: control target
= control target key end

     0   :  { %s1129_s15 = smov 0   ;;  %s1131_s16 = smov 0   ;;  %s1320_s0 = inlined_call_operand.vmem [shape: bf16[16,256], index: 0, kind: input, shape index: {}]   ;;  %s1321_s1 = inlined_call_operand.vmem [shape: bf16[256,512], index: 1, kind: input, shape index: {}]   ;;  %s1322_s2 = inlined_call_operand.vmem [shape: f32[1,512], index: 2, kind: input, shape index: {}]   ;;  %s1323_s3 = inlined_call_operand.vmem [shape: f32[1,512], index: 3, kind: input, shape index: {}]   ;;  %s1324_s4 = inlined_call_operand.vmem [shape: f32[16,512], index: 4, kind: output, shape index: {}]  }
   0x1   :  { %s1133_s17 = smov 0   ;;  %s1135_s18 = smov 0  }
   0x2   :  { %s1137_s19 = smov 0  }
   0x3 LB: > { %s29_s20 = sadd.s32 1, %s1098_s18  ;;  %s919_s21 = sadd.s32 4294967295, %s1102_s19   ;;  %s1102_s19 = sphi %s1137_s19, %s14_s19   ;;  %s1098_s18 = sphi %s1135_s18, %s1329_s18   ;;  %s1094_s17 = sphi %s1133_s17, %s1328_s17   ;;  %s1090_s16 = sphi %s1131_s16, %s1327_s16   ;;  %s1086_s15 = sphi %s1129_s15, %s1326_s15  }
   0x4   : > { %p31_p0 = scmp.ge.s32.totalorder %s29_s20, 2  ;;  %p77_p1 = scmp.ne.s32.totalorder %s1090_s16, %s1086_s15 }
   0x5   : > { %p78_p2 = scmp.eq.s32.totalorder %s1102_s19, 0  ;;  %p161_p4 = scmp.eq.s32.totalorder %s919_s21, 1 }
   0x6   : > { %s1331_s20 = smov (%p31_p0, %s29_s20), 0  ;;  %s70_s23 = sadd.s32 1, %s1090_s16 }
   0x7   : > { %p79_p3 = por %p78_p2, %p77_p1  ;;  %s66_s22 = ssub.s32 %s1098_s18, %s1331_s20 }
   0x8   : > { %p68_p5 = scmp.eq.s32.totalorder %s66_s22, 0  ;;  %p1164_p6 = por %p161_p4, %p77_p1 }
   0x9   : > { %p923_p7 = scmp.ge.s32.totalorder %s1102_s19, 2 }
   0xa   : > { %s1169_s25 = scalar_select %p68_p5, %s1090_s16, %s70_s23  }
   0xb   : > { %198 = sbr.rel (%p923_p7) target bundleno = 38 (0x26), region = 20 }
  0x12   : > { %201 = sbr.rel (!%p79_p3) target bundleno = 38 (0x26), region = 24  ;;  %s203_s26 = sand.u32 (%p79_p3), 1, %s1090_s16  }
  0x13   : > { %s971_s27 = sshll.u32 (%p79_p3), %s1098_s18, 3  ;;  %s924_s28 = sshll.u32 (%p79_p3), %s203_s26, 8 }
  0x14   : > { %s1177_s5 = scalar_lea.vmem (%p79_p3), %s1321_s1, %s971_s27  ;;  %s1182_s6 = scalar_lea.vmem (%p79_p3), [#allocation3], %s924_s28 }
  0x15   : > { %v301_v0 = vld [vmem:[%s1177_s5] sm:$0xff] (%p79_p3)  ;;  %v303_v1 = vld [vmem:[%s1177_s5 + $0x10] sm:$0xff] (%p79_p3) }
  0x16   : > { %v305_v2 = vld [vmem:[%s1177_s5 + $0x20] sm:$0xff] (%p79_p3)  ;;  %302 = vst [vmem:[%s1182_s6] sm:$0xff] (%p79_p3), %v301_v0  ;;  %304 = vst [vmem:[%s1182_s6 + $0x8] sm:$0xff] (%p79_p3), %v303_v1  ;;  %v307_v3 = vld [vmem:[%s1177_s5 + $0x30] sm:$0xff] (%p79_p3) }
  0x17   : > { %306 = vst [vmem:[%s1182_s6 + $0x10] sm:$0xff] (%p79_p3), %v305_v2  ;;  %v309_v4 = vld [vmem:[%s1177_s5 + $0x40] sm:$0xff] (%p79_p3)  ;;  %v311_v5 = vld [vmem:[%s1177_s5 + $0x50] sm:$0xff] (%p79_p3)  ;;  %308 = vst [vmem:[%s1182_s6 + $0x18] sm:$0xff] (%p79_p3), %v307_v3 }
  0x18   : > { %310 = vst [vmem:[%s1182_s6 + $0x20] sm:$0xff] (%p79_p3), %v309_v4  ;;  %312 = vst [vmem:[%s1182_s6 + $0x28] sm:$0xff] (%p79_p3), %v311_v5  ;;  %v313_v6 = vld [vmem:[%s1177_s5 + $0x60] sm:$0xff] (%p79_p3)  ;;  %v315_v7 = vld [vmem:[%s1177_s5 + $0x70] sm:$0xff] (%p79_p3) }
  0x19   : > { %v317_v8 = vld [vmem:[%s1177_s5 + $0x80] sm:$0xff]  ;;  %314 = vst [vmem:[%s1182_s6 + $0x30] sm:$0xff] %v313_v6  ;;  %316 = vst [vmem:[%s1182_s6 + $0x38] sm:$0xff] %v315_v7  ;;  %v319_v9 = vld [vmem:[%s1177_s5 + $0x90] sm:$0xff] }
  0x1a   : > { %318 = vst [vmem:[%s1182_s6 + $0x40] sm:$0xff] %v317_v8  ;;  %v321_v10 = vld [vmem:[%s1177_s5 + $0xa0] sm:$0xff]  ;;  %v323_v11 = vld [vmem:[%s1177_s5 + $0xb0] sm:$0xff]  ;;  %320 = vst [vmem:[%s1182_s6 + $0x48] sm:$0xff] %v319_v9 }
  0x1b   : > { %322 = vst [vmem:[%s1182_s6 + $0x50] sm:$0xff] %v321_v10  ;;  %324 = vst [vmem:[%s1182_s6 + $0x58] sm:$0xff] %v323_v11  ;;  %v325_v12 = vld [vmem:[%s1177_s5 + $0xc0] sm:$0xff]  ;;  %v327_v13 = vld [vmem:[%s1177_s5 + $0xd0] sm:$0xff] }
  0x1c   : > { %v329_v14 = vld [vmem:[%s1177_s5 + $0xe0] sm:$0xff]  ;;  %326 = vst [vmem:[%s1182_s6 + $0x60] sm:$0xff] %v325_v12  ;;  %328 = vst [vmem:[%s1182_s6 + $0x68] sm:$0xff] %v327_v13  ;;  %v331_v15 = vld [vmem:[%s1177_s5 + $0xf0] sm:$0xff] }
  0x1d   : > { %330 = vst [vmem:[%s1182_s6 + $0x70] sm:$0xff] %v329_v14  ;;  %v333_v16 = vld [vmem:[%s1177_s5 + $0x100] sm:$0xff]  ;;  %v335_v17 = vld [vmem:[%s1177_s5 + $0x110] sm:$0xff]  ;;  %332 = vst [vmem:[%s1182_s6 + $0x78] sm:$0xff] %v331_v15 }
  0x1e   : > { %334 = vst [vmem:[%s1182_s6 + $0x80] sm:$0xff] %v333_v16  ;;  %336 = vst [vmem:[%s1182_s6 + $0x88] sm:$0xff] %v335_v17  ;;  %v337_v18 = vld [vmem:[%s1177_s5 + $0x120] sm:$0xff]  ;;  %v339_v19 = vld [vmem:[%s1177_s5 + $0x130] sm:$0xff] }
  0x1f   : > { %v341_v20 = vld [vmem:[%s1177_s5 + $0x140] sm:$0xff]  ;;  %338 = vst [vmem:[%s1182_s6 + $0x90] sm:$0xff] %v337_v18  ;;  %340 = vst [vmem:[%s1182_s6 + $0x98] sm:$0xff] %v339_v19  ;;  %v343_v21 = vld [vmem:[%s1177_s5 + $0x150] sm:$0xff] }
  0x20   : > { %342 = vst [vmem:[%s1182_s6 + $0xa0] sm:$0xff] %v341_v20  ;;  %v345_v22 = vld [vmem:[%s1177_s5 + $0x160] sm:$0xff]  ;;  %v347_v23 = vld [vmem:[%s1177_s5 + $0x170] sm:$0xff]  ;;  %344 = vst [vmem:[%s1182_s6 + $0xa8] sm:$0xff] %v343_v21 }
  0x21   : > { %346 = vst [vmem:[%s1182_s6 + $0xb0] sm:$0xff] %v345_v22  ;;  %348 = vst [vmem:[%s1182_s6 + $0xb8] sm:$0xff] %v347_v23  ;;  %v349_v24 = vld [vmem:[%s1177_s5 + $0x180] sm:$0xff]  ;;  %v351_v25 = vld [vmem:[%s1177_s5 + $0x190] sm:$0xff] }
  0x22   : > { %v353_v26 = vld [vmem:[%s1177_s5 + $0x1a0] sm:$0xff]  ;;  %350 = vst [vmem:[%s1182_s6 + $0xc0] sm:$0xff] %v349_v24  ;;  %352 = vst [vmem:[%s1182_s6 + $0xc8] sm:$0xff] %v351_v25  ;;  %v355_v27 = vld [vmem:[%s1177_s5 + $0x1b0] sm:$0xff] }
  0x23   : > { %354 = vst [vmem:[%s1182_s6 + $0xd0] sm:$0xff] %v353_v26  ;;  %v357_v28 = vld [vmem:[%s1177_s5 + $0x1c0] sm:$0xff]  ;;  %v359_v29 = vld [vmem:[%s1177_s5 + $0x1d0] sm:$0xff]  ;;  %356 = vst [vmem:[%s1182_s6 + $0xd8] sm:$0xff] %v355_v27 }
  0x24   : > { %358 = vst [vmem:[%s1182_s6 + $0xe0] sm:$0xff] %v357_v28  ;;  %360 = vst [vmem:[%s1182_s6 + $0xe8] sm:$0xff] %v359_v29  ;;  %v361_v30 = vld [vmem:[%s1177_s5 + $0x1e0] sm:$0xff]  ;;  %v363_v31 = vld [vmem:[%s1177_s5 + $0x1f0] sm:$0xff] }
  0x25   : > { %362 = vst [vmem:[%s1182_s6 + $0xf0] sm:$0xff] %v361_v30  ;;  %364 = vst [vmem:[%s1182_s6 + $0xf8] sm:$0xff] %v363_v31 }
  0x26 PF: > { %p927_p8 = scmp.ge.s32.totalorder %s1102_s19, 1  ;;  %p385_p9 = scmp.lt.s32.totalorder %s1102_s19, 3 }
  0x28   : > { %p386_p10 = pnand %p927_p8, %p385_p9 }
  0x29   : > { %s392_s7 = sand.u32 (!%p386_p10), 1, %s1086_s15   ;;  %v1063_v32 = vld [vmem:[%s1320_s0 + $0x4] ss:$8 sps:$4 sm:$0xff] (!%p386_p10)   ;;  %v1061_v1 = vld [vmem:[%s1320_s0] ss:$8 sps:$4 sm:$0xff] (!%p386_p10)   ;;  %s930_s14 = sshll.u32 (!%p386_p10), %s1094_s17, 1  ;;  %v736_v2 = vlaneseq (!%p386_p10) }
  0x2a   : > { %389 = sbr.rel (%p386_p10) target bundleno = 337 (0x151), region = 70  ;;  %s928_s8 = sshll.u32 (!%p386_p10), %s392_s7, 8  ;;  %708 = vmatprep.mubr.bf16.mxu0 (!%p386_p10), %v1063_v32 }
  0x2b   : > { %s1253_s11 = scalar_lea.vmem (!%p386_p10), [#allocation3], %s928_s8  ;;  %p449_p11 = scmp.lt.s32.totalorder (!%p386_p10), %s930_s14, 3  ;;  %v737_v3 = vshrl.u32 (!%p386_p10), %v736_v2, 7 }
  0x2c   : > { %v1013_v33 = vld [vmem:[%s1253_s11 + $0x4] ss:$8 sps:$4 sm:$0xff] (!%p386_p10)   ;;  %v1015_v34 = vld [vmem:[%s1253_s11] ss:$8 sps:$4 sm:$0xff] (!%p386_p10)   ;;  %v1016_v35 = vld [vmem:[%s1253_s11 + $0x14] ss:$8 sps:$4 sm:$0xff] (!%p386_p10)  }
  0x2d   : > { %676 = vmatprep.subr.bf16.mxu0 (!%p386_p10), %v1013_v33  ;;  %v1018_v36 = vld [vmem:[%s1253_s11 + $0x10] ss:$8 sps:$4 sm:$0xff] (!%p386_p10)   ;;  %v1019_v37 = vld [vmem:[%s1253_s11 + $0x24] ss:$8 sps:$4 sm:$0xff] (!%p386_p10)   ;;  %v1021_v38 = vld [vmem:[%s1253_s11 + $0x20] ss:$8 sps:$4 sm:$0xff] (!%p386_p10)  }
  0x2e   : > { %677 = vmatpush1.bf16.msra.mxu0 (!%p386_p10), %v1015_v34  ;;  %v1022_v39 = vld [vmem:[%s1253_s11 + $0x34] ss:$8 sps:$4 sm:$0xff] (!%p386_p10)   ;;  %v1024_v40 = vld [vmem:[%s1253_s11 + $0x30] ss:$8 sps:$4 sm:$0xff] (!%p386_p10)   ;;  %v1025_v41 = vld [vmem:[%s1253_s11 + $0x44] ss:$8 sps:$4 sm:$0xff] (!%p386_p10)  }
  0x2f   : > { %678 = vmatprep.subr.bf16.mxu0 (!%p386_p10), %v1016_v35  ;;  %v1027_v42 = vld [vmem:[%s1253_s11 + $0x40] ss:$8 sps:$4 sm:$0xff] (!%p386_p10)   ;;  %v1028_v43 = vld [vmem:[%s1253_s11 + $0x54] ss:$8 sps:$4 sm:$0xff] (!%p386_p10)   ;;  %v1030_v44 = vld [vmem:[%s1253_s11 + $0x50] ss:$8 sps:$4 sm:$0xff] (!%p386_p10)  }
  0x30   : > { %v1031_v45 = vld [vmem:[%s1253_s11 + $0x64] ss:$8 sps:$4 sm:$0xff] (!%p386_p10)   ;;  %v1033_v46 = vld [vmem:[%s1253_s11 + $0x60] ss:$8 sps:$4 sm:$0xff] (!%p386_p10)   ;;  %v1034_v47 = vld [vmem:[%s1253_s11 + $0x74] ss:$8 sps:$4 sm:$0xff] (!%p386_p10)  }
  0x31   : > { %v1036_v48 = vld [vmem:[%s1253_s11 + $0x70] ss:$8 sps:$4 sm:$0xff]   ;;  %v1037_v49 = vld [vmem:[%s1253_s11 + $0x84] ss:$8 sps:$4 sm:$0xff]   ;;  %v1039_v50 = vld [vmem:[%s1253_s11 + $0x80] ss:$8 sps:$4 sm:$0xff]  }
  0x32   : > { %679 = vmatpush1.bf16.msra.mxu0 %v1018_v36  ;;  %v1040_v51 = vld [vmem:[%s1253_s11 + $0x94] ss:$8 sps:$4 sm:$0xff]   ;;  %v1042_v52 = vld [vmem:[%s1253_s11 + $0x90] ss:$8 sps:$4 sm:$0xff]   ;;  %v1043_v53 = vld [vmem:[%s1253_s11 + $0xa4] ss:$8 sps:$4 sm:$0xff]  }
  0x33   : > { %680 = vmatprep.subr.bf16.mxu0 %v1019_v37  ;;  %v1045_v54 = vld [vmem:[%s1253_s11 + $0xa0] ss:$8 sps:$4 sm:$0xff]   ;;  %v1046_v55 = vld [vmem:[%s1253_s11 + $0xb4] ss:$8 sps:$4 sm:$0xff]   ;;  %v1048_v56 = vld [vmem:[%s1253_s11 + $0xb0] ss:$8 sps:$4 sm:$0xff]  }
  0x34   : > { %v1049_v57 = vld [vmem:[%s1253_s11 + $0xc4] ss:$8 sps:$4 sm:$0xff]   ;;  %v1051_v58 = vld [vmem:[%s1253_s11 + $0xc0] ss:$8 sps:$4 sm:$0xff]   ;;  %v1052_v59 = vld [vmem:[%s1253_s11 + $0xd4] ss:$8 sps:$4 sm:$0xff]  }
  0x35   : > { %v1054_v60 = vld [vmem:[%s1253_s11 + $0xd0] ss:$8 sps:$4 sm:$0xff]   ;;  %v1055_v61 = vld [vmem:[%s1253_s11 + $0xe4] ss:$8 sps:$4 sm:$0xff]   ;;  %v1057_v62 = vld [vmem:[%s1253_s11 + $0xe0] ss:$8 sps:$4 sm:$0xff]  }
  0x36   : > { %681 = vmatpush1.bf16.msra.mxu0 %v1021_v38  ;;  %v1058_v63 = vld [vmem:[%s1253_s11 + $0xf4] ss:$8 sps:$4 sm:$0xff]   ;;  %v1060_v0 = vld [vmem:[%s1253_s11 + $0xf0] ss:$8 sps:$4 sm:$0xff]   ;;  %s1333_s14 = smov (!%p449_p11, %s930_s14), 3  ;;  %v738_v4 = vsub.s32 0, %v737_v3 }
  0x37   : > { %682 = vmatprep.subr.bf16.mxu0 %v1022_v39  ;;  %s451_s23 = scalar_lea.vmem %s1322_s2, %s1333_s14  ;;  %s456_s28 = scalar_lea.vmem %s1323_s3, %s1333_s14  ;;  %v742_v6 = vsub.s32 1, %v737_v3 }
  0x38   : > { %v734_v5 = vld [vmem:[%s451_s23] sm:$0x3]  ;;  %s929_s29 = sshll.u32 %s392_s7, 5  ;;  %s972_s15 = sshll.u32 (%p1164_p6), %s1094_s17, 4 }
  0x39   : > { %v750_v7 = vld [vmem:[%s456_s28] sm:$0x3]  ;;  %v739_v8 = vrot.slane %v734_v5, %v738_v4  ;;  %v743_v9 = vrot.slane %v734_v5, %v742_v6  ;;  %s433_s30 = scalar_lea.vmem [#allocation4], %s929_s29  ;;  %s782_s7 = scalar_lea.vmem (%p1164_p6), %s1324_s4, %s972_s15 }
  0x3a   : > { %683 = vmatpush1.bf16.msra.mxu0 %v1024_v40  ;;  %v755_v10 = vrot.slane %v750_v7, %v738_v4  ;;  %v759_v12 = vrot.slane %v750_v7, %v742_v6 }
  0x3b   : > { %684 = vmatprep.subr.bf16.mxu0 %v1025_v41 }
  0x3e   : > { %685 = vmatpush1.bf16.msra.mxu0 %v1027_v42 }
  0x3f   : > { %686 = vmatprep.subr.bf16.mxu0 %v1028_v43 }
  0x42   : > { %687 = vmatpush1.bf16.msra.mxu0 %v1030_v44 }
  0x43   : > { %688 = vmatprep.subr.bf16.mxu0 %v1031_v45 }
  0x46   : > { %689 = vmatpush1.bf16.msra.mxu0 %v1033_v46 }
  0x47   : > { %690 = vmatprep.subr.bf16.mxu0 %v1034_v47 }
  0x4a   : > { %691 = vmatpush1.bf16.msra.mxu0 %v1036_v48 }
  0x4b   : > { %692 = vmatprep.subr.bf16.mxu0 %v1037_v49 }
  0x4e   : > { %693 = vmatpush1.bf16.msra.mxu0 %v1039_v50 }
  0x4f   : > { %694 = vmatprep.subr.bf16.mxu0 %v1040_v51 }
  0x52   : > { %695 = vmatpush1.bf16.msra.mxu0 %v1042_v52 }
  0x53   : > { %696 = vmatprep.subr.bf16.mxu0 %v1043_v53 }
  0x56   : > { %697 = vmatpush1.bf16.msra.mxu0 %v1045_v54 }
  0x57   : > { %698 = vmatprep.subr.bf16.mxu0 %v1046_v55 }
  0x5a   : > { %699 = vmatpush1.bf16.msra.mxu0 %v1048_v56 }
  0x5b   : > { %700 = vmatprep.subr.bf16.mxu0 %v1049_v57 }
  0x5e   : > { %701 = vmatpush1.bf16.msra.mxu0 %v1051_v58 }
  0x5f   : > { %702 = vmatprep.subr.bf16.mxu0 %v1052_v59 }
  0x62   : > { %703 = vmatpush1.bf16.msra.mxu0 %v1054_v60 }
  0x63   : > { %704 = vmatprep.subr.bf16.mxu0 %v1055_v61 }
  0x66   : > { %705 = vmatpush1.bf16.msra.mxu0 %v1057_v62 }
  0x67   : > { %706 = vmatprep.subr.bf16.mxu0 %v1058_v63 }
  0x6a   : > { %707 = vmatpush1.bf16.msra.mxu0 %v1060_v0 }
  0x6d   : > { %709 = vmatmul.mubr.bf16.vlgmr.msra.gmra.mrb[0].mxu0 %v1061_v1 }
 0x140   : > { %v710_v11 = vpop.f32.mrb[0].mxu0 }
 0x141   : > { %v746_v13 = vmul.f32 %v739_v8, %v710_v11  ;;  %v712_v14 = vpop.f32.mrb[1].mxu0 }
 0x142   : > { %v747_v15 = vmul.f32 %v743_v9, %v712_v14  ;;  %v714_v16 = vpop.f32.mrb[2].mxu0  ;;  %776 = sbr.rel (!%p1164_p6) target bundleno = 337 (0x151), region = 86 }
 0x143   : > { %v762_v17 = vadd.f32 %v755_v10, %v746_v13  ;;  %v748_v18 = vmul.f32 %v739_v8, %v714_v16  ;;  %v716_v19 = vpop.f32.mrb[3].mxu0 }
 0x144   : > { %v763_v20 = vadd.f32 %v759_v12, %v747_v15  ;;  %v749_v21 = vmul.f32 %v743_v9, %v716_v19 }
 0x145   : > { %766 = vst [vmem:[%s433_s30] sm:$0xff] %v762_v17  ;;  %v764_v22 = vadd.f32 %v755_v10, %v748_v18 }
 0x146   : > { %767 = vst [vmem:[%s433_s30 + $0x8] sm:$0xff] %v763_v20  ;;  %v765_v23 = vadd.f32 %v759_v12, %v749_v21 }
 0x147   : > { %768 = vst [vmem:[%s433_s30 + $0x10] sm:$0xff] %v764_v22 }
 0x148   : > { %769 = vst [vmem:[%s433_s30 + $0x18] sm:$0xff] %v765_v23 }
 0x14c   : > { %v795_v24 = vld [vmem:[%s433_s30] sm:$0xff] }
 0x14d   : > { %v797_v25 = vld [vmem:[%s433_s30 + $0x8] sm:$0xff]  ;;  %796 = vst [vmem:[%s782_s7] sm:$0xff] %v795_v24 }
 0x14e   : > { %v799_v26 = vld [vmem:[%s433_s30 + $0x10] sm:$0xff]  ;;  %798 = vst [vmem:[%s782_s7 + $0x8] sm:$0xff] %v797_v25 }
 0x14f   : > { %v801_v27 = vld [vmem:[%s433_s30 + $0x18] sm:$0xff]  ;;  %800 = vst [vmem:[%s782_s7 + $0x20] sm:$0xff] %v799_v26 }
 0x150   : > { %802 = vst [vmem:[%s782_s7 + $0x28] sm:$0xff] %v801_v27 }
 0x151 PF: > { %s14_s19 = sadd.s32 1, %s1102_s19   ;;  %s1326_s15 = smov %s1090_s16 }
 0x152   : > { %p11_p12 = scmp.ge.s32.totalorder %s14_s19, 4   ;;  %s1327_s16 = smov %s1169_s25 }
 0x153   : > { %s1328_s17 = smov %s1098_s18  ;;  %s1329_s18 = smov %s1331_s20 }
 0x154   :  { %13 = sbr.rel (!%p11_p12) target bundleno = 3 (0x3), region = 149 }

// kernel: _lambda_.39
= control target key start
LH: loop header
LB: loop body
LE: loop exit
PB: predicated region body
PF: predicated region fallthrough
CT: control target
= control target key end

     0   :  { %s2256_s0 = inlined_call_operand.vmem [shape: bf16[16,4608], index: 0, kind: input, shape index: {}]   ;;  %s2257_s1 = inlined_call_operand.vmem [shape: bf16[4608,512], index: 1, kind: input, shape index: {}]   ;;  %s2258_s2 = inlined_call_operand.vmem [shape: f32[1,512], index: 2, kind: input, shape index: {}]   ;;  %s2259_s3 = inlined_call_operand.vmem [shape: f32[1,512], index: 3, kind: input, shape index: {}]   ;;  %s2260_s4 = inlined_call_operand.vmem [shape: f32[16,512], index: 4, kind: input, shape index: {}]   ;;  %s2261_s5 = inlined_call_operand.vmem [shape: f32[16,512], index: 5, kind: output, shape index: {}]  }
   0x1   :  { %2265 = sst [smem:[#allocation11_spill]] %s2256_s0 }
   0x2   :  { %s1838_s18 = smov 0   ;;  %s1840_s19 = smov 0  }
   0x3   :  { %s1842_s20 = smov 0   ;;  %s1844_s21 = smov 0  }
   0x4   :  { %s1846_s22 = smov 0   ;;  %s1848_s23 = smov 0  }
   0x5   :  { %s1850_s24 = smov 0   ;;  %s1852_s25 = smov 0  }
   0x6   :  { %s1854_s26 = smov 0   ;;  %s1856_s27 = smov 0  }
   0x7   :  { %s1858_s28 = smov 0  }
   0x8 LB: > { %2266 = sst [smem:[#allocation7_spill]] %s1785_s23  ;;  %s1423_s29 = sadd.s32 4294967295, %s1805_s28   ;;  %s1805_s28 = sphi %s1858_s28, %s15_s28   ;;  %s1801_s27 = sphi %s1856_s27, %s2286_s27   ;;  %s1797_s26 = sphi %s1854_s26, %s2285_s26   ;;  %s1793_s25 = sphi %s1852_s25, %s2284_s25   ;;  %s1789_s24 = sphi %s1850_s24, %s2283_s24   ;;  %s1785_s23 = sphi %s1848_s23, %s2276_s23   ;;  %s1781_s22 = sphi %s1846_s22, %s2275_s22   ;;  %s1777_s21 = sphi %s1844_s21, %s2282_s21   ;;  %s1773_s20 = sphi %s1842_s20, %s2281_s20   ;;  %s1769_s19 = sphi %s1840_s19, %s2280_s19   ;;  %s1765_s18 = sphi %s1838_s18, %s2279_s18  }
   0x9   : > { %s27_s30 = sadd.s32 1, %s1797_s26  ;;  %s30_s6 = sadd.s32 1, %s1801_s27 }
   0xa   : > { %p28_p0 = scmp.ge.s32.totalorder %s27_s30, 9  ;;  %s43_s7 = sadd.s32 1, %s1785_s23 }
   0xb   : > { %p50_p1 = scmp.ne.s32.totalorder %s1785_s23, %s1781_s22  ;;  %p51_p2 = scmp.eq.s32.totalorder %s1805_s28, 0 }
   0xc   : > { %s2288_s30 = smov (%p28_p0, %s27_s30), 0  ;;  %s2290_s6 = smov (!%p28_p0, %s30_s6), %s1801_s27 }
   0xd   : > { %2267 = sst [smem:[#allocation8_spill]] %s2288_s30  ;;  %s39_s8 = ssub.s32 %s1797_s26, %s2288_s30 }
   0xe   : > { %p32_p3 = scmp.ge.s32.totalorder %s2290_s6, 2  ;;  %p41_p4 = scmp.eq.s32.totalorder %s39_s8, 0 }
   0xf   : > { %p1907_p5 = por %p51_p2, %p50_p1  ;;  %s71_s10 = sadd.s32 1, %s1777_s21 }
  0x10   : > { %s2292_s6 = smov (%p32_p3, %s2290_s6), 0  ;;  %p78_p6 = scmp.ne.s32.totalorder %s1777_s21, %s1773_s20 }
  0x11   : > { %2269 = sst [smem:[#allocation9_spill]] %s2292_s6  ;;  %s67_s12 = ssub.s32 %s1801_s27, %s2292_s6 }
  0x12   : > { %s1915_s11 = scalar_select %p41_p4, %s1785_s23, %s43_s7  }
  0x13   : > { %s68_s13 = sor.u32 %s67_s12, %s39_s8  ;;  %p149_p7 = scmp.eq.s32.totalorder %s67_s12, 0 }
  0x14   : > { %2270 = sst [smem:[#allocation10_spill]] %s1915_s11  ;;  %p69_p8 = scmp.eq.s32.totalorder %s68_s13, 0 }
  0x15   : > { %p1923_p9 = por %p78_p6, %p51_p2  ;;  %s151_s15 = sadd.s32 1, %s1769_s19 }
  0x16   : > { %p158_p10 = scmp.ne.s32.totalorder %s1769_s19, %s1765_s18  ;;  %p190_p12 = scmp.eq.s32.totalorder %s1423_s29, 17 }
  0x17   : > { %s1931_s16 = scalar_select %p69_p8, %s1777_s21, %s71_s10  }
  0x18   : > { %s1934_s17 = scalar_select %p149_p7, %s1769_s19, %s151_s15  }
  0x19   : > { %p1938_p11 = por %p158_p10, %p51_p2  ;;  %p1942_p13 = por %p190_p12, %p158_p10 }
  0x1a   : > { %p1426_p0 = scmp.ge.s32.totalorder %s1805_s28, 18 }
  0x1c   : > { %212 = sbr.rel (%p1426_p0) target bundleno = 93 (0x5d), region = 16 }
  0x23   : > { %215 = sbr.rel (!%p1907_p5) target bundleno = 47 (0x2f), region = 20  ;;  %s217_s10 = sand.u32 (%p1907_p5), 1, %s1785_s23  }
  0x24   : > { %s1520_s12 = sshll.u32 (%p1907_p5), %s1797_s26, 4  ;;  %s1427_s13 = sshll.u32 (%p1907_p5), %s217_s10, 5 }
  0x25   : > { %s2274_s0 = sld [smem:[#allocation11_spill]] (%p1907_p5)  ;;  %s219_s29 = scalar_lea.vmem (%p1907_p5), [#allocation3], %s1427_s13 }
  0x2b   : > { %s225_s30 = scalar_lea.vmem %s2274_s0, %s1520_s12 }
  0x2c   : > { %v238_v0 = vld [vmem:[%s225_s30] sm:$0xff]  ;;  %v240_v1 = vld [vmem:[%s225_s30 + $0x8] sm:$0xff]  ;;  %v242_v2 = vld [vmem:[%s225_s30 + $0x90] sm:$0xff] }
  0x2d   : > { %239 = vst [vmem:[%s219_s29] sm:$0xff] %v238_v0  ;;  %241 = vst [vmem:[%s219_s29 + $0x8] sm:$0xff] %v240_v1  ;;  %v244_v3 = vld [vmem:[%s225_s30 + $0x98] sm:$0xff] }
  0x2e   : > { %243 = vst [vmem:[%s219_s29 + $0x10] sm:$0xff] %v242_v2  ;;  %245 = vst [vmem:[%s219_s29 + $0x18] sm:$0xff] %v244_v3 }
  0x2f PF: > { %251 = sbr.rel (!%p1923_p9) target bundleno = 86 (0x56), region = 43  ;;  %s253_s9 = sand.u32 (%p1923_p9), 1, %s1777_s21  }
  0x30   : > { %s1432_s10 = sshll.u32 (%p1923_p9), %s1801_s27, 1  ;;  %s1430_s6 = sshll.u32 (%p1923_p9), %s253_s9, 9 }
  0x31   : > { %s1521_s12 = sshll.u32 (%p1923_p9), %s1797_s26, 8  ;;  %s1967_s30 = scalar_lea.vmem (%p1923_p9), [#allocation4], %s1430_s6 }
  0x32   : > { %s259_s15 = sadd.s32 (%p1923_p9), %s1521_s12, %s1432_s10 }
  0x33   : > { %s1434_s0 = sshll.u32 (%p1923_p9), %s259_s15, 2 }
  0x34   : > { %s1962_s23 = scalar_lea.vmem (%p1923_p9), %s2257_s1, %s1434_s0 }
  0x35   : > { %v415_v4 = vld [vmem:[%s1962_s23] sm:$0xff] (%p1923_p9)  ;;  %v417_v5 = vld [vmem:[%s1962_s23 + $0x10] sm:$0xff] (%p1923_p9) }
  0x36   : > { %v419_v6 = vld [vmem:[%s1962_s23 + $0x20] sm:$0xff]  ;;  %416 = vst [vmem:[%s1967_s30] sm:$0xff] %v415_v4  ;;  %418 = vst [vmem:[%s1967_s30 + $0x8] sm:$0xff] %v417_v5  ;;  %v421_v7 = vld [vmem:[%s1962_s23 + $0x30] sm:$0xff] }
  0x37   : > { %420 = vst [vmem:[%s1967_s30 + $0x10] sm:$0xff] %v419_v6  ;;  %v423_v8 = vld [vmem:[%s1962_s23 + $0x40] sm:$0xff]  ;;  %v425_v9 = vld [vmem:[%s1962_s23 + $0x50] sm:$0xff]  ;;  %422 = vst [vmem:[%s1967_s30 + $0x18] sm:$0xff] %v421_v7 }
  0x38   : > { %424 = vst [vmem:[%s1967_s30 + $0x20] sm:$0xff] %v423_v8  ;;  %426 = vst [vmem:[%s1967_s30 + $0x28] sm:$0xff] %v425_v9  ;;  %v427_v10 = vld [vmem:[%s1962_s23 + $0x60] sm:$0xff]  ;;  %v429_v11 = vld [vmem:[%s1962_s23 + $0x70] sm:$0xff] }
  0x39   : > { %v431_v12 = vld [vmem:[%s1962_s23 + $0x80] sm:$0xff]  ;;  %428 = vst [vmem:[%s1967_s30 + $0x30] sm:$0xff] %v427_v10  ;;  %430 = vst [vmem:[%s1967_s30 + $0x38] sm:$0xff] %v429_v11  ;;  %v433_v13 = vld [vmem:[%s1962_s23 + $0x90] sm:$0xff] }
  0x3a   : > { %432 = vst [vmem:[%s1967_s30 + $0x40] sm:$0xff] %v431_v12  ;;  %v435_v14 = vld [vmem:[%s1962_s23 + $0xa0] sm:$0xff]  ;;  %v437_v15 = vld [vmem:[%s1962_s23 + $0xb0] sm:$0xff]  ;;  %434 = vst [vmem:[%s1967_s30 + $0x48] sm:$0xff] %v433_v13 }
  0x3b   : > { %436 = vst [vmem:[%s1967_s30 + $0x50] sm:$0xff] %v435_v14  ;;  %438 = vst [vmem:[%s1967_s30 + $0x58] sm:$0xff] %v437_v15  ;;  %v439_v16 = vld [vmem:[%s1962_s23 + $0xc0] sm:$0xff]  ;;  %v441_v17 = vld [vmem:[%s1962_s23 + $0xd0] sm:$0xff] }
  0x3c   : > { %v443_v18 = vld [vmem:[%s1962_s23 + $0xe0] sm:$0xff]  ;;  %440 = vst [vmem:[%s1967_s30 + $0x60] sm:$0xff] %v439_v16  ;;  %442 = vst [vmem:[%s1967_s30 + $0x68] sm:$0xff] %v441_v17  ;;  %v445_v19 = vld [vmem:[%s1962_s23 + $0xf0] sm:$0xff] }
  0x3d   : > { %444 = vst [vmem:[%s1967_s30 + $0x70] sm:$0xff] %v443_v18  ;;  %v447_v20 = vld [vmem:[%s1962_s23 + $0x100] sm:$0xff]  ;;  %v449_v21 = vld [vmem:[%s1962_s23 + $0x110] sm:$0xff]  ;;  %446 = vst [vmem:[%s1967_s30 + $0x78] sm:$0xff] %v445_v19 }
  0x3e   : > { %448 = vst [vmem:[%s1967_s30 + $0x80] sm:$0xff] %v447_v20  ;;  %450 = vst [vmem:[%s1967_s30 + $0x88] sm:$0xff] %v449_v21  ;;  %v451_v22 = vld [vmem:[%s1962_s23 + $0x120] sm:$0xff]  ;;  %v453_v23 = vld [vmem:[%s1962_s23 + $0x130] sm:$0xff] }
  0x3f   : > { %v455_v24 = vld [vmem:[%s1962_s23 + $0x140] sm:$0xff]  ;;  %452 = vst [vmem:[%s1967_s30 + $0x90] sm:$0xff] %v451_v22  ;;  %454 = vst [vmem:[%s1967_s30 + $0x98] sm:$0xff] %v453_v23  ;;  %v457_v25 = vld [vmem:[%s1962_s23 + $0x150] sm:$0xff] }
  0x40   : > { %456 = vst [vmem:[%s1967_s30 + $0xa0] sm:$0xff] %v455_v24  ;;  %v459_v26 = vld [vmem:[%s1962_s23 + $0x160] sm:$0xff]  ;;  %v461_v27 = vld [vmem:[%s1962_s23 + $0x170] sm:$0xff]  ;;  %458 = vst [vmem:[%s1967_s30 + $0xa8] sm:$0xff] %v457_v25 }
  0x41   : > { %460 = vst [vmem:[%s1967_s30 + $0xb0] sm:$0xff] %v459_v26  ;;  %462 = vst [vmem:[%s1967_s30 + $0xb8] sm:$0xff] %v461_v27  ;;  %v463_v28 = vld [vmem:[%s1962_s23 + $0x180] sm:$0xff]  ;;  %v465_v29 = vld [vmem:[%s1962_s23 + $0x190] sm:$0xff] }
  0x42   : > { %v467_v30 = vld [vmem:[%s1962_s23 + $0x1a0] sm:$0xff]  ;;  %464 = vst [vmem:[%s1967_s30 + $0xc0] sm:$0xff] %v463_v28  ;;  %466 = vst [vmem:[%s1967_s30 + $0xc8] sm:$0xff] %v465_v29  ;;  %v469_v31 = vld [vmem:[%s1962_s23 + $0x1b0] sm:$0xff] }
  0x43   : > { %468 = vst [vmem:[%s1967_s30 + $0xd0] sm:$0xff] %v467_v30  ;;  %v471_v32 = vld [vmem:[%s1962_s23 + $0x1c0] sm:$0xff]  ;;  %v473_v33 = vld [vmem:[%s1962_s23 + $0x1d0] sm:$0xff]  ;;  %470 = vst [vmem:[%s1967_s30 + $0xd8] sm:$0xff] %v469_v31 }
  0x44   : > { %472 = vst [vmem:[%s1967_s30 + $0xe0] sm:$0xff] %v471_v32  ;;  %474 = vst [vmem:[%s1967_s30 + $0xe8] sm:$0xff] %v473_v33  ;;  %v475_v34 = vld [vmem:[%s1962_s23 + $0x1e0] sm:$0xff]  ;;  %v477_v35 = vld [vmem:[%s1962_s23 + $0x1f0] sm:$0xff] }
  0x45   : > { %v479_v36 = vld [vmem:[%s1962_s23 + $0x200] sm:$0xff]  ;;  %476 = vst [vmem:[%s1967_s30 + $0xf0] sm:$0xff] %v475_v34  ;;  %478 = vst [vmem:[%s1967_s30 + $0xf8] sm:$0xff] %v477_v35  ;;  %v481_v37 = vld [vmem:[%s1962_s23 + $0x210] sm:$0xff] }
  0x46   : > { %480 = vst [vmem:[%s1967_s30 + $0x100] sm:$0xff] %v479_v36  ;;  %v483_v38 = vld [vmem:[%s1962_s23 + $0x220] sm:$0xff]  ;;  %v485_v39 = vld [vmem:[%s1962_s23 + $0x230] sm:$0xff]  ;;  %482 = vst [vmem:[%s1967_s30 + $0x108] sm:$0xff] %v481_v37 }
  0x47   : > { %484 = vst [vmem:[%s1967_s30 + $0x110] sm:$0xff] %v483_v38  ;;  %486 = vst [vmem:[%s1967_s30 + $0x118] sm:$0xff] %v485_v39  ;;  %v487_v40 = vld [vmem:[%s1962_s23 + $0x240] sm:$0xff]  ;;  %v489_v41 = vld [vmem:[%s1962_s23 + $0x250] sm:$0xff] }
  0x48   : > { %v491_v42 = vld [vmem:[%s1962_s23 + $0x260] sm:$0xff]  ;;  %488 = vst [vmem:[%s1967_s30 + $0x120] sm:$0xff] %v487_v40  ;;  %490 = vst [vmem:[%s1967_s30 + $0x128] sm:$0xff] %v489_v41  ;;  %v493_v43 = vld [vmem:[%s1962_s23 + $0x270] sm:$0xff] }
  0x49   : > { %492 = vst [vmem:[%s1967_s30 + $0x130] sm:$0xff] %v491_v42  ;;  %v495_v44 = vld [vmem:[%s1962_s23 + $0x280] sm:$0xff]  ;;  %v497_v45 = vld [vmem:[%s1962_s23 + $0x290] sm:$0xff]  ;;  %494 = vst [vmem:[%s1967_s30 + $0x138] sm:$0xff] %v493_v43 }
  0x4a   : > { %496 = vst [vmem:[%s1967_s30 + $0x140] sm:$0xff] %v495_v44  ;;  %498 = vst [vmem:[%s1967_s30 + $0x148] sm:$0xff] %v497_v45  ;;  %v499_v46 = vld [vmem:[%s1962_s23 + $0x2a0] sm:$0xff]  ;;  %v501_v47 = vld [vmem:[%s1962_s23 + $0x2b0] sm:$0xff] }
  0x4b   : > { %v503_v48 = vld [vmem:[%s1962_s23 + $0x2c0] sm:$0xff]  ;;  %500 = vst [vmem:[%s1967_s30 + $0x150] sm:$0xff] %v499_v46  ;;  %502 = vst [vmem:[%s1967_s30 + $0x158] sm:$0xff] %v501_v47  ;;  %v505_v49 = vld [vmem:[%s1962_s23 + $0x2d0] sm:$0xff] }
  0x4c   : > { %504 = vst [vmem:[%s1967_s30 + $0x160] sm:$0xff] %v503_v48  ;;  %v507_v50 = vld [vmem:[%s1962_s23 + $0x2e0] sm:$0xff]  ;;  %v509_v51 = vld [vmem:[%s1962_s23 + $0x2f0] sm:$0xff]  ;;  %506 = vst [vmem:[%s1967_s30 + $0x168] sm:$0xff] %v505_v49 }
  0x4d   : > { %508 = vst [vmem:[%s1967_s30 + $0x170] sm:$0xff] %v507_v50  ;;  %510 = vst [vmem:[%s1967_s30 + $0x178] sm:$0xff] %v509_v51  ;;  %v511_v52 = vld [vmem:[%s1962_s23 + $0x300] sm:$0xff]  ;;  %v513_v53 = vld [vmem:[%s1962_s23 + $0x310] sm:$0xff] }
  0x4e   : > { %v515_v54 = vld [vmem:[%s1962_s23 + $0x320] sm:$0xff]  ;;  %512 = vst [vmem:[%s1967_s30 + $0x180] sm:$0xff] %v511_v52  ;;  %514 = vst [vmem:[%s1967_s30 + $0x188] sm:$0xff] %v513_v53  ;;  %v517_v55 = vld [vmem:[%s1962_s23 + $0x330] sm:$0xff] }
  0x4f   : > { %516 = vst [vmem:[%s1967_s30 + $0x190] sm:$0xff] %v515_v54  ;;  %v519_v56 = vld [vmem:[%s1962_s23 + $0x340] sm:$0xff]  ;;  %v521_v57 = vld [vmem:[%s1962_s23 + $0x350] sm:$0xff]  ;;  %518 = vst [vmem:[%s1967_s30 + $0x198] sm:$0xff] %v517_v55 }
  0x50   : > { %520 = vst [vmem:[%s1967_s30 + $0x1a0] sm:$0xff] %v519_v56  ;;  %522 = vst [vmem:[%s1967_s30 + $0x1a8] sm:$0xff] %v521_v57  ;;  %v523_v58 = vld [vmem:[%s1962_s23 + $0x360] sm:$0xff]  ;;  %v525_v59 = vld [vmem:[%s1962_s23 + $0x370] sm:$0xff] }
  0x51   : > { %v527_v60 = vld [vmem:[%s1962_s23 + $0x380] sm:$0xff]  ;;  %524 = vst [vmem:[%s1967_s30 + $0x1b0] sm:$0xff] %v523_v58  ;;  %526 = vst [vmem:[%s1967_s30 + $0x1b8] sm:$0xff] %v525_v59  ;;  %v529_v61 = vld [vmem:[%s1962_s23 + $0x390] sm:$0xff] }
  0x52   : > { %528 = vst [vmem:[%s1967_s30 + $0x1c0] sm:$0xff] %v527_v60  ;;  %v531_v62 = vld [vmem:[%s1962_s23 + $0x3a0] sm:$0xff]  ;;  %v533_v63 = vld [vmem:[%s1962_s23 + $0x3b0] sm:$0xff]  ;;  %530 = vst [vmem:[%s1967_s30 + $0x1c8] sm:$0xff] %v529_v61 }
  0x53   : > { %532 = vst [vmem:[%s1967_s30 + $0x1d0] sm:$0xff] %v531_v62  ;;  %534 = vst [vmem:[%s1967_s30 + $0x1d8] sm:$0xff] %v533_v63  ;;  %v535_v0 = vld [vmem:[%s1962_s23 + $0x3c0] sm:$0xff]  ;;  %v537_v1 = vld [vmem:[%s1962_s23 + $0x3d0] sm:$0xff] }
  0x54   : > { %v539_v2 = vld [vmem:[%s1962_s23 + $0x3e0] sm:$0xff]  ;;  %536 = vst [vmem:[%s1967_s30 + $0x1e0] sm:$0xff] %v535_v0  ;;  %538 = vst [vmem:[%s1967_s30 + $0x1e8] sm:$0xff] %v537_v1  ;;  %v541_v3 = vld [vmem:[%s1962_s23 + $0x3f0] sm:$0xff] }
  0x55   : > { %540 = vst [vmem:[%s1967_s30 + $0x1f0] sm:$0xff] %v539_v2  ;;  %542 = vst [vmem:[%s1967_s30 + $0x1f8] sm:$0xff] %v541_v3 }
  0x56 PF: > { %564 = sbr.rel (!%p1938_p11) target bundleno = 93 (0x5d), region = 89  ;;  %s566_s0 = sand.u32 (%p1938_p11), 1, %s1769_s19  }
  0x57   : > { %s1522_s11 = sshll.u32 (%p1938_p11), %s1801_s27, 4  ;;  %s1435_s14 = sshll.u32 (%p1938_p11), %s566_s0, 5 }
  0x58   : > { %s574_s10 = scalar_lea.vmem (%p1938_p11), %s2260_s4, %s1522_s11  ;;  %s568_s6 = scalar_lea.vmem (%p1938_p11), [#allocation5], %s1435_s14 }
  0x59   : > { %v587_v4 = vld [vmem:[%s574_s10] sm:$0xff] (%p1938_p11)  ;;  %v589_v5 = vld [vmem:[%s574_s10 + $0x8] sm:$0xff] (%p1938_p11) }
  0x5a   : > { %v591_v6 = vld [vmem:[%s574_s10 + $0x20] sm:$0xff] (%p1938_p11)  ;;  %588 = vst [vmem:[%s568_s6] sm:$0xff] (%p1938_p11), %v587_v4  ;;  %590 = vst [vmem:[%s568_s6 + $0x8] sm:$0xff] (%p1938_p11), %v589_v5  ;;  %v593_v7 = vld [vmem:[%s574_s10 + $0x28] sm:$0xff] (%p1938_p11) }
  0x5b   : > { %592 = vst [vmem:[%s568_s6 + $0x10] sm:$0xff] (%p1938_p11), %v591_v6  ;;  %594 = vst [vmem:[%s568_s6 + $0x18] sm:$0xff] (%p1938_p11), %v593_v7 }
  0x5d PF: > { %p1438_p1 = scmp.ge.s32.totalorder %s1805_s28, 1  ;;  %p599_p2 = scmp.lt.s32.totalorder %s1805_s28, 19 }
  0x5f   : > { %p600_p3 = pnand %p1438_p1, %p599_p2 }
  0x60   : > { %s606_s23 = sand.u32 (!%p600_p3), 1, %s1781_s22   ;;  %s613_s7 = sand.u32 (!%p600_p3), 1, %s1773_s20  }
  0x61   : > { %603 = sbr.rel (%p600_p3) target bundleno = 421 (0x1a5), region = 112  ;;  %s1439_s12 = sshll.u32 (!%p600_p3), %s606_s23, 5 }
  0x62   : > { %s1440_s15 = sshll.u32 (!%p600_p3), %s613_s7, 9  ;;  %s620_s13 = sand.u32 (!%p600_p3), 1, %s1765_s18  }
  0x63   : > { %s1443_s30 = sshll.u32 (!%p600_p3), %s1793_s25, 1  ;;  %s1441_s0 = sshll.u32 (!%p600_p3), %s620_s13, 5 }
  0x64   : > { %p667_p4 = scmp.lt.s32.totalorder (!%p600_p3), %s1443_s30, 3  ;;  %s2117_s22 = scalar_lea.vmem (!%p600_p3), [#allocation3], %s1439_s12 }
  0x65   : > { %s2119_s20 = scalar_lea.vmem (!%p600_p3), [#allocation4], %s1440_s15  ;;  %s2121_s18 = scalar_lea.vmem (!%p600_p3), [#allocation5], %s1441_s0 }
  0x66   : > { %s2123_s23 = scalar_lea.vmem (!%p600_p3), [#allocation6], %s1441_s0  ;;  %p1445_p5 = scmp.ne.s32.totalorder (!%p600_p3), %s1789_s24, 0 }
  0x68   : > { %s2294_s30 = smov (!%p667_p4, %s1443_s30), 3  ;;  %683 = sbr.rel (%p1445_p5) target bundleno = 111 (0x6f), region = 128 }
  0x69   : > { %s669_s29 = scalar_lea.vmem %s2258_s2, %s2294_s30  ;;  %s674_s6 = scalar_lea.vmem %s2259_s3, %s2294_s30  ;;  %v1807_v8 = vmov (!%p1445_p5), 0.0  }
  0x6a   : > { %684 = vst [vmem:[#allocation2] sm:$0xff] (!%p1445_p5), %v1807_v8  ;;  %685 = vst [vmem:[#allocation2 + $0x8] sm:$0xff] (!%p1445_p5), %v1807_v8 }
  0x6b   : > { %686 = vst [vmem:[#allocation2 + $0x10] sm:$0xff] (!%p1445_p5), %v1807_v8  ;;  %687 = vst [vmem:[#allocation2 + $0x18] sm:$0xff] (!%p1445_p5), %v1807_v8 }
  0x6f PF: > { %v1617_v9 = vld [vmem:[%s2119_s20 + $0x4] ss:$8 sps:$4 sm:$0xff]   ;;  %v1621_v11 = vld [vmem:[%s2119_s20] ss:$8 sps:$4 sm:$0xff]   ;;  %v1623_v13 = vld [vmem:[%s2119_s20 + $0x14] ss:$8 sps:$4 sm:$0xff]  }
  0x70   : > { %v1619_v10 = vld [vmem:[%s2119_s20 + $0x104] ss:$8 sps:$4 sm:$0xff]   ;;  %1100 = vmatprep.subr.bf16.mxu1 %v1617_v9  ;;  %v1622_v12 = vld [vmem:[%s2119_s20 + $0x100] ss:$8 sps:$4 sm:$0xff]   ;;  %v1625_v14 = vld [vmem:[%s2119_s20 + $0x114] ss:$8 sps:$4 sm:$0xff]  }
  0x71   : > { %1143 = vmatprep.subr.bf16.mxu0 %v1619_v10  ;;  %1101 = vmatpush1.bf16.msra.mxu1 %v1621_v11  ;;  %v1627_v15 = vld [vmem:[%s2119_s20 + $0x10] ss:$8 sps:$4 sm:$0xff]   ;;  %v1629_v17 = vld [vmem:[%s2119_s20 + $0x24] ss:$8 sps:$4 sm:$0xff]   ;;  %v1633_v19 = vld [vmem:[%s2119_s20 + $0x20] ss:$8 sps:$4 sm:$0xff]  }
  0x72   : > { %1144 = vmatpush1.bf16.msra.mxu0 %v1622_v12  ;;  %1102 = vmatprep.subr.bf16.mxu1 %v1623_v13  ;;  %v1628_v16 = vld [vmem:[%s2119_s20 + $0x110] ss:$8 sps:$4 sm:$0xff]   ;;  %v1631_v18 = vld [vmem:[%s2119_s20 + $0x124] ss:$8 sps:$4 sm:$0xff]   ;;  %v1634_v20 = vld [vmem:[%s2119_s20 + $0x120] ss:$8 sps:$4 sm:$0xff]  }
  0x73   : > { %1145 = vmatprep.subr.bf16.mxu0 %v1625_v14  ;;  %v1635_v21 = vld [vmem:[%s2119_s20 + $0x34] ss:$8 sps:$4 sm:$0xff]   ;;  %v1639_v23 = vld [vmem:[%s2119_s20 + $0x30] ss:$8 sps:$4 sm:$0xff]   ;;  %v1641_v25 = vld [vmem:[%s2119_s20 + $0x44] ss:$8 sps:$4 sm:$0xff]  }
  0x74   : > { %v1637_v22 = vld [vmem:[%s2119_s20 + $0x134] ss:$8 sps:$4 sm:$0xff]   ;;  %v1640_v24 = vld [vmem:[%s2119_s20 + $0x130] ss:$8 sps:$4 sm:$0xff]   ;;  %v1643_v26 = vld [vmem:[%s2119_s20 + $0x144] ss:$8 sps:$4 sm:$0xff]  }
  0x75   : > { %1103 = vmatpush1.bf16.msra.mxu1 %v1627_v15  ;;  %v1645_v27 = vld [vmem:[%s2119_s20 + $0x40] ss:$8 sps:$4 sm:$0xff]   ;;  %v1647_v29 = vld [vmem:[%s2119_s20 + $0x54] ss:$8 sps:$4 sm:$0xff]   ;;  %v1651_v31 = vld [vmem:[%s2119_s20 + $0x50] ss:$8 sps:$4 sm:$0xff]  }
  0x76   : > { %1146 = vmatpush1.bf16.msra.mxu0 %v1628_v16  ;;  %1104 = vmatprep.subr.bf16.mxu1 %v1629_v17  ;;  %v1646_v28 = vld [vmem:[%s2119_s20 + $0x140] ss:$8 sps:$4 sm:$0xff]   ;;  %v1649_v30 = vld [vmem:[%s2119_s20 + $0x154] ss:$8 sps:$4 sm:$0xff]   ;;  %v1652_v32 = vld [vmem:[%s2119_s20 + $0x150] ss:$8 sps:$4 sm:$0xff]  }
  0x77   : > { %1147 = vmatprep.subr.bf16.mxu0 %v1631_v18  ;;  %v1653_v33 = vld [vmem:[%s2119_s20 + $0x64] ss:$8 sps:$4 sm:$0xff]   ;;  %v1657_v35 = vld [vmem:[%s2119_s20 + $0x60] ss:$8 sps:$4 sm:$0xff]   ;;  %v1659_v37 = vld [vmem:[%s2119_s20 + $0x74] ss:$8 sps:$4 sm:$0xff]  }
  0x78   : > { %v1655_v34 = vld [vmem:[%s2119_s20 + $0x164] ss:$8 sps:$4 sm:$0xff]   ;;  %v1658_v36 = vld [vmem:[%s2119_s20 + $0x160] ss:$8 sps:$4 sm:$0xff]   ;;  %v1661_v38 = vld [vmem:[%s2119_s20 + $0x174] ss:$8 sps:$4 sm:$0xff]  }
  0x79   : > { %1105 = vmatpush1.bf16.msra.mxu1 %v1633_v19  ;;  %v1663_v39 = vld [vmem:[%s2119_s20 + $0x70] ss:$8 sps:$4 sm:$0xff]   ;;  %v1665_v41 = vld [vmem:[%s2119_s20 + $0x84] ss:$8 sps:$4 sm:$0xff]   ;;  %v1669_v43 = vld [vmem:[%s2119_s20 + $0x80] ss:$8 sps:$4 sm:$0xff]  }
  0x7a   : > { %1148 = vmatpush1.bf16.msra.mxu0 %v1634_v20  ;;  %1106 = vmatprep.subr.bf16.mxu1 %v1635_v21  ;;  %v1664_v40 = vld [vmem:[%s2119_s20 + $0x170] ss:$8 sps:$4 sm:$0xff]   ;;  %v1667_v42 = vld [vmem:[%s2119_s20 + $0x184] ss:$8 sps:$4 sm:$0xff]   ;;  %v1670_v44 = vld [vmem:[%s2119_s20 + $0x180] ss:$8 sps:$4 sm:$0xff]  }
  0x7b   : > { %1149 = vmatprep.subr.bf16.mxu0 %v1637_v22  ;;  %v1671_v45 = vld [vmem:[%s2119_s20 + $0x94] ss:$8 sps:$4 sm:$0xff]   ;;  %v1675_v47 = vld [vmem:[%s2119_s20 + $0x90] ss:$8 sps:$4 sm:$0xff]   ;;  %v1677_v49 = vld [vmem:[%s2119_s20 + $0xa4] ss:$8 sps:$4 sm:$0xff]  }
  0x7c   : > { %v1673_v46 = vld [vmem:[%s2119_s20 + $0x194] ss:$8 sps:$4 sm:$0xff]   ;;  %v1676_v48 = vld [vmem:[%s2119_s20 + $0x190] ss:$8 sps:$4 sm:$0xff]   ;;  %v1679_v50 = vld [vmem:[%s2119_s20 + $0x1a4] ss:$8 sps:$4 sm:$0xff]  }
  0x7d   : > { %1107 = vmatpush1.bf16.msra.mxu1 %v1639_v23  ;;  %v1681_v51 = vld [vmem:[%s2119_s20 + $0xa0] ss:$8 sps:$4 sm:$0xff]   ;;  %v1683_v53 = vld [vmem:[%s2119_s20 + $0xb4] ss:$8 sps:$4 sm:$0xff]   ;;  %v1687_v55 = vld [vmem:[%s2119_s20 + $0xb0] ss:$8 sps:$4 sm:$0xff]  }
  0x7e   : > { %1150 = vmatpush1.bf16.msra.mxu0 %v1640_v24  ;;  %1108 = vmatprep.subr.bf16.mxu1 %v1641_v25  ;;  %v1682_v52 = vld [vmem:[%s2119_s20 + $0x1a0] ss:$8 sps:$4 sm:$0xff]   ;;  %v1685_v54 = vld [vmem:[%s2119_s20 + $0x1b4] ss:$8 sps:$4 sm:$0xff]   ;;  %v1688_v57 = vld [vmem:[%s2119_s20 + $0x1b0] ss:$8 sps:$4 sm:$0xff]  }
  0x7f   : > { %1151 = vmatprep.subr.bf16.mxu0 %v1643_v26  ;;  %v1715_v56 = vld [vmem:[%s2117_s22 + $0x4] ss:$16 sps:$4 sm:$0xff]   ;;  %v1718_v60 = vld [vmem:[%s2117_s22 + $0xc] ss:$16 sps:$4 sm:$0xff]   ;;  %v1693_v61 = vld [vmem:[%s2119_s20 + $0xc0] ss:$8 sps:$4 sm:$0xff]  }
  0x80   : > { %v1689_v58 = vld [vmem:[%s2119_s20 + $0xc4] ss:$8 sps:$4 sm:$0xff]   ;;  %1132 = vmatprep.mubr.bf16.mxu1 %v1715_v56  ;;  %1175 = vmatprep.mubr.bf16.mxu0 %v1718_v60  ;;  %v1694_v62 = vld [vmem:[%s2119_s20 + $0x1c0] ss:$8 sps:$4 sm:$0xff]   ;;  %v1695_v63 = vld [vmem:[%s2119_s20 + $0xd4] ss:$8 sps:$4 sm:$0xff]  }
  0x81   : > { %1109 = vmatpush1.bf16.msra.mxu1 %v1645_v27  ;;  %v1691_v59 = vld [vmem:[%s2119_s20 + $0x1c4] ss:$8 sps:$4 sm:$0xff]   ;;  %v1697_v0 = vld [vmem:[%s2119_s20 + $0x1d4] ss:$8 sps:$4 sm:$0xff]   ;;  %v1699_v1 = vld [vmem:[%s2119_s20 + $0xd0] ss:$8 sps:$4 sm:$0xff]  }
  0x82   : > { %1152 = vmatpush1.bf16.msra.mxu0 %v1646_v28  ;;  %1110 = vmatprep.subr.bf16.mxu1 %v1647_v29  ;;  %v1700_v2 = vld [vmem:[%s2119_s20 + $0x1d0] ss:$8 sps:$4 sm:$0xff]   ;;  %v1701_v3 = vld [vmem:[%s2119_s20 + $0xe4] ss:$8 sps:$4 sm:$0xff]   ;;  %v1705_v5 = vld [vmem:[%s2119_s20 + $0xe0] ss:$8 sps:$4 sm:$0xff]  }
  0x83   : > { %1153 = vmatprep.subr.bf16.mxu0 %v1649_v30  ;;  %v1703_v4 = vld [vmem:[%s2119_s20 + $0x1e4] ss:$8 sps:$4 sm:$0xff]   ;;  %v1706_v6 = vld [vmem:[%s2119_s20 + $0x1e0] ss:$8 sps:$4 sm:$0xff]   ;;  %v1707_v7 = vld [vmem:[%s2119_s20 + $0xf4] ss:$8 sps:$4 sm:$0xff]  }
  0x84   : > { %v1709_v8 = vld [vmem:[%s2119_s20 + $0x1f4] ss:$8 sps:$4 sm:$0xff]   ;;  %v1711_v9 = vld [vmem:[%s2119_s20 + $0xf0] ss:$8 sps:$4 sm:$0xff]   ;;  %v688_v14 = vld [vmem:[#allocation2] sm:$0xff]  ;;  %p1514_p6 = scmp.ne.s32.totalorder %s1789_s24, 8 }
  0x85   : > { %1111 = vmatpush1.bf16.msra.mxu1 %v1651_v31  ;;  %v1712_v10 = vld [vmem:[%s2119_s20 + $0x1f0] ss:$8 sps:$4 sm:$0xff]   ;;  %v689_v18 = vld [vmem:[#allocation2 + $0x8] sm:$0xff] }
  0x86   : > { %1154 = vmatpush1.bf16.msra.mxu0 %v1652_v32  ;;  %1112 = vmatprep.subr.bf16.mxu1 %v1653_v33  ;;  %v1713_v11 = vld [vmem:[%s2117_s22] ss:$16 sps:$4 sm:$0xff]   ;;  %v1716_v12 = vld [vmem:[%s2117_s22 + $0x8] ss:$16 sps:$4 sm:$0xff]   ;;  %v1204_v33 = vlaneseq (!%p1514_p6) }
  0x87   : > { %1155 = vmatprep.subr.bf16.mxu0 %v1655_v34  ;;  %v690_v22 = vld [vmem:[#allocation2 + $0x10] sm:$0xff]  ;;  %v691_v27 = vld [vmem:[#allocation2 + $0x18] sm:$0xff] }
  0x88   : > { %v1205_v34 = vshrl.u32 (!%p1514_p6), %v1204_v33, 7 }
  0x89   : > { %1113 = vmatpush1.bf16.msra.mxu1 %v1657_v35  ;;  %v1202_v35 = vld [vmem:[%s669_s29] sm:$0x3] (!%p1514_p6) }
  0x8a   : > { %1156 = vmatpush1.bf16.msra.mxu0 %v1658_v36  ;;  %1114 = vmatprep.subr.bf16.mxu1 %v1659_v37  ;;  %v1218_v36 = vld [vmem:[%s674_s6] sm:$0x3] (!%p1514_p6) }
  0x8b   : > { %1157 = vmatprep.subr.bf16.mxu0 %v1661_v38  ;;  %v1206_v38 = vsub.s32 (!%p1514_p6), 0, %v1205_v34 }
  0x8d   : > { %1115 = vmatpush1.bf16.msra.mxu1 %v1663_v39  ;;  %v1210_v39 = vsub.s32 (!%p1514_p6), 1, %v1205_v34 }
  0x8e   : > { %1158 = vmatpush1.bf16.msra.mxu0 %v1664_v40  ;;  %1116 = vmatprep.subr.bf16.mxu1 %v1665_v41 }
  0x8f   : > { %1159 = vmatprep.subr.bf16.mxu0 %v1667_v42 }
  0x91   : > { %1117 = vmatpush1.bf16.msra.mxu1 %v1669_v43  ;;  %v1207_v43 = vrot.slane (!%p1514_p6), %v1202_v35, %v1206_v38 }
  0x92   : > { %1160 = vmatpush1.bf16.msra.mxu0 %v1670_v44  ;;  %1118 = vmatprep.subr.bf16.mxu1 %v1671_v45  ;;  %v1223_v44 = vrot.slane (!%p1514_p6), %v1218_v36, %v1206_v38  ;;  %v1211_v45 = vrot.slane (!%p1514_p6), %v1202_v35, %v1210_v39 }
  0x93   : > { %1161 = vmatprep.subr.bf16.mxu0 %v1673_v46  ;;  %v1227_v46 = vrot.slane (!%p1514_p6), %v1218_v36, %v1210_v39 }
  0x95   : > { %1119 = vmatpush1.bf16.msra.mxu1 %v1675_v47 }
  0x96   : > { %1162 = vmatpush1.bf16.msra.mxu0 %v1676_v48  ;;  %1120 = vmatprep.subr.bf16.mxu1 %v1677_v49  ;;  %v1234_v48 = vld [vmem:[%s2121_s18] sm:$0xff] (!%p1514_p6) }
  0x97   : > { %1163 = vmatprep.subr.bf16.mxu0 %v1679_v50 }
  0x99   : > { %1121 = vmatpush1.bf16.msra.mxu1 %v1681_v51 }
  0x9a   : > { %1164 = vmatpush1.bf16.msra.mxu0 %v1682_v52  ;;  %1122 = vmatprep.subr.bf16.mxu1 %v1683_v53  ;;  %v1235_v52 = vld [vmem:[%s2121_s18 + $0x8] sm:$0xff] (!%p1514_p6)  ;;  %v1236_v53 = vld [vmem:[%s2121_s18 + $0x10] sm:$0xff] (!%p1514_p6) }
  0x9b   : > { %1165 = vmatprep.subr.bf16.mxu0 %v1685_v54  ;;  %v1237_v54 = vld [vmem:[%s2121_s18 + $0x18] sm:$0xff] (!%p1514_p6) }
  0x9d   : > { %1123 = vmatpush1.bf16.msra.mxu1 %v1687_v55 }
  0x9e   : > { %1166 = vmatpush1.bf16.msra.mxu0 %v1688_v57  ;;  %1124 = vmatprep.subr.bf16.mxu1 %v1689_v58 }
  0x9f   : > { %1167 = vmatprep.subr.bf16.mxu0 %v1691_v59 }
  0xa1   : > { %1125 = vmatpush1.bf16.msra.mxu1 %v1693_v61 }
  0xa2   : > { %1168 = vmatpush1.bf16.msra.mxu0 %v1694_v62  ;;  %1126 = vmatprep.subr.bf16.mxu1 %v1695_v63 }
  0xa3   : > { %1169 = vmatprep.subr.bf16.mxu0 %v1697_v0 }
  0xa5   : > { %1127 = vmatpush1.bf16.msra.mxu1 %v1699_v1 }
  0xa6   : > { %1170 = vmatpush1.bf16.msra.mxu0 %v1700_v2  ;;  %1128 = vmatprep.subr.bf16.mxu1 %v1701_v3 }
  0xa7   : > { %1171 = vmatprep.subr.bf16.mxu0 %v1703_v4 }
  0xa9   : > { %1129 = vmatpush1.bf16.msra.mxu1 %v1705_v5 }
  0xaa   : > { %1172 = vmatpush1.bf16.msra.mxu0 %v1706_v6  ;;  %1130 = vmatprep.subr.bf16.mxu1 %v1707_v7 }
  0xab   : > { %1173 = vmatprep.subr.bf16.mxu0 %v1709_v8 }
  0xad   : > { %1131 = vmatpush1.bf16.msra.mxu1 %v1711_v9 }
  0xae   : > { %1174 = vmatpush1.bf16.msra.mxu0 %v1712_v10 }
  0xb0   : > { %1133 = vmatmul.mubr.bf16.vlgmr.msra.gmra.mrb[0].mxu1 %v1713_v11 }
  0xb1   : > { %1176 = vmatmul.mubr.bf16.vlgmr.msra.gmra.mrb[0].mxu0 %v1716_v12 }
 0x183   : > { %v1134_v13 = vpop.f32.mrb[0].mxu1 }
 0x184   : > { %v1177_v15 = vpop.f32.mrb[0].mxu0  ;;  %v1136_v17 = vpop.f32.mrb[1].mxu1 }
 0x185   : > { %v1178_v16 = vadd.f32 %v1177_v15, %v1134_v13  ;;  %v1179_v19 = vpop.f32.mrb[1].mxu0  ;;  %v1138_v21 = vpop.f32.mrb[2].mxu1 }
 0x186   : > { %v1180_v20 = vadd.f32 %v1179_v19, %v1136_v17  ;;  %v1181_v23 = vpop.f32.mrb[2].mxu0  ;;  %v1140_v26 = vpop.f32.mrb[3].mxu1  ;;  %1197 = sbr.rel (%p1514_p6) target bundleno = 413 (0x19d), region = 132 }
 0x187   : > { %v1186_v24 = vadd.f32 %v1178_v16, %v688_v14  ;;  %v1182_v25 = vadd.f32 %v1181_v23, %v1138_v21  ;;  %v1183_v28 = vpop.f32.mrb[3].mxu0 }
 0x188   : > { %v1187_v29 = vadd.f32 %v1180_v20, %v689_v18  ;;  %v1184_v30 = vadd.f32 %v1183_v28, %v1140_v26 }
 0x189   : > { %1190 = vst [vmem:[#allocation2] sm:$0xff] %v1186_v24  ;;  %v1188_v31 = vadd.f32 %v1182_v25, %v690_v22 }
 0x18a   : > { %1191 = vst [vmem:[#allocation2 + $0x8] sm:$0xff] %v1187_v29  ;;  %v1189_v32 = vadd.f32 %v1184_v30, %v691_v27 }
 0x18b   : > { %1192 = vst [vmem:[#allocation2 + $0x10] sm:$0xff] %v1188_v31 }
 0x18c   : > { %1193 = vst [vmem:[#allocation2 + $0x18] sm:$0xff] %v1189_v32 }
 0x190   : > { %v1198_v37 = vld [vmem:[#allocation2] sm:$0xff] }
 0x191   : > { %v1199_v40 = vld [vmem:[#allocation2 + $0x8] sm:$0xff]  ;;  %v1214_v47 = vmul.f32 %v1207_v43, %v1198_v37 }
 0x192   : > { %v1200_v41 = vld [vmem:[#allocation2 + $0x10] sm:$0xff]  ;;  %v1215_v49 = vmul.f32 %v1211_v45, %v1199_v40 }
 0x193   : > { %v1201_v42 = vld [vmem:[#allocation2 + $0x18] sm:$0xff]  ;;  %v1216_v50 = vmul.f32 %v1207_v43, %v1200_v41  ;;  %v1230_v55 = vadd.f32 %v1223_v44, %v1214_v47 }
 0x194   : > { %v1217_v51 = vmul.f32 %v1211_v45, %v1201_v42  ;;  %v1231_v56 = vadd.f32 %v1227_v46, %v1215_v49 }
 0x195   : > { %v1232_v57 = vadd.f32 %v1223_v44, %v1216_v50  ;;  %v1238_v59 = vadd.f32 %v1234_v48, %v1230_v55 }
 0x196   : > { %v1233_v58 = vadd.f32 %v1227_v46, %v1217_v51  ;;  %v1239_v60 = vadd.f32 %v1235_v52, %v1231_v56 }
 0x197   : > { %v1240_v61 = vadd.f32 %v1236_v53, %v1232_v57  ;;  %v1242_v63 = vmax.f32 %v1238_v59, 0.0 }
 0x198   : > { %v1241_v62 = vadd.f32 %v1237_v54, %v1233_v58  ;;  %v1243_v0 = vmax.f32 %v1239_v60, 0.0 }
 0x199   : > { %v1244_v1 = vmax.f32 %v1240_v61, 0.0  ;;  %1246 = vst [vmem:[%s2123_s23] sm:$0xff] %v1242_v63 }
 0x19a   : > { %v1245_v2 = vmax.f32 %v1241_v62, 0.0  ;;  %1247 = vst [vmem:[%s2123_s23 + $0x8] sm:$0xff] %v1243_v0 }
 0x19b   : > { %1248 = vst [vmem:[%s2123_s23 + $0x10] sm:$0xff] %v1244_v1 }
 0x19c   : > { %1249 = vst [vmem:[%s2123_s23 + $0x18] sm:$0xff] %v1245_v2 }
 0x19d PF: > { %1256 = sbr.rel (!%p1942_p13) target bundleno = 421 (0x1a5), region = 136  ;;  %s1523_s24 = sshll.u32 (%p1942_p13), %s1793_s25, 4 }
 0x19e   : > { %s1262_s11 = scalar_lea.vmem (%p1942_p13), %s2261_s5, %s1523_s24 }
 0x1a0   : > { %v1275_v3 = vld [vmem:[%s2123_s23] sm:$0xff] (%p1942_p13) }
 0x1a1   : > { %v1277_v4 = vld [vmem:[%s2123_s23 + $0x8] sm:$0xff] (%p1942_p13)  ;;  %1276 = vst [vmem:[%s1262_s11] sm:$0xff] (%p1942_p13), %v1275_v3 }
 0x1a2   : > { %v1279_v5 = vld [vmem:[%s2123_s23 + $0x10] sm:$0xff] (%p1942_p13)  ;;  %1278 = vst [vmem:[%s1262_s11 + $0x8] sm:$0xff] (%p1942_p13), %v1277_v4 }
 0x1a3   : > { %v1281_v6 = vld [vmem:[%s2123_s23 + $0x18] sm:$0xff] (%p1942_p13)  ;;  %1280 = vst [vmem:[%s1262_s11 + $0x20] sm:$0xff] (%p1942_p13), %v1279_v5 }
 0x1a4   : > { %1282 = vst [vmem:[%s1262_s11 + $0x28] sm:$0xff] %v1281_v6 }
 0x1a5 PF: > { %s15_s28 = sadd.s32 1, %s1805_s28   ;;  %s2275_s22 = sld [smem:[#allocation7_spill]] }
 0x1a6   : > { %p12_p7 = scmp.ge.s32.totalorder %s15_s28, 20   ;;  %s2276_s23 = sld [smem:[#allocation10_spill]] }
 0x1a7   : > { %s2277_s8 = sld [smem:[#allocation8_spill]]  ;;  %s2278_s14 = sld [smem:[#allocation9_spill]] }
 0x1a8   : > { %s2279_s18 = smov %s1769_s19  ;;  %s2280_s19 = smov %s1934_s17 }
 0x1a9   : > { %s2281_s20 = smov %s1777_s21  ;;  %s2282_s21 = smov %s1931_s16 }
 0x1aa   : > { %s2283_s24 = smov %s1797_s26  ;;  %s2284_s25 = smov %s1801_s27 }
 0x1ab   :  { %14 = sbr.rel (!%p12_p7) target bundleno = 8 (0x8), region = 212 }
 0x1ad   : > { %s2285_s26 = smov %s2277_s8  ;;  %s2286_s27 = smov %s2278_s14 }

// kernel: _lambda_.40
= control target key start
LH: loop header
LB: loop body
LE: loop exit
PB: predicated region body
PF: predicated region fallthrough
CT: control target
= control target key end

     0   :  { %s2114_s0 = inlined_call_operand.vmem [shape: bf16[16,4608], index: 0, kind: input, shape index: {}]   ;;  %s2115_s1 = inlined_call_operand.vmem [shape: bf16[4608,512], index: 1, kind: input, shape index: {}]   ;;  %s2116_s2 = inlined_call_operand.vmem [shape: f32[1,512], index: 2, kind: input, shape index: {}]   ;;  %s2117_s3 = inlined_call_operand.vmem [shape: f32[1,512], index: 3, kind: input, shape index: {}]   ;;  %s2118_s4 = inlined_call_operand.vmem [shape: f32[16,512], index: 4, kind: output, shape index: {}]  }
   0x1   :  { %2121 = sst [smem:[#allocation8_spill]] %s2114_s0 }
   0x2   :  { %2122 = sst [smem:[#allocation9_spill]] %s2115_s1 }
   0x3   :  { %s1719_s15 = smov 0   ;;  %s1721_s16 = smov 0  }
   0x4   :  { %s1723_s17 = smov 0   ;;  %s1725_s18 = smov 0  }
   0x5   :  { %s1727_s19 = smov 0   ;;  %s1729_s20 = smov 0  }
   0x6   :  { %s1731_s21 = smov 0   ;;  %s1733_s22 = smov 0  }
   0x7   :  { %s1735_s23 = smov 0   ;;  %s1737_s24 = smov 0  }
   0x8   :  { %s1739_s25 = smov 0  }
   0x9 LB: > { %s1314_s26 = sadd.s32 4294967295, %s1691_s25   ;;  %s26_s27 = sadd.s32 1, %s1683_s23  ;;  %s1691_s25 = sphi %s1739_s25, %s14_s25   ;;  %s1687_s24 = sphi %s1737_s24, %s2141_s24   ;;  %s1683_s23 = sphi %s1735_s23, %s2140_s23   ;;  %s1679_s22 = sphi %s1733_s22, %s2139_s22   ;;  %s1675_s21 = sphi %s1731_s21, %s2138_s21   ;;  %s1671_s20 = sphi %s1729_s20, %s2137_s20   ;;  %s1667_s19 = sphi %s1727_s19, %s2136_s19   ;;  %s1663_s18 = sphi %s1725_s18, %s2135_s18   ;;  %s1659_s17 = sphi %s1723_s17, %s2134_s17   ;;  %s1655_s16 = sphi %s1721_s16, %s2133_s16   ;;  %s1651_s15 = sphi %s1719_s15, %s2132_s15  }
   0xa   : > { %p27_p0 = scmp.ge.s32.totalorder %s26_s27, 9  ;;  %s29_s28 = sadd.s32 1, %s1687_s24 }
   0xb   : > { %s42_s29 = sadd.s32 1, %s1671_s20  ;;  %p49_p1 = scmp.ne.s32.totalorder %s1671_s20, %s1667_s19 }
   0xc   : > { %s2143_s27 = smov (%p27_p0, %s26_s27), 0  ;;  %s2145_s28 = smov (!%p27_p0, %s29_s28), %s1687_s24 }
   0xd   : > { %2123 = sst [smem:[#allocation6_spill]] %s2143_s27  ;;  %s38_s30 = ssub.s32 %s1683_s23, %s2143_s27 }
   0xe   : > { %p50_p2 = scmp.eq.s32.totalorder %s1691_s25, 0  ;;  %p31_p3 = scmp.ge.s32.totalorder %s2145_s28, 2 }
   0xf   : > { %p40_p4 = scmp.eq.s32.totalorder %s38_s30, 0  ;;  %s70_s6 = sadd.s32 1, %s1663_s18 }
  0x10   : > { %p1786_p5 = por %p50_p2, %p49_p1  ;;  %s2147_s28 = smov (%p31_p3, %s2145_s28), 0 }
  0x11   : > { %2125 = sst [smem:[#allocation7_spill]] %s2147_s28  ;;  %s66_s8 = ssub.s32 %s1687_s24, %s2147_s28 }
  0x12   : > { %s1794_s7 = scalar_select %p40_p4, %s1671_s20, %s42_s29  }
  0x13   : > { %p77_p6 = scmp.ne.s32.totalorder %s1663_s18, %s1659_s17  ;;  %s67_s9 = sor.u32 %s66_s8, %s38_s30 }
  0x14   : > { %p148_p7 = scmp.eq.s32.totalorder %s66_s8, 0  ;;  %p68_p8 = scmp.eq.s32.totalorder %s67_s9, 0 }
  0x15   : > { %p1800_p9 = por %p77_p6, %p50_p2  ;;  %s150_s11 = sadd.s32 1, %s1655_s16 }
  0x16   : > { %p160_p10 = scmp.ne.s32.totalorder %s1655_s16, %s1651_s15  ;;  %p161_p11 = scmp.eq.s32.totalorder %s1314_s26, 17 }
  0x17   : > { %s1808_s12 = scalar_select %p68_p8, %s1663_s18, %s70_s6  }
  0x18   : > { %s1811_s13 = scalar_select %p148_p7, %s1655_s16, %s150_s11  }
  0x19   : > { %p1813_p12 = por %p161_p11, %p160_p10  ;;  %p1317_p13 = scmp.ge.s32.totalorder %s1691_s25, 18 }
  0x1b   : > { %183 = sbr.rel (%p1317_p13) target bundleno = 88 (0x58), region = 16 }
  0x22   : > { %186 = sbr.rel (!%p1786_p5) target bundleno = 46 (0x2e), region = 20  ;;  %s188_s29 = sand.u32 (%p1786_p5), 1, %s1671_s20  }
  0x23   : > { %s1407_s30 = sshll.u32 (%p1786_p5), %s1683_s23, 4  ;;  %s1318_s8 = sshll.u32 (%p1786_p5), %s188_s29, 5 }
  0x24   : > { %s2128_s0 = sld [smem:[#allocation8_spill]] (%p1786_p5)  ;;  %s190_s26 = scalar_lea.vmem (%p1786_p5), [#allocation3], %s1318_s8 }
  0x2a   : > { %s196_s11 = scalar_lea.vmem %s2128_s0, %s1407_s30 }
  0x2b   : > { %v209_v0 = vld [vmem:[%s196_s11] sm:$0xff]  ;;  %v211_v1 = vld [vmem:[%s196_s11 + $0x8] sm:$0xff]  ;;  %v213_v2 = vld [vmem:[%s196_s11 + $0x90] sm:$0xff] }
  0x2c   : > { %210 = vst [vmem:[%s190_s26] sm:$0xff] %v209_v0  ;;  %212 = vst [vmem:[%s190_s26 + $0x8] sm:$0xff] %v211_v1  ;;  %v215_v3 = vld [vmem:[%s196_s11 + $0x98] sm:$0xff] }
  0x2d   : > { %214 = vst [vmem:[%s190_s26 + $0x10] sm:$0xff] %v213_v2  ;;  %216 = vst [vmem:[%s190_s26 + $0x18] sm:$0xff] %v215_v3 }
  0x2e PF: > { %222 = sbr.rel (!%p1800_p9) target bundleno = 88 (0x58), region = 43  ;;  %s224_s5 = sand.u32 (%p1800_p9), 1, %s1663_s18  }
  0x2f   : > { %s1323_s29 = sshll.u32 (%p1800_p9), %s1687_s24, 1  ;;  %s1321_s6 = sshll.u32 (%p1800_p9), %s224_s5, 9 }
  0x30   : > { %s1408_s30 = sshll.u32 (%p1800_p9), %s1683_s23, 8  ;;  %s2129_s1 = sld [smem:[#allocation9_spill]] (%p1800_p9) }
  0x31   : > { %s230_s9 = sadd.s32 (%p1800_p9), %s1408_s30, %s1323_s29  ;;  %s1838_s10 = scalar_lea.vmem (%p1800_p9), [#allocation4], %s1321_s6 }
  0x32   : > { %s1325_s0 = sshll.u32 (%p1800_p9), %s230_s9, 2 }
  0x36   : > { %s1833_s27 = scalar_lea.vmem %s2129_s1, %s1325_s0 }
  0x37   : > { %v386_v4 = vld [vmem:[%s1833_s27] sm:$0xff]  ;;  %v388_v5 = vld [vmem:[%s1833_s27 + $0x10] sm:$0xff] }
  0x38   : > { %v390_v6 = vld [vmem:[%s1833_s27 + $0x20] sm:$0xff]  ;;  %387 = vst [vmem:[%s1838_s10] sm:$0xff] %v386_v4  ;;  %389 = vst [vmem:[%s1838_s10 + $0x8] sm:$0xff] %v388_v5  ;;  %v392_v7 = vld [vmem:[%s1833_s27 + $0x30] sm:$0xff] }
  0x39   : > { %391 = vst [vmem:[%s1838_s10 + $0x10] sm:$0xff] %v390_v6  ;;  %v394_v8 = vld [vmem:[%s1833_s27 + $0x40] sm:$0xff]  ;;  %v396_v9 = vld [vmem:[%s1833_s27 + $0x50] sm:$0xff]  ;;  %393 = vst [vmem:[%s1838_s10 + $0x18] sm:$0xff] %v392_v7 }
  0x3a   : > { %395 = vst [vmem:[%s1838_s10 + $0x20] sm:$0xff] %v394_v8  ;;  %397 = vst [vmem:[%s1838_s10 + $0x28] sm:$0xff] %v396_v9  ;;  %v398_v10 = vld [vmem:[%s1833_s27 + $0x60] sm:$0xff]  ;;  %v400_v11 = vld [vmem:[%s1833_s27 + $0x70] sm:$0xff] }
  0x3b   : > { %v402_v12 = vld [vmem:[%s1833_s27 + $0x80] sm:$0xff]  ;;  %399 = vst [vmem:[%s1838_s10 + $0x30] sm:$0xff] %v398_v10  ;;  %401 = vst [vmem:[%s1838_s10 + $0x38] sm:$0xff] %v400_v11  ;;  %v404_v13 = vld [vmem:[%s1833_s27 + $0x90] sm:$0xff] }
  0x3c   : > { %403 = vst [vmem:[%s1838_s10 + $0x40] sm:$0xff] %v402_v12  ;;  %v406_v14 = vld [vmem:[%s1833_s27 + $0xa0] sm:$0xff]  ;;  %v408_v15 = vld [vmem:[%s1833_s27 + $0xb0] sm:$0xff]  ;;  %405 = vst [vmem:[%s1838_s10 + $0x48] sm:$0xff] %v404_v13 }
  0x3d   : > { %407 = vst [vmem:[%s1838_s10 + $0x50] sm:$0xff] %v406_v14  ;;  %409 = vst [vmem:[%s1838_s10 + $0x58] sm:$0xff] %v408_v15  ;;  %v410_v16 = vld [vmem:[%s1833_s27 + $0xc0] sm:$0xff]  ;;  %v412_v17 = vld [vmem:[%s1833_s27 + $0xd0] sm:$0xff] }
  0x3e   : > { %v414_v18 = vld [vmem:[%s1833_s27 + $0xe0] sm:$0xff]  ;;  %411 = vst [vmem:[%s1838_s10 + $0x60] sm:$0xff] %v410_v16  ;;  %413 = vst [vmem:[%s1838_s10 + $0x68] sm:$0xff] %v412_v17  ;;  %v416_v19 = vld [vmem:[%s1833_s27 + $0xf0] sm:$0xff] }
  0x3f   : > { %415 = vst [vmem:[%s1838_s10 + $0x70] sm:$0xff] %v414_v18  ;;  %v418_v20 = vld [vmem:[%s1833_s27 + $0x100] sm:$0xff]  ;;  %v420_v21 = vld [vmem:[%s1833_s27 + $0x110] sm:$0xff]  ;;  %417 = vst [vmem:[%s1838_s10 + $0x78] sm:$0xff] %v416_v19 }
  0x40   : > { %419 = vst [vmem:[%s1838_s10 + $0x80] sm:$0xff] %v418_v20  ;;  %421 = vst [vmem:[%s1838_s10 + $0x88] sm:$0xff] %v420_v21  ;;  %v422_v22 = vld [vmem:[%s1833_s27 + $0x120] sm:$0xff]  ;;  %v424_v23 = vld [vmem:[%s1833_s27 + $0x130] sm:$0xff] }
  0x41   : > { %v426_v24 = vld [vmem:[%s1833_s27 + $0x140] sm:$0xff]  ;;  %423 = vst [vmem:[%s1838_s10 + $0x90] sm:$0xff] %v422_v22  ;;  %425 = vst [vmem:[%s1838_s10 + $0x98] sm:$0xff] %v424_v23  ;;  %v428_v25 = vld [vmem:[%s1833_s27 + $0x150] sm:$0xff] }
  0x42   : > { %427 = vst [vmem:[%s1838_s10 + $0xa0] sm:$0xff] %v426_v24  ;;  %v430_v26 = vld [vmem:[%s1833_s27 + $0x160] sm:$0xff]  ;;  %v432_v27 = vld [vmem:[%s1833_s27 + $0x170] sm:$0xff]  ;;  %429 = vst [vmem:[%s1838_s10 + $0xa8] sm:$0xff] %v428_v25 }
  0x43   : > { %431 = vst [vmem:[%s1838_s10 + $0xb0] sm:$0xff] %v430_v26  ;;  %433 = vst [vmem:[%s1838_s10 + $0xb8] sm:$0xff] %v432_v27  ;;  %v434_v28 = vld [vmem:[%s1833_s27 + $0x180] sm:$0xff]  ;;  %v436_v29 = vld [vmem:[%s1833_s27 + $0x190] sm:$0xff] }
  0x44   : > { %v438_v30 = vld [vmem:[%s1833_s27 + $0x1a0] sm:$0xff]  ;;  %435 = vst [vmem:[%s1838_s10 + $0xc0] sm:$0xff] %v434_v28  ;;  %437 = vst [vmem:[%s1838_s10 + $0xc8] sm:$0xff] %v436_v29  ;;  %v440_v31 = vld [vmem:[%s1833_s27 + $0x1b0] sm:$0xff] }
  0x45   : > { %439 = vst [vmem:[%s1838_s10 + $0xd0] sm:$0xff] %v438_v30  ;;  %v442_v32 = vld [vmem:[%s1833_s27 + $0x1c0] sm:$0xff]  ;;  %v444_v33 = vld [vmem:[%s1833_s27 + $0x1d0] sm:$0xff]  ;;  %441 = vst [vmem:[%s1838_s10 + $0xd8] sm:$0xff] %v440_v31 }
  0x46   : > { %443 = vst [vmem:[%s1838_s10 + $0xe0] sm:$0xff] %v442_v32  ;;  %445 = vst [vmem:[%s1838_s10 + $0xe8] sm:$0xff] %v444_v33  ;;  %v446_v34 = vld [vmem:[%s1833_s27 + $0x1e0] sm:$0xff]  ;;  %v448_v35 = vld [vmem:[%s1833_s27 + $0x1f0] sm:$0xff] }
  0x47   : > { %v450_v36 = vld [vmem:[%s1833_s27 + $0x200] sm:$0xff]  ;;  %447 = vst [vmem:[%s1838_s10 + $0xf0] sm:$0xff] %v446_v34  ;;  %449 = vst [vmem:[%s1838_s10 + $0xf8] sm:$0xff] %v448_v35  ;;  %v452_v37 = vld [vmem:[%s1833_s27 + $0x210] sm:$0xff] }
  0x48   : > { %451 = vst [vmem:[%s1838_s10 + $0x100] sm:$0xff] %v450_v36  ;;  %v454_v38 = vld [vmem:[%s1833_s27 + $0x220] sm:$0xff]  ;;  %v456_v39 = vld [vmem:[%s1833_s27 + $0x230] sm:$0xff]  ;;  %453 = vst [vmem:[%s1838_s10 + $0x108] sm:$0xff] %v452_v37 }
  0x49   : > { %455 = vst [vmem:[%s1838_s10 + $0x110] sm:$0xff] %v454_v38  ;;  %457 = vst [vmem:[%s1838_s10 + $0x118] sm:$0xff] %v456_v39  ;;  %v458_v40 = vld [vmem:[%s1833_s27 + $0x240] sm:$0xff]  ;;  %v460_v41 = vld [vmem:[%s1833_s27 + $0x250] sm:$0xff] }
  0x4a   : > { %v462_v42 = vld [vmem:[%s1833_s27 + $0x260] sm:$0xff]  ;;  %459 = vst [vmem:[%s1838_s10 + $0x120] sm:$0xff] %v458_v40  ;;  %461 = vst [vmem:[%s1838_s10 + $0x128] sm:$0xff] %v460_v41  ;;  %v464_v43 = vld [vmem:[%s1833_s27 + $0x270] sm:$0xff] }
  0x4b   : > { %463 = vst [vmem:[%s1838_s10 + $0x130] sm:$0xff] %v462_v42  ;;  %v466_v44 = vld [vmem:[%s1833_s27 + $0x280] sm:$0xff]  ;;  %v468_v45 = vld [vmem:[%s1833_s27 + $0x290] sm:$0xff]  ;;  %465 = vst [vmem:[%s1838_s10 + $0x138] sm:$0xff] %v464_v43 }
  0x4c   : > { %467 = vst [vmem:[%s1838_s10 + $0x140] sm:$0xff] %v466_v44  ;;  %469 = vst [vmem:[%s1838_s10 + $0x148] sm:$0xff] %v468_v45  ;;  %v470_v46 = vld [vmem:[%s1833_s27 + $0x2a0] sm:$0xff]  ;;  %v472_v47 = vld [vmem:[%s1833_s27 + $0x2b0] sm:$0xff] }
  0x4d   : > { %v474_v48 = vld [vmem:[%s1833_s27 + $0x2c0] sm:$0xff]  ;;  %471 = vst [vmem:[%s1838_s10 + $0x150] sm:$0xff] %v470_v46  ;;  %473 = vst [vmem:[%s1838_s10 + $0x158] sm:$0xff] %v472_v47  ;;  %v476_v49 = vld [vmem:[%s1833_s27 + $0x2d0] sm:$0xff] }
  0x4e   : > { %475 = vst [vmem:[%s1838_s10 + $0x160] sm:$0xff] %v474_v48  ;;  %v478_v50 = vld [vmem:[%s1833_s27 + $0x2e0] sm:$0xff]  ;;  %v480_v51 = vld [vmem:[%s1833_s27 + $0x2f0] sm:$0xff]  ;;  %477 = vst [vmem:[%s1838_s10 + $0x168] sm:$0xff] %v476_v49 }
  0x4f   : > { %479 = vst [vmem:[%s1838_s10 + $0x170] sm:$0xff] %v478_v50  ;;  %481 = vst [vmem:[%s1838_s10 + $0x178] sm:$0xff] %v480_v51  ;;  %v482_v52 = vld [vmem:[%s1833_s27 + $0x300] sm:$0xff]  ;;  %v484_v53 = vld [vmem:[%s1833_s27 + $0x310] sm:$0xff] }
  0x50   : > { %v486_v54 = vld [vmem:[%s1833_s27 + $0x320] sm:$0xff]  ;;  %483 = vst [vmem:[%s1838_s10 + $0x180] sm:$0xff] %v482_v52  ;;  %485 = vst [vmem:[%s1838_s10 + $0x188] sm:$0xff] %v484_v53  ;;  %v488_v55 = vld [vmem:[%s1833_s27 + $0x330] sm:$0xff] }
  0x51   : > { %487 = vst [vmem:[%s1838_s10 + $0x190] sm:$0xff] %v486_v54  ;;  %v490_v56 = vld [vmem:[%s1833_s27 + $0x340] sm:$0xff]  ;;  %v492_v57 = vld [vmem:[%s1833_s27 + $0x350] sm:$0xff]  ;;  %489 = vst [vmem:[%s1838_s10 + $0x198] sm:$0xff] %v488_v55 }
  0x52   : > { %491 = vst [vmem:[%s1838_s10 + $0x1a0] sm:$0xff] %v490_v56  ;;  %493 = vst [vmem:[%s1838_s10 + $0x1a8] sm:$0xff] %v492_v57  ;;  %v494_v58 = vld [vmem:[%s1833_s27 + $0x360] sm:$0xff]  ;;  %v496_v59 = vld [vmem:[%s1833_s27 + $0x370] sm:$0xff] }
  0x53   : > { %v498_v60 = vld [vmem:[%s1833_s27 + $0x380] sm:$0xff]  ;;  %495 = vst [vmem:[%s1838_s10 + $0x1b0] sm:$0xff] %v494_v58  ;;  %497 = vst [vmem:[%s1838_s10 + $0x1b8] sm:$0xff] %v496_v59  ;;  %v500_v61 = vld [vmem:[%s1833_s27 + $0x390] sm:$0xff] }
  0x54   : > { %499 = vst [vmem:[%s1838_s10 + $0x1c0] sm:$0xff] %v498_v60  ;;  %v502_v62 = vld [vmem:[%s1833_s27 + $0x3a0] sm:$0xff]  ;;  %v504_v63 = vld [vmem:[%s1833_s27 + $0x3b0] sm:$0xff]  ;;  %501 = vst [vmem:[%s1838_s10 + $0x1c8] sm:$0xff] %v500_v61 }
  0x55   : > { %503 = vst [vmem:[%s1838_s10 + $0x1d0] sm:$0xff] %v502_v62  ;;  %505 = vst [vmem:[%s1838_s10 + $0x1d8] sm:$0xff] %v504_v63  ;;  %v506_v0 = vld [vmem:[%s1833_s27 + $0x3c0] sm:$0xff]  ;;  %v508_v1 = vld [vmem:[%s1833_s27 + $0x3d0] sm:$0xff] }
  0x56   : > { %v510_v2 = vld [vmem:[%s1833_s27 + $0x3e0] sm:$0xff]  ;;  %507 = vst [vmem:[%s1838_s10 + $0x1e0] sm:$0xff] %v506_v0  ;;  %509 = vst [vmem:[%s1838_s10 + $0x1e8] sm:$0xff] %v508_v1  ;;  %v512_v3 = vld [vmem:[%s1833_s27 + $0x3f0] sm:$0xff] }
  0x57   : > { %511 = vst [vmem:[%s1838_s10 + $0x1f0] sm:$0xff] %v510_v2  ;;  %513 = vst [vmem:[%s1838_s10 + $0x1f8] sm:$0xff] %v512_v3 }
  0x58 PF: > { %p1326_p0 = scmp.ge.s32.totalorder %s1691_s25, 1  ;;  %p534_p1 = scmp.lt.s32.totalorder %s1691_s25, 19 }
  0x5a   : > { %p535_p2 = pnand %p1326_p0, %p534_p1 }
  0x5b   : > { %s541_s0 = sand.u32 (!%p535_p2), 1, %s1667_s19   ;;  %s548_s28 = sand.u32 (!%p535_p2), 1, %s1659_s17  }
  0x5c   : > { %538 = sbr.rel (%p535_p2) target bundleno = 414 (0x19e), region = 89  ;;  %s1327_s11 = sshll.u32 (!%p535_p2), %s541_s0, 5 }
  0x5d   : > { %s1328_s26 = sshll.u32 (!%p535_p2), %s548_s28, 9  ;;  %s581_s5 = sand.u32 (!%p535_p2), 1, %s1651_s15  }
  0x5e   : > { %s1330_s29 = sshll.u32 (!%p535_p2), %s1679_s22, 1  ;;  %s1329_s27 = sshll.u32 (!%p535_p2), %s581_s5, 5 }
  0x5f   : > { %p589_p3 = scmp.lt.s32.totalorder (!%p535_p2), %s1330_s29, 3  ;;  %s1981_s19 = scalar_lea.vmem (!%p535_p2), [#allocation3], %s1327_s11 }
  0x60   : > { %s1983_s17 = scalar_lea.vmem (!%p535_p2), [#allocation4], %s1328_s26  ;;  %s1985_s15 = scalar_lea.vmem (!%p535_p2), [#allocation5], %s1329_s27 }
  0x61   : > { %p1332_p4 = scmp.ne.s32.totalorder (!%p535_p2), %s1675_s21, 0 }
  0x63   : > { %s2149_s29 = smov (!%p589_p3, %s1330_s29), 3  ;;  %603 = sbr.rel (%p1332_p4) target bundleno = 106 (0x6a), region = 101 }
  0x64   : > { %s591_s9 = scalar_lea.vmem %s2116_s2, %s2149_s29  ;;  %s596_s1 = scalar_lea.vmem %s2117_s3, %s2149_s29  ;;  %v1693_v4 = vmov (!%p1332_p4), 0.0  }
  0x65   : > { %604 = vst [vmem:[#allocation2] sm:$0xff] (!%p1332_p4), %v1693_v4  ;;  %605 = vst [vmem:[#allocation2 + $0x8] sm:$0xff] (!%p1332_p4), %v1693_v4 }
  0x66   : > { %606 = vst [vmem:[#allocation2 + $0x10] sm:$0xff] (!%p1332_p4), %v1693_v4  ;;  %607 = vst [vmem:[#allocation2 + $0x18] sm:$0xff] (!%p1332_p4), %v1693_v4 }
  0x6a PF: > { %v1503_v5 = vld [vmem:[%s1983_s17 + $0x4] ss:$8 sps:$4 sm:$0xff]   ;;  %v1507_v7 = vld [vmem:[%s1983_s17] ss:$8 sps:$4 sm:$0xff]   ;;  %v1509_v9 = vld [vmem:[%s1983_s17 + $0x14] ss:$8 sps:$4 sm:$0xff]  }
  0x6b   : > { %v1505_v6 = vld [vmem:[%s1983_s17 + $0x104] ss:$8 sps:$4 sm:$0xff]   ;;  %1020 = vmatprep.subr.bf16.mxu1 %v1503_v5  ;;  %v1508_v8 = vld [vmem:[%s1983_s17 + $0x100] ss:$8 sps:$4 sm:$0xff]   ;;  %v1511_v10 = vld [vmem:[%s1983_s17 + $0x114] ss:$8 sps:$4 sm:$0xff]  }
  0x6c   : > { %1063 = vmatprep.subr.bf16.mxu0 %v1505_v6  ;;  %1021 = vmatpush1.bf16.msra.mxu1 %v1507_v7  ;;  %v1513_v11 = vld [vmem:[%s1983_s17 + $0x10] ss:$8 sps:$4 sm:$0xff]   ;;  %v1515_v13 = vld [vmem:[%s1983_s17 + $0x24] ss:$8 sps:$4 sm:$0xff]   ;;  %v1519_v15 = vld [vmem:[%s1983_s17 + $0x20] ss:$8 sps:$4 sm:$0xff]  }
  0x6d   : > { %1064 = vmatpush1.bf16.msra.mxu0 %v1508_v8  ;;  %1022 = vmatprep.subr.bf16.mxu1 %v1509_v9  ;;  %v1514_v12 = vld [vmem:[%s1983_s17 + $0x110] ss:$8 sps:$4 sm:$0xff]   ;;  %v1517_v14 = vld [vmem:[%s1983_s17 + $0x124] ss:$8 sps:$4 sm:$0xff]   ;;  %v1520_v16 = vld [vmem:[%s1983_s17 + $0x120] ss:$8 sps:$4 sm:$0xff]  }
  0x6e   : > { %1065 = vmatprep.subr.bf16.mxu0 %v1511_v10  ;;  %v1521_v17 = vld [vmem:[%s1983_s17 + $0x34] ss:$8 sps:$4 sm:$0xff]   ;;  %v1525_v19 = vld [vmem:[%s1983_s17 + $0x30] ss:$8 sps:$4 sm:$0xff]   ;;  %v1527_v21 = vld [vmem:[%s1983_s17 + $0x44] ss:$8 sps:$4 sm:$0xff]  }
  0x6f   : > { %v1523_v18 = vld [vmem:[%s1983_s17 + $0x134] ss:$8 sps:$4 sm:$0xff]   ;;  %v1526_v20 = vld [vmem:[%s1983_s17 + $0x130] ss:$8 sps:$4 sm:$0xff]   ;;  %v1529_v22 = vld [vmem:[%s1983_s17 + $0x144] ss:$8 sps:$4 sm:$0xff]  }
  0x70   : > { %1023 = vmatpush1.bf16.msra.mxu1 %v1513_v11  ;;  %v1531_v23 = vld [vmem:[%s1983_s17 + $0x40] ss:$8 sps:$4 sm:$0xff]   ;;  %v1533_v25 = vld [vmem:[%s1983_s17 + $0x54] ss:$8 sps:$4 sm:$0xff]   ;;  %v1537_v27 = vld [vmem:[%s1983_s17 + $0x50] ss:$8 sps:$4 sm:$0xff]  }
  0x71   : > { %1066 = vmatpush1.bf16.msra.mxu0 %v1514_v12  ;;  %1024 = vmatprep.subr.bf16.mxu1 %v1515_v13  ;;  %v1532_v24 = vld [vmem:[%s1983_s17 + $0x140] ss:$8 sps:$4 sm:$0xff]   ;;  %v1535_v26 = vld [vmem:[%s1983_s17 + $0x154] ss:$8 sps:$4 sm:$0xff]   ;;  %v1538_v28 = vld [vmem:[%s1983_s17 + $0x150] ss:$8 sps:$4 sm:$0xff]  }
  0x72   : > { %1067 = vmatprep.subr.bf16.mxu0 %v1517_v14  ;;  %v1539_v29 = vld [vmem:[%s1983_s17 + $0x64] ss:$8 sps:$4 sm:$0xff]   ;;  %v1543_v31 = vld [vmem:[%s1983_s17 + $0x60] ss:$8 sps:$4 sm:$0xff]   ;;  %v1545_v33 = vld [vmem:[%s1983_s17 + $0x74] ss:$8 sps:$4 sm:$0xff]  }
  0x73   : > { %v1541_v30 = vld [vmem:[%s1983_s17 + $0x164] ss:$8 sps:$4 sm:$0xff]   ;;  %v1544_v32 = vld [vmem:[%s1983_s17 + $0x160] ss:$8 sps:$4 sm:$0xff]   ;;  %v1547_v34 = vld [vmem:[%s1983_s17 + $0x174] ss:$8 sps:$4 sm:$0xff]  }
  0x74   : > { %1025 = vmatpush1.bf16.msra.mxu1 %v1519_v15  ;;  %v1549_v35 = vld [vmem:[%s1983_s17 + $0x70] ss:$8 sps:$4 sm:$0xff]   ;;  %v1551_v37 = vld [vmem:[%s1983_s17 + $0x84] ss:$8 sps:$4 sm:$0xff]   ;;  %v1555_v39 = vld [vmem:[%s1983_s17 + $0x80] ss:$8 sps:$4 sm:$0xff]  }
  0x75   : > { %1068 = vmatpush1.bf16.msra.mxu0 %v1520_v16  ;;  %1026 = vmatprep.subr.bf16.mxu1 %v1521_v17  ;;  %v1550_v36 = vld [vmem:[%s1983_s17 + $0x170] ss:$8 sps:$4 sm:$0xff]   ;;  %v1553_v38 = vld [vmem:[%s1983_s17 + $0x184] ss:$8 sps:$4 sm:$0xff]   ;;  %v1556_v40 = vld [vmem:[%s1983_s17 + $0x180] ss:$8 sps:$4 sm:$0xff]  }
  0x76   : > { %1069 = vmatprep.subr.bf16.mxu0 %v1523_v18  ;;  %v1557_v41 = vld [vmem:[%s1983_s17 + $0x94] ss:$8 sps:$4 sm:$0xff]   ;;  %v1561_v43 = vld [vmem:[%s1983_s17 + $0x90] ss:$8 sps:$4 sm:$0xff]   ;;  %v1563_v45 = vld [vmem:[%s1983_s17 + $0xa4] ss:$8 sps:$4 sm:$0xff]  }
  0x77   : > { %v1559_v42 = vld [vmem:[%s1983_s17 + $0x194] ss:$8 sps:$4 sm:$0xff]   ;;  %v1562_v44 = vld [vmem:[%s1983_s17 + $0x190] ss:$8 sps:$4 sm:$0xff]   ;;  %v1565_v46 = vld [vmem:[%s1983_s17 + $0x1a4] ss:$8 sps:$4 sm:$0xff]  }
  0x78   : > { %1027 = vmatpush1.bf16.msra.mxu1 %v1525_v19  ;;  %v1567_v47 = vld [vmem:[%s1983_s17 + $0xa0] ss:$8 sps:$4 sm:$0xff]   ;;  %v1569_v49 = vld [vmem:[%s1983_s17 + $0xb4] ss:$8 sps:$4 sm:$0xff]   ;;  %v1573_v51 = vld [vmem:[%s1983_s17 + $0xb0] ss:$8 sps:$4 sm:$0xff]  }
  0x79   : > { %1070 = vmatpush1.bf16.msra.mxu0 %v1526_v20  ;;  %1028 = vmatprep.subr.bf16.mxu1 %v1527_v21  ;;  %v1568_v48 = vld [vmem:[%s1983_s17 + $0x1a0] ss:$8 sps:$4 sm:$0xff]   ;;  %v1571_v50 = vld [vmem:[%s1983_s17 + $0x1b4] ss:$8 sps:$4 sm:$0xff]   ;;  %v1574_v53 = vld [vmem:[%s1983_s17 + $0x1b0] ss:$8 sps:$4 sm:$0xff]  }
  0x7a   : > { %1071 = vmatprep.subr.bf16.mxu0 %v1529_v22  ;;  %v1601_v52 = vld [vmem:[%s1981_s19 + $0x4] ss:$16 sps:$4 sm:$0xff]   ;;  %v1604_v56 = vld [vmem:[%s1981_s19 + $0xc] ss:$16 sps:$4 sm:$0xff]   ;;  %v1579_v57 = vld [vmem:[%s1983_s17 + $0xc0] ss:$8 sps:$4 sm:$0xff]  }
  0x7b   : > { %v1575_v54 = vld [vmem:[%s1983_s17 + $0xc4] ss:$8 sps:$4 sm:$0xff]   ;;  %1052 = vmatprep.mubr.bf16.mxu1 %v1601_v52  ;;  %1095 = vmatprep.mubr.bf16.mxu0 %v1604_v56  ;;  %v1580_v58 = vld [vmem:[%s1983_s17 + $0x1c0] ss:$8 sps:$4 sm:$0xff]   ;;  %v1581_v59 = vld [vmem:[%s1983_s17 + $0xd4] ss:$8 sps:$4 sm:$0xff]  }
  0x7c   : > { %1029 = vmatpush1.bf16.msra.mxu1 %v1531_v23  ;;  %v1577_v55 = vld [vmem:[%s1983_s17 + $0x1c4] ss:$8 sps:$4 sm:$0xff]   ;;  %v1583_v60 = vld [vmem:[%s1983_s17 + $0x1d4] ss:$8 sps:$4 sm:$0xff]   ;;  %v1585_v61 = vld [vmem:[%s1983_s17 + $0xd0] ss:$8 sps:$4 sm:$0xff]  }
  0x7d   : > { %1072 = vmatpush1.bf16.msra.mxu0 %v1532_v24  ;;  %1030 = vmatprep.subr.bf16.mxu1 %v1533_v25  ;;  %v1586_v62 = vld [vmem:[%s1983_s17 + $0x1d0] ss:$8 sps:$4 sm:$0xff]   ;;  %v1587_v63 = vld [vmem:[%s1983_s17 + $0xe4] ss:$8 sps:$4 sm:$0xff]   ;;  %v1591_v1 = vld [vmem:[%s1983_s17 + $0xe0] ss:$8 sps:$4 sm:$0xff]  }
  0x7e   : > { %1073 = vmatprep.subr.bf16.mxu0 %v1535_v26  ;;  %v1589_v0 = vld [vmem:[%s1983_s17 + $0x1e4] ss:$8 sps:$4 sm:$0xff]   ;;  %v1592_v2 = vld [vmem:[%s1983_s17 + $0x1e0] ss:$8 sps:$4 sm:$0xff]   ;;  %v1593_v3 = vld [vmem:[%s1983_s17 + $0xf4] ss:$8 sps:$4 sm:$0xff]  }
  0x7f   : > { %v1595_v4 = vld [vmem:[%s1983_s17 + $0x1f4] ss:$8 sps:$4 sm:$0xff]   ;;  %v1597_v5 = vld [vmem:[%s1983_s17 + $0xf0] ss:$8 sps:$4 sm:$0xff]   ;;  %v608_v10 = vld [vmem:[#allocation2] sm:$0xff]  ;;  %p1401_p5 = scmp.ne.s32.totalorder %s1675_s21, 8 }
  0x80   : > { %1031 = vmatpush1.bf16.msra.mxu1 %v1537_v27  ;;  %v1598_v6 = vld [vmem:[%s1983_s17 + $0x1f0] ss:$8 sps:$4 sm:$0xff]   ;;  %v609_v14 = vld [vmem:[#allocation2 + $0x8] sm:$0xff] }
  0x81   : > { %1074 = vmatpush1.bf16.msra.mxu0 %v1538_v28  ;;  %1032 = vmatprep.subr.bf16.mxu1 %v1539_v29  ;;  %v1599_v7 = vld [vmem:[%s1981_s19] ss:$16 sps:$4 sm:$0xff]   ;;  %v1602_v8 = vld [vmem:[%s1981_s19 + $0x8] ss:$16 sps:$4 sm:$0xff]   ;;  %v1124_v29 = vlaneseq (!%p1401_p5) }
  0x82   : > { %1075 = vmatprep.subr.bf16.mxu0 %v1541_v30  ;;  %v610_v18 = vld [vmem:[#allocation2 + $0x10] sm:$0xff]  ;;  %v611_v23 = vld [vmem:[#allocation2 + $0x18] sm:$0xff] }
  0x83   : > { %v1125_v30 = vshrl.u32 (!%p1401_p5), %v1124_v29, 7 }
  0x84   : > { %1033 = vmatpush1.bf16.msra.mxu1 %v1543_v31  ;;  %v1122_v31 = vld [vmem:[%s591_s9] sm:$0x3] (!%p1401_p5) }
  0x85   : > { %1076 = vmatpush1.bf16.msra.mxu0 %v1544_v32  ;;  %1034 = vmatprep.subr.bf16.mxu1 %v1545_v33  ;;  %v1138_v32 = vld [vmem:[%s596_s1] sm:$0x3] (!%p1401_p5) }
  0x86   : > { %1077 = vmatprep.subr.bf16.mxu0 %v1547_v34  ;;  %v1126_v34 = vsub.s32 (!%p1401_p5), 0, %v1125_v30 }
  0x88   : > { %1035 = vmatpush1.bf16.msra.mxu1 %v1549_v35  ;;  %v1130_v35 = vsub.s32 (!%p1401_p5), 1, %v1125_v30 }
  0x89   : > { %1078 = vmatpush1.bf16.msra.mxu0 %v1550_v36  ;;  %1036 = vmatprep.subr.bf16.mxu1 %v1551_v37 }
  0x8a   : > { %1079 = vmatprep.subr.bf16.mxu0 %v1553_v38 }
  0x8c   : > { %1037 = vmatpush1.bf16.msra.mxu1 %v1555_v39  ;;  %v1127_v39 = vrot.slane (!%p1401_p5), %v1122_v31, %v1126_v34 }
  0x8d   : > { %1080 = vmatpush1.bf16.msra.mxu0 %v1556_v40  ;;  %1038 = vmatprep.subr.bf16.mxu1 %v1557_v41  ;;  %v1143_v40 = vrot.slane (!%p1401_p5), %v1138_v32, %v1126_v34  ;;  %v1131_v41 = vrot.slane (!%p1401_p5), %v1122_v31, %v1130_v35 }
  0x8e   : > { %1081 = vmatprep.subr.bf16.mxu0 %v1559_v42  ;;  %v1147_v42 = vrot.slane (!%p1401_p5), %v1138_v32, %v1130_v35 }
  0x90   : > { %1039 = vmatpush1.bf16.msra.mxu1 %v1561_v43 }
  0x91   : > { %1082 = vmatpush1.bf16.msra.mxu0 %v1562_v44  ;;  %1040 = vmatprep.subr.bf16.mxu1 %v1563_v45 }
  0x92   : > { %1083 = vmatprep.subr.bf16.mxu0 %v1565_v46 }
  0x94   : > { %1041 = vmatpush1.bf16.msra.mxu1 %v1567_v47 }
  0x95   : > { %1084 = vmatpush1.bf16.msra.mxu0 %v1568_v48  ;;  %1042 = vmatprep.subr.bf16.mxu1 %v1569_v49 }
  0x96   : > { %1085 = vmatprep.subr.bf16.mxu0 %v1571_v50 }
  0x98   : > { %1043 = vmatpush1.bf16.msra.mxu1 %v1573_v51 }
  0x99   : > { %1086 = vmatpush1.bf16.msra.mxu0 %v1574_v53  ;;  %1044 = vmatprep.subr.bf16.mxu1 %v1575_v54 }
  0x9a   : > { %1087 = vmatprep.subr.bf16.mxu0 %v1577_v55 }
  0x9c   : > { %1045 = vmatpush1.bf16.msra.mxu1 %v1579_v57 }
  0x9d   : > { %1088 = vmatpush1.bf16.msra.mxu0 %v1580_v58  ;;  %1046 = vmatprep.subr.bf16.mxu1 %v1581_v59 }
  0x9e   : > { %1089 = vmatprep.subr.bf16.mxu0 %v1583_v60 }
  0xa0   : > { %1047 = vmatpush1.bf16.msra.mxu1 %v1585_v61 }
  0xa1   : > { %1090 = vmatpush1.bf16.msra.mxu0 %v1586_v62  ;;  %1048 = vmatprep.subr.bf16.mxu1 %v1587_v63 }
  0xa2   : > { %1091 = vmatprep.subr.bf16.mxu0 %v1589_v0 }
  0xa4   : > { %1049 = vmatpush1.bf16.msra.mxu1 %v1591_v1 }
  0xa5   : > { %1092 = vmatpush1.bf16.msra.mxu0 %v1592_v2  ;;  %1050 = vmatprep.subr.bf16.mxu1 %v1593_v3 }
  0xa6   : > { %1093 = vmatprep.subr.bf16.mxu0 %v1595_v4 }
  0xa8   : > { %1051 = vmatpush1.bf16.msra.mxu1 %v1597_v5 }
  0xa9   : > { %1094 = vmatpush1.bf16.msra.mxu0 %v1598_v6 }
  0xab   : > { %1053 = vmatmul.mubr.bf16.vlgmr.msra.gmra.mrb[0].mxu1 %v1599_v7 }
  0xac   : > { %1096 = vmatmul.mubr.bf16.vlgmr.msra.gmra.mrb[0].mxu0 %v1602_v8 }
 0x17e   : > { %v1054_v9 = vpop.f32.mrb[0].mxu1 }
 0x17f   : > { %v1097_v11 = vpop.f32.mrb[0].mxu0  ;;  %v1056_v13 = vpop.f32.mrb[1].mxu1 }
 0x180   : > { %v1098_v12 = vadd.f32 %v1097_v11, %v1054_v9  ;;  %v1099_v15 = vpop.f32.mrb[1].mxu0  ;;  %v1058_v17 = vpop.f32.mrb[2].mxu1 }
 0x181   : > { %v1100_v16 = vadd.f32 %v1099_v15, %v1056_v13  ;;  %v1101_v19 = vpop.f32.mrb[2].mxu0  ;;  %v1060_v22 = vpop.f32.mrb[3].mxu1  ;;  %1117 = sbr.rel (%p1401_p5) target bundleno = 406 (0x196), region = 105 }
 0x182   : > { %v1106_v20 = vadd.f32 %v1098_v12, %v608_v10  ;;  %v1102_v21 = vadd.f32 %v1101_v19, %v1058_v17  ;;  %v1103_v24 = vpop.f32.mrb[3].mxu0 }
 0x183   : > { %v1107_v25 = vadd.f32 %v1100_v16, %v609_v14  ;;  %v1104_v26 = vadd.f32 %v1103_v24, %v1060_v22 }
 0x184   : > { %1110 = vst [vmem:[#allocation2] sm:$0xff] %v1106_v20  ;;  %v1108_v27 = vadd.f32 %v1102_v21, %v610_v18 }
 0x185   : > { %1111 = vst [vmem:[#allocation2 + $0x8] sm:$0xff] %v1107_v25  ;;  %v1109_v28 = vadd.f32 %v1104_v26, %v611_v23 }
 0x186   : > { %1112 = vst [vmem:[#allocation2 + $0x10] sm:$0xff] %v1108_v27 }
 0x187   : > { %1113 = vst [vmem:[#allocation2 + $0x18] sm:$0xff] %v1109_v28 }
 0x18b   : > { %v1118_v33 = vld [vmem:[#allocation2] sm:$0xff] }
 0x18c   : > { %v1119_v36 = vld [vmem:[#allocation2 + $0x8] sm:$0xff]  ;;  %v1134_v43 = vmul.f32 %v1127_v39, %v1118_v33 }
 0x18d   : > { %v1120_v37 = vld [vmem:[#allocation2 + $0x10] sm:$0xff]  ;;  %v1135_v44 = vmul.f32 %v1131_v41, %v1119_v36 }
 0x18e   : > { %v1121_v38 = vld [vmem:[#allocation2 + $0x18] sm:$0xff]  ;;  %v1136_v45 = vmul.f32 %v1127_v39, %v1120_v37  ;;  %v1150_v47 = vadd.f32 %v1143_v40, %v1134_v43 }
 0x18f   : > { %v1137_v46 = vmul.f32 %v1131_v41, %v1121_v38  ;;  %v1151_v48 = vadd.f32 %v1147_v42, %v1135_v44 }
 0x190   : > { %v1152_v49 = vadd.f32 %v1143_v40, %v1136_v45  ;;  %v1154_v51 = vmax.f32 %v1150_v47, 0.0 }
 0x191   : > { %v1153_v50 = vadd.f32 %v1147_v42, %v1137_v46  ;;  %v1155_v52 = vmax.f32 %v1151_v48, 0.0 }
 0x192   : > { %v1156_v53 = vmax.f32 %v1152_v49, 0.0  ;;  %1158 = vst [vmem:[%s1985_s15] sm:$0xff] %v1154_v51 }
 0x193   : > { %v1157_v54 = vmax.f32 %v1153_v50, 0.0  ;;  %1159 = vst [vmem:[%s1985_s15 + $0x8] sm:$0xff] %v1155_v52 }
 0x194   : > { %1160 = vst [vmem:[%s1985_s15 + $0x10] sm:$0xff] %v1156_v53 }
 0x195   : > { %1161 = vst [vmem:[%s1985_s15 + $0x18] sm:$0xff] %v1157_v54 }
 0x196 PF: > { %1168 = sbr.rel (!%p1813_p12) target bundleno = 414 (0x19e), region = 109  ;;  %s1409_s1 = sshll.u32 (%p1813_p12), %s1679_s22, 4 }
 0x197   : > { %s1174_s29 = scalar_lea.vmem (%p1813_p12), %s2118_s4, %s1409_s1 }
 0x199   : > { %v1187_v55 = vld [vmem:[%s1985_s15] sm:$0xff] (%p1813_p12) }
 0x19a   : > { %v1189_v56 = vld [vmem:[%s1985_s15 + $0x8] sm:$0xff] (%p1813_p12)  ;;  %1188 = vst [vmem:[%s1174_s29] sm:$0xff] (%p1813_p12), %v1187_v55 }
 0x19b   : > { %v1191_v57 = vld [vmem:[%s1985_s15 + $0x10] sm:$0xff] (%p1813_p12)  ;;  %1190 = vst [vmem:[%s1174_s29 + $0x8] sm:$0xff] (%p1813_p12), %v1189_v56 }
 0x19c   : > { %v1193_v58 = vld [vmem:[%s1985_s15 + $0x18] sm:$0xff] (%p1813_p12)  ;;  %1192 = vst [vmem:[%s1174_s29 + $0x20] sm:$0xff] (%p1813_p12), %v1191_v57 }
 0x19d   : > { %1194 = vst [vmem:[%s1174_s29 + $0x28] sm:$0xff] %v1193_v58 }
 0x19e PF: > { %s14_s25 = sadd.s32 1, %s1691_s25   ;;  %s2130_s14 = sld [smem:[#allocation6_spill]] }
 0x19f   : > { %p11_p6 = scmp.ge.s32.totalorder %s14_s25, 20   ;;  %s2131_s27 = sld [smem:[#allocation7_spill]] }
 0x1a0   : > { %s2132_s15 = smov %s1655_s16  ;;  %s2133_s16 = smov %s1811_s13 }
 0x1a1   : > { %s2134_s17 = smov %s1663_s18  ;;  %s2135_s18 = smov %s1808_s12 }
 0x1a2   : > { %s2136_s19 = smov %s1671_s20  ;;  %s2137_s20 = smov %s1794_s7 }
 0x1a3   : > { %s2138_s21 = smov %s1683_s23  ;;  %s2139_s22 = smov %s1687_s24 }
 0x1a4   : > { %s2140_s23 = smov %s2130_s14  ;;  %13 = sbr.rel (!%p11_p6) target bundleno = 9 (0x9), region = 177 }
 0x1a5   : > { %s2141_s24 = smov %s2131_s27 }

// kernel: _lambda_.42
= control target key start
LH: loop header
LB: loop body
LE: loop exit
PB: predicated region body
PF: predicated region fallthrough
CT: control target
= control target key end

     0   :  { %s314_s6 = smov 0   ;;  %s316_s7 = smov 0   ;;  %s368_s0 = inlined_call_operand.vmem [shape: f32[2,4,512], index: 0, kind: input, shape index: {}]   ;;  %s369_s1 = inlined_call_operand.vmem [shape: f32[2,512], index: 1, kind: output, shape index: {}]  }
   0x1   :  { %s318_s8 = smov 0  }
   0x2 LB: > { %s245_s9 = sadd.s32 4294967295, %s302_s8   ;;  %s331_s10 = sadd.s32 1, %s302_s8   ;;  %s302_s8 = sphi %s318_s8, %s372_s8   ;;  %s298_s7 = sphi %s316_s7, %s371_s7   ;;  %s294_s6 = sphi %s314_s6, %s370_s6  }
   0x3   : > { %s15_s11 = ssub.s32 %s302_s8, %s331_s10  ;;  %s18_s12 = sadd.s32 1, %s298_s7 }
   0x4   : > { %p16_p0 = scmp.eq.s32.totalorder %s15_s11, 0  ;;  %p25_p1 = scmp.ne.s32.totalorder %s298_s7, %s294_s6 }
   0x5   : > { %p26_p2 = scmp.eq.s32.totalorder %s302_s8, 0  ;;  %p248_p4 = scmp.ge.s32.totalorder %s302_s8, 4 }
   0x6   : > { %s340_s13 = scalar_select %p16_p0, %s298_s7, %s18_s12  }
   0x7   : > { %p27_p3 = por %p26_p2, %p25_p1  ;;  %77 = sbr.rel (%p248_p4) target bundleno = 21 (0x15), region = 16 }
   0xe   : > { %80 = sbr.rel (!%p27_p3) target bundleno = 21 (0x15), region = 20  ;;  %s82_s14 = sand.u32 (%p27_p3), 1, %s298_s7  }
   0xf   : > { %s250_s15 = sshll.u32 (%p27_p3), %s302_s8, 2  ;;  %s249_s16 = sshll.u32 (%p27_p3), %s82_s14, 3 }
  0x10   : > { %s86_s19 = scalar_lea.vmem (%p27_p3), %s368_s0, %s250_s15  ;;  %s84_s20 = scalar_lea.vmem (%p27_p3), [#allocation2], %s249_s16 }
  0x11   : > { %v102_v0 = vld [vmem:[%s86_s19] sm:$0xf] (%p27_p3)  ;;  %v104_v1 = vld [vmem:[%s86_s19 + $0x10] sm:$0xf] (%p27_p3) }
  0x12   : > { %103 = vst [vmem:[%s84_s20] sm:$0xf] (%p27_p3), %v102_v0  ;;  %105 = vst [vmem:[%s84_s20 + $0x4] sm:$0xf] (%p27_p3), %v104_v1 }
  0x15 PF: > { %p251_p5 = scmp.ge.s32.totalorder %s302_s8, 1  ;;  %p131_p6 = scmp.lt.s32.totalorder %s302_s8, 5 }
  0x17   : > { %p132_p7 = pnand %p251_p5, %p131_p6 }
  0x18   : > { %s138_s21 = sand.u32 (!%p132_p7), 1, %s294_s6   ;;  %vm162_vm0 = vcmask (!%p132_p7), 1043456   ;;  %p156_p8 = scmp.lt.s32.totalorder (!%p132_p7), %s245_s9, 3  ;;  %vm182_vm1 = vcmask (!%p132_p7), 1041409  }
  0x19   : > { %135 = sbr.rel (%p132_p7) target bundleno = 45 (0x2d), region = 61  ;;  %s252_s22 = sshll.u32 (!%p132_p7), %s138_s21, 3 }
  0x1a   : > { %s140_s23 = scalar_lea.vmem (!%p132_p7), [#allocation2], %s252_s22 }
  0x1b   : > { %v160_v2 = vld [vmem:[%s140_s23] sm:$0xf] (!%p132_p7)  ;;  %v161_v3 = vld [vmem:[%s140_s23 + $0x4] sm:$0xf] (!%p132_p7) }
  0x1c   : > { %v163_v4 = vsel (!%p132_p7), %vm162_vm0, %v160_v2, 0.0  ;;  %v170_v5 = vsel (!%p132_p7), %vm162_vm0, %v161_v3, 0.0 }
  0x1d   : > { %v164_v6 = vrot.slane (!%p132_p7), %v163_v4, 4  ;;  %v171_v7 = vrot.slane (!%p132_p7), %v170_v5, 4 }
  0x1f   : > { %v165_v8 = vadd.f32 (!%p132_p7), %v164_v6, %v163_v4  ;;  %v172_v9 = vadd.f32 (!%p132_p7), %v171_v7, %v170_v5 }
  0x20   : > { %s374_s9 = smov (!%p156_p8, %s245_s9), 3 }
  0x21   : > { %v166_v10 = vrot.slane %v165_v8, 2  ;;  %v173_v11 = vrot.slane %v172_v9, 2  ;;  %s253_s24 = sshll.u32 %s374_s9, 1 }
  0x22   : > { %s159_s27 = scalar_lea.vmem %s369_s1, %s253_s24 }
  0x23   : > { %v167_v12 = vadd.f32 %v166_v10, %v165_v8  ;;  %v174_v13 = vadd.f32 %v173_v11, %v172_v9 }
  0x25   : > { %v168_v14 = vrot.slane %v167_v12, 1  ;;  %v175_v15 = vrot.slane %v174_v13, 1 }
  0x27   : > { %v169_v16 = vadd.f32 %v168_v14, %v167_v12  ;;  %v176_v17 = vadd.f32 %v175_v15, %v174_v13 }
  0x29   : > { %v178_v18 = vmul.f32 0.25, %v169_v16  ;;  %v179_v19 = vmul.f32 0.25, %v176_v17 }
  0x2b   : > { %v183_v20 = vsel %vm182_vm1, %v179_v19, %v178_v18 }
  0x2c   : > { %185 = vst [vmem:[%s159_s27] sm:$0x3] %v183_v20 }
  0x2d PF: > { %p8_p9 = scmp.ge.s32.totalorder %s331_s10, 6   ;;  %s370_s6 = smov %s298_s7 }
  0x2e   : > { %s371_s7 = smov %s340_s13  ;;  %s372_s8 = smov %s331_s10 }
  0x2f   :  { %10 = sbr.rel (!%p8_p9) target bundleno = 2 (0x2), region = 100 }

// kernel: _lambda_.43
= control target key start
LH: loop header
LB: loop body
LE: loop exit
PB: predicated region body
PF: predicated region fallthrough
CT: control target
= control target key end

     0   :  { %s686_s1 = inlined_call_operand.vmem [shape: bf16[512,128], index: 1, kind: input, shape index: {}]   ;;  %s687_s0 = inlined_call_operand.vmem [shape: bf16[16,512], index: 0, kind: input, shape index: {}]   ;;  %s688_s2 = inlined_call_operand.vmem [shape: f32[1,128], index: 2, kind: input, shape index: {}]   ;;  %s689_s3 = inlined_call_operand.vmem [shape: f32[1,128], index: 3, kind: input, shape index: {}]   ;;  %s690_s4 = inlined_call_operand.vmem [shape: f32[16,128], index: 4, kind: output, shape index: {}]  }
   0x1   :  { %v503_v0 = vld [vmem:[%s686_s1 + $0x40] sm:$0xff]   ;;  %v507_v4 = vld [vmem:[%s686_s1 + $0x48] sm:$0xff]   ;;  %v511_v8 = vld [vmem:[%s686_s1 + $0x50] sm:$0xff]  }
   0x2   :  { %v504_v1 = vld [vmem:[%s686_s1 + $0xc0] sm:$0xff]   ;;  %459 = vmatprep.subr.bf16.mxu0 %v503_v0  ;;  %v508_v5 = vld [vmem:[%s686_s1 + $0xc8] sm:$0xff]   ;;  %v512_v9 = vld [vmem:[%s686_s1 + $0xd0] sm:$0xff]  }
   0x3   :  { %v505_v2 = vld [vmem:[%s686_s1] sm:$0xff]   ;;  %481 = vmatprep.subr.bf16.mxu1 %v504_v1  ;;  %v509_v6 = vld [vmem:[%s686_s1 + $0x8] sm:$0xff]   ;;  %v513_v10 = vld [vmem:[%s686_s1 + $0x10] sm:$0xff]  }
   0x4   :  { %v506_v3 = vld [vmem:[%s686_s1 + $0x80] sm:$0xff]   ;;  %460 = vmatpush3.bf16.msra.mxu0 %v505_v2  ;;  %v510_v7 = vld [vmem:[%s686_s1 + $0x88] sm:$0xff]   ;;  %v514_v11 = vld [vmem:[%s686_s1 + $0x90] sm:$0xff]  }
   0x5   :  { %482 = vmatpush3.bf16.msra.mxu1 %v506_v3  ;;  %461 = vmatprep.subr.bf16.mxu0 %v507_v4  ;;  %v515_v12 = vld [vmem:[%s686_s1 + $0x58] sm:$0xff]   ;;  %v519_v16 = vld [vmem:[%s686_s1 + $0x60] sm:$0xff]   ;;  %v523_v20 = vld [vmem:[%s686_s1 + $0x68] sm:$0xff]  }
   0x6   :  { %483 = vmatprep.subr.bf16.mxu1 %v508_v5  ;;  %v516_v13 = vld [vmem:[%s686_s1 + $0xd8] sm:$0xff]   ;;  %v520_v17 = vld [vmem:[%s686_s1 + $0xe0] sm:$0xff]   ;;  %v524_v21 = vld [vmem:[%s686_s1 + $0xe8] sm:$0xff]  }
   0x7   :  { %v517_v14 = vld [vmem:[%s686_s1 + $0x18] sm:$0xff]   ;;  %v521_v18 = vld [vmem:[%s686_s1 + $0x20] sm:$0xff]   ;;  %v525_v22 = vld [vmem:[%s686_s1 + $0x28] sm:$0xff]  }
   0x8   :  { %462 = vmatpush3.bf16.msra.mxu0 %v509_v6  ;;  %v518_v15 = vld [vmem:[%s686_s1 + $0x98] sm:$0xff]   ;;  %v522_v19 = vld [vmem:[%s686_s1 + $0xa0] sm:$0xff]   ;;  %v526_v23 = vld [vmem:[%s686_s1 + $0xa8] sm:$0xff]  }
   0x9   :  { %484 = vmatpush3.bf16.msra.mxu1 %v510_v7  ;;  %463 = vmatprep.subr.bf16.mxu0 %v511_v8  ;;  %v527_v24 = vld [vmem:[%s686_s1 + $0x70] sm:$0xff]   ;;  %v531_v28 = vld [vmem:[%s686_s1 + $0x78] sm:$0xff]   ;;  %v457_v45 = vld [vmem:[%s688_s2] ss:$0 sm:$0xff] }
   0xa   :  { %485 = vmatprep.subr.bf16.mxu1 %v512_v9  ;;  %v528_v25 = vld [vmem:[%s686_s1 + $0xf0] sm:$0xff]   ;;  %v532_v29 = vld [vmem:[%s686_s1 + $0xf8] sm:$0xff]   ;;  %v458_v50 = vld [vmem:[%s689_s3] ss:$0 sm:$0xff] }
   0xb   :  { %v529_v26 = vld [vmem:[%s686_s1 + $0x30] sm:$0xff]   ;;  %v533_v30 = vld [vmem:[%s686_s1 + $0x38] sm:$0xff]  }
   0xc   :  { %464 = vmatpush3.bf16.msra.mxu0 %v513_v10  ;;  %v530_v27 = vld [vmem:[%s686_s1 + $0xb0] sm:$0xff]   ;;  %v534_v31 = vld [vmem:[%s686_s1 + $0xb8] sm:$0xff]  }
   0xd   :  { %486 = vmatpush3.bf16.msra.mxu1 %v514_v11  ;;  %465 = vmatprep.subr.bf16.mxu0 %v515_v12  ;;  %v535_v32 = vld [vmem:[%s687_s0] ss:$16 sps:$4 sm:$0xff]   ;;  %v537_v33 = vld [vmem:[%s687_s0 + $0x4] ss:$16 sps:$4 sm:$0xff]   ;;  %v538_v34 = vld [vmem:[%s687_s0 + $0x8] ss:$16 sps:$4 sm:$0xff]  }
   0xe   :  { %487 = vmatprep.subr.bf16.mxu1 %v516_v13  ;;  %v540_v35 = vld [vmem:[%s687_s0 + $0xc] ss:$16 sps:$4 sm:$0xff]   ;;  %338 = vmatprep.mubr.bf16.mxu0 %v537_v33 }
   0xf   :  { %379 = vmatprep.mubr.bf16.mxu1 %v540_v35 }
  0x10   :  { %466 = vmatpush3.bf16.msra.mxu0 %v517_v14 }
  0x11   :  { %488 = vmatpush3.bf16.msra.mxu1 %v518_v15  ;;  %467 = vmatprep.subr.bf16.mxu0 %v519_v16 }
  0x12   :  { %489 = vmatprep.subr.bf16.mxu1 %v520_v17 }
  0x14   :  { %468 = vmatpush3.bf16.msra.mxu0 %v521_v18 }
  0x15   :  { %490 = vmatpush3.bf16.msra.mxu1 %v522_v19  ;;  %469 = vmatprep.subr.bf16.mxu0 %v523_v20 }
  0x16   :  { %491 = vmatprep.subr.bf16.mxu1 %v524_v21 }
  0x18   :  { %470 = vmatpush3.bf16.msra.mxu0 %v525_v22 }
  0x19   :  { %492 = vmatpush3.bf16.msra.mxu1 %v526_v23  ;;  %471 = vmatprep.subr.bf16.mxu0 %v527_v24 }
  0x1a   :  { %493 = vmatprep.subr.bf16.mxu1 %v528_v25 }
  0x1c   :  { %472 = vmatpush3.bf16.msra.mxu0 %v529_v26 }
  0x1d   :  { %494 = vmatpush3.bf16.msra.mxu1 %v530_v27  ;;  %473 = vmatprep.subr.bf16.mxu0 %v531_v28 }
  0x1e   :  { %495 = vmatprep.subr.bf16.mxu1 %v532_v29 }
  0x20   :  { %474 = vmatpush3.bf16.msra.mxu0 %v533_v30 }
  0x21   :  { %496 = vmatpush3.bf16.msra.mxu1 %v534_v31 }
  0x23   :  { %339 = vmatmul.mubr.bf16.vlgmr.msra.gmra.mrb[0].mxu0 %v535_v32 }
  0x24   :  { %380 = vmatmul.mubr.bf16.vlgmr.msra.gmra.mrb[0].mxu1 %v538_v34 }
  0xf6   :  { %v475_v36 = vpop.f32.mrb[0].mxu0 }
  0xf7   :  { %v497_v37 = vpop.f32.mrb[0].mxu1  ;;  %v476_v38 = vpop.f32.mrb[1].mxu0 }
  0xf8   :  { %v477_v39 = vadd.f32 %v476_v38, %v475_v36  ;;  %v498_v40 = vpop.f32.mrb[1].mxu1  ;;  %v478_v41 = vpop.f32.mrb[2].mxu0 }
  0xf9   :  { %v499_v42 = vadd.f32 %v498_v40, %v497_v37  ;;  %v500_v43 = vpop.f32.mrb[2].mxu1  ;;  %v479_v44 = vpop.f32.mrb[3].mxu0 }
  0xfa   :  { %v480_v46 = vadd.f32 %v479_v44, %v478_v41  ;;  %v501_v47 = vpop.f32.mrb[3].mxu1 }
  0xfb   :  { %v382_v48 = vadd.f32 %v499_v42, %v477_v39  ;;  %v502_v49 = vadd.f32 %v501_v47, %v500_v43 }
  0xfd   :  { %v404_v51 = vmul.f32 %v457_v45, %v382_v48  ;;  %v385_v52 = vadd.f32 %v502_v49, %v480_v46 }
  0xff   :  { %v413_v53 = vadd.f32 %v458_v50, %v404_v51  ;;  %v405_v54 = vmul.f32 %v457_v45, %v385_v52 }
 0x101   :  { %415 = vst [vmem:[%s690_s4] sm:$0xff] %v413_v53  ;;  %v414_v55 = vadd.f32 %v458_v50, %v405_v54 }
 0x103   :  { %416 = vst [vmem:[%s690_s4 + $0x8] sm:$0xff] %v414_v55 }

</bundles_post_ra>
